<compile_context>
chip_gen: v6e
topology: v6e:2x2x1
jax: 0.10.0
libtpu: 0.0.40
codegen_flags: <defaults>
</compile_context>

<pallas_src>
import functools

import jax
import jax.numpy as jnp
from jax import lax
from jax.experimental import pallas as pl
from jax.experimental.pallas import tpu as pltpu


ONE_THIRD = 1.0 / 3.0


# -----------------------------------------------------------------------------
# Fused Triplet kernel
# -----------------------------------------------------------------------------
def _conv7x7_silu(pad_ref, w_ref, shift_ref, gate):
    """7x7 'same' conv (2 pooled channels -> 1) + folded BN + x*sigmoid(x), *1/3.

    pad_ref:   VMEM (2, A+6, B+6) scratch. Channel 0 = max-pool, 1 = sum-pool
               (mean denominator folded into the weights), interior at
               [3:3+A, 3:3+B], zero border of width 3 (= conv padding).
    w_ref:     SMEM (294,) BN-folded conv weights, 98 per gate
               ([49 max taps | 49 sum taps], tap index = di*7 + dj).
    shift_ref: SMEM (3,) BN-folded bias per gate.
    gate:      python int in {0, 1, 2}.
    Returns the gated (A, B) float32 map (y * sigmoid(y)) / 3.
    """
    a = pad_ref.shape[1] - 6
    b = pad_ref.shape[2] - 6
    base = gate * 98
    # Folded conv-bias / BN shift baked into the accumulator init.
    acc = jnp.full((a, b), shift_ref[gate], jnp.float32)
    for dj in range(7):
        # Hoist the lane (last-axis) shift out of the di loop: 7 shifted loads
        # per pooled channel instead of 49 lane-misaligned slices per channel.
        smx = pad_ref[0, :, dj:dj + b]            # (a+6, b)
        ssm = pad_ref[1, :, dj:dj + b]            # (a+6, b)
        for di in range(7):                       # sublane-only slices inside
            acc = acc + w_ref[base + di * 7 + dj] * smx[di:di + a, :]
            acc = acc + w_ref[base + 49 + di * 7 + dj] * ssm[di:di + a, :]
    # SiLU (out * sigmoid(out)); the final 1/3 of the Triplet combine is applied
    # here on the small map instead of on the full NCHW output.
    return (acc * jax.nn.sigmoid(acc)) * ONE_THIRD


def triplet_kernel(w_ref, shift_ref, x_ref,
                   g_h_ref, g_w_ref, g_s_ref,
                   p_h_ref, p_w_ref, p_s_ref):
    """One batch element: all three SpatialGates from a single read of x.

    x_ref:   VMEM (1, C, H, W)
    g_h_ref: VMEM (1, C, W)  height gate  (pool over H, conv on (C, W) map)
    g_w_ref: VMEM (1, C, H)  width gate   (pool over W, conv on (C, H) map,
                                           taps pre-transposed in the wrapper)
    g_s_ref: VMEM (1, H, W)  spatial gate (pool over C, conv on (H, W) map)
    p_*_ref: VMEM (2, A+6, B+6) zero-padded pooled-map scratches.
    """
    x = x_ref[0].astype(jnp.float32)             # (C, H, W) -- single read of x

    def fill(p_ref, mx, sm):
        a, b = mx.shape
        p_ref[...] = jnp.zeros_like(p_ref)        # zero border = conv padding
        p_ref[0, 3:3 + a, 3:3 + b] = mx
        p_ref[1, 3:3 + a, 3:3 + b] = sm           # raw sum; 1/denom is in taps

    # ChannelPool (max + mean) over each of the three axes, from the same tile.
    fill(p_h_ref, jnp.max(x, axis=1), jnp.sum(x, axis=1))        # (C, W)
    fill(p_w_ref, jnp.max(x, axis=2), jnp.sum(x, axis=2))        # (C, H)
    fill(p_s_ref, jnp.max(x, axis=0), jnp.sum(x, axis=0))        # (H, W)

    g_h_ref[...] = _conv7x7_silu(p_h_ref, w_ref, shift_ref, 0)[None]
    g_w_ref[...] = _conv7x7_silu(p_w_ref, w_ref, shift_ref, 1)[None]
    g_s_ref[...] = _conv7x7_silu(p_s_ref, w_ref, shift_ref, 2)[None]


# -----------------------------------------------------------------------------
# Wrapper
# -----------------------------------------------------------------------------
def _fold_gate_params(gate_params, mean_denom, transpose_taps=False, eps=1e-5):
    """Fold Conv2d(2,1,7) bias + eval-mode BatchNorm2d + mean denominator into
    (98,) weights and a scalar shift."""
    wconv, bias, gamma, beta, rmean, rvar = gate_params
    scale = gamma / jnp.sqrt(rvar + eps)                     # (1,)
    shift = beta + (bias - rmean) * scale                    # (1,)
    wk = wconv[0] * scale                                    # (2, 7, 7)
    # mean-pool taps get 1/denom so the kernel can store raw sums.
    wk = wk * jnp.array([1.0, 1.0 / mean_denom], jnp.float32)[:, None, None]
    if transpose_taps:
        # Width gate: the kernel runs its conv on the (C, H)-oriented map
        # (transpose of PyTorch's (H, C) map), so transpose the spatial taps.
        wk = jnp.transpose(wk, (0, 2, 1))
    return wk.reshape(98).astype(jnp.float32), shift[0].astype(jnp.float32)


def triplet_forward(x, params):
    """Pallas implementation of Triplet.forward (spatial=True). x: (N, C, H, W)."""
    n, c, h, w = x.shape
    w_h, s_h = _fold_gate_params(params["height"], mean_denom=h)
    w_w, s_w = _fold_gate_params(params["width"], mean_denom=w, transpose_taps=True)
    w_s, s_s = _fold_gate_params(params["spatial"], mean_denom=c)
    w_all = jnp.concatenate([w_h, w_w, w_s])                 # (294,)  -> SMEM
    shifts = jnp.stack([s_h, s_w, s_s])                      # (3,)    -> SMEM

    g_h, g_w, g_s = pl.pallas_call(
        triplet_kernel,
        out_shape=(
            jax.ShapeDtypeStruct((n, c, w), jnp.float32),    # height gate
            jax.ShapeDtypeStruct((n, c, h), jnp.float32),    # width gate
            jax.ShapeDtypeStruct((n, h, w), jnp.float32),    # spatial gate
        ),
        grid=(n,),
        in_specs=[
            pl.BlockSpec(memory_space=pltpu.MemorySpace.SMEM),
            pl.BlockSpec(memory_space=pltpu.MemorySpace.SMEM),
            pl.BlockSpec((1, c, h, w), lambda i: (i, 0, 0, 0)),
        ],
        out_specs=(
            pl.BlockSpec((1, c, w), lambda i: (i, 0, 0)),
            pl.BlockSpec((1, c, h), lambda i: (i, 0, 0)),
            pl.BlockSpec((1, h, w), lambda i: (i, 0, 0)),
        ),
        scratch_shapes=[
            pltpu.VMEM((2, c + 6, w + 6), jnp.float32),      # height-gate pad
            pltpu.VMEM((2, c + 6, h + 6), jnp.float32),      # width-gate pad
            pltpu.VMEM((2, h + 6, w + 6), jnp.float32),      # spatial-gate pad
        ],
        compiler_params=pltpu.CompilerParams(
            dimension_semantics=("parallel",),               # v7x: 2 TCs split N
        ),
    )(w_all, shifts, x)

    # Final broadcast-combine in XLA (gate maps are tiny vs x; the big NCHW
    # write is emitted lane-densely by XLA's elementwise fusion; 1/3 already
    # folded into the gates inside the kernel).
    # out[n,c,h,w] = g_h[n,c,w] + g_w[n,c,h] + g_s[n,h,w]
    return g_h[:, :, None, :] + g_w[:, :, :, None] + g_s[:, None, :, :]


# -----------------------------------------------------------------------------
# Pure-JAX reference (for verification)
# -----------------------------------------------------------------------------
def spatial_gate_ref(xp, w, bias, gamma, beta, rmean, rvar, eps=1e-5):
    pooled = jnp.concatenate(
        [jnp.max(xp, axis=1, keepdims=True), jnp.mean(xp, axis=1, keepdims=True)],
        axis=1,
    )
    conv = lax.conv_general_dilated(
        pooled, w, window_strides=(1, 1), padding=((3, 3), (3, 3)),
        dimension_numbers=("NCHW", "OIHW", "NCHW"),
    ) + bias[None, :, None, None]
    bn = (conv - rmean[None, :, None, None]) / jnp.sqrt(
        rvar[None, :, None, None] + eps
    ) * gamma[None, :, None, None] + beta[None, :, None, None]
    return bn * jax.nn.sigmoid(bn)


def triplet_ref(x, params):
    x1 = jnp.transpose(x, (0, 2, 1, 3))
    a = jnp.transpose(spatial_gate_ref(x1, *params["height"]), (0, 2, 1, 3))
    x2 = jnp.transpose(x, (0, 3, 2, 1))
    b = jnp.transpose(spatial_gate_ref(x2, *params["width"]), (0, 3, 2, 1))
    cgate = spatial_gate_ref(x, *params["spatial"])
    return (a + b + cgate) / 3.0


# -----------------------------------------------------------------------------
# Main
# -----------------------------------------------------------------------------
def make_gate_params(key):
    kw, kb, kg, kbe = jax.random.split(key, 4)
    w = jax.random.normal(kw, (1, 2, 7, 7), jnp.float32) * 0.1    # Conv2d(2,1,7)
    bias = jax.random.normal(kb, (1,), jnp.float32) * 0.1         # conv bias
    gamma = 1.0 + 0.1 * jax.random.normal(kg, (1,), jnp.float32)  # BN weight
    beta = 0.1 * jax.random.normal(kbe, (1,), jnp.float32)        # BN bias
    rmean = jnp.zeros((1,), jnp.float32)                          # BN running mean
    rvar = jnp.ones((1,), jnp.float32)                            # BN running var
    return (w, bias, gamma, beta, rmean, rvar)


if __name__ == "__main__":
    key = jax.random.PRNGKey(0)
    kx, k1, k2, k3 = jax.random.split(key, 4)

    N, C, H, W = 2, 4, 16, 16
    x = jax.random.normal(kx, (N, C, H, W), jnp.float32)

    params = {
        "height": make_gate_params(k1),
        "width": make_gate_params(k2),
        "spatial": make_gate_params(k3),
    }

    out = jax.jit(functools.partial(triplet_forward, params=params))(x)
    out = jax.block_until_ready(out)

    ref = triplet_ref(x, params)
    assert out.shape == (N, C, H, W)
    max_err = float(jnp.max(jnp.abs(out - ref)))
    assert jnp.allclose(out, ref, atol=1e-4, rtol=1e-4), max_err

    print("KERNEL_OK")
</pallas_src>

<mosaic_0001>
module attributes {stable_mosaic.version = 11 : i64} {
  func.func @triplet_kernel(%arg0: i32, %arg1: memref<294xf32, #tpu.memory_space<smem>>, %arg2: memref<3xf32, #tpu.memory_space<smem>>, %arg3: memref<1x4x16x16xf32, #tpu.memory_space<vmem>>, %arg4: memref<1x4x16xf32, #tpu.memory_space<vmem>>, %arg5: memref<1x4x16xf32, #tpu.memory_space<vmem>>, %arg6: memref<1x16x16xf32, #tpu.memory_space<vmem>>, %arg7: memref<2x10x22xf32, #tpu.memory_space<vmem>>, %arg8: memref<2x10x22xf32, #tpu.memory_space<vmem>>, %arg9: memref<2x22x22xf32, #tpu.memory_space<vmem>>) attributes {dimension_semantics = [#tpu.dimension_semantics<parallel>], iteration_bounds = array<i64: 2>, scalar_prefetch = 0 : i64, scratch_operands = 3 : i64, tpu.core_type = #tpu.core_type<tc>, window_params = [{transform_indices = @transform_0, window_bounds = array<i64: 294>}, {transform_indices = @transform_1, window_bounds = array<i64: 3>}, {transform_indices = @transform_2, window_bounds = array<i64: 1, 4, 16, 16>}, {transform_indices = @transform_3, window_bounds = array<i64: 1, 4, 16>}, {transform_indices = @transform_4, window_bounds = array<i64: 1, 4, 16>}, {transform_indices = @transform_5, window_bounds = array<i64: 1, 16, 16>}]} {
    %c0 = arith.constant 0 : index
    %c0_0 = arith.constant 0 : index
    %c0_1 = arith.constant 0 : index
    %c0_2 = arith.constant 0 : index
    %0 = vector.load %arg3[%c0, %c0_0, %c0_1, %c0_2] : memref<1x4x16x16xf32, #tpu.memory_space<vmem>>, vector<1x4x16x16xf32>
    %1 = vector.shape_cast %0 : vector<1x4x16x16xf32> to vector<4x16x16xf32>
    %cst = arith.constant dense<0xFF800000> : vector<4x16xf32>
    %2 = vector.multi_reduction <maximumf>, %1, %cst [1] : vector<4x16x16xf32> to vector<4x16xf32>
    %cst_3 = arith.constant dense<0.000000e+00> : vector<4x16xf32>
    %3 = vector.multi_reduction <add>, %1, %cst_3 [1] : vector<4x16x16xf32> to vector<4x16xf32>
    %cst_4 = arith.constant 0.000000e+00 : f32
    %4 = vector.broadcast %cst_4 : f32 to vector<2x10x22xf32>
    %c0_5 = arith.constant 0 : index
    %c0_6 = arith.constant 0 : index
    %c0_7 = arith.constant 0 : index
    %5 = vector.load %arg7[%c0_5, %c0_6, %c0_7] : memref<2x10x22xf32, #tpu.memory_space<vmem>>, vector<2x10x22xf32>
    tpu.vector_store %arg7[%c0_5, %c0_6, %c0_7], %4 {strides = array<i32>} : memref<2x10x22xf32, #tpu.memory_space<vmem>>, vector<2x10x22xf32>,
    %c0_8 = arith.constant 0 : index
    %c3 = arith.constant 3 : index
    %c3_9 = arith.constant 3 : index
    %6 = vector.load %arg7[%c0_8, %c3, %c3_9] : memref<2x10x22xf32, #tpu.memory_space<vmem>>, vector<1x4x16xf32>
    %7 = vector.shape_cast %6 : vector<1x4x16xf32> to vector<4x16xf32>
    %8 = vector.shape_cast %2 : vector<4x16xf32> to vector<1x4x16xf32>
    tpu.vector_store %arg7[%c0_8, %c3, %c3_9], %8 {strides = array<i32>} : memref<2x10x22xf32, #tpu.memory_space<vmem>>, vector<1x4x16xf32>,
    %c1 = arith.constant 1 : index
    %c3_10 = arith.constant 3 : index
    %c3_11 = arith.constant 3 : index
    %9 = vector.load %arg7[%c1, %c3_10, %c3_11] : memref<2x10x22xf32, #tpu.memory_space<vmem>>, vector<1x4x16xf32>
    %10 = vector.shape_cast %9 : vector<1x4x16xf32> to vector<4x16xf32>
    %11 = vector.shape_cast %3 : vector<4x16xf32> to vector<1x4x16xf32>
    tpu.vector_store %arg7[%c1, %c3_10, %c3_11], %11 {strides = array<i32>} : memref<2x10x22xf32, #tpu.memory_space<vmem>>, vector<1x4x16xf32>,
    %cst_12 = arith.constant dense<0xFF800000> : vector<4x16xf32>
    %12 = vector.multi_reduction <maximumf>, %1, %cst_12 [2] : vector<4x16x16xf32> to vector<4x16xf32>
    %cst_13 = arith.constant dense<0.000000e+00> : vector<4x16xf32>
    %13 = vector.multi_reduction <add>, %1, %cst_13 [2] : vector<4x16x16xf32> to vector<4x16xf32>
    %cst_14 = arith.constant 0.000000e+00 : f32
    %14 = vector.broadcast %cst_14 : f32 to vector<2x10x22xf32>
    %c0_15 = arith.constant 0 : index
    %c0_16 = arith.constant 0 : index
    %c0_17 = arith.constant 0 : index
    %15 = vector.load %arg8[%c0_15, %c0_16, %c0_17] : memref<2x10x22xf32, #tpu.memory_space<vmem>>, vector<2x10x22xf32>
    tpu.vector_store %arg8[%c0_15, %c0_16, %c0_17], %14 {strides = array<i32>} : memref<2x10x22xf32, #tpu.memory_space<vmem>>, vector<2x10x22xf32>,
    %c0_18 = arith.constant 0 : index
    %c3_19 = arith.constant 3 : index
    %c3_20 = arith.constant 3 : index
    %16 = vector.load %arg8[%c0_18, %c3_19, %c3_20] : memref<2x10x22xf32, #tpu.memory_space<vmem>>, vector<1x4x16xf32>
    %17 = vector.shape_cast %16 : vector<1x4x16xf32> to vector<4x16xf32>
    %18 = vector.shape_cast %12 : vector<4x16xf32> to vector<1x4x16xf32>
    tpu.vector_store %arg8[%c0_18, %c3_19, %c3_20], %18 {strides = array<i32>} : memref<2x10x22xf32, #tpu.memory_space<vmem>>, vector<1x4x16xf32>,
    %c1_21 = arith.constant 1 : index
    %c3_22 = arith.constant 3 : index
    %c3_23 = arith.constant 3 : index
    %19 = vector.load %arg8[%c1_21, %c3_22, %c3_23] : memref<2x10x22xf32, #tpu.memory_space<vmem>>, vector<1x4x16xf32>
    %20 = vector.shape_cast %19 : vector<1x4x16xf32> to vector<4x16xf32>
    %21 = vector.shape_cast %13 : vector<4x16xf32> to vector<1x4x16xf32>
    tpu.vector_store %arg8[%c1_21, %c3_22, %c3_23], %21 {strides = array<i32>} : memref<2x10x22xf32, #tpu.memory_space<vmem>>, vector<1x4x16xf32>,
    %cst_24 = arith.constant dense<0xFF800000> : vector<16x16xf32>
    %22 = vector.multi_reduction <maximumf>, %1, %cst_24 [0] : vector<4x16x16xf32> to vector<16x16xf32>
    %cst_25 = arith.constant dense<0.000000e+00> : vector<16x16xf32>
    %23 = vector.multi_reduction <add>, %1, %cst_25 [0] : vector<4x16x16xf32> to vector<16x16xf32>
    %cst_26 = arith.constant 0.000000e+00 : f32
    %24 = vector.broadcast %cst_26 : f32 to vector<2x22x22xf32>
    %c0_27 = arith.constant 0 : index
    %c0_28 = arith.constant 0 : index
    %c0_29 = arith.constant 0 : index
    %25 = vector.load %arg9[%c0_27, %c0_28, %c0_29] : memref<2x22x22xf32, #tpu.memory_space<vmem>>, vector<2x22x22xf32>
    tpu.vector_store %arg9[%c0_27, %c0_28, %c0_29], %24 {strides = array<i32>} : memref<2x22x22xf32, #tpu.memory_space<vmem>>, vector<2x22x22xf32>,
    %c0_30 = arith.constant 0 : index
    %c3_31 = arith.constant 3 : index
    %c3_32 = arith.constant 3 : index
    %26 = vector.load %arg9[%c0_30, %c3_31, %c3_32] : memref<2x22x22xf32, #tpu.memory_space<vmem>>, vector<1x16x16xf32>
    %27 = vector.shape_cast %26 : vector<1x16x16xf32> to vector<16x16xf32>
    %28 = vector.shape_cast %22 : vector<16x16xf32> to vector<1x16x16xf32>
    tpu.vector_store %arg9[%c0_30, %c3_31, %c3_32], %28 {strides = array<i32>} : memref<2x22x22xf32, #tpu.memory_space<vmem>>, vector<1x16x16xf32>,
    %c1_33 = arith.constant 1 : index
    %c3_34 = arith.constant 3 : index
    %c3_35 = arith.constant 3 : index
    %29 = vector.load %arg9[%c1_33, %c3_34, %c3_35] : memref<2x22x22xf32, #tpu.memory_space<vmem>>, vector<1x16x16xf32>
    %30 = vector.shape_cast %29 : vector<1x16x16xf32> to vector<16x16xf32>
    %31 = vector.shape_cast %23 : vector<16x16xf32> to vector<1x16x16xf32>
    tpu.vector_store %arg9[%c1_33, %c3_34, %c3_35], %31 {strides = array<i32>} : memref<2x22x22xf32, #tpu.memory_space<vmem>>, vector<1x16x16xf32>,
    %c0_36 = arith.constant 0 : index
    %32 = memref.load %arg2[%c0_36] : memref<3xf32, #tpu.memory_space<smem>>
    %33 = vector.broadcast %32 : f32 to vector<4x16xf32>
    %c0_37 = arith.constant 0 : index
    %c0_38 = arith.constant 0 : index
    %c0_39 = arith.constant 0 : index
    %34 = vector.load %arg7[%c0_37, %c0_38, %c0_39] : memref<2x10x22xf32, #tpu.memory_space<vmem>>, vector<1x10x16xf32>
    %35 = vector.shape_cast %34 : vector<1x10x16xf32> to vector<10x16xf32>
    %c1_40 = arith.constant 1 : index
    %c0_41 = arith.constant 0 : index
    %c0_42 = arith.constant 0 : index
    %36 = vector.load %arg7[%c1_40, %c0_41, %c0_42] : memref<2x10x22xf32, #tpu.memory_space<vmem>>, vector<1x10x16xf32>
    %37 = vector.shape_cast %36 : vector<1x10x16xf32> to vector<10x16xf32>
    %c0_43 = arith.constant 0 : index
    %38 = memref.load %arg1[%c0_43] : memref<294xf32, #tpu.memory_space<smem>>
    %39 = vector.extract_strided_slice %35 {offsets = [0, 0], sizes = [4, 16], strides = [1, 1]} : vector<10x16xf32> to vector<4x16xf32>
    %40 = vector.broadcast %38 : f32 to vector<4x16xf32>
    %41 = arith.mulf %40, %39 : vector<4x16xf32>
    %42 = arith.addf %33, %41 : vector<4x16xf32>
    %c49 = arith.constant 49 : index
    %43 = memref.load %arg1[%c49] : memref<294xf32, #tpu.memory_space<smem>>
    %44 = vector.extract_strided_slice %37 {offsets = [0, 0], sizes = [4, 16], strides = [1, 1]} : vector<10x16xf32> to vector<4x16xf32>
    %45 = vector.broadcast %43 : f32 to vector<4x16xf32>
    %46 = arith.mulf %45, %44 : vector<4x16xf32>
    %47 = arith.addf %42, %46 : vector<4x16xf32>
    %c7 = arith.constant 7 : index
    %48 = memref.load %arg1[%c7] : memref<294xf32, #tpu.memory_space<smem>>
    %49 = vector.extract_strided_slice %35 {offsets = [1, 0], sizes = [4, 16], strides = [1, 1]} : vector<10x16xf32> to vector<4x16xf32>
    %50 = vector.broadcast %48 : f32 to vector<4x16xf32>
    %51 = arith.mulf %50, %49 : vector<4x16xf32>
    %52 = arith.addf %47, %51 : vector<4x16xf32>
    %c56 = arith.constant 56 : index
    %53 = memref.load %arg1[%c56] : memref<294xf32, #tpu.memory_space<smem>>
    %54 = vector.extract_strided_slice %37 {offsets = [1, 0], sizes = [4, 16], strides = [1, 1]} : vector<10x16xf32> to vector<4x16xf32>
    %55 = vector.broadcast %53 : f32 to vector<4x16xf32>
    %56 = arith.mulf %55, %54 : vector<4x16xf32>
    %57 = arith.addf %52, %56 : vector<4x16xf32>
    %c14 = arith.constant 14 : index
    %58 = memref.load %arg1[%c14] : memref<294xf32, #tpu.memory_space<smem>>
    %59 = vector.extract_strided_slice %35 {offsets = [2, 0], sizes = [4, 16], strides = [1, 1]} : vector<10x16xf32> to vector<4x16xf32>
    %60 = vector.broadcast %58 : f32 to vector<4x16xf32>
    %61 = arith.mulf %60, %59 : vector<4x16xf32>
    %62 = arith.addf %57, %61 : vector<4x16xf32>
    %c63 = arith.constant 63 : index
    %63 = memref.load %arg1[%c63] : memref<294xf32, #tpu.memory_space<smem>>
    %64 = vector.extract_strided_slice %37 {offsets = [2, 0], sizes = [4, 16], strides = [1, 1]} : vector<10x16xf32> to vector<4x16xf32>
    %65 = vector.broadcast %63 : f32 to vector<4x16xf32>
    %66 = arith.mulf %65, %64 : vector<4x16xf32>
    %67 = arith.addf %62, %66 : vector<4x16xf32>
    %c21 = arith.constant 21 : index
    %68 = memref.load %arg1[%c21] : memref<294xf32, #tpu.memory_space<smem>>
    %69 = vector.extract_strided_slice %35 {offsets = [3, 0], sizes = [4, 16], strides = [1, 1]} : vector<10x16xf32> to vector<4x16xf32>
    %70 = vector.broadcast %68 : f32 to vector<4x16xf32>
    %71 = arith.mulf %70, %69 : vector<4x16xf32>
    %72 = arith.addf %67, %71 : vector<4x16xf32>
    %c70 = arith.constant 70 : index
    %73 = memref.load %arg1[%c70] : memref<294xf32, #tpu.memory_space<smem>>
    %74 = vector.extract_strided_slice %37 {offsets = [3, 0], sizes = [4, 16], strides = [1, 1]} : vector<10x16xf32> to vector<4x16xf32>
    %75 = vector.broadcast %73 : f32 to vector<4x16xf32>
    %76 = arith.mulf %75, %74 : vector<4x16xf32>
    %77 = arith.addf %72, %76 : vector<4x16xf32>
    %c28 = arith.constant 28 : index
    %78 = memref.load %arg1[%c28] : memref<294xf32, #tpu.memory_space<smem>>
    %79 = vector.extract_strided_slice %35 {offsets = [4, 0], sizes = [4, 16], strides = [1, 1]} : vector<10x16xf32> to vector<4x16xf32>
    %80 = vector.broadcast %78 : f32 to vector<4x16xf32>
    %81 = arith.mulf %80, %79 : vector<4x16xf32>
    %82 = arith.addf %77, %81 : vector<4x16xf32>
    %c77 = arith.constant 77 : index
    %83 = memref.load %arg1[%c77] : memref<294xf32, #tpu.memory_space<smem>>
    %84 = vector.extract_strided_slice %37 {offsets = [4, 0], sizes = [4, 16], strides = [1, 1]} : vector<10x16xf32> to vector<4x16xf32>
    %85 = vector.broadcast %83 : f32 to vector<4x16xf32>
    %86 = arith.mulf %85, %84 : vector<4x16xf32>
    %87 = arith.addf %82, %86 : vector<4x16xf32>
    %c35 = arith.constant 35 : index
    %88 = memref.load %arg1[%c35] : memref<294xf32, #tpu.memory_space<smem>>
    %89 = vector.extract_strided_slice %35 {offsets = [5, 0], sizes = [4, 16], strides = [1, 1]} : vector<10x16xf32> to vector<4x16xf32>
    %90 = vector.broadcast %88 : f32 to vector<4x16xf32>
    %91 = arith.mulf %90, %89 : vector<4x16xf32>
    %92 = arith.addf %87, %91 : vector<4x16xf32>
    %c84 = arith.constant 84 : index
    %93 = memref.load %arg1[%c84] : memref<294xf32, #tpu.memory_space<smem>>
    %94 = vector.extract_strided_slice %37 {offsets = [5, 0], sizes = [4, 16], strides = [1, 1]} : vector<10x16xf32> to vector<4x16xf32>
    %95 = vector.broadcast %93 : f32 to vector<4x16xf32>
    %96 = arith.mulf %95, %94 : vector<4x16xf32>
    %97 = arith.addf %92, %96 : vector<4x16xf32>
    %c42 = arith.constant 42 : index
    %98 = memref.load %arg1[%c42] : memref<294xf32, #tpu.memory_space<smem>>
    %99 = vector.extract_strided_slice %35 {offsets = [6, 0], sizes = [4, 16], strides = [1, 1]} : vector<10x16xf32> to vector<4x16xf32>
    %100 = vector.broadcast %98 : f32 to vector<4x16xf32>
    %101 = arith.mulf %100, %99 : vector<4x16xf32>
    %102 = arith.addf %97, %101 : vector<4x16xf32>
    %c91 = arith.constant 91 : index
    %103 = memref.load %arg1[%c91] : memref<294xf32, #tpu.memory_space<smem>>
    %104 = vector.extract_strided_slice %37 {offsets = [6, 0], sizes = [4, 16], strides = [1, 1]} : vector<10x16xf32> to vector<4x16xf32>
    %105 = vector.broadcast %103 : f32 to vector<4x16xf32>
    %106 = arith.mulf %105, %104 : vector<4x16xf32>
    %107 = arith.addf %102, %106 : vector<4x16xf32>
    %c0_44 = arith.constant 0 : index
    %c0_45 = arith.constant 0 : index
    %c1_46 = arith.constant 1 : index
    %108 = vector.load %arg7[%c0_44, %c0_45, %c1_46] : memref<2x10x22xf32, #tpu.memory_space<vmem>>, vector<1x10x16xf32>
    %109 = vector.shape_cast %108 : vector<1x10x16xf32> to vector<10x16xf32>
    %c1_47 = arith.constant 1 : index
    %c0_48 = arith.constant 0 : index
    %c1_49 = arith.constant 1 : index
    %110 = vector.load %arg7[%c1_47, %c0_48, %c1_49] : memref<2x10x22xf32, #tpu.memory_space<vmem>>, vector<1x10x16xf32>
    %111 = vector.shape_cast %110 : vector<1x10x16xf32> to vector<10x16xf32>
    %c1_50 = arith.constant 1 : index
    %112 = memref.load %arg1[%c1_50] : memref<294xf32, #tpu.memory_space<smem>>
    %113 = vector.extract_strided_slice %109 {offsets = [0, 0], sizes = [4, 16], strides = [1, 1]} : vector<10x16xf32> to vector<4x16xf32>
    %114 = vector.broadcast %112 : f32 to vector<4x16xf32>
    %115 = arith.mulf %114, %113 : vector<4x16xf32>
    %116 = arith.addf %107, %115 : vector<4x16xf32>
    %c50 = arith.constant 50 : index
    %117 = memref.load %arg1[%c50] : memref<294xf32, #tpu.memory_space<smem>>
    %118 = vector.extract_strided_slice %111 {offsets = [0, 0], sizes = [4, 16], strides = [1, 1]} : vector<10x16xf32> to vector<4x16xf32>
    %119 = vector.broadcast %117 : f32 to vector<4x16xf32>
    %120 = arith.mulf %119, %118 : vector<4x16xf32>
    %121 = arith.addf %116, %120 : vector<4x16xf32>
    %c8 = arith.constant 8 : index
    %122 = memref.load %arg1[%c8] : memref<294xf32, #tpu.memory_space<smem>>
    %123 = vector.extract_strided_slice %109 {offsets = [1, 0], sizes = [4, 16], strides = [1, 1]} : vector<10x16xf32> to vector<4x16xf32>
    %124 = vector.broadcast %122 : f32 to vector<4x16xf32>
    %125 = arith.mulf %124, %123 : vector<4x16xf32>
    %126 = arith.addf %121, %125 : vector<4x16xf32>
    %c57 = arith.constant 57 : index
    %127 = memref.load %arg1[%c57] : memref<294xf32, #tpu.memory_space<smem>>
    %128 = vector.extract_strided_slice %111 {offsets = [1, 0], sizes = [4, 16], strides = [1, 1]} : vector<10x16xf32> to vector<4x16xf32>
    %129 = vector.broadcast %127 : f32 to vector<4x16xf32>
    %130 = arith.mulf %129, %128 : vector<4x16xf32>
    %131 = arith.addf %126, %130 : vector<4x16xf32>
    %c15 = arith.constant 15 : index
    %132 = memref.load %arg1[%c15] : memref<294xf32, #tpu.memory_space<smem>>
    %133 = vector.extract_strided_slice %109 {offsets = [2, 0], sizes = [4, 16], strides = [1, 1]} : vector<10x16xf32> to vector<4x16xf32>
    %134 = vector.broadcast %132 : f32 to vector<4x16xf32>
    %135 = arith.mulf %134, %133 : vector<4x16xf32>
    %136 = arith.addf %131, %135 : vector<4x16xf32>
    %c64 = arith.constant 64 : index
    %137 = memref.load %arg1[%c64] : memref<294xf32, #tpu.memory_space<smem>>
    %138 = vector.extract_strided_slice %111 {offsets = [2, 0], sizes = [4, 16], strides = [1, 1]} : vector<10x16xf32> to vector<4x16xf32>
    %139 = vector.broadcast %137 : f32 to vector<4x16xf32>
    %140 = arith.mulf %139, %138 : vector<4x16xf32>
    %141 = arith.addf %136, %140 : vector<4x16xf32>
    %c22 = arith.constant 22 : index
    %142 = memref.load %arg1[%c22] : memref<294xf32, #tpu.memory_space<smem>>
    %143 = vector.extract_strided_slice %109 {offsets = [3, 0], sizes = [4, 16], strides = [1, 1]} : vector<10x16xf32> to vector<4x16xf32>
    %144 = vector.broadcast %142 : f32 to vector<4x16xf32>
    %145 = arith.mulf %144, %143 : vector<4x16xf32>
    %146 = arith.addf %141, %145 : vector<4x16xf32>
    %c71 = arith.constant 71 : index
    %147 = memref.load %arg1[%c71] : memref<294xf32, #tpu.memory_space<smem>>
    %148 = vector.extract_strided_slice %111 {offsets = [3, 0], sizes = [4, 16], strides = [1, 1]} : vector<10x16xf32> to vector<4x16xf32>
    %149 = vector.broadcast %147 : f32 to vector<4x16xf32>
    %150 = arith.mulf %149, %148 : vector<4x16xf32>
    %151 = arith.addf %146, %150 : vector<4x16xf32>
    %c29 = arith.constant 29 : index
    %152 = memref.load %arg1[%c29] : memref<294xf32, #tpu.memory_space<smem>>
    %153 = vector.extract_strided_slice %109 {offsets = [4, 0], sizes = [4, 16], strides = [1, 1]} : vector<10x16xf32> to vector<4x16xf32>
    %154 = vector.broadcast %152 : f32 to vector<4x16xf32>
    %155 = arith.mulf %154, %153 : vector<4x16xf32>
    %156 = arith.addf %151, %155 : vector<4x16xf32>
    %c78 = arith.constant 78 : index
    %157 = memref.load %arg1[%c78] : memref<294xf32, #tpu.memory_space<smem>>
    %158 = vector.extract_strided_slice %111 {offsets = [4, 0], sizes = [4, 16], strides = [1, 1]} : vector<10x16xf32> to vector<4x16xf32>
    %159 = vector.broadcast %157 : f32 to vector<4x16xf32>
    %160 = arith.mulf %159, %158 : vector<4x16xf32>
    %161 = arith.addf %156, %160 : vector<4x16xf32>
    %c36 = arith.constant 36 : index
    %162 = memref.load %arg1[%c36] : memref<294xf32, #tpu.memory_space<smem>>
    %163 = vector.extract_strided_slice %109 {offsets = [5, 0], sizes = [4, 16], strides = [1, 1]} : vector<10x16xf32> to vector<4x16xf32>
    %164 = vector.broadcast %162 : f32 to vector<4x16xf32>
    %165 = arith.mulf %164, %163 : vector<4x16xf32>
    %166 = arith.addf %161, %165 : vector<4x16xf32>
    %c85 = arith.constant 85 : index
    %167 = memref.load %arg1[%c85] : memref<294xf32, #tpu.memory_space<smem>>
    %168 = vector.extract_strided_slice %111 {offsets = [5, 0], sizes = [4, 16], strides = [1, 1]} : vector<10x16xf32> to vector<4x16xf32>
    %169 = vector.broadcast %167 : f32 to vector<4x16xf32>
    %170 = arith.mulf %169, %168 : vector<4x16xf32>
    %171 = arith.addf %166, %170 : vector<4x16xf32>
    %c43 = arith.constant 43 : index
    %172 = memref.load %arg1[%c43] : memref<294xf32, #tpu.memory_space<smem>>
    %173 = vector.extract_strided_slice %109 {offsets = [6, 0], sizes = [4, 16], strides = [1, 1]} : vector<10x16xf32> to vector<4x16xf32>
    %174 = vector.broadcast %172 : f32 to vector<4x16xf32>
    %175 = arith.mulf %174, %173 : vector<4x16xf32>
    %176 = arith.addf %171, %175 : vector<4x16xf32>
    %c92 = arith.constant 92 : index
    %177 = memref.load %arg1[%c92] : memref<294xf32, #tpu.memory_space<smem>>
    %178 = vector.extract_strided_slice %111 {offsets = [6, 0], sizes = [4, 16], strides = [1, 1]} : vector<10x16xf32> to vector<4x16xf32>
    %179 = vector.broadcast %177 : f32 to vector<4x16xf32>
    %180 = arith.mulf %179, %178 : vector<4x16xf32>
    %181 = arith.addf %176, %180 : vector<4x16xf32>
    %c0_51 = arith.constant 0 : index
    %c0_52 = arith.constant 0 : index
    %c2 = arith.constant 2 : index
    %182 = vector.load %arg7[%c0_51, %c0_52, %c2] : memref<2x10x22xf32, #tpu.memory_space<vmem>>, vector<1x10x16xf32>
    %183 = vector.shape_cast %182 : vector<1x10x16xf32> to vector<10x16xf32>
    %c1_53 = arith.constant 1 : index
    %c0_54 = arith.constant 0 : index
    %c2_55 = arith.constant 2 : index
    %184 = vector.load %arg7[%c1_53, %c0_54, %c2_55] : memref<2x10x22xf32, #tpu.memory_space<vmem>>, vector<1x10x16xf32>
    %185 = vector.shape_cast %184 : vector<1x10x16xf32> to vector<10x16xf32>
    %c2_56 = arith.constant 2 : index
    %186 = memref.load %arg1[%c2_56] : memref<294xf32, #tpu.memory_space<smem>>
    %187 = vector.extract_strided_slice %183 {offsets = [0, 0], sizes = [4, 16], strides = [1, 1]} : vector<10x16xf32> to vector<4x16xf32>
    %188 = vector.broadcast %186 : f32 to vector<4x16xf32>
    %189 = arith.mulf %188, %187 : vector<4x16xf32>
    %190 = arith.addf %181, %189 : vector<4x16xf32>
    %c51 = arith.constant 51 : index
    %191 = memref.load %arg1[%c51] : memref<294xf32, #tpu.memory_space<smem>>
    %192 = vector.extract_strided_slice %185 {offsets = [0, 0], sizes = [4, 16], strides = [1, 1]} : vector<10x16xf32> to vector<4x16xf32>
    %193 = vector.broadcast %191 : f32 to vector<4x16xf32>
    %194 = arith.mulf %193, %192 : vector<4x16xf32>
    %195 = arith.addf %190, %194 : vector<4x16xf32>
    %c9 = arith.constant 9 : index
    %196 = memref.load %arg1[%c9] : memref<294xf32, #tpu.memory_space<smem>>
    %197 = vector.extract_strided_slice %183 {offsets = [1, 0], sizes = [4, 16], strides = [1, 1]} : vector<10x16xf32> to vector<4x16xf32>
    %198 = vector.broadcast %196 : f32 to vector<4x16xf32>
    %199 = arith.mulf %198, %197 : vector<4x16xf32>
    %200 = arith.addf %195, %199 : vector<4x16xf32>
    %c58 = arith.constant 58 : index
    %201 = memref.load %arg1[%c58] : memref<294xf32, #tpu.memory_space<smem>>
    %202 = vector.extract_strided_slice %185 {offsets = [1, 0], sizes = [4, 16], strides = [1, 1]} : vector<10x16xf32> to vector<4x16xf32>
    %203 = vector.broadcast %201 : f32 to vector<4x16xf32>
    %204 = arith.mulf %203, %202 : vector<4x16xf32>
    %205 = arith.addf %200, %204 : vector<4x16xf32>
    %c16 = arith.constant 16 : index
    %206 = memref.load %arg1[%c16] : memref<294xf32, #tpu.memory_space<smem>>
    %207 = vector.extract_strided_slice %183 {offsets = [2, 0], sizes = [4, 16], strides = [1, 1]} : vector<10x16xf32> to vector<4x16xf32>
    %208 = vector.broadcast %206 : f32 to vector<4x16xf32>
    %209 = arith.mulf %208, %207 : vector<4x16xf32>
    %210 = arith.addf %205, %209 : vector<4x16xf32>
    %c65 = arith.constant 65 : index
    %211 = memref.load %arg1[%c65] : memref<294xf32, #tpu.memory_space<smem>>
    %212 = vector.extract_strided_slice %185 {offsets = [2, 0], sizes = [4, 16], strides = [1, 1]} : vector<10x16xf32> to vector<4x16xf32>
    %213 = vector.broadcast %211 : f32 to vector<4x16xf32>
    %214 = arith.mulf %213, %212 : vector<4x16xf32>
    %215 = arith.addf %210, %214 : vector<4x16xf32>
    %c23 = arith.constant 23 : index
    %216 = memref.load %arg1[%c23] : memref<294xf32, #tpu.memory_space<smem>>
    %217 = vector.extract_strided_slice %183 {offsets = [3, 0], sizes = [4, 16], strides = [1, 1]} : vector<10x16xf32> to vector<4x16xf32>
    %218 = vector.broadcast %216 : f32 to vector<4x16xf32>
    %219 = arith.mulf %218, %217 : vector<4x16xf32>
    %220 = arith.addf %215, %219 : vector<4x16xf32>
    %c72 = arith.constant 72 : index
    %221 = memref.load %arg1[%c72] : memref<294xf32, #tpu.memory_space<smem>>
    %222 = vector.extract_strided_slice %185 {offsets = [3, 0], sizes = [4, 16], strides = [1, 1]} : vector<10x16xf32> to vector<4x16xf32>
    %223 = vector.broadcast %221 : f32 to vector<4x16xf32>
    %224 = arith.mulf %223, %222 : vector<4x16xf32>
    %225 = arith.addf %220, %224 : vector<4x16xf32>
    %c30 = arith.constant 30 : index
    %226 = memref.load %arg1[%c30] : memref<294xf32, #tpu.memory_space<smem>>
    %227 = vector.extract_strided_slice %183 {offsets = [4, 0], sizes = [4, 16], strides = [1, 1]} : vector<10x16xf32> to vector<4x16xf32>
    %228 = vector.broadcast %226 : f32 to vector<4x16xf32>
    %229 = arith.mulf %228, %227 : vector<4x16xf32>
    %230 = arith.addf %225, %229 : vector<4x16xf32>
    %c79 = arith.constant 79 : index
    %231 = memref.load %arg1[%c79] : memref<294xf32, #tpu.memory_space<smem>>
    %232 = vector.extract_strided_slice %185 {offsets = [4, 0], sizes = [4, 16], strides = [1, 1]} : vector<10x16xf32> to vector<4x16xf32>
    %233 = vector.broadcast %231 : f32 to vector<4x16xf32>
    %234 = arith.mulf %233, %232 : vector<4x16xf32>
    %235 = arith.addf %230, %234 : vector<4x16xf32>
    %c37 = arith.constant 37 : index
    %236 = memref.load %arg1[%c37] : memref<294xf32, #tpu.memory_space<smem>>
    %237 = vector.extract_strided_slice %183 {offsets = [5, 0], sizes = [4, 16], strides = [1, 1]} : vector<10x16xf32> to vector<4x16xf32>
    %238 = vector.broadcast %236 : f32 to vector<4x16xf32>
    %239 = arith.mulf %238, %237 : vector<4x16xf32>
    %240 = arith.addf %235, %239 : vector<4x16xf32>
    %c86 = arith.constant 86 : index
    %241 = memref.load %arg1[%c86] : memref<294xf32, #tpu.memory_space<smem>>
    %242 = vector.extract_strided_slice %185 {offsets = [5, 0], sizes = [4, 16], strides = [1, 1]} : vector<10x16xf32> to vector<4x16xf32>
    %243 = vector.broadcast %241 : f32 to vector<4x16xf32>
    %244 = arith.mulf %243, %242 : vector<4x16xf32>
    %245 = arith.addf %240, %244 : vector<4x16xf32>
    %c44 = arith.constant 44 : index
    %246 = memref.load %arg1[%c44] : memref<294xf32, #tpu.memory_space<smem>>
    %247 = vector.extract_strided_slice %183 {offsets = [6, 0], sizes = [4, 16], strides = [1, 1]} : vector<10x16xf32> to vector<4x16xf32>
    %248 = vector.broadcast %246 : f32 to vector<4x16xf32>
    %249 = arith.mulf %248, %247 : vector<4x16xf32>
    %250 = arith.addf %245, %249 : vector<4x16xf32>
    %c93 = arith.constant 93 : index
    %251 = memref.load %arg1[%c93] : memref<294xf32, #tpu.memory_space<smem>>
    %252 = vector.extract_strided_slice %185 {offsets = [6, 0], sizes = [4, 16], strides = [1, 1]} : vector<10x16xf32> to vector<4x16xf32>
    %253 = vector.broadcast %251 : f32 to vector<4x16xf32>
    %254 = arith.mulf %253, %252 : vector<4x16xf32>
    %255 = arith.addf %250, %254 : vector<4x16xf32>
    %c0_57 = arith.constant 0 : index
    %c0_58 = arith.constant 0 : index
    %c3_59 = arith.constant 3 : index
    %256 = vector.load %arg7[%c0_57, %c0_58, %c3_59] : memref<2x10x22xf32, #tpu.memory_space<vmem>>, vector<1x10x16xf32>
    %257 = vector.shape_cast %256 : vector<1x10x16xf32> to vector<10x16xf32>
    %c1_60 = arith.constant 1 : index
    %c0_61 = arith.constant 0 : index
    %c3_62 = arith.constant 3 : index
    %258 = vector.load %arg7[%c1_60, %c0_61, %c3_62] : memref<2x10x22xf32, #tpu.memory_space<vmem>>, vector<1x10x16xf32>
    %259 = vector.shape_cast %258 : vector<1x10x16xf32> to vector<10x16xf32>
    %c3_63 = arith.constant 3 : index
    %260 = memref.load %arg1[%c3_63] : memref<294xf32, #tpu.memory_space<smem>>
    %261 = vector.extract_strided_slice %257 {offsets = [0, 0], sizes = [4, 16], strides = [1, 1]} : vector<10x16xf32> to vector<4x16xf32>
    %262 = vector.broadcast %260 : f32 to vector<4x16xf32>
    %263 = arith.mulf %262, %261 : vector<4x16xf32>
    %264 = arith.addf %255, %263 : vector<4x16xf32>
    %c52 = arith.constant 52 : index
    %265 = memref.load %arg1[%c52] : memref<294xf32, #tpu.memory_space<smem>>
    %266 = vector.extract_strided_slice %259 {offsets = [0, 0], sizes = [4, 16], strides = [1, 1]} : vector<10x16xf32> to vector<4x16xf32>
    %267 = vector.broadcast %265 : f32 to vector<4x16xf32>
    %268 = arith.mulf %267, %266 : vector<4x16xf32>
    %269 = arith.addf %264, %268 : vector<4x16xf32>
    %c10 = arith.constant 10 : index
    %270 = memref.load %arg1[%c10] : memref<294xf32, #tpu.memory_space<smem>>
    %271 = vector.extract_strided_slice %257 {offsets = [1, 0], sizes = [4, 16], strides = [1, 1]} : vector<10x16xf32> to vector<4x16xf32>
    %272 = vector.broadcast %270 : f32 to vector<4x16xf32>
    %273 = arith.mulf %272, %271 : vector<4x16xf32>
    %274 = arith.addf %269, %273 : vector<4x16xf32>
    %c59 = arith.constant 59 : index
    %275 = memref.load %arg1[%c59] : memref<294xf32, #tpu.memory_space<smem>>
    %276 = vector.extract_strided_slice %259 {offsets = [1, 0], sizes = [4, 16], strides = [1, 1]} : vector<10x16xf32> to vector<4x16xf32>
    %277 = vector.broadcast %275 : f32 to vector<4x16xf32>
    %278 = arith.mulf %277, %276 : vector<4x16xf32>
    %279 = arith.addf %274, %278 : vector<4x16xf32>
    %c17 = arith.constant 17 : index
    %280 = memref.load %arg1[%c17] : memref<294xf32, #tpu.memory_space<smem>>
    %281 = vector.extract_strided_slice %257 {offsets = [2, 0], sizes = [4, 16], strides = [1, 1]} : vector<10x16xf32> to vector<4x16xf32>
    %282 = vector.broadcast %280 : f32 to vector<4x16xf32>
    %283 = arith.mulf %282, %281 : vector<4x16xf32>
    %284 = arith.addf %279, %283 : vector<4x16xf32>
    %c66 = arith.constant 66 : index
    %285 = memref.load %arg1[%c66] : memref<294xf32, #tpu.memory_space<smem>>
    %286 = vector.extract_strided_slice %259 {offsets = [2, 0], sizes = [4, 16], strides = [1, 1]} : vector<10x16xf32> to vector<4x16xf32>
    %287 = vector.broadcast %285 : f32 to vector<4x16xf32>
    %288 = arith.mulf %287, %286 : vector<4x16xf32>
    %289 = arith.addf %284, %288 : vector<4x16xf32>
    %c24 = arith.constant 24 : index
    %290 = memref.load %arg1[%c24] : memref<294xf32, #tpu.memory_space<smem>>
    %291 = vector.extract_strided_slice %257 {offsets = [3, 0], sizes = [4, 16], strides = [1, 1]} : vector<10x16xf32> to vector<4x16xf32>
    %292 = vector.broadcast %290 : f32 to vector<4x16xf32>
    %293 = arith.mulf %292, %291 : vector<4x16xf32>
    %294 = arith.addf %289, %293 : vector<4x16xf32>
    %c73 = arith.constant 73 : index
    %295 = memref.load %arg1[%c73] : memref<294xf32, #tpu.memory_space<smem>>
    %296 = vector.extract_strided_slice %259 {offsets = [3, 0], sizes = [4, 16], strides = [1, 1]} : vector<10x16xf32> to vector<4x16xf32>
    %297 = vector.broadcast %295 : f32 to vector<4x16xf32>
    %298 = arith.mulf %297, %296 : vector<4x16xf32>
    %299 = arith.addf %294, %298 : vector<4x16xf32>
    %c31 = arith.constant 31 : index
    %300 = memref.load %arg1[%c31] : memref<294xf32, #tpu.memory_space<smem>>
    %301 = vector.extract_strided_slice %257 {offsets = [4, 0], sizes = [4, 16], strides = [1, 1]} : vector<10x16xf32> to vector<4x16xf32>
    %302 = vector.broadcast %300 : f32 to vector<4x16xf32>
    %303 = arith.mulf %302, %301 : vector<4x16xf32>
    %304 = arith.addf %299, %303 : vector<4x16xf32>
    %c80 = arith.constant 80 : index
    %305 = memref.load %arg1[%c80] : memref<294xf32, #tpu.memory_space<smem>>
    %306 = vector.extract_strided_slice %259 {offsets = [4, 0], sizes = [4, 16], strides = [1, 1]} : vector<10x16xf32> to vector<4x16xf32>
    %307 = vector.broadcast %305 : f32 to vector<4x16xf32>
    %308 = arith.mulf %307, %306 : vector<4x16xf32>
    %309 = arith.addf %304, %308 : vector<4x16xf32>
    %c38 = arith.constant 38 : index
    %310 = memref.load %arg1[%c38] : memref<294xf32, #tpu.memory_space<smem>>
    %311 = vector.extract_strided_slice %257 {offsets = [5, 0], sizes = [4, 16], strides = [1, 1]} : vector<10x16xf32> to vector<4x16xf32>
    %312 = vector.broadcast %310 : f32 to vector<4x16xf32>
    %313 = arith.mulf %312, %311 : vector<4x16xf32>
    %314 = arith.addf %309, %313 : vector<4x16xf32>
    %c87 = arith.constant 87 : index
    %315 = memref.load %arg1[%c87] : memref<294xf32, #tpu.memory_space<smem>>
    %316 = vector.extract_strided_slice %259 {offsets = [5, 0], sizes = [4, 16], strides = [1, 1]} : vector<10x16xf32> to vector<4x16xf32>
    %317 = vector.broadcast %315 : f32 to vector<4x16xf32>
    %318 = arith.mulf %317, %316 : vector<4x16xf32>
    %319 = arith.addf %314, %318 : vector<4x16xf32>
    %c45 = arith.constant 45 : index
    %320 = memref.load %arg1[%c45] : memref<294xf32, #tpu.memory_space<smem>>
    %321 = vector.extract_strided_slice %257 {offsets = [6, 0], sizes = [4, 16], strides = [1, 1]} : vector<10x16xf32> to vector<4x16xf32>
    %322 = vector.broadcast %320 : f32 to vector<4x16xf32>
    %323 = arith.mulf %322, %321 : vector<4x16xf32>
    %324 = arith.addf %319, %323 : vector<4x16xf32>
    %c94 = arith.constant 94 : index
    %325 = memref.load %arg1[%c94] : memref<294xf32, #tpu.memory_space<smem>>
    %326 = vector.extract_strided_slice %259 {offsets = [6, 0], sizes = [4, 16], strides = [1, 1]} : vector<10x16xf32> to vector<4x16xf32>
    %327 = vector.broadcast %325 : f32 to vector<4x16xf32>
    %328 = arith.mulf %327, %326 : vector<4x16xf32>
    %329 = arith.addf %324, %328 : vector<4x16xf32>
    %c0_64 = arith.constant 0 : index
    %c0_65 = arith.constant 0 : index
    %c4 = arith.constant 4 : index
    %330 = vector.load %arg7[%c0_64, %c0_65, %c4] : memref<2x10x22xf32, #tpu.memory_space<vmem>>, vector<1x10x16xf32>
    %331 = vector.shape_cast %330 : vector<1x10x16xf32> to vector<10x16xf32>
    %c1_66 = arith.constant 1 : index
    %c0_67 = arith.constant 0 : index
    %c4_68 = arith.constant 4 : index
    %332 = vector.load %arg7[%c1_66, %c0_67, %c4_68] : memref<2x10x22xf32, #tpu.memory_space<vmem>>, vector<1x10x16xf32>
    %333 = vector.shape_cast %332 : vector<1x10x16xf32> to vector<10x16xf32>
    %c4_69 = arith.constant 4 : index
    %334 = memref.load %arg1[%c4_69] : memref<294xf32, #tpu.memory_space<smem>>
    %335 = vector.extract_strided_slice %331 {offsets = [0, 0], sizes = [4, 16], strides = [1, 1]} : vector<10x16xf32> to vector<4x16xf32>
    %336 = vector.broadcast %334 : f32 to vector<4x16xf32>
    %337 = arith.mulf %336, %335 : vector<4x16xf32>
    %338 = arith.addf %329, %337 : vector<4x16xf32>
    %c53 = arith.constant 53 : index
    %339 = memref.load %arg1[%c53] : memref<294xf32, #tpu.memory_space<smem>>
    %340 = vector.extract_strided_slice %333 {offsets = [0, 0], sizes = [4, 16], strides = [1, 1]} : vector<10x16xf32> to vector<4x16xf32>
    %341 = vector.broadcast %339 : f32 to vector<4x16xf32>
    %342 = arith.mulf %341, %340 : vector<4x16xf32>
    %343 = arith.addf %338, %342 : vector<4x16xf32>
    %c11 = arith.constant 11 : index
    %344 = memref.load %arg1[%c11] : memref<294xf32, #tpu.memory_space<smem>>
    %345 = vector.extract_strided_slice %331 {offsets = [1, 0], sizes = [4, 16], strides = [1, 1]} : vector<10x16xf32> to vector<4x16xf32>
    %346 = vector.broadcast %344 : f32 to vector<4x16xf32>
    %347 = arith.mulf %346, %345 : vector<4x16xf32>
    %348 = arith.addf %343, %347 : vector<4x16xf32>
    %c60 = arith.constant 60 : index
    %349 = memref.load %arg1[%c60] : memref<294xf32, #tpu.memory_space<smem>>
    %350 = vector.extract_strided_slice %333 {offsets = [1, 0], sizes = [4, 16], strides = [1, 1]} : vector<10x16xf32> to vector<4x16xf32>
    %351 = vector.broadcast %349 : f32 to vector<4x16xf32>
    %352 = arith.mulf %351, %350 : vector<4x16xf32>
    %353 = arith.addf %348, %352 : vector<4x16xf32>
    %c18 = arith.constant 18 : index
    %354 = memref.load %arg1[%c18] : memref<294xf32, #tpu.memory_space<smem>>
    %355 = vector.extract_strided_slice %331 {offsets = [2, 0], sizes = [4, 16], strides = [1, 1]} : vector<10x16xf32> to vector<4x16xf32>
    %356 = vector.broadcast %354 : f32 to vector<4x16xf32>
    %357 = arith.mulf %356, %355 : vector<4x16xf32>
    %358 = arith.addf %353, %357 : vector<4x16xf32>
    %c67 = arith.constant 67 : index
    %359 = memref.load %arg1[%c67] : memref<294xf32, #tpu.memory_space<smem>>
    %360 = vector.extract_strided_slice %333 {offsets = [2, 0], sizes = [4, 16], strides = [1, 1]} : vector<10x16xf32> to vector<4x16xf32>
    %361 = vector.broadcast %359 : f32 to vector<4x16xf32>
    %362 = arith.mulf %361, %360 : vector<4x16xf32>
    %363 = arith.addf %358, %362 : vector<4x16xf32>
    %c25 = arith.constant 25 : index
    %364 = memref.load %arg1[%c25] : memref<294xf32, #tpu.memory_space<smem>>
    %365 = vector.extract_strided_slice %331 {offsets = [3, 0], sizes = [4, 16], strides = [1, 1]} : vector<10x16xf32> to vector<4x16xf32>
    %366 = vector.broadcast %364 : f32 to vector<4x16xf32>
    %367 = arith.mulf %366, %365 : vector<4x16xf32>
    %368 = arith.addf %363, %367 : vector<4x16xf32>
    %c74 = arith.constant 74 : index
    %369 = memref.load %arg1[%c74] : memref<294xf32, #tpu.memory_space<smem>>
    %370 = vector.extract_strided_slice %333 {offsets = [3, 0], sizes = [4, 16], strides = [1, 1]} : vector<10x16xf32> to vector<4x16xf32>
    %371 = vector.broadcast %369 : f32 to vector<4x16xf32>
    %372 = arith.mulf %371, %370 : vector<4x16xf32>
    %373 = arith.addf %368, %372 : vector<4x16xf32>
    %c32 = arith.constant 32 : index
    %374 = memref.load %arg1[%c32] : memref<294xf32, #tpu.memory_space<smem>>
    %375 = vector.extract_strided_slice %331 {offsets = [4, 0], sizes = [4, 16], strides = [1, 1]} : vector<10x16xf32> to vector<4x16xf32>
    %376 = vector.broadcast %374 : f32 to vector<4x16xf32>
    %377 = arith.mulf %376, %375 : vector<4x16xf32>
    %378 = arith.addf %373, %377 : vector<4x16xf32>
    %c81 = arith.constant 81 : index
    %379 = memref.load %arg1[%c81] : memref<294xf32, #tpu.memory_space<smem>>
    %380 = vector.extract_strided_slice %333 {offsets = [4, 0], sizes = [4, 16], strides = [1, 1]} : vector<10x16xf32> to vector<4x16xf32>
    %381 = vector.broadcast %379 : f32 to vector<4x16xf32>
    %382 = arith.mulf %381, %380 : vector<4x16xf32>
    %383 = arith.addf %378, %382 : vector<4x16xf32>
    %c39 = arith.constant 39 : index
    %384 = memref.load %arg1[%c39] : memref<294xf32, #tpu.memory_space<smem>>
    %385 = vector.extract_strided_slice %331 {offsets = [5, 0], sizes = [4, 16], strides = [1, 1]} : vector<10x16xf32> to vector<4x16xf32>
    %386 = vector.broadcast %384 : f32 to vector<4x16xf32>
    %387 = arith.mulf %386, %385 : vector<4x16xf32>
    %388 = arith.addf %383, %387 : vector<4x16xf32>
    %c88 = arith.constant 88 : index
    %389 = memref.load %arg1[%c88] : memref<294xf32, #tpu.memory_space<smem>>
    %390 = vector.extract_strided_slice %333 {offsets = [5, 0], sizes = [4, 16], strides = [1, 1]} : vector<10x16xf32> to vector<4x16xf32>
    %391 = vector.broadcast %389 : f32 to vector<4x16xf32>
    %392 = arith.mulf %391, %390 : vector<4x16xf32>
    %393 = arith.addf %388, %392 : vector<4x16xf32>
    %c46 = arith.constant 46 : index
    %394 = memref.load %arg1[%c46] : memref<294xf32, #tpu.memory_space<smem>>
    %395 = vector.extract_strided_slice %331 {offsets = [6, 0], sizes = [4, 16], strides = [1, 1]} : vector<10x16xf32> to vector<4x16xf32>
    %396 = vector.broadcast %394 : f32 to vector<4x16xf32>
    %397 = arith.mulf %396, %395 : vector<4x16xf32>
    %398 = arith.addf %393, %397 : vector<4x16xf32>
    %c95 = arith.constant 95 : index
    %399 = memref.load %arg1[%c95] : memref<294xf32, #tpu.memory_space<smem>>
    %400 = vector.extract_strided_slice %333 {offsets = [6, 0], sizes = [4, 16], strides = [1, 1]} : vector<10x16xf32> to vector<4x16xf32>
    %401 = vector.broadcast %399 : f32 to vector<4x16xf32>
    %402 = arith.mulf %401, %400 : vector<4x16xf32>
    %403 = arith.addf %398, %402 : vector<4x16xf32>
    %c0_70 = arith.constant 0 : index
    %c0_71 = arith.constant 0 : index
    %c5 = arith.constant 5 : index
    %404 = vector.load %arg7[%c0_70, %c0_71, %c5] : memref<2x10x22xf32, #tpu.memory_space<vmem>>, vector<1x10x16xf32>
    %405 = vector.shape_cast %404 : vector<1x10x16xf32> to vector<10x16xf32>
    %c1_72 = arith.constant 1 : index
    %c0_73 = arith.constant 0 : index
    %c5_74 = arith.constant 5 : index
    %406 = vector.load %arg7[%c1_72, %c0_73, %c5_74] : memref<2x10x22xf32, #tpu.memory_space<vmem>>, vector<1x10x16xf32>
    %407 = vector.shape_cast %406 : vector<1x10x16xf32> to vector<10x16xf32>
    %c5_75 = arith.constant 5 : index
    %408 = memref.load %arg1[%c5_75] : memref<294xf32, #tpu.memory_space<smem>>
    %409 = vector.extract_strided_slice %405 {offsets = [0, 0], sizes = [4, 16], strides = [1, 1]} : vector<10x16xf32> to vector<4x16xf32>
    %410 = vector.broadcast %408 : f32 to vector<4x16xf32>
    %411 = arith.mulf %410, %409 : vector<4x16xf32>
    %412 = arith.addf %403, %411 : vector<4x16xf32>
    %c54 = arith.constant 54 : index
    %413 = memref.load %arg1[%c54] : memref<294xf32, #tpu.memory_space<smem>>
    %414 = vector.extract_strided_slice %407 {offsets = [0, 0], sizes = [4, 16], strides = [1, 1]} : vector<10x16xf32> to vector<4x16xf32>
    %415 = vector.broadcast %413 : f32 to vector<4x16xf32>
    %416 = arith.mulf %415, %414 : vector<4x16xf32>
    %417 = arith.addf %412, %416 : vector<4x16xf32>
    %c12 = arith.constant 12 : index
    %418 = memref.load %arg1[%c12] : memref<294xf32, #tpu.memory_space<smem>>
    %419 = vector.extract_strided_slice %405 {offsets = [1, 0], sizes = [4, 16], strides = [1, 1]} : vector<10x16xf32> to vector<4x16xf32>
    %420 = vector.broadcast %418 : f32 to vector<4x16xf32>
    %421 = arith.mulf %420, %419 : vector<4x16xf32>
    %422 = arith.addf %417, %421 : vector<4x16xf32>
    %c61 = arith.constant 61 : index
    %423 = memref.load %arg1[%c61] : memref<294xf32, #tpu.memory_space<smem>>
    %424 = vector.extract_strided_slice %407 {offsets = [1, 0], sizes = [4, 16], strides = [1, 1]} : vector<10x16xf32> to vector<4x16xf32>
    %425 = vector.broadcast %423 : f32 to vector<4x16xf32>
    %426 = arith.mulf %425, %424 : vector<4x16xf32>
    %427 = arith.addf %422, %426 : vector<4x16xf32>
    %c19 = arith.constant 19 : index
    %428 = memref.load %arg1[%c19] : memref<294xf32, #tpu.memory_space<smem>>
    %429 = vector.extract_strided_slice %405 {offsets = [2, 0], sizes = [4, 16], strides = [1, 1]} : vector<10x16xf32> to vector<4x16xf32>
    %430 = vector.broadcast %428 : f32 to vector<4x16xf32>
    %431 = arith.mulf %430, %429 : vector<4x16xf32>
    %432 = arith.addf %427, %431 : vector<4x16xf32>
    %c68 = arith.constant 68 : index
    %433 = memref.load %arg1[%c68] : memref<294xf32, #tpu.memory_space<smem>>
    %434 = vector.extract_strided_slice %407 {offsets = [2, 0], sizes = [4, 16], strides = [1, 1]} : vector<10x16xf32> to vector<4x16xf32>
    %435 = vector.broadcast %433 : f32 to vector<4x16xf32>
    %436 = arith.mulf %435, %434 : vector<4x16xf32>
    %437 = arith.addf %432, %436 : vector<4x16xf32>
    %c26 = arith.constant 26 : index
    %438 = memref.load %arg1[%c26] : memref<294xf32, #tpu.memory_space<smem>>
    %439 = vector.extract_strided_slice %405 {offsets = [3, 0], sizes = [4, 16], strides = [1, 1]} : vector<10x16xf32> to vector<4x16xf32>
    %440 = vector.broadcast %438 : f32 to vector<4x16xf32>
    %441 = arith.mulf %440, %439 : vector<4x16xf32>
    %442 = arith.addf %437, %441 : vector<4x16xf32>
    %c75 = arith.constant 75 : index
    %443 = memref.load %arg1[%c75] : memref<294xf32, #tpu.memory_space<smem>>
    %444 = vector.extract_strided_slice %407 {offsets = [3, 0], sizes = [4, 16], strides = [1, 1]} : vector<10x16xf32> to vector<4x16xf32>
    %445 = vector.broadcast %443 : f32 to vector<4x16xf32>
    %446 = arith.mulf %445, %444 : vector<4x16xf32>
    %447 = arith.addf %442, %446 : vector<4x16xf32>
    %c33 = arith.constant 33 : index
    %448 = memref.load %arg1[%c33] : memref<294xf32, #tpu.memory_space<smem>>
    %449 = vector.extract_strided_slice %405 {offsets = [4, 0], sizes = [4, 16], strides = [1, 1]} : vector<10x16xf32> to vector<4x16xf32>
    %450 = vector.broadcast %448 : f32 to vector<4x16xf32>
    %451 = arith.mulf %450, %449 : vector<4x16xf32>
    %452 = arith.addf %447, %451 : vector<4x16xf32>
    %c82 = arith.constant 82 : index
    %453 = memref.load %arg1[%c82] : memref<294xf32, #tpu.memory_space<smem>>
    %454 = vector.extract_strided_slice %407 {offsets = [4, 0], sizes = [4, 16], strides = [1, 1]} : vector<10x16xf32> to vector<4x16xf32>
    %455 = vector.broadcast %453 : f32 to vector<4x16xf32>
    %456 = arith.mulf %455, %454 : vector<4x16xf32>
    %457 = arith.addf %452, %456 : vector<4x16xf32>
    %c40 = arith.constant 40 : index
    %458 = memref.load %arg1[%c40] : memref<294xf32, #tpu.memory_space<smem>>
    %459 = vector.extract_strided_slice %405 {offsets = [5, 0], sizes = [4, 16], strides = [1, 1]} : vector<10x16xf32> to vector<4x16xf32>
    %460 = vector.broadcast %458 : f32 to vector<4x16xf32>
    %461 = arith.mulf %460, %459 : vector<4x16xf32>
    %462 = arith.addf %457, %461 : vector<4x16xf32>
    %c89 = arith.constant 89 : index
    %463 = memref.load %arg1[%c89] : memref<294xf32, #tpu.memory_space<smem>>
    %464 = vector.extract_strided_slice %407 {offsets = [5, 0], sizes = [4, 16], strides = [1, 1]} : vector<10x16xf32> to vector<4x16xf32>
    %465 = vector.broadcast %463 : f32 to vector<4x16xf32>
    %466 = arith.mulf %465, %464 : vector<4x16xf32>
    %467 = arith.addf %462, %466 : vector<4x16xf32>
    %c47 = arith.constant 47 : index
    %468 = memref.load %arg1[%c47] : memref<294xf32, #tpu.memory_space<smem>>
    %469 = vector.extract_strided_slice %405 {offsets = [6, 0], sizes = [4, 16], strides = [1, 1]} : vector<10x16xf32> to vector<4x16xf32>
    %470 = vector.broadcast %468 : f32 to vector<4x16xf32>
    %471 = arith.mulf %470, %469 : vector<4x16xf32>
    %472 = arith.addf %467, %471 : vector<4x16xf32>
    %c96 = arith.constant 96 : index
    %473 = memref.load %arg1[%c96] : memref<294xf32, #tpu.memory_space<smem>>
    %474 = vector.extract_strided_slice %407 {offsets = [6, 0], sizes = [4, 16], strides = [1, 1]} : vector<10x16xf32> to vector<4x16xf32>
    %475 = vector.broadcast %473 : f32 to vector<4x16xf32>
    %476 = arith.mulf %475, %474 : vector<4x16xf32>
    %477 = arith.addf %472, %476 : vector<4x16xf32>
    %c0_76 = arith.constant 0 : index
    %c0_77 = arith.constant 0 : index
    %c6 = arith.constant 6 : index
    %478 = vector.load %arg7[%c0_76, %c0_77, %c6] : memref<2x10x22xf32, #tpu.memory_space<vmem>>, vector<1x10x16xf32>
    %479 = vector.shape_cast %478 : vector<1x10x16xf32> to vector<10x16xf32>
    %c1_78 = arith.constant 1 : index
    %c0_79 = arith.constant 0 : index
    %c6_80 = arith.constant 6 : index
    %480 = vector.load %arg7[%c1_78, %c0_79, %c6_80] : memref<2x10x22xf32, #tpu.memory_space<vmem>>, vector<1x10x16xf32>
    %481 = vector.shape_cast %480 : vector<1x10x16xf32> to vector<10x16xf32>
    %c6_81 = arith.constant 6 : index
    %482 = memref.load %arg1[%c6_81] : memref<294xf32, #tpu.memory_space<smem>>
    %483 = vector.extract_strided_slice %479 {offsets = [0, 0], sizes = [4, 16], strides = [1, 1]} : vector<10x16xf32> to vector<4x16xf32>
    %484 = vector.broadcast %482 : f32 to vector<4x16xf32>
    %485 = arith.mulf %484, %483 : vector<4x16xf32>
    %486 = arith.addf %477, %485 : vector<4x16xf32>
    %c55 = arith.constant 55 : index
    %487 = memref.load %arg1[%c55] : memref<294xf32, #tpu.memory_space<smem>>
    %488 = vector.extract_strided_slice %481 {offsets = [0, 0], sizes = [4, 16], strides = [1, 1]} : vector<10x16xf32> to vector<4x16xf32>
    %489 = vector.broadcast %487 : f32 to vector<4x16xf32>
    %490 = arith.mulf %489, %488 : vector<4x16xf32>
    %491 = arith.addf %486, %490 : vector<4x16xf32>
    %c13 = arith.constant 13 : index
    %492 = memref.load %arg1[%c13] : memref<294xf32, #tpu.memory_space<smem>>
    %493 = vector.extract_strided_slice %479 {offsets = [1, 0], sizes = [4, 16], strides = [1, 1]} : vector<10x16xf32> to vector<4x16xf32>
    %494 = vector.broadcast %492 : f32 to vector<4x16xf32>
    %495 = arith.mulf %494, %493 : vector<4x16xf32>
    %496 = arith.addf %491, %495 : vector<4x16xf32>
    %c62 = arith.constant 62 : index
    %497 = memref.load %arg1[%c62] : memref<294xf32, #tpu.memory_space<smem>>
    %498 = vector.extract_strided_slice %481 {offsets = [1, 0], sizes = [4, 16], strides = [1, 1]} : vector<10x16xf32> to vector<4x16xf32>
    %499 = vector.broadcast %497 : f32 to vector<4x16xf32>
    %500 = arith.mulf %499, %498 : vector<4x16xf32>
    %501 = arith.addf %496, %500 : vector<4x16xf32>
    %c20 = arith.constant 20 : index
    %502 = memref.load %arg1[%c20] : memref<294xf32, #tpu.memory_space<smem>>
    %503 = vector.extract_strided_slice %479 {offsets = [2, 0], sizes = [4, 16], strides = [1, 1]} : vector<10x16xf32> to vector<4x16xf32>
    %504 = vector.broadcast %502 : f32 to vector<4x16xf32>
    %505 = arith.mulf %504, %503 : vector<4x16xf32>
    %506 = arith.addf %501, %505 : vector<4x16xf32>
    %c69 = arith.constant 69 : index
    %507 = memref.load %arg1[%c69] : memref<294xf32, #tpu.memory_space<smem>>
    %508 = vector.extract_strided_slice %481 {offsets = [2, 0], sizes = [4, 16], strides = [1, 1]} : vector<10x16xf32> to vector<4x16xf32>
    %509 = vector.broadcast %507 : f32 to vector<4x16xf32>
    %510 = arith.mulf %509, %508 : vector<4x16xf32>
    %511 = arith.addf %506, %510 : vector<4x16xf32>
    %c27 = arith.constant 27 : index
    %512 = memref.load %arg1[%c27] : memref<294xf32, #tpu.memory_space<smem>>
    %513 = vector.extract_strided_slice %479 {offsets = [3, 0], sizes = [4, 16], strides = [1, 1]} : vector<10x16xf32> to vector<4x16xf32>
    %514 = vector.broadcast %512 : f32 to vector<4x16xf32>
    %515 = arith.mulf %514, %513 : vector<4x16xf32>
    %516 = arith.addf %511, %515 : vector<4x16xf32>
    %c76 = arith.constant 76 : index
    %517 = memref.load %arg1[%c76] : memref<294xf32, #tpu.memory_space<smem>>
    %518 = vector.extract_strided_slice %481 {offsets = [3, 0], sizes = [4, 16], strides = [1, 1]} : vector<10x16xf32> to vector<4x16xf32>
    %519 = vector.broadcast %517 : f32 to vector<4x16xf32>
    %520 = arith.mulf %519, %518 : vector<4x16xf32>
    %521 = arith.addf %516, %520 : vector<4x16xf32>
    %c34 = arith.constant 34 : index
    %522 = memref.load %arg1[%c34] : memref<294xf32, #tpu.memory_space<smem>>
    %523 = vector.extract_strided_slice %479 {offsets = [4, 0], sizes = [4, 16], strides = [1, 1]} : vector<10x16xf32> to vector<4x16xf32>
    %524 = vector.broadcast %522 : f32 to vector<4x16xf32>
    %525 = arith.mulf %524, %523 : vector<4x16xf32>
    %526 = arith.addf %521, %525 : vector<4x16xf32>
    %c83 = arith.constant 83 : index
    %527 = memref.load %arg1[%c83] : memref<294xf32, #tpu.memory_space<smem>>
    %528 = vector.extract_strided_slice %481 {offsets = [4, 0], sizes = [4, 16], strides = [1, 1]} : vector<10x16xf32> to vector<4x16xf32>
    %529 = vector.broadcast %527 : f32 to vector<4x16xf32>
    %530 = arith.mulf %529, %528 : vector<4x16xf32>
    %531 = arith.addf %526, %530 : vector<4x16xf32>
    %c41 = arith.constant 41 : index
    %532 = memref.load %arg1[%c41] : memref<294xf32, #tpu.memory_space<smem>>
    %533 = vector.extract_strided_slice %479 {offsets = [5, 0], sizes = [4, 16], strides = [1, 1]} : vector<10x16xf32> to vector<4x16xf32>
    %534 = vector.broadcast %532 : f32 to vector<4x16xf32>
    %535 = arith.mulf %534, %533 : vector<4x16xf32>
    %536 = arith.addf %531, %535 : vector<4x16xf32>
    %c90 = arith.constant 90 : index
    %537 = memref.load %arg1[%c90] : memref<294xf32, #tpu.memory_space<smem>>
    %538 = vector.extract_strided_slice %481 {offsets = [5, 0], sizes = [4, 16], strides = [1, 1]} : vector<10x16xf32> to vector<4x16xf32>
    %539 = vector.broadcast %537 : f32 to vector<4x16xf32>
    %540 = arith.mulf %539, %538 : vector<4x16xf32>
    %541 = arith.addf %536, %540 : vector<4x16xf32>
    %c48 = arith.constant 48 : index
    %542 = memref.load %arg1[%c48] : memref<294xf32, #tpu.memory_space<smem>>
    %543 = vector.extract_strided_slice %479 {offsets = [6, 0], sizes = [4, 16], strides = [1, 1]} : vector<10x16xf32> to vector<4x16xf32>
    %544 = vector.broadcast %542 : f32 to vector<4x16xf32>
    %545 = arith.mulf %544, %543 : vector<4x16xf32>
    %546 = arith.addf %541, %545 : vector<4x16xf32>
    %c97 = arith.constant 97 : index
    %547 = memref.load %arg1[%c97] : memref<294xf32, #tpu.memory_space<smem>>
    %548 = vector.extract_strided_slice %481 {offsets = [6, 0], sizes = [4, 16], strides = [1, 1]} : vector<10x16xf32> to vector<4x16xf32>
    %549 = vector.broadcast %547 : f32 to vector<4x16xf32>
    %550 = arith.mulf %549, %548 : vector<4x16xf32>
    %551 = arith.addf %546, %550 : vector<4x16xf32>
    %552 = arith.negf %551 : vector<4x16xf32>
    %553 = math.exp %552 : vector<4x16xf32>
    %cst_82 = arith.constant 1.000000e+00 : f32
    %554 = vector.broadcast %cst_82 : f32 to vector<4x16xf32>
    %555 = arith.addf %554, %553 : vector<4x16xf32>
    %556 = arith.divf %554, %555 : vector<4x16xf32>
    %557 = arith.mulf %551, %556 : vector<4x16xf32>
    %cst_83 = arith.constant 0.333333343 : f32
    %558 = vector.broadcast %cst_83 : f32 to vector<4x16xf32>
    %559 = arith.mulf %557, %558 : vector<4x16xf32>
    %560 = vector.shape_cast %559 : vector<4x16xf32> to vector<1x4x16xf32>
    %c0_84 = arith.constant 0 : index
    %c0_85 = arith.constant 0 : index
    %c0_86 = arith.constant 0 : index
    %561 = vector.load %arg4[%c0_84, %c0_85, %c0_86] : memref<1x4x16xf32, #tpu.memory_space<vmem>>, vector<1x4x16xf32>
    tpu.vector_store %arg4[%c0_84, %c0_85, %c0_86], %560 {strides = array<i32>} : memref<1x4x16xf32, #tpu.memory_space<vmem>>, vector<1x4x16xf32>,
    %c1_87 = arith.constant 1 : index
    %562 = memref.load %arg2[%c1_87] : memref<3xf32, #tpu.memory_space<smem>>
    %563 = vector.broadcast %562 : f32 to vector<4x16xf32>
    %c0_88 = arith.constant 0 : index
    %c0_89 = arith.constant 0 : index
    %c0_90 = arith.constant 0 : index
    %564 = vector.load %arg8[%c0_88, %c0_89, %c0_90] : memref<2x10x22xf32, #tpu.memory_space<vmem>>, vector<1x10x16xf32>
    %565 = vector.shape_cast %564 : vector<1x10x16xf32> to vector<10x16xf32>
    %c1_91 = arith.constant 1 : index
    %c0_92 = arith.constant 0 : index
    %c0_93 = arith.constant 0 : index
    %566 = vector.load %arg8[%c1_91, %c0_92, %c0_93] : memref<2x10x22xf32, #tpu.memory_space<vmem>>, vector<1x10x16xf32>
    %567 = vector.shape_cast %566 : vector<1x10x16xf32> to vector<10x16xf32>
    %c98 = arith.constant 98 : index
    %568 = memref.load %arg1[%c98] : memref<294xf32, #tpu.memory_space<smem>>
    %569 = vector.extract_strided_slice %565 {offsets = [0, 0], sizes = [4, 16], strides = [1, 1]} : vector<10x16xf32> to vector<4x16xf32>
    %570 = vector.broadcast %568 : f32 to vector<4x16xf32>
    %571 = arith.mulf %570, %569 : vector<4x16xf32>
    %572 = arith.addf %563, %571 : vector<4x16xf32>
    %c147 = arith.constant 147 : index
    %573 = memref.load %arg1[%c147] : memref<294xf32, #tpu.memory_space<smem>>
    %574 = vector.extract_strided_slice %567 {offsets = [0, 0], sizes = [4, 16], strides = [1, 1]} : vector<10x16xf32> to vector<4x16xf32>
    %575 = vector.broadcast %573 : f32 to vector<4x16xf32>
    %576 = arith.mulf %575, %574 : vector<4x16xf32>
    %577 = arith.addf %572, %576 : vector<4x16xf32>
    %c105 = arith.constant 105 : index
    %578 = memref.load %arg1[%c105] : memref<294xf32, #tpu.memory_space<smem>>
    %579 = vector.extract_strided_slice %565 {offsets = [1, 0], sizes = [4, 16], strides = [1, 1]} : vector<10x16xf32> to vector<4x16xf32>
    %580 = vector.broadcast %578 : f32 to vector<4x16xf32>
    %581 = arith.mulf %580, %579 : vector<4x16xf32>
    %582 = arith.addf %577, %581 : vector<4x16xf32>
    %c154 = arith.constant 154 : index
    %583 = memref.load %arg1[%c154] : memref<294xf32, #tpu.memory_space<smem>>
    %584 = vector.extract_strided_slice %567 {offsets = [1, 0], sizes = [4, 16], strides = [1, 1]} : vector<10x16xf32> to vector<4x16xf32>
    %585 = vector.broadcast %583 : f32 to vector<4x16xf32>
    %586 = arith.mulf %585, %584 : vector<4x16xf32>
    %587 = arith.addf %582, %586 : vector<4x16xf32>
    %c112 = arith.constant 112 : index
    %588 = memref.load %arg1[%c112] : memref<294xf32, #tpu.memory_space<smem>>
    %589 = vector.extract_strided_slice %565 {offsets = [2, 0], sizes = [4, 16], strides = [1, 1]} : vector<10x16xf32> to vector<4x16xf32>
    %590 = vector.broadcast %588 : f32 to vector<4x16xf32>
    %591 = arith.mulf %590, %589 : vector<4x16xf32>
    %592 = arith.addf %587, %591 : vector<4x16xf32>
    %c161 = arith.constant 161 : index
    %593 = memref.load %arg1[%c161] : memref<294xf32, #tpu.memory_space<smem>>
    %594 = vector.extract_strided_slice %567 {offsets = [2, 0], sizes = [4, 16], strides = [1, 1]} : vector<10x16xf32> to vector<4x16xf32>
    %595 = vector.broadcast %593 : f32 to vector<4x16xf32>
    %596 = arith.mulf %595, %594 : vector<4x16xf32>
    %597 = arith.addf %592, %596 : vector<4x16xf32>
    %c119 = arith.constant 119 : index
    %598 = memref.load %arg1[%c119] : memref<294xf32, #tpu.memory_space<smem>>
    %599 = vector.extract_strided_slice %565 {offsets = [3, 0], sizes = [4, 16], strides = [1, 1]} : vector<10x16xf32> to vector<4x16xf32>
    %600 = vector.broadcast %598 : f32 to vector<4x16xf32>
    %601 = arith.mulf %600, %599 : vector<4x16xf32>
    %602 = arith.addf %597, %601 : vector<4x16xf32>
    %c168 = arith.constant 168 : index
    %603 = memref.load %arg1[%c168] : memref<294xf32, #tpu.memory_space<smem>>
    %604 = vector.extract_strided_slice %567 {offsets = [3, 0], sizes = [4, 16], strides = [1, 1]} : vector<10x16xf32> to vector<4x16xf32>
    %605 = vector.broadcast %603 : f32 to vector<4x16xf32>
    %606 = arith.mulf %605, %604 : vector<4x16xf32>
    %607 = arith.addf %602, %606 : vector<4x16xf32>
    %c126 = arith.constant 126 : index
    %608 = memref.load %arg1[%c126] : memref<294xf32, #tpu.memory_space<smem>>
    %609 = vector.extract_strided_slice %565 {offsets = [4, 0], sizes = [4, 16], strides = [1, 1]} : vector<10x16xf32> to vector<4x16xf32>
    %610 = vector.broadcast %608 : f32 to vector<4x16xf32>
    %611 = arith.mulf %610, %609 : vector<4x16xf32>
    %612 = arith.addf %607, %611 : vector<4x16xf32>
    %c175 = arith.constant 175 : index
    %613 = memref.load %arg1[%c175] : memref<294xf32, #tpu.memory_space<smem>>
    %614 = vector.extract_strided_slice %567 {offsets = [4, 0], sizes = [4, 16], strides = [1, 1]} : vector<10x16xf32> to vector<4x16xf32>
    %615 = vector.broadcast %613 : f32 to vector<4x16xf32>
    %616 = arith.mulf %615, %614 : vector<4x16xf32>
    %617 = arith.addf %612, %616 : vector<4x16xf32>
    %c133 = arith.constant 133 : index
    %618 = memref.load %arg1[%c133] : memref<294xf32, #tpu.memory_space<smem>>
    %619 = vector.extract_strided_slice %565 {offsets = [5, 0], sizes = [4, 16], strides = [1, 1]} : vector<10x16xf32> to vector<4x16xf32>
    %620 = vector.broadcast %618 : f32 to vector<4x16xf32>
    %621 = arith.mulf %620, %619 : vector<4x16xf32>
    %622 = arith.addf %617, %621 : vector<4x16xf32>
    %c182 = arith.constant 182 : index
    %623 = memref.load %arg1[%c182] : memref<294xf32, #tpu.memory_space<smem>>
    %624 = vector.extract_strided_slice %567 {offsets = [5, 0], sizes = [4, 16], strides = [1, 1]} : vector<10x16xf32> to vector<4x16xf32>
    %625 = vector.broadcast %623 : f32 to vector<4x16xf32>
    %626 = arith.mulf %625, %624 : vector<4x16xf32>
    %627 = arith.addf %622, %626 : vector<4x16xf32>
    %c140 = arith.constant 140 : index
    %628 = memref.load %arg1[%c140] : memref<294xf32, #tpu.memory_space<smem>>
    %629 = vector.extract_strided_slice %565 {offsets = [6, 0], sizes = [4, 16], strides = [1, 1]} : vector<10x16xf32> to vector<4x16xf32>
    %630 = vector.broadcast %628 : f32 to vector<4x16xf32>
    %631 = arith.mulf %630, %629 : vector<4x16xf32>
    %632 = arith.addf %627, %631 : vector<4x16xf32>
    %c189 = arith.constant 189 : index
    %633 = memref.load %arg1[%c189] : memref<294xf32, #tpu.memory_space<smem>>
    %634 = vector.extract_strided_slice %567 {offsets = [6, 0], sizes = [4, 16], strides = [1, 1]} : vector<10x16xf32> to vector<4x16xf32>
    %635 = vector.broadcast %633 : f32 to vector<4x16xf32>
    %636 = arith.mulf %635, %634 : vector<4x16xf32>
    %637 = arith.addf %632, %636 : vector<4x16xf32>
    %c0_94 = arith.constant 0 : index
    %c0_95 = arith.constant 0 : index
    %c1_96 = arith.constant 1 : index
    %638 = vector.load %arg8[%c0_94, %c0_95, %c1_96] : memref<2x10x22xf32, #tpu.memory_space<vmem>>, vector<1x10x16xf32>
    %639 = vector.shape_cast %638 : vector<1x10x16xf32> to vector<10x16xf32>
    %c1_97 = arith.constant 1 : index
    %c0_98 = arith.constant 0 : index
    %c1_99 = arith.constant 1 : index
    %640 = vector.load %arg8[%c1_97, %c0_98, %c1_99] : memref<2x10x22xf32, #tpu.memory_space<vmem>>, vector<1x10x16xf32>
    %641 = vector.shape_cast %640 : vector<1x10x16xf32> to vector<10x16xf32>
    %c99 = arith.constant 99 : index
    %642 = memref.load %arg1[%c99] : memref<294xf32, #tpu.memory_space<smem>>
    %643 = vector.extract_strided_slice %639 {offsets = [0, 0], sizes = [4, 16], strides = [1, 1]} : vector<10x16xf32> to vector<4x16xf32>
    %644 = vector.broadcast %642 : f32 to vector<4x16xf32>
    %645 = arith.mulf %644, %643 : vector<4x16xf32>
    %646 = arith.addf %637, %645 : vector<4x16xf32>
    %c148 = arith.constant 148 : index
    %647 = memref.load %arg1[%c148] : memref<294xf32, #tpu.memory_space<smem>>
    %648 = vector.extract_strided_slice %641 {offsets = [0, 0], sizes = [4, 16], strides = [1, 1]} : vector<10x16xf32> to vector<4x16xf32>
    %649 = vector.broadcast %647 : f32 to vector<4x16xf32>
    %650 = arith.mulf %649, %648 : vector<4x16xf32>
    %651 = arith.addf %646, %650 : vector<4x16xf32>
    %c106 = arith.constant 106 : index
    %652 = memref.load %arg1[%c106] : memref<294xf32, #tpu.memory_space<smem>>
    %653 = vector.extract_strided_slice %639 {offsets = [1, 0], sizes = [4, 16], strides = [1, 1]} : vector<10x16xf32> to vector<4x16xf32>
    %654 = vector.broadcast %652 : f32 to vector<4x16xf32>
    %655 = arith.mulf %654, %653 : vector<4x16xf32>
    %656 = arith.addf %651, %655 : vector<4x16xf32>
    %c155 = arith.constant 155 : index
    %657 = memref.load %arg1[%c155] : memref<294xf32, #tpu.memory_space<smem>>
    %658 = vector.extract_strided_slice %641 {offsets = [1, 0], sizes = [4, 16], strides = [1, 1]} : vector<10x16xf32> to vector<4x16xf32>
    %659 = vector.broadcast %657 : f32 to vector<4x16xf32>
    %660 = arith.mulf %659, %658 : vector<4x16xf32>
    %661 = arith.addf %656, %660 : vector<4x16xf32>
    %c113 = arith.constant 113 : index
    %662 = memref.load %arg1[%c113] : memref<294xf32, #tpu.memory_space<smem>>
    %663 = vector.extract_strided_slice %639 {offsets = [2, 0], sizes = [4, 16], strides = [1, 1]} : vector<10x16xf32> to vector<4x16xf32>
    %664 = vector.broadcast %662 : f32 to vector<4x16xf32>
    %665 = arith.mulf %664, %663 : vector<4x16xf32>
    %666 = arith.addf %661, %665 : vector<4x16xf32>
    %c162 = arith.constant 162 : index
    %667 = memref.load %arg1[%c162] : memref<294xf32, #tpu.memory_space<smem>>
    %668 = vector.extract_strided_slice %641 {offsets = [2, 0], sizes = [4, 16], strides = [1, 1]} : vector<10x16xf32> to vector<4x16xf32>
    %669 = vector.broadcast %667 : f32 to vector<4x16xf32>
    %670 = arith.mulf %669, %668 : vector<4x16xf32>
    %671 = arith.addf %666, %670 : vector<4x16xf32>
    %c120 = arith.constant 120 : index
    %672 = memref.load %arg1[%c120] : memref<294xf32, #tpu.memory_space<smem>>
    %673 = vector.extract_strided_slice %639 {offsets = [3, 0], sizes = [4, 16], strides = [1, 1]} : vector<10x16xf32> to vector<4x16xf32>
    %674 = vector.broadcast %672 : f32 to vector<4x16xf32>
    %675 = arith.mulf %674, %673 : vector<4x16xf32>
    %676 = arith.addf %671, %675 : vector<4x16xf32>
    %c169 = arith.constant 169 : index
    %677 = memref.load %arg1[%c169] : memref<294xf32, #tpu.memory_space<smem>>
    %678 = vector.extract_strided_slice %641 {offsets = [3, 0], sizes = [4, 16], strides = [1, 1]} : vector<10x16xf32> to vector<4x16xf32>
    %679 = vector.broadcast %677 : f32 to vector<4x16xf32>
    %680 = arith.mulf %679, %678 : vector<4x16xf32>
    %681 = arith.addf %676, %680 : vector<4x16xf32>
    %c127 = arith.constant 127 : index
    %682 = memref.load %arg1[%c127] : memref<294xf32, #tpu.memory_space<smem>>
    %683 = vector.extract_strided_slice %639 {offsets = [4, 0], sizes = [4, 16], strides = [1, 1]} : vector<10x16xf32> to vector<4x16xf32>
    %684 = vector.broadcast %682 : f32 to vector<4x16xf32>
    %685 = arith.mulf %684, %683 : vector<4x16xf32>
    %686 = arith.addf %681, %685 : vector<4x16xf32>
    %c176 = arith.constant 176 : index
    %687 = memref.load %arg1[%c176] : memref<294xf32, #tpu.memory_space<smem>>
    %688 = vector.extract_strided_slice %641 {offsets = [4, 0], sizes = [4, 16], strides = [1, 1]} : vector<10x16xf32> to vector<4x16xf32>
    %689 = vector.broadcast %687 : f32 to vector<4x16xf32>
    %690 = arith.mulf %689, %688 : vector<4x16xf32>
    %691 = arith.addf %686, %690 : vector<4x16xf32>
    %c134 = arith.constant 134 : index
    %692 = memref.load %arg1[%c134] : memref<294xf32, #tpu.memory_space<smem>>
    %693 = vector.extract_strided_slice %639 {offsets = [5, 0], sizes = [4, 16], strides = [1, 1]} : vector<10x16xf32> to vector<4x16xf32>
    %694 = vector.broadcast %692 : f32 to vector<4x16xf32>
    %695 = arith.mulf %694, %693 : vector<4x16xf32>
    %696 = arith.addf %691, %695 : vector<4x16xf32>
    %c183 = arith.constant 183 : index
    %697 = memref.load %arg1[%c183] : memref<294xf32, #tpu.memory_space<smem>>
    %698 = vector.extract_strided_slice %641 {offsets = [5, 0], sizes = [4, 16], strides = [1, 1]} : vector<10x16xf32> to vector<4x16xf32>
    %699 = vector.broadcast %697 : f32 to vector<4x16xf32>
    %700 = arith.mulf %699, %698 : vector<4x16xf32>
    %701 = arith.addf %696, %700 : vector<4x16xf32>
    %c141 = arith.constant 141 : index
    %702 = memref.load %arg1[%c141] : memref<294xf32, #tpu.memory_space<smem>>
    %703 = vector.extract_strided_slice %639 {offsets = [6, 0], sizes = [4, 16], strides = [1, 1]} : vector<10x16xf32> to vector<4x16xf32>
    %704 = vector.broadcast %702 : f32 to vector<4x16xf32>
    %705 = arith.mulf %704, %703 : vector<4x16xf32>
    %706 = arith.addf %701, %705 : vector<4x16xf32>
    %c190 = arith.constant 190 : index
    %707 = memref.load %arg1[%c190] : memref<294xf32, #tpu.memory_space<smem>>
    %708 = vector.extract_strided_slice %641 {offsets = [6, 0], sizes = [4, 16], strides = [1, 1]} : vector<10x16xf32> to vector<4x16xf32>
    %709 = vector.broadcast %707 : f32 to vector<4x16xf32>
    %710 = arith.mulf %709, %708 : vector<4x16xf32>
    %711 = arith.addf %706, %710 : vector<4x16xf32>
    %c0_100 = arith.constant 0 : index
    %c0_101 = arith.constant 0 : index
    %c2_102 = arith.constant 2 : index
    %712 = vector.load %arg8[%c0_100, %c0_101, %c2_102] : memref<2x10x22xf32, #tpu.memory_space<vmem>>, vector<1x10x16xf32>
    %713 = vector.shape_cast %712 : vector<1x10x16xf32> to vector<10x16xf32>
    %c1_103 = arith.constant 1 : index
    %c0_104 = arith.constant 0 : index
    %c2_105 = arith.constant 2 : index
    %714 = vector.load %arg8[%c1_103, %c0_104, %c2_105] : memref<2x10x22xf32, #tpu.memory_space<vmem>>, vector<1x10x16xf32>
    %715 = vector.shape_cast %714 : vector<1x10x16xf32> to vector<10x16xf32>
    %c100 = arith.constant 100 : index
    %716 = memref.load %arg1[%c100] : memref<294xf32, #tpu.memory_space<smem>>
    %717 = vector.extract_strided_slice %713 {offsets = [0, 0], sizes = [4, 16], strides = [1, 1]} : vector<10x16xf32> to vector<4x16xf32>
    %718 = vector.broadcast %716 : f32 to vector<4x16xf32>
    %719 = arith.mulf %718, %717 : vector<4x16xf32>
    %720 = arith.addf %711, %719 : vector<4x16xf32>
    %c149 = arith.constant 149 : index
    %721 = memref.load %arg1[%c149] : memref<294xf32, #tpu.memory_space<smem>>
    %722 = vector.extract_strided_slice %715 {offsets = [0, 0], sizes = [4, 16], strides = [1, 1]} : vector<10x16xf32> to vector<4x16xf32>
    %723 = vector.broadcast %721 : f32 to vector<4x16xf32>
    %724 = arith.mulf %723, %722 : vector<4x16xf32>
    %725 = arith.addf %720, %724 : vector<4x16xf32>
    %c107 = arith.constant 107 : index
    %726 = memref.load %arg1[%c107] : memref<294xf32, #tpu.memory_space<smem>>
    %727 = vector.extract_strided_slice %713 {offsets = [1, 0], sizes = [4, 16], strides = [1, 1]} : vector<10x16xf32> to vector<4x16xf32>
    %728 = vector.broadcast %726 : f32 to vector<4x16xf32>
    %729 = arith.mulf %728, %727 : vector<4x16xf32>
    %730 = arith.addf %725, %729 : vector<4x16xf32>
    %c156 = arith.constant 156 : index
    %731 = memref.load %arg1[%c156] : memref<294xf32, #tpu.memory_space<smem>>
    %732 = vector.extract_strided_slice %715 {offsets = [1, 0], sizes = [4, 16], strides = [1, 1]} : vector<10x16xf32> to vector<4x16xf32>
    %733 = vector.broadcast %731 : f32 to vector<4x16xf32>
    %734 = arith.mulf %733, %732 : vector<4x16xf32>
    %735 = arith.addf %730, %734 : vector<4x16xf32>
    %c114 = arith.constant 114 : index
    %736 = memref.load %arg1[%c114] : memref<294xf32, #tpu.memory_space<smem>>
    %737 = vector.extract_strided_slice %713 {offsets = [2, 0], sizes = [4, 16], strides = [1, 1]} : vector<10x16xf32> to vector<4x16xf32>
    %738 = vector.broadcast %736 : f32 to vector<4x16xf32>
    %739 = arith.mulf %738, %737 : vector<4x16xf32>
    %740 = arith.addf %735, %739 : vector<4x16xf32>
    %c163 = arith.constant 163 : index
    %741 = memref.load %arg1[%c163] : memref<294xf32, #tpu.memory_space<smem>>
    %742 = vector.extract_strided_slice %715 {offsets = [2, 0], sizes = [4, 16], strides = [1, 1]} : vector<10x16xf32> to vector<4x16xf32>
    %743 = vector.broadcast %741 : f32 to vector<4x16xf32>
    %744 = arith.mulf %743, %742 : vector<4x16xf32>
    %745 = arith.addf %740, %744 : vector<4x16xf32>
    %c121 = arith.constant 121 : index
    %746 = memref.load %arg1[%c121] : memref<294xf32, #tpu.memory_space<smem>>
    %747 = vector.extract_strided_slice %713 {offsets = [3, 0], sizes = [4, 16], strides = [1, 1]} : vector<10x16xf32> to vector<4x16xf32>
    %748 = vector.broadcast %746 : f32 to vector<4x16xf32>
    %749 = arith.mulf %748, %747 : vector<4x16xf32>
    %750 = arith.addf %745, %749 : vector<4x16xf32>
    %c170 = arith.constant 170 : index
    %751 = memref.load %arg1[%c170] : memref<294xf32, #tpu.memory_space<smem>>
    %752 = vector.extract_strided_slice %715 {offsets = [3, 0], sizes = [4, 16], strides = [1, 1]} : vector<10x16xf32> to vector<4x16xf32>
    %753 = vector.broadcast %751 : f32 to vector<4x16xf32>
    %754 = arith.mulf %753, %752 : vector<4x16xf32>
    %755 = arith.addf %750, %754 : vector<4x16xf32>
    %c128 = arith.constant 128 : index
    %756 = memref.load %arg1[%c128] : memref<294xf32, #tpu.memory_space<smem>>
    %757 = vector.extract_strided_slice %713 {offsets = [4, 0], sizes = [4, 16], strides = [1, 1]} : vector<10x16xf32> to vector<4x16xf32>
    %758 = vector.broadcast %756 : f32 to vector<4x16xf32>
    %759 = arith.mulf %758, %757 : vector<4x16xf32>
    %760 = arith.addf %755, %759 : vector<4x16xf32>
    %c177 = arith.constant 177 : index
    %761 = memref.load %arg1[%c177] : memref<294xf32, #tpu.memory_space<smem>>
    %762 = vector.extract_strided_slice %715 {offsets = [4, 0], sizes = [4, 16], strides = [1, 1]} : vector<10x16xf32> to vector<4x16xf32>
    %763 = vector.broadcast %761 : f32 to vector<4x16xf32>
    %764 = arith.mulf %763, %762 : vector<4x16xf32>
    %765 = arith.addf %760, %764 : vector<4x16xf32>
    %c135 = arith.constant 135 : index
    %766 = memref.load %arg1[%c135] : memref<294xf32, #tpu.memory_space<smem>>
    %767 = vector.extract_strided_slice %713 {offsets = [5, 0], sizes = [4, 16], strides = [1, 1]} : vector<10x16xf32> to vector<4x16xf32>
    %768 = vector.broadcast %766 : f32 to vector<4x16xf32>
    %769 = arith.mulf %768, %767 : vector<4x16xf32>
    %770 = arith.addf %765, %769 : vector<4x16xf32>
    %c184 = arith.constant 184 : index
    %771 = memref.load %arg1[%c184] : memref<294xf32, #tpu.memory_space<smem>>
    %772 = vector.extract_strided_slice %715 {offsets = [5, 0], sizes = [4, 16], strides = [1, 1]} : vector<10x16xf32> to vector<4x16xf32>
    %773 = vector.broadcast %771 : f32 to vector<4x16xf32>
    %774 = arith.mulf %773, %772 : vector<4x16xf32>
    %775 = arith.addf %770, %774 : vector<4x16xf32>
    %c142 = arith.constant 142 : index
    %776 = memref.load %arg1[%c142] : memref<294xf32, #tpu.memory_space<smem>>
    %777 = vector.extract_strided_slice %713 {offsets = [6, 0], sizes = [4, 16], strides = [1, 1]} : vector<10x16xf32> to vector<4x16xf32>
    %778 = vector.broadcast %776 : f32 to vector<4x16xf32>
    %779 = arith.mulf %778, %777 : vector<4x16xf32>
    %780 = arith.addf %775, %779 : vector<4x16xf32>
    %c191 = arith.constant 191 : index
    %781 = memref.load %arg1[%c191] : memref<294xf32, #tpu.memory_space<smem>>
    %782 = vector.extract_strided_slice %715 {offsets = [6, 0], sizes = [4, 16], strides = [1, 1]} : vector<10x16xf32> to vector<4x16xf32>
    %783 = vector.broadcast %781 : f32 to vector<4x16xf32>
    %784 = arith.mulf %783, %782 : vector<4x16xf32>
    %785 = arith.addf %780, %784 : vector<4x16xf32>
    %c0_106 = arith.constant 0 : index
    %c0_107 = arith.constant 0 : index
    %c3_108 = arith.constant 3 : index
    %786 = vector.load %arg8[%c0_106, %c0_107, %c3_108] : memref<2x10x22xf32, #tpu.memory_space<vmem>>, vector<1x10x16xf32>
    %787 = vector.shape_cast %786 : vector<1x10x16xf32> to vector<10x16xf32>
    %c1_109 = arith.constant 1 : index
    %c0_110 = arith.constant 0 : index
    %c3_111 = arith.constant 3 : index
    %788 = vector.load %arg8[%c1_109, %c0_110, %c3_111] : memref<2x10x22xf32, #tpu.memory_space<vmem>>, vector<1x10x16xf32>
    %789 = vector.shape_cast %788 : vector<1x10x16xf32> to vector<10x16xf32>
    %c101 = arith.constant 101 : index
    %790 = memref.load %arg1[%c101] : memref<294xf32, #tpu.memory_space<smem>>
    %791 = vector.extract_strided_slice %787 {offsets = [0, 0], sizes = [4, 16], strides = [1, 1]} : vector<10x16xf32> to vector<4x16xf32>
    %792 = vector.broadcast %790 : f32 to vector<4x16xf32>
    %793 = arith.mulf %792, %791 : vector<4x16xf32>
    %794 = arith.addf %785, %793 : vector<4x16xf32>
    %c150 = arith.constant 150 : index
    %795 = memref.load %arg1[%c150] : memref<294xf32, #tpu.memory_space<smem>>
    %796 = vector.extract_strided_slice %789 {offsets = [0, 0], sizes = [4, 16], strides = [1, 1]} : vector<10x16xf32> to vector<4x16xf32>
    %797 = vector.broadcast %795 : f32 to vector<4x16xf32>
    %798 = arith.mulf %797, %796 : vector<4x16xf32>
    %799 = arith.addf %794, %798 : vector<4x16xf32>
    %c108 = arith.constant 108 : index
    %800 = memref.load %arg1[%c108] : memref<294xf32, #tpu.memory_space<smem>>
    %801 = vector.extract_strided_slice %787 {offsets = [1, 0], sizes = [4, 16], strides = [1, 1]} : vector<10x16xf32> to vector<4x16xf32>
    %802 = vector.broadcast %800 : f32 to vector<4x16xf32>
    %803 = arith.mulf %802, %801 : vector<4x16xf32>
    %804 = arith.addf %799, %803 : vector<4x16xf32>
    %c157 = arith.constant 157 : index
    %805 = memref.load %arg1[%c157] : memref<294xf32, #tpu.memory_space<smem>>
    %806 = vector.extract_strided_slice %789 {offsets = [1, 0], sizes = [4, 16], strides = [1, 1]} : vector<10x16xf32> to vector<4x16xf32>
    %807 = vector.broadcast %805 : f32 to vector<4x16xf32>
    %808 = arith.mulf %807, %806 : vector<4x16xf32>
    %809 = arith.addf %804, %808 : vector<4x16xf32>
    %c115 = arith.constant 115 : index
    %810 = memref.load %arg1[%c115] : memref<294xf32, #tpu.memory_space<smem>>
    %811 = vector.extract_strided_slice %787 {offsets = [2, 0], sizes = [4, 16], strides = [1, 1]} : vector<10x16xf32> to vector<4x16xf32>
    %812 = vector.broadcast %810 : f32 to vector<4x16xf32>
    %813 = arith.mulf %812, %811 : vector<4x16xf32>
    %814 = arith.addf %809, %813 : vector<4x16xf32>
    %c164 = arith.constant 164 : index
    %815 = memref.load %arg1[%c164] : memref<294xf32, #tpu.memory_space<smem>>
    %816 = vector.extract_strided_slice %789 {offsets = [2, 0], sizes = [4, 16], strides = [1, 1]} : vector<10x16xf32> to vector<4x16xf32>
    %817 = vector.broadcast %815 : f32 to vector<4x16xf32>
    %818 = arith.mulf %817, %816 : vector<4x16xf32>
    %819 = arith.addf %814, %818 : vector<4x16xf32>
    %c122 = arith.constant 122 : index
    %820 = memref.load %arg1[%c122] : memref<294xf32, #tpu.memory_space<smem>>
    %821 = vector.extract_strided_slice %787 {offsets = [3, 0], sizes = [4, 16], strides = [1, 1]} : vector<10x16xf32> to vector<4x16xf32>
    %822 = vector.broadcast %820 : f32 to vector<4x16xf32>
    %823 = arith.mulf %822, %821 : vector<4x16xf32>
    %824 = arith.addf %819, %823 : vector<4x16xf32>
    %c171 = arith.constant 171 : index
    %825 = memref.load %arg1[%c171] : memref<294xf32, #tpu.memory_space<smem>>
    %826 = vector.extract_strided_slice %789 {offsets = [3, 0], sizes = [4, 16], strides = [1, 1]} : vector<10x16xf32> to vector<4x16xf32>
    %827 = vector.broadcast %825 : f32 to vector<4x16xf32>
    %828 = arith.mulf %827, %826 : vector<4x16xf32>
    %829 = arith.addf %824, %828 : vector<4x16xf32>
    %c129 = arith.constant 129 : index
    %830 = memref.load %arg1[%c129] : memref<294xf32, #tpu.memory_space<smem>>
    %831 = vector.extract_strided_slice %787 {offsets = [4, 0], sizes = [4, 16], strides = [1, 1]} : vector<10x16xf32> to vector<4x16xf32>
    %832 = vector.broadcast %830 : f32 to vector<4x16xf32>
    %833 = arith.mulf %832, %831 : vector<4x16xf32>
    %834 = arith.addf %829, %833 : vector<4x16xf32>
    %c178 = arith.constant 178 : index
    %835 = memref.load %arg1[%c178] : memref<294xf32, #tpu.memory_space<smem>>
    %836 = vector.extract_strided_slice %789 {offsets = [4, 0], sizes = [4, 16], strides = [1, 1]} : vector<10x16xf32> to vector<4x16xf32>
    %837 = vector.broadcast %835 : f32 to vector<4x16xf32>
    %838 = arith.mulf %837, %836 : vector<4x16xf32>
    %839 = arith.addf %834, %838 : vector<4x16xf32>
    %c136 = arith.constant 136 : index
    %840 = memref.load %arg1[%c136] : memref<294xf32, #tpu.memory_space<smem>>
    %841 = vector.extract_strided_slice %787 {offsets = [5, 0], sizes = [4, 16], strides = [1, 1]} : vector<10x16xf32> to vector<4x16xf32>
    %842 = vector.broadcast %840 : f32 to vector<4x16xf32>
    %843 = arith.mulf %842, %841 : vector<4x16xf32>
    %844 = arith.addf %839, %843 : vector<4x16xf32>
    %c185 = arith.constant 185 : index
    %845 = memref.load %arg1[%c185] : memref<294xf32, #tpu.memory_space<smem>>
    %846 = vector.extract_strided_slice %789 {offsets = [5, 0], sizes = [4, 16], strides = [1, 1]} : vector<10x16xf32> to vector<4x16xf32>
    %847 = vector.broadcast %845 : f32 to vector<4x16xf32>
    %848 = arith.mulf %847, %846 : vector<4x16xf32>
    %849 = arith.addf %844, %848 : vector<4x16xf32>
    %c143 = arith.constant 143 : index
    %850 = memref.load %arg1[%c143] : memref<294xf32, #tpu.memory_space<smem>>
    %851 = vector.extract_strided_slice %787 {offsets = [6, 0], sizes = [4, 16], strides = [1, 1]} : vector<10x16xf32> to vector<4x16xf32>
    %852 = vector.broadcast %850 : f32 to vector<4x16xf32>
    %853 = arith.mulf %852, %851 : vector<4x16xf32>
    %854 = arith.addf %849, %853 : vector<4x16xf32>
    %c192 = arith.constant 192 : index
    %855 = memref.load %arg1[%c192] : memref<294xf32, #tpu.memory_space<smem>>
    %856 = vector.extract_strided_slice %789 {offsets = [6, 0], sizes = [4, 16], strides = [1, 1]} : vector<10x16xf32> to vector<4x16xf32>
    %857 = vector.broadcast %855 : f32 to vector<4x16xf32>
    %858 = arith.mulf %857, %856 : vector<4x16xf32>
    %859 = arith.addf %854, %858 : vector<4x16xf32>
    %c0_112 = arith.constant 0 : index
    %c0_113 = arith.constant 0 : index
    %c4_114 = arith.constant 4 : index
    %860 = vector.load %arg8[%c0_112, %c0_113, %c4_114] : memref<2x10x22xf32, #tpu.memory_space<vmem>>, vector<1x10x16xf32>
    %861 = vector.shape_cast %860 : vector<1x10x16xf32> to vector<10x16xf32>
    %c1_115 = arith.constant 1 : index
    %c0_116 = arith.constant 0 : index
    %c4_117 = arith.constant 4 : index
    %862 = vector.load %arg8[%c1_115, %c0_116, %c4_117] : memref<2x10x22xf32, #tpu.memory_space<vmem>>, vector<1x10x16xf32>
    %863 = vector.shape_cast %862 : vector<1x10x16xf32> to vector<10x16xf32>
    %c102 = arith.constant 102 : index
    %864 = memref.load %arg1[%c102] : memref<294xf32, #tpu.memory_space<smem>>
    %865 = vector.extract_strided_slice %861 {offsets = [0, 0], sizes = [4, 16], strides = [1, 1]} : vector<10x16xf32> to vector<4x16xf32>
    %866 = vector.broadcast %864 : f32 to vector<4x16xf32>
    %867 = arith.mulf %866, %865 : vector<4x16xf32>
    %868 = arith.addf %859, %867 : vector<4x16xf32>
    %c151 = arith.constant 151 : index
    %869 = memref.load %arg1[%c151] : memref<294xf32, #tpu.memory_space<smem>>
    %870 = vector.extract_strided_slice %863 {offsets = [0, 0], sizes = [4, 16], strides = [1, 1]} : vector<10x16xf32> to vector<4x16xf32>
    %871 = vector.broadcast %869 : f32 to vector<4x16xf32>
    %872 = arith.mulf %871, %870 : vector<4x16xf32>
    %873 = arith.addf %868, %872 : vector<4x16xf32>
    %c109 = arith.constant 109 : index
    %874 = memref.load %arg1[%c109] : memref<294xf32, #tpu.memory_space<smem>>
    %875 = vector.extract_strided_slice %861 {offsets = [1, 0], sizes = [4, 16], strides = [1, 1]} : vector<10x16xf32> to vector<4x16xf32>
    %876 = vector.broadcast %874 : f32 to vector<4x16xf32>
    %877 = arith.mulf %876, %875 : vector<4x16xf32>
    %878 = arith.addf %873, %877 : vector<4x16xf32>
    %c158 = arith.constant 158 : index
    %879 = memref.load %arg1[%c158] : memref<294xf32, #tpu.memory_space<smem>>
    %880 = vector.extract_strided_slice %863 {offsets = [1, 0], sizes = [4, 16], strides = [1, 1]} : vector<10x16xf32> to vector<4x16xf32>
    %881 = vector.broadcast %879 : f32 to vector<4x16xf32>
    %882 = arith.mulf %881, %880 : vector<4x16xf32>
    %883 = arith.addf %878, %882 : vector<4x16xf32>
    %c116 = arith.constant 116 : index
    %884 = memref.load %arg1[%c116] : memref<294xf32, #tpu.memory_space<smem>>
    %885 = vector.extract_strided_slice %861 {offsets = [2, 0], sizes = [4, 16], strides = [1, 1]} : vector<10x16xf32> to vector<4x16xf32>
    %886 = vector.broadcast %884 : f32 to vector<4x16xf32>
    %887 = arith.mulf %886, %885 : vector<4x16xf32>
    %888 = arith.addf %883, %887 : vector<4x16xf32>
    %c165 = arith.constant 165 : index
    %889 = memref.load %arg1[%c165] : memref<294xf32, #tpu.memory_space<smem>>
    %890 = vector.extract_strided_slice %863 {offsets = [2, 0], sizes = [4, 16], strides = [1, 1]} : vector<10x16xf32> to vector<4x16xf32>
    %891 = vector.broadcast %889 : f32 to vector<4x16xf32>
    %892 = arith.mulf %891, %890 : vector<4x16xf32>
    %893 = arith.addf %888, %892 : vector<4x16xf32>
    %c123 = arith.constant 123 : index
    %894 = memref.load %arg1[%c123] : memref<294xf32, #tpu.memory_space<smem>>
    %895 = vector.extract_strided_slice %861 {offsets = [3, 0], sizes = [4, 16], strides = [1, 1]} : vector<10x16xf32> to vector<4x16xf32>
    %896 = vector.broadcast %894 : f32 to vector<4x16xf32>
    %897 = arith.mulf %896, %895 : vector<4x16xf32>
    %898 = arith.addf %893, %897 : vector<4x16xf32>
    %c172 = arith.constant 172 : index
    %899 = memref.load %arg1[%c172] : memref<294xf32, #tpu.memory_space<smem>>
    %900 = vector.extract_strided_slice %863 {offsets = [3, 0], sizes = [4, 16], strides = [1, 1]} : vector<10x16xf32> to vector<4x16xf32>
    %901 = vector.broadcast %899 : f32 to vector<4x16xf32>
    %902 = arith.mulf %901, %900 : vector<4x16xf32>
    %903 = arith.addf %898, %902 : vector<4x16xf32>
    %c130 = arith.constant 130 : index
    %904 = memref.load %arg1[%c130] : memref<294xf32, #tpu.memory_space<smem>>
    %905 = vector.extract_strided_slice %861 {offsets = [4, 0], sizes = [4, 16], strides = [1, 1]} : vector<10x16xf32> to vector<4x16xf32>
    %906 = vector.broadcast %904 : f32 to vector<4x16xf32>
    %907 = arith.mulf %906, %905 : vector<4x16xf32>
    %908 = arith.addf %903, %907 : vector<4x16xf32>
    %c179 = arith.constant 179 : index
    %909 = memref.load %arg1[%c179] : memref<294xf32, #tpu.memory_space<smem>>
    %910 = vector.extract_strided_slice %863 {offsets = [4, 0], sizes = [4, 16], strides = [1, 1]} : vector<10x16xf32> to vector<4x16xf32>
    %911 = vector.broadcast %909 : f32 to vector<4x16xf32>
    %912 = arith.mulf %911, %910 : vector<4x16xf32>
    %913 = arith.addf %908, %912 : vector<4x16xf32>
    %c137 = arith.constant 137 : index
    %914 = memref.load %arg1[%c137] : memref<294xf32, #tpu.memory_space<smem>>
    %915 = vector.extract_strided_slice %861 {offsets = [5, 0], sizes = [4, 16], strides = [1, 1]} : vector<10x16xf32> to vector<4x16xf32>
    %916 = vector.broadcast %914 : f32 to vector<4x16xf32>
    %917 = arith.mulf %916, %915 : vector<4x16xf32>
    %918 = arith.addf %913, %917 : vector<4x16xf32>
    %c186 = arith.constant 186 : index
    %919 = memref.load %arg1[%c186] : memref<294xf32, #tpu.memory_space<smem>>
    %920 = vector.extract_strided_slice %863 {offsets = [5, 0], sizes = [4, 16], strides = [1, 1]} : vector<10x16xf32> to vector<4x16xf32>
    %921 = vector.broadcast %919 : f32 to vector<4x16xf32>
    %922 = arith.mulf %921, %920 : vector<4x16xf32>
    %923 = arith.addf %918, %922 : vector<4x16xf32>
    %c144 = arith.constant 144 : index
    %924 = memref.load %arg1[%c144] : memref<294xf32, #tpu.memory_space<smem>>
    %925 = vector.extract_strided_slice %861 {offsets = [6, 0], sizes = [4, 16], strides = [1, 1]} : vector<10x16xf32> to vector<4x16xf32>
    %926 = vector.broadcast %924 : f32 to vector<4x16xf32>
    %927 = arith.mulf %926, %925 : vector<4x16xf32>
    %928 = arith.addf %923, %927 : vector<4x16xf32>
    %c193 = arith.constant 193 : index
    %929 = memref.load %arg1[%c193] : memref<294xf32, #tpu.memory_space<smem>>
    %930 = vector.extract_strided_slice %863 {offsets = [6, 0], sizes = [4, 16], strides = [1, 1]} : vector<10x16xf32> to vector<4x16xf32>
    %931 = vector.broadcast %929 : f32 to vector<4x16xf32>
    %932 = arith.mulf %931, %930 : vector<4x16xf32>
    %933 = arith.addf %928, %932 : vector<4x16xf32>
    %c0_118 = arith.constant 0 : index
    %c0_119 = arith.constant 0 : index
    %c5_120 = arith.constant 5 : index
    %934 = vector.load %arg8[%c0_118, %c0_119, %c5_120] : memref<2x10x22xf32, #tpu.memory_space<vmem>>, vector<1x10x16xf32>
    %935 = vector.shape_cast %934 : vector<1x10x16xf32> to vector<10x16xf32>
    %c1_121 = arith.constant 1 : index
    %c0_122 = arith.constant 0 : index
    %c5_123 = arith.constant 5 : index
    %936 = vector.load %arg8[%c1_121, %c0_122, %c5_123] : memref<2x10x22xf32, #tpu.memory_space<vmem>>, vector<1x10x16xf32>
    %937 = vector.shape_cast %936 : vector<1x10x16xf32> to vector<10x16xf32>
    %c103 = arith.constant 103 : index
    %938 = memref.load %arg1[%c103] : memref<294xf32, #tpu.memory_space<smem>>
    %939 = vector.extract_strided_slice %935 {offsets = [0, 0], sizes = [4, 16], strides = [1, 1]} : vector<10x16xf32> to vector<4x16xf32>
    %940 = vector.broadcast %938 : f32 to vector<4x16xf32>
    %941 = arith.mulf %940, %939 : vector<4x16xf32>
    %942 = arith.addf %933, %941 : vector<4x16xf32>
    %c152 = arith.constant 152 : index
    %943 = memref.load %arg1[%c152] : memref<294xf32, #tpu.memory_space<smem>>
    %944 = vector.extract_strided_slice %937 {offsets = [0, 0], sizes = [4, 16], strides = [1, 1]} : vector<10x16xf32> to vector<4x16xf32>
    %945 = vector.broadcast %943 : f32 to vector<4x16xf32>
    %946 = arith.mulf %945, %944 : vector<4x16xf32>
    %947 = arith.addf %942, %946 : vector<4x16xf32>
    %c110 = arith.constant 110 : index
    %948 = memref.load %arg1[%c110] : memref<294xf32, #tpu.memory_space<smem>>
    %949 = vector.extract_strided_slice %935 {offsets = [1, 0], sizes = [4, 16], strides = [1, 1]} : vector<10x16xf32> to vector<4x16xf32>
    %950 = vector.broadcast %948 : f32 to vector<4x16xf32>
    %951 = arith.mulf %950, %949 : vector<4x16xf32>
    %952 = arith.addf %947, %951 : vector<4x16xf32>
    %c159 = arith.constant 159 : index
    %953 = memref.load %arg1[%c159] : memref<294xf32, #tpu.memory_space<smem>>
    %954 = vector.extract_strided_slice %937 {offsets = [1, 0], sizes = [4, 16], strides = [1, 1]} : vector<10x16xf32> to vector<4x16xf32>
    %955 = vector.broadcast %953 : f32 to vector<4x16xf32>
    %956 = arith.mulf %955, %954 : vector<4x16xf32>
    %957 = arith.addf %952, %956 : vector<4x16xf32>
    %c117 = arith.constant 117 : index
    %958 = memref.load %arg1[%c117] : memref<294xf32, #tpu.memory_space<smem>>
    %959 = vector.extract_strided_slice %935 {offsets = [2, 0], sizes = [4, 16], strides = [1, 1]} : vector<10x16xf32> to vector<4x16xf32>
    %960 = vector.broadcast %958 : f32 to vector<4x16xf32>
    %961 = arith.mulf %960, %959 : vector<4x16xf32>
    %962 = arith.addf %957, %961 : vector<4x16xf32>
    %c166 = arith.constant 166 : index
    %963 = memref.load %arg1[%c166] : memref<294xf32, #tpu.memory_space<smem>>
    %964 = vector.extract_strided_slice %937 {offsets = [2, 0], sizes = [4, 16], strides = [1, 1]} : vector<10x16xf32> to vector<4x16xf32>
    %965 = vector.broadcast %963 : f32 to vector<4x16xf32>
    %966 = arith.mulf %965, %964 : vector<4x16xf32>
    %967 = arith.addf %962, %966 : vector<4x16xf32>
    %c124 = arith.constant 124 : index
    %968 = memref.load %arg1[%c124] : memref<294xf32, #tpu.memory_space<smem>>
    %969 = vector.extract_strided_slice %935 {offsets = [3, 0], sizes = [4, 16], strides = [1, 1]} : vector<10x16xf32> to vector<4x16xf32>
    %970 = vector.broadcast %968 : f32 to vector<4x16xf32>
    %971 = arith.mulf %970, %969 : vector<4x16xf32>
    %972 = arith.addf %967, %971 : vector<4x16xf32>
    %c173 = arith.constant 173 : index
    %973 = memref.load %arg1[%c173] : memref<294xf32, #tpu.memory_space<smem>>
    %974 = vector.extract_strided_slice %937 {offsets = [3, 0], sizes = [4, 16], strides = [1, 1]} : vector<10x16xf32> to vector<4x16xf32>
    %975 = vector.broadcast %973 : f32 to vector<4x16xf32>
    %976 = arith.mulf %975, %974 : vector<4x16xf32>
    %977 = arith.addf %972, %976 : vector<4x16xf32>
    %c131 = arith.constant 131 : index
    %978 = memref.load %arg1[%c131] : memref<294xf32, #tpu.memory_space<smem>>
    %979 = vector.extract_strided_slice %935 {offsets = [4, 0], sizes = [4, 16], strides = [1, 1]} : vector<10x16xf32> to vector<4x16xf32>
    %980 = vector.broadcast %978 : f32 to vector<4x16xf32>
    %981 = arith.mulf %980, %979 : vector<4x16xf32>
    %982 = arith.addf %977, %981 : vector<4x16xf32>
    %c180 = arith.constant 180 : index
    %983 = memref.load %arg1[%c180] : memref<294xf32, #tpu.memory_space<smem>>
    %984 = vector.extract_strided_slice %937 {offsets = [4, 0], sizes = [4, 16], strides = [1, 1]} : vector<10x16xf32> to vector<4x16xf32>
    %985 = vector.broadcast %983 : f32 to vector<4x16xf32>
    %986 = arith.mulf %985, %984 : vector<4x16xf32>
    %987 = arith.addf %982, %986 : vector<4x16xf32>
    %c138 = arith.constant 138 : index
    %988 = memref.load %arg1[%c138] : memref<294xf32, #tpu.memory_space<smem>>
    %989 = vector.extract_strided_slice %935 {offsets = [5, 0], sizes = [4, 16], strides = [1, 1]} : vector<10x16xf32> to vector<4x16xf32>
    %990 = vector.broadcast %988 : f32 to vector<4x16xf32>
    %991 = arith.mulf %990, %989 : vector<4x16xf32>
    %992 = arith.addf %987, %991 : vector<4x16xf32>
    %c187 = arith.constant 187 : index
    %993 = memref.load %arg1[%c187] : memref<294xf32, #tpu.memory_space<smem>>
    %994 = vector.extract_strided_slice %937 {offsets = [5, 0], sizes = [4, 16], strides = [1, 1]} : vector<10x16xf32> to vector<4x16xf32>
    %995 = vector.broadcast %993 : f32 to vector<4x16xf32>
    %996 = arith.mulf %995, %994 : vector<4x16xf32>
    %997 = arith.addf %992, %996 : vector<4x16xf32>
    %c145 = arith.constant 145 : index
    %998 = memref.load %arg1[%c145] : memref<294xf32, #tpu.memory_space<smem>>
    %999 = vector.extract_strided_slice %935 {offsets = [6, 0], sizes = [4, 16], strides = [1, 1]} : vector<10x16xf32> to vector<4x16xf32>
    %1000 = vector.broadcast %998 : f32 to vector<4x16xf32>
    %1001 = arith.mulf %1000, %999 : vector<4x16xf32>
    %1002 = arith.addf %997, %1001 : vector<4x16xf32>
    %c194 = arith.constant 194 : index
    %1003 = memref.load %arg1[%c194] : memref<294xf32, #tpu.memory_space<smem>>
    %1004 = vector.extract_strided_slice %937 {offsets = [6, 0], sizes = [4, 16], strides = [1, 1]} : vector<10x16xf32> to vector<4x16xf32>
    %1005 = vector.broadcast %1003 : f32 to vector<4x16xf32>
    %1006 = arith.mulf %1005, %1004 : vector<4x16xf32>
    %1007 = arith.addf %1002, %1006 : vector<4x16xf32>
    %c0_124 = arith.constant 0 : index
    %c0_125 = arith.constant 0 : index
    %c6_126 = arith.constant 6 : index
    %1008 = vector.load %arg8[%c0_124, %c0_125, %c6_126] : memref<2x10x22xf32, #tpu.memory_space<vmem>>, vector<1x10x16xf32>
    %1009 = vector.shape_cast %1008 : vector<1x10x16xf32> to vector<10x16xf32>
    %c1_127 = arith.constant 1 : index
    %c0_128 = arith.constant 0 : index
    %c6_129 = arith.constant 6 : index
    %1010 = vector.load %arg8[%c1_127, %c0_128, %c6_129] : memref<2x10x22xf32, #tpu.memory_space<vmem>>, vector<1x10x16xf32>
    %1011 = vector.shape_cast %1010 : vector<1x10x16xf32> to vector<10x16xf32>
    %c104 = arith.constant 104 : index
    %1012 = memref.load %arg1[%c104] : memref<294xf32, #tpu.memory_space<smem>>
    %1013 = vector.extract_strided_slice %1009 {offsets = [0, 0], sizes = [4, 16], strides = [1, 1]} : vector<10x16xf32> to vector<4x16xf32>
    %1014 = vector.broadcast %1012 : f32 to vector<4x16xf32>
    %1015 = arith.mulf %1014, %1013 : vector<4x16xf32>
    %1016 = arith.addf %1007, %1015 : vector<4x16xf32>
    %c153 = arith.constant 153 : index
    %1017 = memref.load %arg1[%c153] : memref<294xf32, #tpu.memory_space<smem>>
    %1018 = vector.extract_strided_slice %1011 {offsets = [0, 0], sizes = [4, 16], strides = [1, 1]} : vector<10x16xf32> to vector<4x16xf32>
    %1019 = vector.broadcast %1017 : f32 to vector<4x16xf32>
    %1020 = arith.mulf %1019, %1018 : vector<4x16xf32>
    %1021 = arith.addf %1016, %1020 : vector<4x16xf32>
    %c111 = arith.constant 111 : index
    %1022 = memref.load %arg1[%c111] : memref<294xf32, #tpu.memory_space<smem>>
    %1023 = vector.extract_strided_slice %1009 {offsets = [1, 0], sizes = [4, 16], strides = [1, 1]} : vector<10x16xf32> to vector<4x16xf32>
    %1024 = vector.broadcast %1022 : f32 to vector<4x16xf32>
    %1025 = arith.mulf %1024, %1023 : vector<4x16xf32>
    %1026 = arith.addf %1021, %1025 : vector<4x16xf32>
    %c160 = arith.constant 160 : index
    %1027 = memref.load %arg1[%c160] : memref<294xf32, #tpu.memory_space<smem>>
    %1028 = vector.extract_strided_slice %1011 {offsets = [1, 0], sizes = [4, 16], strides = [1, 1]} : vector<10x16xf32> to vector<4x16xf32>
    %1029 = vector.broadcast %1027 : f32 to vector<4x16xf32>
    %1030 = arith.mulf %1029, %1028 : vector<4x16xf32>
    %1031 = arith.addf %1026, %1030 : vector<4x16xf32>
    %c118 = arith.constant 118 : index
    %1032 = memref.load %arg1[%c118] : memref<294xf32, #tpu.memory_space<smem>>
    %1033 = vector.extract_strided_slice %1009 {offsets = [2, 0], sizes = [4, 16], strides = [1, 1]} : vector<10x16xf32> to vector<4x16xf32>
    %1034 = vector.broadcast %1032 : f32 to vector<4x16xf32>
    %1035 = arith.mulf %1034, %1033 : vector<4x16xf32>
    %1036 = arith.addf %1031, %1035 : vector<4x16xf32>
    %c167 = arith.constant 167 : index
    %1037 = memref.load %arg1[%c167] : memref<294xf32, #tpu.memory_space<smem>>
    %1038 = vector.extract_strided_slice %1011 {offsets = [2, 0], sizes = [4, 16], strides = [1, 1]} : vector<10x16xf32> to vector<4x16xf32>
    %1039 = vector.broadcast %1037 : f32 to vector<4x16xf32>
    %1040 = arith.mulf %1039, %1038 : vector<4x16xf32>
    %1041 = arith.addf %1036, %1040 : vector<4x16xf32>
    %c125 = arith.constant 125 : index
    %1042 = memref.load %arg1[%c125] : memref<294xf32, #tpu.memory_space<smem>>
    %1043 = vector.extract_strided_slice %1009 {offsets = [3, 0], sizes = [4, 16], strides = [1, 1]} : vector<10x16xf32> to vector<4x16xf32>
    %1044 = vector.broadcast %1042 : f32 to vector<4x16xf32>
    %1045 = arith.mulf %1044, %1043 : vector<4x16xf32>
    %1046 = arith.addf %1041, %1045 : vector<4x16xf32>
    %c174 = arith.constant 174 : index
    %1047 = memref.load %arg1[%c174] : memref<294xf32, #tpu.memory_space<smem>>
    %1048 = vector.extract_strided_slice %1011 {offsets = [3, 0], sizes = [4, 16], strides = [1, 1]} : vector<10x16xf32> to vector<4x16xf32>
    %1049 = vector.broadcast %1047 : f32 to vector<4x16xf32>
    %1050 = arith.mulf %1049, %1048 : vector<4x16xf32>
    %1051 = arith.addf %1046, %1050 : vector<4x16xf32>
    %c132 = arith.constant 132 : index
    %1052 = memref.load %arg1[%c132] : memref<294xf32, #tpu.memory_space<smem>>
    %1053 = vector.extract_strided_slice %1009 {offsets = [4, 0], sizes = [4, 16], strides = [1, 1]} : vector<10x16xf32> to vector<4x16xf32>
    %1054 = vector.broadcast %1052 : f32 to vector<4x16xf32>
    %1055 = arith.mulf %1054, %1053 : vector<4x16xf32>
    %1056 = arith.addf %1051, %1055 : vector<4x16xf32>
    %c181 = arith.constant 181 : index
    %1057 = memref.load %arg1[%c181] : memref<294xf32, #tpu.memory_space<smem>>
    %1058 = vector.extract_strided_slice %1011 {offsets = [4, 0], sizes = [4, 16], strides = [1, 1]} : vector<10x16xf32> to vector<4x16xf32>
    %1059 = vector.broadcast %1057 : f32 to vector<4x16xf32>
    %1060 = arith.mulf %1059, %1058 : vector<4x16xf32>
    %1061 = arith.addf %1056, %1060 : vector<4x16xf32>
    %c139 = arith.constant 139 : index
    %1062 = memref.load %arg1[%c139] : memref<294xf32, #tpu.memory_space<smem>>
    %1063 = vector.extract_strided_slice %1009 {offsets = [5, 0], sizes = [4, 16], strides = [1, 1]} : vector<10x16xf32> to vector<4x16xf32>
    %1064 = vector.broadcast %1062 : f32 to vector<4x16xf32>
    %1065 = arith.mulf %1064, %1063 : vector<4x16xf32>
    %1066 = arith.addf %1061, %1065 : vector<4x16xf32>
    %c188 = arith.constant 188 : index
    %1067 = memref.load %arg1[%c188] : memref<294xf32, #tpu.memory_space<smem>>
    %1068 = vector.extract_strided_slice %1011 {offsets = [5, 0], sizes = [4, 16], strides = [1, 1]} : vector<10x16xf32> to vector<4x16xf32>
    %1069 = vector.broadcast %1067 : f32 to vector<4x16xf32>
    %1070 = arith.mulf %1069, %1068 : vector<4x16xf32>
    %1071 = arith.addf %1066, %1070 : vector<4x16xf32>
    %c146 = arith.constant 146 : index
    %1072 = memref.load %arg1[%c146] : memref<294xf32, #tpu.memory_space<smem>>
    %1073 = vector.extract_strided_slice %1009 {offsets = [6, 0], sizes = [4, 16], strides = [1, 1]} : vector<10x16xf32> to vector<4x16xf32>
    %1074 = vector.broadcast %1072 : f32 to vector<4x16xf32>
    %1075 = arith.mulf %1074, %1073 : vector<4x16xf32>
    %1076 = arith.addf %1071, %1075 : vector<4x16xf32>
    %c195 = arith.constant 195 : index
    %1077 = memref.load %arg1[%c195] : memref<294xf32, #tpu.memory_space<smem>>
    %1078 = vector.extract_strided_slice %1011 {offsets = [6, 0], sizes = [4, 16], strides = [1, 1]} : vector<10x16xf32> to vector<4x16xf32>
    %1079 = vector.broadcast %1077 : f32 to vector<4x16xf32>
    %1080 = arith.mulf %1079, %1078 : vector<4x16xf32>
    %1081 = arith.addf %1076, %1080 : vector<4x16xf32>
    %1082 = arith.negf %1081 : vector<4x16xf32>
    %1083 = math.exp %1082 : vector<4x16xf32>
    %cst_130 = arith.constant 1.000000e+00 : f32
    %1084 = vector.broadcast %cst_130 : f32 to vector<4x16xf32>
    %1085 = arith.addf %1084, %1083 : vector<4x16xf32>
    %1086 = arith.divf %1084, %1085 : vector<4x16xf32>
    %1087 = arith.mulf %1081, %1086 : vector<4x16xf32>
    %cst_131 = arith.constant 0.333333343 : f32
    %1088 = vector.broadcast %cst_131 : f32 to vector<4x16xf32>
    %1089 = arith.mulf %1087, %1088 : vector<4x16xf32>
    %1090 = vector.shape_cast %1089 : vector<4x16xf32> to vector<1x4x16xf32>
    %c0_132 = arith.constant 0 : index
    %c0_133 = arith.constant 0 : index
    %c0_134 = arith.constant 0 : index
    %1091 = vector.load %arg5[%c0_132, %c0_133, %c0_134] : memref<1x4x16xf32, #tpu.memory_space<vmem>>, vector<1x4x16xf32>
    tpu.vector_store %arg5[%c0_132, %c0_133, %c0_134], %1090 {strides = array<i32>} : memref<1x4x16xf32, #tpu.memory_space<vmem>>, vector<1x4x16xf32>,
    %c2_135 = arith.constant 2 : index
    %1092 = memref.load %arg2[%c2_135] : memref<3xf32, #tpu.memory_space<smem>>
    %1093 = vector.broadcast %1092 : f32 to vector<16x16xf32>
    %c0_136 = arith.constant 0 : index
    %c0_137 = arith.constant 0 : index
    %c0_138 = arith.constant 0 : index
    %1094 = vector.load %arg9[%c0_136, %c0_137, %c0_138] : memref<2x22x22xf32, #tpu.memory_space<vmem>>, vector<1x22x16xf32>
    %1095 = vector.shape_cast %1094 : vector<1x22x16xf32> to vector<22x16xf32>
    %c1_139 = arith.constant 1 : index
    %c0_140 = arith.constant 0 : index
    %c0_141 = arith.constant 0 : index
    %1096 = vector.load %arg9[%c1_139, %c0_140, %c0_141] : memref<2x22x22xf32, #tpu.memory_space<vmem>>, vector<1x22x16xf32>
    %1097 = vector.shape_cast %1096 : vector<1x22x16xf32> to vector<22x16xf32>
    %c196 = arith.constant 196 : index
    %1098 = memref.load %arg1[%c196] : memref<294xf32, #tpu.memory_space<smem>>
    %1099 = vector.extract_strided_slice %1095 {offsets = [0, 0], sizes = [16, 16], strides = [1, 1]} : vector<22x16xf32> to vector<16x16xf32>
    %1100 = vector.broadcast %1098 : f32 to vector<16x16xf32>
    %1101 = arith.mulf %1100, %1099 : vector<16x16xf32>
    %1102 = arith.addf %1093, %1101 : vector<16x16xf32>
    %c245 = arith.constant 245 : index
    %1103 = memref.load %arg1[%c245] : memref<294xf32, #tpu.memory_space<smem>>
    %1104 = vector.extract_strided_slice %1097 {offsets = [0, 0], sizes = [16, 16], strides = [1, 1]} : vector<22x16xf32> to vector<16x16xf32>
    %1105 = vector.broadcast %1103 : f32 to vector<16x16xf32>
    %1106 = arith.mulf %1105, %1104 : vector<16x16xf32>
    %1107 = arith.addf %1102, %1106 : vector<16x16xf32>
    %c203 = arith.constant 203 : index
    %1108 = memref.load %arg1[%c203] : memref<294xf32, #tpu.memory_space<smem>>
    %1109 = vector.extract_strided_slice %1095 {offsets = [1, 0], sizes = [16, 16], strides = [1, 1]} : vector<22x16xf32> to vector<16x16xf32>
    %1110 = vector.broadcast %1108 : f32 to vector<16x16xf32>
    %1111 = arith.mulf %1110, %1109 : vector<16x16xf32>
    %1112 = arith.addf %1107, %1111 : vector<16x16xf32>
    %c252 = arith.constant 252 : index
    %1113 = memref.load %arg1[%c252] : memref<294xf32, #tpu.memory_space<smem>>
    %1114 = vector.extract_strided_slice %1097 {offsets = [1, 0], sizes = [16, 16], strides = [1, 1]} : vector<22x16xf32> to vector<16x16xf32>
    %1115 = vector.broadcast %1113 : f32 to vector<16x16xf32>
    %1116 = arith.mulf %1115, %1114 : vector<16x16xf32>
    %1117 = arith.addf %1112, %1116 : vector<16x16xf32>
    %c210 = arith.constant 210 : index
    %1118 = memref.load %arg1[%c210] : memref<294xf32, #tpu.memory_space<smem>>
    %1119 = vector.extract_strided_slice %1095 {offsets = [2, 0], sizes = [16, 16], strides = [1, 1]} : vector<22x16xf32> to vector<16x16xf32>
    %1120 = vector.broadcast %1118 : f32 to vector<16x16xf32>
    %1121 = arith.mulf %1120, %1119 : vector<16x16xf32>
    %1122 = arith.addf %1117, %1121 : vector<16x16xf32>
    %c259 = arith.constant 259 : index
    %1123 = memref.load %arg1[%c259] : memref<294xf32, #tpu.memory_space<smem>>
    %1124 = vector.extract_strided_slice %1097 {offsets = [2, 0], sizes = [16, 16], strides = [1, 1]} : vector<22x16xf32> to vector<16x16xf32>
    %1125 = vector.broadcast %1123 : f32 to vector<16x16xf32>
    %1126 = arith.mulf %1125, %1124 : vector<16x16xf32>
    %1127 = arith.addf %1122, %1126 : vector<16x16xf32>
    %c217 = arith.constant 217 : index
    %1128 = memref.load %arg1[%c217] : memref<294xf32, #tpu.memory_space<smem>>
    %1129 = vector.extract_strided_slice %1095 {offsets = [3, 0], sizes = [16, 16], strides = [1, 1]} : vector<22x16xf32> to vector<16x16xf32>
    %1130 = vector.broadcast %1128 : f32 to vector<16x16xf32>
    %1131 = arith.mulf %1130, %1129 : vector<16x16xf32>
    %1132 = arith.addf %1127, %1131 : vector<16x16xf32>
    %c266 = arith.constant 266 : index
    %1133 = memref.load %arg1[%c266] : memref<294xf32, #tpu.memory_space<smem>>
    %1134 = vector.extract_strided_slice %1097 {offsets = [3, 0], sizes = [16, 16], strides = [1, 1]} : vector<22x16xf32> to vector<16x16xf32>
    %1135 = vector.broadcast %1133 : f32 to vector<16x16xf32>
    %1136 = arith.mulf %1135, %1134 : vector<16x16xf32>
    %1137 = arith.addf %1132, %1136 : vector<16x16xf32>
    %c224 = arith.constant 224 : index
    %1138 = memref.load %arg1[%c224] : memref<294xf32, #tpu.memory_space<smem>>
    %1139 = vector.extract_strided_slice %1095 {offsets = [4, 0], sizes = [16, 16], strides = [1, 1]} : vector<22x16xf32> to vector<16x16xf32>
    %1140 = vector.broadcast %1138 : f32 to vector<16x16xf32>
    %1141 = arith.mulf %1140, %1139 : vector<16x16xf32>
    %1142 = arith.addf %1137, %1141 : vector<16x16xf32>
    %c273 = arith.constant 273 : index
    %1143 = memref.load %arg1[%c273] : memref<294xf32, #tpu.memory_space<smem>>
    %1144 = vector.extract_strided_slice %1097 {offsets = [4, 0], sizes = [16, 16], strides = [1, 1]} : vector<22x16xf32> to vector<16x16xf32>
    %1145 = vector.broadcast %1143 : f32 to vector<16x16xf32>
    %1146 = arith.mulf %1145, %1144 : vector<16x16xf32>
    %1147 = arith.addf %1142, %1146 : vector<16x16xf32>
    %c231 = arith.constant 231 : index
    %1148 = memref.load %arg1[%c231] : memref<294xf32, #tpu.memory_space<smem>>
    %1149 = vector.extract_strided_slice %1095 {offsets = [5, 0], sizes = [16, 16], strides = [1, 1]} : vector<22x16xf32> to vector<16x16xf32>
    %1150 = vector.broadcast %1148 : f32 to vector<16x16xf32>
    %1151 = arith.mulf %1150, %1149 : vector<16x16xf32>
    %1152 = arith.addf %1147, %1151 : vector<16x16xf32>
    %c280 = arith.constant 280 : index
    %1153 = memref.load %arg1[%c280] : memref<294xf32, #tpu.memory_space<smem>>
    %1154 = vector.extract_strided_slice %1097 {offsets = [5, 0], sizes = [16, 16], strides = [1, 1]} : vector<22x16xf32> to vector<16x16xf32>
    %1155 = vector.broadcast %1153 : f32 to vector<16x16xf32>
    %1156 = arith.mulf %1155, %1154 : vector<16x16xf32>
    %1157 = arith.addf %1152, %1156 : vector<16x16xf32>
    %c238 = arith.constant 238 : index
    %1158 = memref.load %arg1[%c238] : memref<294xf32, #tpu.memory_space<smem>>
    %1159 = vector.extract_strided_slice %1095 {offsets = [6, 0], sizes = [16, 16], strides = [1, 1]} : vector<22x16xf32> to vector<16x16xf32>
    %1160 = vector.broadcast %1158 : f32 to vector<16x16xf32>
    %1161 = arith.mulf %1160, %1159 : vector<16x16xf32>
    %1162 = arith.addf %1157, %1161 : vector<16x16xf32>
    %c287 = arith.constant 287 : index
    %1163 = memref.load %arg1[%c287] : memref<294xf32, #tpu.memory_space<smem>>
    %1164 = vector.extract_strided_slice %1097 {offsets = [6, 0], sizes = [16, 16], strides = [1, 1]} : vector<22x16xf32> to vector<16x16xf32>
    %1165 = vector.broadcast %1163 : f32 to vector<16x16xf32>
    %1166 = arith.mulf %1165, %1164 : vector<16x16xf32>
    %1167 = arith.addf %1162, %1166 : vector<16x16xf32>
    %c0_142 = arith.constant 0 : index
    %c0_143 = arith.constant 0 : index
    %c1_144 = arith.constant 1 : index
    %1168 = vector.load %arg9[%c0_142, %c0_143, %c1_144] : memref<2x22x22xf32, #tpu.memory_space<vmem>>, vector<1x22x16xf32>
    %1169 = vector.shape_cast %1168 : vector<1x22x16xf32> to vector<22x16xf32>
    %c1_145 = arith.constant 1 : index
    %c0_146 = arith.constant 0 : index
    %c1_147 = arith.constant 1 : index
    %1170 = vector.load %arg9[%c1_145, %c0_146, %c1_147] : memref<2x22x22xf32, #tpu.memory_space<vmem>>, vector<1x22x16xf32>
    %1171 = vector.shape_cast %1170 : vector<1x22x16xf32> to vector<22x16xf32>
    %c197 = arith.constant 197 : index
    %1172 = memref.load %arg1[%c197] : memref<294xf32, #tpu.memory_space<smem>>
    %1173 = vector.extract_strided_slice %1169 {offsets = [0, 0], sizes = [16, 16], strides = [1, 1]} : vector<22x16xf32> to vector<16x16xf32>
    %1174 = vector.broadcast %1172 : f32 to vector<16x16xf32>
    %1175 = arith.mulf %1174, %1173 : vector<16x16xf32>
    %1176 = arith.addf %1167, %1175 : vector<16x16xf32>
    %c246 = arith.constant 246 : index
    %1177 = memref.load %arg1[%c246] : memref<294xf32, #tpu.memory_space<smem>>
    %1178 = vector.extract_strided_slice %1171 {offsets = [0, 0], sizes = [16, 16], strides = [1, 1]} : vector<22x16xf32> to vector<16x16xf32>
    %1179 = vector.broadcast %1177 : f32 to vector<16x16xf32>
    %1180 = arith.mulf %1179, %1178 : vector<16x16xf32>
    %1181 = arith.addf %1176, %1180 : vector<16x16xf32>
    %c204 = arith.constant 204 : index
    %1182 = memref.load %arg1[%c204] : memref<294xf32, #tpu.memory_space<smem>>
    %1183 = vector.extract_strided_slice %1169 {offsets = [1, 0], sizes = [16, 16], strides = [1, 1]} : vector<22x16xf32> to vector<16x16xf32>
    %1184 = vector.broadcast %1182 : f32 to vector<16x16xf32>
    %1185 = arith.mulf %1184, %1183 : vector<16x16xf32>
    %1186 = arith.addf %1181, %1185 : vector<16x16xf32>
    %c253 = arith.constant 253 : index
    %1187 = memref.load %arg1[%c253] : memref<294xf32, #tpu.memory_space<smem>>
    %1188 = vector.extract_strided_slice %1171 {offsets = [1, 0], sizes = [16, 16], strides = [1, 1]} : vector<22x16xf32> to vector<16x16xf32>
    %1189 = vector.broadcast %1187 : f32 to vector<16x16xf32>
    %1190 = arith.mulf %1189, %1188 : vector<16x16xf32>
    %1191 = arith.addf %1186, %1190 : vector<16x16xf32>
    %c211 = arith.constant 211 : index
    %1192 = memref.load %arg1[%c211] : memref<294xf32, #tpu.memory_space<smem>>
    %1193 = vector.extract_strided_slice %1169 {offsets = [2, 0], sizes = [16, 16], strides = [1, 1]} : vector<22x16xf32> to vector<16x16xf32>
    %1194 = vector.broadcast %1192 : f32 to vector<16x16xf32>
    %1195 = arith.mulf %1194, %1193 : vector<16x16xf32>
    %1196 = arith.addf %1191, %1195 : vector<16x16xf32>
    %c260 = arith.constant 260 : index
    %1197 = memref.load %arg1[%c260] : memref<294xf32, #tpu.memory_space<smem>>
    %1198 = vector.extract_strided_slice %1171 {offsets = [2, 0], sizes = [16, 16], strides = [1, 1]} : vector<22x16xf32> to vector<16x16xf32>
    %1199 = vector.broadcast %1197 : f32 to vector<16x16xf32>
    %1200 = arith.mulf %1199, %1198 : vector<16x16xf32>
    %1201 = arith.addf %1196, %1200 : vector<16x16xf32>
    %c218 = arith.constant 218 : index
    %1202 = memref.load %arg1[%c218] : memref<294xf32, #tpu.memory_space<smem>>
    %1203 = vector.extract_strided_slice %1169 {offsets = [3, 0], sizes = [16, 16], strides = [1, 1]} : vector<22x16xf32> to vector<16x16xf32>
    %1204 = vector.broadcast %1202 : f32 to vector<16x16xf32>
    %1205 = arith.mulf %1204, %1203 : vector<16x16xf32>
    %1206 = arith.addf %1201, %1205 : vector<16x16xf32>
    %c267 = arith.constant 267 : index
    %1207 = memref.load %arg1[%c267] : memref<294xf32, #tpu.memory_space<smem>>
    %1208 = vector.extract_strided_slice %1171 {offsets = [3, 0], sizes = [16, 16], strides = [1, 1]} : vector<22x16xf32> to vector<16x16xf32>
    %1209 = vector.broadcast %1207 : f32 to vector<16x16xf32>
    %1210 = arith.mulf %1209, %1208 : vector<16x16xf32>
    %1211 = arith.addf %1206, %1210 : vector<16x16xf32>
    %c225 = arith.constant 225 : index
    %1212 = memref.load %arg1[%c225] : memref<294xf32, #tpu.memory_space<smem>>
    %1213 = vector.extract_strided_slice %1169 {offsets = [4, 0], sizes = [16, 16], strides = [1, 1]} : vector<22x16xf32> to vector<16x16xf32>
    %1214 = vector.broadcast %1212 : f32 to vector<16x16xf32>
    %1215 = arith.mulf %1214, %1213 : vector<16x16xf32>
    %1216 = arith.addf %1211, %1215 : vector<16x16xf32>
    %c274 = arith.constant 274 : index
    %1217 = memref.load %arg1[%c274] : memref<294xf32, #tpu.memory_space<smem>>
    %1218 = vector.extract_strided_slice %1171 {offsets = [4, 0], sizes = [16, 16], strides = [1, 1]} : vector<22x16xf32> to vector<16x16xf32>
    %1219 = vector.broadcast %1217 : f32 to vector<16x16xf32>
    %1220 = arith.mulf %1219, %1218 : vector<16x16xf32>
    %1221 = arith.addf %1216, %1220 : vector<16x16xf32>
    %c232 = arith.constant 232 : index
    %1222 = memref.load %arg1[%c232] : memref<294xf32, #tpu.memory_space<smem>>
    %1223 = vector.extract_strided_slice %1169 {offsets = [5, 0], sizes = [16, 16], strides = [1, 1]} : vector<22x16xf32> to vector<16x16xf32>
    %1224 = vector.broadcast %1222 : f32 to vector<16x16xf32>
    %1225 = arith.mulf %1224, %1223 : vector<16x16xf32>
    %1226 = arith.addf %1221, %1225 : vector<16x16xf32>
    %c281 = arith.constant 281 : index
    %1227 = memref.load %arg1[%c281] : memref<294xf32, #tpu.memory_space<smem>>
    %1228 = vector.extract_strided_slice %1171 {offsets = [5, 0], sizes = [16, 16], strides = [1, 1]} : vector<22x16xf32> to vector<16x16xf32>
    %1229 = vector.broadcast %1227 : f32 to vector<16x16xf32>
    %1230 = arith.mulf %1229, %1228 : vector<16x16xf32>
    %1231 = arith.addf %1226, %1230 : vector<16x16xf32>
    %c239 = arith.constant 239 : index
    %1232 = memref.load %arg1[%c239] : memref<294xf32, #tpu.memory_space<smem>>
    %1233 = vector.extract_strided_slice %1169 {offsets = [6, 0], sizes = [16, 16], strides = [1, 1]} : vector<22x16xf32> to vector<16x16xf32>
    %1234 = vector.broadcast %1232 : f32 to vector<16x16xf32>
    %1235 = arith.mulf %1234, %1233 : vector<16x16xf32>
    %1236 = arith.addf %1231, %1235 : vector<16x16xf32>
    %c288 = arith.constant 288 : index
    %1237 = memref.load %arg1[%c288] : memref<294xf32, #tpu.memory_space<smem>>
    %1238 = vector.extract_strided_slice %1171 {offsets = [6, 0], sizes = [16, 16], strides = [1, 1]} : vector<22x16xf32> to vector<16x16xf32>
    %1239 = vector.broadcast %1237 : f32 to vector<16x16xf32>
    %1240 = arith.mulf %1239, %1238 : vector<16x16xf32>
    %1241 = arith.addf %1236, %1240 : vector<16x16xf32>
    %c0_148 = arith.constant 0 : index
    %c0_149 = arith.constant 0 : index
    %c2_150 = arith.constant 2 : index
    %1242 = vector.load %arg9[%c0_148, %c0_149, %c2_150] : memref<2x22x22xf32, #tpu.memory_space<vmem>>, vector<1x22x16xf32>
    %1243 = vector.shape_cast %1242 : vector<1x22x16xf32> to vector<22x16xf32>
    %c1_151 = arith.constant 1 : index
    %c0_152 = arith.constant 0 : index
    %c2_153 = arith.constant 2 : index
    %1244 = vector.load %arg9[%c1_151, %c0_152, %c2_153] : memref<2x22x22xf32, #tpu.memory_space<vmem>>, vector<1x22x16xf32>
    %1245 = vector.shape_cast %1244 : vector<1x22x16xf32> to vector<22x16xf32>
    %c198 = arith.constant 198 : index
    %1246 = memref.load %arg1[%c198] : memref<294xf32, #tpu.memory_space<smem>>
    %1247 = vector.extract_strided_slice %1243 {offsets = [0, 0], sizes = [16, 16], strides = [1, 1]} : vector<22x16xf32> to vector<16x16xf32>
    %1248 = vector.broadcast %1246 : f32 to vector<16x16xf32>
    %1249 = arith.mulf %1248, %1247 : vector<16x16xf32>
    %1250 = arith.addf %1241, %1249 : vector<16x16xf32>
    %c247 = arith.constant 247 : index
    %1251 = memref.load %arg1[%c247] : memref<294xf32, #tpu.memory_space<smem>>
    %1252 = vector.extract_strided_slice %1245 {offsets = [0, 0], sizes = [16, 16], strides = [1, 1]} : vector<22x16xf32> to vector<16x16xf32>
    %1253 = vector.broadcast %1251 : f32 to vector<16x16xf32>
    %1254 = arith.mulf %1253, %1252 : vector<16x16xf32>
    %1255 = arith.addf %1250, %1254 : vector<16x16xf32>
    %c205 = arith.constant 205 : index
    %1256 = memref.load %arg1[%c205] : memref<294xf32, #tpu.memory_space<smem>>
    %1257 = vector.extract_strided_slice %1243 {offsets = [1, 0], sizes = [16, 16], strides = [1, 1]} : vector<22x16xf32> to vector<16x16xf32>
    %1258 = vector.broadcast %1256 : f32 to vector<16x16xf32>
    %1259 = arith.mulf %1258, %1257 : vector<16x16xf32>
    %1260 = arith.addf %1255, %1259 : vector<16x16xf32>
    %c254 = arith.constant 254 : index
    %1261 = memref.load %arg1[%c254] : memref<294xf32, #tpu.memory_space<smem>>
    %1262 = vector.extract_strided_slice %1245 {offsets = [1, 0], sizes = [16, 16], strides = [1, 1]} : vector<22x16xf32> to vector<16x16xf32>
    %1263 = vector.broadcast %1261 : f32 to vector<16x16xf32>
    %1264 = arith.mulf %1263, %1262 : vector<16x16xf32>
    %1265 = arith.addf %1260, %1264 : vector<16x16xf32>
    %c212 = arith.constant 212 : index
    %1266 = memref.load %arg1[%c212] : memref<294xf32, #tpu.memory_space<smem>>
    %1267 = vector.extract_strided_slice %1243 {offsets = [2, 0], sizes = [16, 16], strides = [1, 1]} : vector<22x16xf32> to vector<16x16xf32>
    %1268 = vector.broadcast %1266 : f32 to vector<16x16xf32>
    %1269 = arith.mulf %1268, %1267 : vector<16x16xf32>
    %1270 = arith.addf %1265, %1269 : vector<16x16xf32>
    %c261 = arith.constant 261 : index
    %1271 = memref.load %arg1[%c261] : memref<294xf32, #tpu.memory_space<smem>>
    %1272 = vector.extract_strided_slice %1245 {offsets = [2, 0], sizes = [16, 16], strides = [1, 1]} : vector<22x16xf32> to vector<16x16xf32>
    %1273 = vector.broadcast %1271 : f32 to vector<16x16xf32>
    %1274 = arith.mulf %1273, %1272 : vector<16x16xf32>
    %1275 = arith.addf %1270, %1274 : vector<16x16xf32>
    %c219 = arith.constant 219 : index
    %1276 = memref.load %arg1[%c219] : memref<294xf32, #tpu.memory_space<smem>>
    %1277 = vector.extract_strided_slice %1243 {offsets = [3, 0], sizes = [16, 16], strides = [1, 1]} : vector<22x16xf32> to vector<16x16xf32>
    %1278 = vector.broadcast %1276 : f32 to vector<16x16xf32>
    %1279 = arith.mulf %1278, %1277 : vector<16x16xf32>
    %1280 = arith.addf %1275, %1279 : vector<16x16xf32>
    %c268 = arith.constant 268 : index
    %1281 = memref.load %arg1[%c268] : memref<294xf32, #tpu.memory_space<smem>>
    %1282 = vector.extract_strided_slice %1245 {offsets = [3, 0], sizes = [16, 16], strides = [1, 1]} : vector<22x16xf32> to vector<16x16xf32>
    %1283 = vector.broadcast %1281 : f32 to vector<16x16xf32>
    %1284 = arith.mulf %1283, %1282 : vector<16x16xf32>
    %1285 = arith.addf %1280, %1284 : vector<16x16xf32>
    %c226 = arith.constant 226 : index
    %1286 = memref.load %arg1[%c226] : memref<294xf32, #tpu.memory_space<smem>>
    %1287 = vector.extract_strided_slice %1243 {offsets = [4, 0], sizes = [16, 16], strides = [1, 1]} : vector<22x16xf32> to vector<16x16xf32>
    %1288 = vector.broadcast %1286 : f32 to vector<16x16xf32>
    %1289 = arith.mulf %1288, %1287 : vector<16x16xf32>
    %1290 = arith.addf %1285, %1289 : vector<16x16xf32>
    %c275 = arith.constant 275 : index
    %1291 = memref.load %arg1[%c275] : memref<294xf32, #tpu.memory_space<smem>>
    %1292 = vector.extract_strided_slice %1245 {offsets = [4, 0], sizes = [16, 16], strides = [1, 1]} : vector<22x16xf32> to vector<16x16xf32>
    %1293 = vector.broadcast %1291 : f32 to vector<16x16xf32>
    %1294 = arith.mulf %1293, %1292 : vector<16x16xf32>
    %1295 = arith.addf %1290, %1294 : vector<16x16xf32>
    %c233 = arith.constant 233 : index
    %1296 = memref.load %arg1[%c233] : memref<294xf32, #tpu.memory_space<smem>>
    %1297 = vector.extract_strided_slice %1243 {offsets = [5, 0], sizes = [16, 16], strides = [1, 1]} : vector<22x16xf32> to vector<16x16xf32>
    %1298 = vector.broadcast %1296 : f32 to vector<16x16xf32>
    %1299 = arith.mulf %1298, %1297 : vector<16x16xf32>
    %1300 = arith.addf %1295, %1299 : vector<16x16xf32>
    %c282 = arith.constant 282 : index
    %1301 = memref.load %arg1[%c282] : memref<294xf32, #tpu.memory_space<smem>>
    %1302 = vector.extract_strided_slice %1245 {offsets = [5, 0], sizes = [16, 16], strides = [1, 1]} : vector<22x16xf32> to vector<16x16xf32>
    %1303 = vector.broadcast %1301 : f32 to vector<16x16xf32>
    %1304 = arith.mulf %1303, %1302 : vector<16x16xf32>
    %1305 = arith.addf %1300, %1304 : vector<16x16xf32>
    %c240 = arith.constant 240 : index
    %1306 = memref.load %arg1[%c240] : memref<294xf32, #tpu.memory_space<smem>>
    %1307 = vector.extract_strided_slice %1243 {offsets = [6, 0], sizes = [16, 16], strides = [1, 1]} : vector<22x16xf32> to vector<16x16xf32>
    %1308 = vector.broadcast %1306 : f32 to vector<16x16xf32>
    %1309 = arith.mulf %1308, %1307 : vector<16x16xf32>
    %1310 = arith.addf %1305, %1309 : vector<16x16xf32>
    %c289 = arith.constant 289 : index
    %1311 = memref.load %arg1[%c289] : memref<294xf32, #tpu.memory_space<smem>>
    %1312 = vector.extract_strided_slice %1245 {offsets = [6, 0], sizes = [16, 16], strides = [1, 1]} : vector<22x16xf32> to vector<16x16xf32>
    %1313 = vector.broadcast %1311 : f32 to vector<16x16xf32>
    %1314 = arith.mulf %1313, %1312 : vector<16x16xf32>
    %1315 = arith.addf %1310, %1314 : vector<16x16xf32>
    %c0_154 = arith.constant 0 : index
    %c0_155 = arith.constant 0 : index
    %c3_156 = arith.constant 3 : index
    %1316 = vector.load %arg9[%c0_154, %c0_155, %c3_156] : memref<2x22x22xf32, #tpu.memory_space<vmem>>, vector<1x22x16xf32>
    %1317 = vector.shape_cast %1316 : vector<1x22x16xf32> to vector<22x16xf32>
    %c1_157 = arith.constant 1 : index
    %c0_158 = arith.constant 0 : index
    %c3_159 = arith.constant 3 : index
    %1318 = vector.load %arg9[%c1_157, %c0_158, %c3_159] : memref<2x22x22xf32, #tpu.memory_space<vmem>>, vector<1x22x16xf32>
    %1319 = vector.shape_cast %1318 : vector<1x22x16xf32> to vector<22x16xf32>
    %c199 = arith.constant 199 : index
    %1320 = memref.load %arg1[%c199] : memref<294xf32, #tpu.memory_space<smem>>
    %1321 = vector.extract_strided_slice %1317 {offsets = [0, 0], sizes = [16, 16], strides = [1, 1]} : vector<22x16xf32> to vector<16x16xf32>
    %1322 = vector.broadcast %1320 : f32 to vector<16x16xf32>
    %1323 = arith.mulf %1322, %1321 : vector<16x16xf32>
    %1324 = arith.addf %1315, %1323 : vector<16x16xf32>
    %c248 = arith.constant 248 : index
    %1325 = memref.load %arg1[%c248] : memref<294xf32, #tpu.memory_space<smem>>
    %1326 = vector.extract_strided_slice %1319 {offsets = [0, 0], sizes = [16, 16], strides = [1, 1]} : vector<22x16xf32> to vector<16x16xf32>
    %1327 = vector.broadcast %1325 : f32 to vector<16x16xf32>
    %1328 = arith.mulf %1327, %1326 : vector<16x16xf32>
    %1329 = arith.addf %1324, %1328 : vector<16x16xf32>
    %c206 = arith.constant 206 : index
    %1330 = memref.load %arg1[%c206] : memref<294xf32, #tpu.memory_space<smem>>
    %1331 = vector.extract_strided_slice %1317 {offsets = [1, 0], sizes = [16, 16], strides = [1, 1]} : vector<22x16xf32> to vector<16x16xf32>
    %1332 = vector.broadcast %1330 : f32 to vector<16x16xf32>
    %1333 = arith.mulf %1332, %1331 : vector<16x16xf32>
    %1334 = arith.addf %1329, %1333 : vector<16x16xf32>
    %c255 = arith.constant 255 : index
    %1335 = memref.load %arg1[%c255] : memref<294xf32, #tpu.memory_space<smem>>
    %1336 = vector.extract_strided_slice %1319 {offsets = [1, 0], sizes = [16, 16], strides = [1, 1]} : vector<22x16xf32> to vector<16x16xf32>
    %1337 = vector.broadcast %1335 : f32 to vector<16x16xf32>
    %1338 = arith.mulf %1337, %1336 : vector<16x16xf32>
    %1339 = arith.addf %1334, %1338 : vector<16x16xf32>
    %c213 = arith.constant 213 : index
    %1340 = memref.load %arg1[%c213] : memref<294xf32, #tpu.memory_space<smem>>
    %1341 = vector.extract_strided_slice %1317 {offsets = [2, 0], sizes = [16, 16], strides = [1, 1]} : vector<22x16xf32> to vector<16x16xf32>
    %1342 = vector.broadcast %1340 : f32 to vector<16x16xf32>
    %1343 = arith.mulf %1342, %1341 : vector<16x16xf32>
    %1344 = arith.addf %1339, %1343 : vector<16x16xf32>
    %c262 = arith.constant 262 : index
    %1345 = memref.load %arg1[%c262] : memref<294xf32, #tpu.memory_space<smem>>
    %1346 = vector.extract_strided_slice %1319 {offsets = [2, 0], sizes = [16, 16], strides = [1, 1]} : vector<22x16xf32> to vector<16x16xf32>
    %1347 = vector.broadcast %1345 : f32 to vector<16x16xf32>
    %1348 = arith.mulf %1347, %1346 : vector<16x16xf32>
    %1349 = arith.addf %1344, %1348 : vector<16x16xf32>
    %c220 = arith.constant 220 : index
    %1350 = memref.load %arg1[%c220] : memref<294xf32, #tpu.memory_space<smem>>
    %1351 = vector.extract_strided_slice %1317 {offsets = [3, 0], sizes = [16, 16], strides = [1, 1]} : vector<22x16xf32> to vector<16x16xf32>
    %1352 = vector.broadcast %1350 : f32 to vector<16x16xf32>
    %1353 = arith.mulf %1352, %1351 : vector<16x16xf32>
    %1354 = arith.addf %1349, %1353 : vector<16x16xf32>
    %c269 = arith.constant 269 : index
    %1355 = memref.load %arg1[%c269] : memref<294xf32, #tpu.memory_space<smem>>
    %1356 = vector.extract_strided_slice %1319 {offsets = [3, 0], sizes = [16, 16], strides = [1, 1]} : vector<22x16xf32> to vector<16x16xf32>
    %1357 = vector.broadcast %1355 : f32 to vector<16x16xf32>
    %1358 = arith.mulf %1357, %1356 : vector<16x16xf32>
    %1359 = arith.addf %1354, %1358 : vector<16x16xf32>
    %c227 = arith.constant 227 : index
    %1360 = memref.load %arg1[%c227] : memref<294xf32, #tpu.memory_space<smem>>
    %1361 = vector.extract_strided_slice %1317 {offsets = [4, 0], sizes = [16, 16], strides = [1, 1]} : vector<22x16xf32> to vector<16x16xf32>
    %1362 = vector.broadcast %1360 : f32 to vector<16x16xf32>
    %1363 = arith.mulf %1362, %1361 : vector<16x16xf32>
    %1364 = arith.addf %1359, %1363 : vector<16x16xf32>
    %c276 = arith.constant 276 : index
    %1365 = memref.load %arg1[%c276] : memref<294xf32, #tpu.memory_space<smem>>
    %1366 = vector.extract_strided_slice %1319 {offsets = [4, 0], sizes = [16, 16], strides = [1, 1]} : vector<22x16xf32> to vector<16x16xf32>
    %1367 = vector.broadcast %1365 : f32 to vector<16x16xf32>
    %1368 = arith.mulf %1367, %1366 : vector<16x16xf32>
    %1369 = arith.addf %1364, %1368 : vector<16x16xf32>
    %c234 = arith.constant 234 : index
    %1370 = memref.load %arg1[%c234] : memref<294xf32, #tpu.memory_space<smem>>
    %1371 = vector.extract_strided_slice %1317 {offsets = [5, 0], sizes = [16, 16], strides = [1, 1]} : vector<22x16xf32> to vector<16x16xf32>
    %1372 = vector.broadcast %1370 : f32 to vector<16x16xf32>
    %1373 = arith.mulf %1372, %1371 : vector<16x16xf32>
    %1374 = arith.addf %1369, %1373 : vector<16x16xf32>
    %c283 = arith.constant 283 : index
    %1375 = memref.load %arg1[%c283] : memref<294xf32, #tpu.memory_space<smem>>
    %1376 = vector.extract_strided_slice %1319 {offsets = [5, 0], sizes = [16, 16], strides = [1, 1]} : vector<22x16xf32> to vector<16x16xf32>
    %1377 = vector.broadcast %1375 : f32 to vector<16x16xf32>
    %1378 = arith.mulf %1377, %1376 : vector<16x16xf32>
    %1379 = arith.addf %1374, %1378 : vector<16x16xf32>
    %c241 = arith.constant 241 : index
    %1380 = memref.load %arg1[%c241] : memref<294xf32, #tpu.memory_space<smem>>
    %1381 = vector.extract_strided_slice %1317 {offsets = [6, 0], sizes = [16, 16], strides = [1, 1]} : vector<22x16xf32> to vector<16x16xf32>
    %1382 = vector.broadcast %1380 : f32 to vector<16x16xf32>
    %1383 = arith.mulf %1382, %1381 : vector<16x16xf32>
    %1384 = arith.addf %1379, %1383 : vector<16x16xf32>
    %c290 = arith.constant 290 : index
    %1385 = memref.load %arg1[%c290] : memref<294xf32, #tpu.memory_space<smem>>
    %1386 = vector.extract_strided_slice %1319 {offsets = [6, 0], sizes = [16, 16], strides = [1, 1]} : vector<22x16xf32> to vector<16x16xf32>
    %1387 = vector.broadcast %1385 : f32 to vector<16x16xf32>
    %1388 = arith.mulf %1387, %1386 : vector<16x16xf32>
    %1389 = arith.addf %1384, %1388 : vector<16x16xf32>
    %c0_160 = arith.constant 0 : index
    %c0_161 = arith.constant 0 : index
    %c4_162 = arith.constant 4 : index
    %1390 = vector.load %arg9[%c0_160, %c0_161, %c4_162] : memref<2x22x22xf32, #tpu.memory_space<vmem>>, vector<1x22x16xf32>
    %1391 = vector.shape_cast %1390 : vector<1x22x16xf32> to vector<22x16xf32>
    %c1_163 = arith.constant 1 : index
    %c0_164 = arith.constant 0 : index
    %c4_165 = arith.constant 4 : index
    %1392 = vector.load %arg9[%c1_163, %c0_164, %c4_165] : memref<2x22x22xf32, #tpu.memory_space<vmem>>, vector<1x22x16xf32>
    %1393 = vector.shape_cast %1392 : vector<1x22x16xf32> to vector<22x16xf32>
    %c200 = arith.constant 200 : index
    %1394 = memref.load %arg1[%c200] : memref<294xf32, #tpu.memory_space<smem>>
    %1395 = vector.extract_strided_slice %1391 {offsets = [0, 0], sizes = [16, 16], strides = [1, 1]} : vector<22x16xf32> to vector<16x16xf32>
    %1396 = vector.broadcast %1394 : f32 to vector<16x16xf32>
    %1397 = arith.mulf %1396, %1395 : vector<16x16xf32>
    %1398 = arith.addf %1389, %1397 : vector<16x16xf32>
    %c249 = arith.constant 249 : index
    %1399 = memref.load %arg1[%c249] : memref<294xf32, #tpu.memory_space<smem>>
    %1400 = vector.extract_strided_slice %1393 {offsets = [0, 0], sizes = [16, 16], strides = [1, 1]} : vector<22x16xf32> to vector<16x16xf32>
    %1401 = vector.broadcast %1399 : f32 to vector<16x16xf32>
    %1402 = arith.mulf %1401, %1400 : vector<16x16xf32>
    %1403 = arith.addf %1398, %1402 : vector<16x16xf32>
    %c207 = arith.constant 207 : index
    %1404 = memref.load %arg1[%c207] : memref<294xf32, #tpu.memory_space<smem>>
    %1405 = vector.extract_strided_slice %1391 {offsets = [1, 0], sizes = [16, 16], strides = [1, 1]} : vector<22x16xf32> to vector<16x16xf32>
    %1406 = vector.broadcast %1404 : f32 to vector<16x16xf32>
    %1407 = arith.mulf %1406, %1405 : vector<16x16xf32>
    %1408 = arith.addf %1403, %1407 : vector<16x16xf32>
    %c256 = arith.constant 256 : index
    %1409 = memref.load %arg1[%c256] : memref<294xf32, #tpu.memory_space<smem>>
    %1410 = vector.extract_strided_slice %1393 {offsets = [1, 0], sizes = [16, 16], strides = [1, 1]} : vector<22x16xf32> to vector<16x16xf32>
    %1411 = vector.broadcast %1409 : f32 to vector<16x16xf32>
    %1412 = arith.mulf %1411, %1410 : vector<16x16xf32>
    %1413 = arith.addf %1408, %1412 : vector<16x16xf32>
    %c214 = arith.constant 214 : index
    %1414 = memref.load %arg1[%c214] : memref<294xf32, #tpu.memory_space<smem>>
    %1415 = vector.extract_strided_slice %1391 {offsets = [2, 0], sizes = [16, 16], strides = [1, 1]} : vector<22x16xf32> to vector<16x16xf32>
    %1416 = vector.broadcast %1414 : f32 to vector<16x16xf32>
    %1417 = arith.mulf %1416, %1415 : vector<16x16xf32>
    %1418 = arith.addf %1413, %1417 : vector<16x16xf32>
    %c263 = arith.constant 263 : index
    %1419 = memref.load %arg1[%c263] : memref<294xf32, #tpu.memory_space<smem>>
    %1420 = vector.extract_strided_slice %1393 {offsets = [2, 0], sizes = [16, 16], strides = [1, 1]} : vector<22x16xf32> to vector<16x16xf32>
    %1421 = vector.broadcast %1419 : f32 to vector<16x16xf32>
    %1422 = arith.mulf %1421, %1420 : vector<16x16xf32>
    %1423 = arith.addf %1418, %1422 : vector<16x16xf32>
    %c221 = arith.constant 221 : index
    %1424 = memref.load %arg1[%c221] : memref<294xf32, #tpu.memory_space<smem>>
    %1425 = vector.extract_strided_slice %1391 {offsets = [3, 0], sizes = [16, 16], strides = [1, 1]} : vector<22x16xf32> to vector<16x16xf32>
    %1426 = vector.broadcast %1424 : f32 to vector<16x16xf32>
    %1427 = arith.mulf %1426, %1425 : vector<16x16xf32>
    %1428 = arith.addf %1423, %1427 : vector<16x16xf32>
    %c270 = arith.constant 270 : index
    %1429 = memref.load %arg1[%c270] : memref<294xf32, #tpu.memory_space<smem>>
    %1430 = vector.extract_strided_slice %1393 {offsets = [3, 0], sizes = [16, 16], strides = [1, 1]} : vector<22x16xf32> to vector<16x16xf32>
    %1431 = vector.broadcast %1429 : f32 to vector<16x16xf32>
    %1432 = arith.mulf %1431, %1430 : vector<16x16xf32>
    %1433 = arith.addf %1428, %1432 : vector<16x16xf32>
    %c228 = arith.constant 228 : index
    %1434 = memref.load %arg1[%c228] : memref<294xf32, #tpu.memory_space<smem>>
    %1435 = vector.extract_strided_slice %1391 {offsets = [4, 0], sizes = [16, 16], strides = [1, 1]} : vector<22x16xf32> to vector<16x16xf32>
    %1436 = vector.broadcast %1434 : f32 to vector<16x16xf32>
    %1437 = arith.mulf %1436, %1435 : vector<16x16xf32>
    %1438 = arith.addf %1433, %1437 : vector<16x16xf32>
    %c277 = arith.constant 277 : index
    %1439 = memref.load %arg1[%c277] : memref<294xf32, #tpu.memory_space<smem>>
    %1440 = vector.extract_strided_slice %1393 {offsets = [4, 0], sizes = [16, 16], strides = [1, 1]} : vector<22x16xf32> to vector<16x16xf32>
    %1441 = vector.broadcast %1439 : f32 to vector<16x16xf32>
    %1442 = arith.mulf %1441, %1440 : vector<16x16xf32>
    %1443 = arith.addf %1438, %1442 : vector<16x16xf32>
    %c235 = arith.constant 235 : index
    %1444 = memref.load %arg1[%c235] : memref<294xf32, #tpu.memory_space<smem>>
    %1445 = vector.extract_strided_slice %1391 {offsets = [5, 0], sizes = [16, 16], strides = [1, 1]} : vector<22x16xf32> to vector<16x16xf32>
    %1446 = vector.broadcast %1444 : f32 to vector<16x16xf32>
    %1447 = arith.mulf %1446, %1445 : vector<16x16xf32>
    %1448 = arith.addf %1443, %1447 : vector<16x16xf32>
    %c284 = arith.constant 284 : index
    %1449 = memref.load %arg1[%c284] : memref<294xf32, #tpu.memory_space<smem>>
    %1450 = vector.extract_strided_slice %1393 {offsets = [5, 0], sizes = [16, 16], strides = [1, 1]} : vector<22x16xf32> to vector<16x16xf32>
    %1451 = vector.broadcast %1449 : f32 to vector<16x16xf32>
    %1452 = arith.mulf %1451, %1450 : vector<16x16xf32>
    %1453 = arith.addf %1448, %1452 : vector<16x16xf32>
    %c242 = arith.constant 242 : index
    %1454 = memref.load %arg1[%c242] : memref<294xf32, #tpu.memory_space<smem>>
    %1455 = vector.extract_strided_slice %1391 {offsets = [6, 0], sizes = [16, 16], strides = [1, 1]} : vector<22x16xf32> to vector<16x16xf32>
    %1456 = vector.broadcast %1454 : f32 to vector<16x16xf32>
    %1457 = arith.mulf %1456, %1455 : vector<16x16xf32>
    %1458 = arith.addf %1453, %1457 : vector<16x16xf32>
    %c291 = arith.constant 291 : index
    %1459 = memref.load %arg1[%c291] : memref<294xf32, #tpu.memory_space<smem>>
    %1460 = vector.extract_strided_slice %1393 {offsets = [6, 0], sizes = [16, 16], strides = [1, 1]} : vector<22x16xf32> to vector<16x16xf32>
    %1461 = vector.broadcast %1459 : f32 to vector<16x16xf32>
    %1462 = arith.mulf %1461, %1460 : vector<16x16xf32>
    %1463 = arith.addf %1458, %1462 : vector<16x16xf32>
    %c0_166 = arith.constant 0 : index
    %c0_167 = arith.constant 0 : index
    %c5_168 = arith.constant 5 : index
    %1464 = vector.load %arg9[%c0_166, %c0_167, %c5_168] : memref<2x22x22xf32, #tpu.memory_space<vmem>>, vector<1x22x16xf32>
    %1465 = vector.shape_cast %1464 : vector<1x22x16xf32> to vector<22x16xf32>
    %c1_169 = arith.constant 1 : index
    %c0_170 = arith.constant 0 : index
    %c5_171 = arith.constant 5 : index
    %1466 = vector.load %arg9[%c1_169, %c0_170, %c5_171] : memref<2x22x22xf32, #tpu.memory_space<vmem>>, vector<1x22x16xf32>
    %1467 = vector.shape_cast %1466 : vector<1x22x16xf32> to vector<22x16xf32>
    %c201 = arith.constant 201 : index
    %1468 = memref.load %arg1[%c201] : memref<294xf32, #tpu.memory_space<smem>>
    %1469 = vector.extract_strided_slice %1465 {offsets = [0, 0], sizes = [16, 16], strides = [1, 1]} : vector<22x16xf32> to vector<16x16xf32>
    %1470 = vector.broadcast %1468 : f32 to vector<16x16xf32>
    %1471 = arith.mulf %1470, %1469 : vector<16x16xf32>
    %1472 = arith.addf %1463, %1471 : vector<16x16xf32>
    %c250 = arith.constant 250 : index
    %1473 = memref.load %arg1[%c250] : memref<294xf32, #tpu.memory_space<smem>>
    %1474 = vector.extract_strided_slice %1467 {offsets = [0, 0], sizes = [16, 16], strides = [1, 1]} : vector<22x16xf32> to vector<16x16xf32>
    %1475 = vector.broadcast %1473 : f32 to vector<16x16xf32>
    %1476 = arith.mulf %1475, %1474 : vector<16x16xf32>
    %1477 = arith.addf %1472, %1476 : vector<16x16xf32>
    %c208 = arith.constant 208 : index
    %1478 = memref.load %arg1[%c208] : memref<294xf32, #tpu.memory_space<smem>>
    %1479 = vector.extract_strided_slice %1465 {offsets = [1, 0], sizes = [16, 16], strides = [1, 1]} : vector<22x16xf32> to vector<16x16xf32>
    %1480 = vector.broadcast %1478 : f32 to vector<16x16xf32>
    %1481 = arith.mulf %1480, %1479 : vector<16x16xf32>
    %1482 = arith.addf %1477, %1481 : vector<16x16xf32>
    %c257 = arith.constant 257 : index
    %1483 = memref.load %arg1[%c257] : memref<294xf32, #tpu.memory_space<smem>>
    %1484 = vector.extract_strided_slice %1467 {offsets = [1, 0], sizes = [16, 16], strides = [1, 1]} : vector<22x16xf32> to vector<16x16xf32>
    %1485 = vector.broadcast %1483 : f32 to vector<16x16xf32>
    %1486 = arith.mulf %1485, %1484 : vector<16x16xf32>
    %1487 = arith.addf %1482, %1486 : vector<16x16xf32>
    %c215 = arith.constant 215 : index
    %1488 = memref.load %arg1[%c215] : memref<294xf32, #tpu.memory_space<smem>>
    %1489 = vector.extract_strided_slice %1465 {offsets = [2, 0], sizes = [16, 16], strides = [1, 1]} : vector<22x16xf32> to vector<16x16xf32>
    %1490 = vector.broadcast %1488 : f32 to vector<16x16xf32>
    %1491 = arith.mulf %1490, %1489 : vector<16x16xf32>
    %1492 = arith.addf %1487, %1491 : vector<16x16xf32>
    %c264 = arith.constant 264 : index
    %1493 = memref.load %arg1[%c264] : memref<294xf32, #tpu.memory_space<smem>>
    %1494 = vector.extract_strided_slice %1467 {offsets = [2, 0], sizes = [16, 16], strides = [1, 1]} : vector<22x16xf32> to vector<16x16xf32>
    %1495 = vector.broadcast %1493 : f32 to vector<16x16xf32>
    %1496 = arith.mulf %1495, %1494 : vector<16x16xf32>
    %1497 = arith.addf %1492, %1496 : vector<16x16xf32>
    %c222 = arith.constant 222 : index
    %1498 = memref.load %arg1[%c222] : memref<294xf32, #tpu.memory_space<smem>>
    %1499 = vector.extract_strided_slice %1465 {offsets = [3, 0], sizes = [16, 16], strides = [1, 1]} : vector<22x16xf32> to vector<16x16xf32>
    %1500 = vector.broadcast %1498 : f32 to vector<16x16xf32>
    %1501 = arith.mulf %1500, %1499 : vector<16x16xf32>
    %1502 = arith.addf %1497, %1501 : vector<16x16xf32>
    %c271 = arith.constant 271 : index
    %1503 = memref.load %arg1[%c271] : memref<294xf32, #tpu.memory_space<smem>>
    %1504 = vector.extract_strided_slice %1467 {offsets = [3, 0], sizes = [16, 16], strides = [1, 1]} : vector<22x16xf32> to vector<16x16xf32>
    %1505 = vector.broadcast %1503 : f32 to vector<16x16xf32>
    %1506 = arith.mulf %1505, %1504 : vector<16x16xf32>
    %1507 = arith.addf %1502, %1506 : vector<16x16xf32>
    %c229 = arith.constant 229 : index
    %1508 = memref.load %arg1[%c229] : memref<294xf32, #tpu.memory_space<smem>>
    %1509 = vector.extract_strided_slice %1465 {offsets = [4, 0], sizes = [16, 16], strides = [1, 1]} : vector<22x16xf32> to vector<16x16xf32>
    %1510 = vector.broadcast %1508 : f32 to vector<16x16xf32>
    %1511 = arith.mulf %1510, %1509 : vector<16x16xf32>
    %1512 = arith.addf %1507, %1511 : vector<16x16xf32>
    %c278 = arith.constant 278 : index
    %1513 = memref.load %arg1[%c278] : memref<294xf32, #tpu.memory_space<smem>>
    %1514 = vector.extract_strided_slice %1467 {offsets = [4, 0], sizes = [16, 16], strides = [1, 1]} : vector<22x16xf32> to vector<16x16xf32>
    %1515 = vector.broadcast %1513 : f32 to vector<16x16xf32>
    %1516 = arith.mulf %1515, %1514 : vector<16x16xf32>
    %1517 = arith.addf %1512, %1516 : vector<16x16xf32>
    %c236 = arith.constant 236 : index
    %1518 = memref.load %arg1[%c236] : memref<294xf32, #tpu.memory_space<smem>>
    %1519 = vector.extract_strided_slice %1465 {offsets = [5, 0], sizes = [16, 16], strides = [1, 1]} : vector<22x16xf32> to vector<16x16xf32>
    %1520 = vector.broadcast %1518 : f32 to vector<16x16xf32>
    %1521 = arith.mulf %1520, %1519 : vector<16x16xf32>
    %1522 = arith.addf %1517, %1521 : vector<16x16xf32>
    %c285 = arith.constant 285 : index
    %1523 = memref.load %arg1[%c285] : memref<294xf32, #tpu.memory_space<smem>>
    %1524 = vector.extract_strided_slice %1467 {offsets = [5, 0], sizes = [16, 16], strides = [1, 1]} : vector<22x16xf32> to vector<16x16xf32>
    %1525 = vector.broadcast %1523 : f32 to vector<16x16xf32>
    %1526 = arith.mulf %1525, %1524 : vector<16x16xf32>
    %1527 = arith.addf %1522, %1526 : vector<16x16xf32>
    %c243 = arith.constant 243 : index
    %1528 = memref.load %arg1[%c243] : memref<294xf32, #tpu.memory_space<smem>>
    %1529 = vector.extract_strided_slice %1465 {offsets = [6, 0], sizes = [16, 16], strides = [1, 1]} : vector<22x16xf32> to vector<16x16xf32>
    %1530 = vector.broadcast %1528 : f32 to vector<16x16xf32>
    %1531 = arith.mulf %1530, %1529 : vector<16x16xf32>
    %1532 = arith.addf %1527, %1531 : vector<16x16xf32>
    %c292 = arith.constant 292 : index
    %1533 = memref.load %arg1[%c292] : memref<294xf32, #tpu.memory_space<smem>>
    %1534 = vector.extract_strided_slice %1467 {offsets = [6, 0], sizes = [16, 16], strides = [1, 1]} : vector<22x16xf32> to vector<16x16xf32>
    %1535 = vector.broadcast %1533 : f32 to vector<16x16xf32>
    %1536 = arith.mulf %1535, %1534 : vector<16x16xf32>
    %1537 = arith.addf %1532, %1536 : vector<16x16xf32>
    %c0_172 = arith.constant 0 : index
    %c0_173 = arith.constant 0 : index
    %c6_174 = arith.constant 6 : index
    %1538 = vector.load %arg9[%c0_172, %c0_173, %c6_174] : memref<2x22x22xf32, #tpu.memory_space<vmem>>, vector<1x22x16xf32>
    %1539 = vector.shape_cast %1538 : vector<1x22x16xf32> to vector<22x16xf32>
    %c1_175 = arith.constant 1 : index
    %c0_176 = arith.constant 0 : index
    %c6_177 = arith.constant 6 : index
    %1540 = vector.load %arg9[%c1_175, %c0_176, %c6_177] : memref<2x22x22xf32, #tpu.memory_space<vmem>>, vector<1x22x16xf32>
    %1541 = vector.shape_cast %1540 : vector<1x22x16xf32> to vector<22x16xf32>
    %c202 = arith.constant 202 : index
    %1542 = memref.load %arg1[%c202] : memref<294xf32, #tpu.memory_space<smem>>
    %1543 = vector.extract_strided_slice %1539 {offsets = [0, 0], sizes = [16, 16], strides = [1, 1]} : vector<22x16xf32> to vector<16x16xf32>
    %1544 = vector.broadcast %1542 : f32 to vector<16x16xf32>
    %1545 = arith.mulf %1544, %1543 : vector<16x16xf32>
    %1546 = arith.addf %1537, %1545 : vector<16x16xf32>
    %c251 = arith.constant 251 : index
    %1547 = memref.load %arg1[%c251] : memref<294xf32, #tpu.memory_space<smem>>
    %1548 = vector.extract_strided_slice %1541 {offsets = [0, 0], sizes = [16, 16], strides = [1, 1]} : vector<22x16xf32> to vector<16x16xf32>
    %1549 = vector.broadcast %1547 : f32 to vector<16x16xf32>
    %1550 = arith.mulf %1549, %1548 : vector<16x16xf32>
    %1551 = arith.addf %1546, %1550 : vector<16x16xf32>
    %c209 = arith.constant 209 : index
    %1552 = memref.load %arg1[%c209] : memref<294xf32, #tpu.memory_space<smem>>
    %1553 = vector.extract_strided_slice %1539 {offsets = [1, 0], sizes = [16, 16], strides = [1, 1]} : vector<22x16xf32> to vector<16x16xf32>
    %1554 = vector.broadcast %1552 : f32 to vector<16x16xf32>
    %1555 = arith.mulf %1554, %1553 : vector<16x16xf32>
    %1556 = arith.addf %1551, %1555 : vector<16x16xf32>
    %c258 = arith.constant 258 : index
    %1557 = memref.load %arg1[%c258] : memref<294xf32, #tpu.memory_space<smem>>
    %1558 = vector.extract_strided_slice %1541 {offsets = [1, 0], sizes = [16, 16], strides = [1, 1]} : vector<22x16xf32> to vector<16x16xf32>
    %1559 = vector.broadcast %1557 : f32 to vector<16x16xf32>
    %1560 = arith.mulf %1559, %1558 : vector<16x16xf32>
    %1561 = arith.addf %1556, %1560 : vector<16x16xf32>
    %c216 = arith.constant 216 : index
    %1562 = memref.load %arg1[%c216] : memref<294xf32, #tpu.memory_space<smem>>
    %1563 = vector.extract_strided_slice %1539 {offsets = [2, 0], sizes = [16, 16], strides = [1, 1]} : vector<22x16xf32> to vector<16x16xf32>
    %1564 = vector.broadcast %1562 : f32 to vector<16x16xf32>
    %1565 = arith.mulf %1564, %1563 : vector<16x16xf32>
    %1566 = arith.addf %1561, %1565 : vector<16x16xf32>
    %c265 = arith.constant 265 : index
    %1567 = memref.load %arg1[%c265] : memref<294xf32, #tpu.memory_space<smem>>
    %1568 = vector.extract_strided_slice %1541 {offsets = [2, 0], sizes = [16, 16], strides = [1, 1]} : vector<22x16xf32> to vector<16x16xf32>
    %1569 = vector.broadcast %1567 : f32 to vector<16x16xf32>
    %1570 = arith.mulf %1569, %1568 : vector<16x16xf32>
    %1571 = arith.addf %1566, %1570 : vector<16x16xf32>
    %c223 = arith.constant 223 : index
    %1572 = memref.load %arg1[%c223] : memref<294xf32, #tpu.memory_space<smem>>
    %1573 = vector.extract_strided_slice %1539 {offsets = [3, 0], sizes = [16, 16], strides = [1, 1]} : vector<22x16xf32> to vector<16x16xf32>
    %1574 = vector.broadcast %1572 : f32 to vector<16x16xf32>
    %1575 = arith.mulf %1574, %1573 : vector<16x16xf32>
    %1576 = arith.addf %1571, %1575 : vector<16x16xf32>
    %c272 = arith.constant 272 : index
    %1577 = memref.load %arg1[%c272] : memref<294xf32, #tpu.memory_space<smem>>
    %1578 = vector.extract_strided_slice %1541 {offsets = [3, 0], sizes = [16, 16], strides = [1, 1]} : vector<22x16xf32> to vector<16x16xf32>
    %1579 = vector.broadcast %1577 : f32 to vector<16x16xf32>
    %1580 = arith.mulf %1579, %1578 : vector<16x16xf32>
    %1581 = arith.addf %1576, %1580 : vector<16x16xf32>
    %c230 = arith.constant 230 : index
    %1582 = memref.load %arg1[%c230] : memref<294xf32, #tpu.memory_space<smem>>
    %1583 = vector.extract_strided_slice %1539 {offsets = [4, 0], sizes = [16, 16], strides = [1, 1]} : vector<22x16xf32> to vector<16x16xf32>
    %1584 = vector.broadcast %1582 : f32 to vector<16x16xf32>
    %1585 = arith.mulf %1584, %1583 : vector<16x16xf32>
    %1586 = arith.addf %1581, %1585 : vector<16x16xf32>
    %c279 = arith.constant 279 : index
    %1587 = memref.load %arg1[%c279] : memref<294xf32, #tpu.memory_space<smem>>
    %1588 = vector.extract_strided_slice %1541 {offsets = [4, 0], sizes = [16, 16], strides = [1, 1]} : vector<22x16xf32> to vector<16x16xf32>
    %1589 = vector.broadcast %1587 : f32 to vector<16x16xf32>
    %1590 = arith.mulf %1589, %1588 : vector<16x16xf32>
    %1591 = arith.addf %1586, %1590 : vector<16x16xf32>
    %c237 = arith.constant 237 : index
    %1592 = memref.load %arg1[%c237] : memref<294xf32, #tpu.memory_space<smem>>
    %1593 = vector.extract_strided_slice %1539 {offsets = [5, 0], sizes = [16, 16], strides = [1, 1]} : vector<22x16xf32> to vector<16x16xf32>
    %1594 = vector.broadcast %1592 : f32 to vector<16x16xf32>
    %1595 = arith.mulf %1594, %1593 : vector<16x16xf32>
    %1596 = arith.addf %1591, %1595 : vector<16x16xf32>
    %c286 = arith.constant 286 : index
    %1597 = memref.load %arg1[%c286] : memref<294xf32, #tpu.memory_space<smem>>
    %1598 = vector.extract_strided_slice %1541 {offsets = [5, 0], sizes = [16, 16], strides = [1, 1]} : vector<22x16xf32> to vector<16x16xf32>
    %1599 = vector.broadcast %1597 : f32 to vector<16x16xf32>
    %1600 = arith.mulf %1599, %1598 : vector<16x16xf32>
    %1601 = arith.addf %1596, %1600 : vector<16x16xf32>
    %c244 = arith.constant 244 : index
    %1602 = memref.load %arg1[%c244] : memref<294xf32, #tpu.memory_space<smem>>
    %1603 = vector.extract_strided_slice %1539 {offsets = [6, 0], sizes = [16, 16], strides = [1, 1]} : vector<22x16xf32> to vector<16x16xf32>
    %1604 = vector.broadcast %1602 : f32 to vector<16x16xf32>
    %1605 = arith.mulf %1604, %1603 : vector<16x16xf32>
    %1606 = arith.addf %1601, %1605 : vector<16x16xf32>
    %c293 = arith.constant 293 : index
    %1607 = memref.load %arg1[%c293] : memref<294xf32, #tpu.memory_space<smem>>
    %1608 = vector.extract_strided_slice %1541 {offsets = [6, 0], sizes = [16, 16], strides = [1, 1]} : vector<22x16xf32> to vector<16x16xf32>
    %1609 = vector.broadcast %1607 : f32 to vector<16x16xf32>
    %1610 = arith.mulf %1609, %1608 : vector<16x16xf32>
    %1611 = arith.addf %1606, %1610 : vector<16x16xf32>
    %1612 = arith.negf %1611 : vector<16x16xf32>
    %1613 = math.exp %1612 : vector<16x16xf32>
    %cst_178 = arith.constant 1.000000e+00 : f32
    %1614 = vector.broadcast %cst_178 : f32 to vector<16x16xf32>
    %1615 = arith.addf %1614, %1613 : vector<16x16xf32>
    %1616 = arith.divf %1614, %1615 : vector<16x16xf32>
    %1617 = arith.mulf %1611, %1616 : vector<16x16xf32>
    %cst_179 = arith.constant 0.333333343 : f32
    %1618 = vector.broadcast %cst_179 : f32 to vector<16x16xf32>
    %1619 = arith.mulf %1617, %1618 : vector<16x16xf32>
    %1620 = vector.shape_cast %1619 : vector<16x16xf32> to vector<1x16x16xf32>
    %c0_180 = arith.constant 0 : index
    %c0_181 = arith.constant 0 : index
    %c0_182 = arith.constant 0 : index
    %1621 = vector.load %arg6[%c0_180, %c0_181, %c0_182] : memref<1x16x16xf32, #tpu.memory_space<vmem>>, vector<1x16x16xf32>
    tpu.vector_store %arg6[%c0_180, %c0_181, %c0_182], %1620 {strides = array<i32>} : memref<1x16x16xf32, #tpu.memory_space<vmem>>, vector<1x16x16xf32>,
    return
  }
  func.func @transform_0(%arg0: i32) -> i32 {
    %c0_i32 = arith.constant 0 : i32
    %c0_i32_0 = arith.constant 0 : i32
    return %c0_i32 : i32
  }
  func.func @transform_1(%arg0: i32) -> i32 {
    %c0_i32 = arith.constant 0 : i32
    %c0_i32_0 = arith.constant 0 : i32
    return %c0_i32 : i32
  }
  func.func @transform_2(%arg0: i32) -> (i32, i32, i32, i32) {
    %c0_i32 = arith.constant 0 : i32
    %c0_i32_0 = arith.constant 0 : i32
    %c0_i32_1 = arith.constant 0 : i32
    %c0_i32_2 = arith.constant 0 : i32
    return %arg0, %c0_i32, %c0_i32_0, %c0_i32_1 : i32, i32, i32, i32
  }
  func.func @transform_3(%arg0: i32) -> (i32, i32, i32) {
    %c0_i32 = arith.constant 0 : i32
    %c0_i32_0 = arith.constant 0 : i32
    %c0_i32_1 = arith.constant 0 : i32
    return %arg0, %c0_i32, %c0_i32_0 : i32, i32, i32
  }
  func.func @transform_4(%arg0: i32) -> (i32, i32, i32) {
    %c0_i32 = arith.constant 0 : i32
    %c0_i32_0 = arith.constant 0 : i32
    %c0_i32_1 = arith.constant 0 : i32
    return %arg0, %c0_i32, %c0_i32_0 : i32, i32, i32
  }
  func.func @transform_5(%arg0: i32) -> (i32, i32, i32) {
    %c0_i32 = arith.constant 0 : i32
    %c0_i32_0 = arith.constant 0 : i32
    %c0_i32_1 = arith.constant 0 : i32
    return %arg0, %c0_i32, %c0_i32_0 : i32, i32, i32
  }
}

</mosaic_0001>

<bundles_post_ra>
// kernel: triplet_forward.1
= control target key start
LH: loop header
LB: loop body
LE: loop exit
PB: predicated region body
PF: predicated region fallthrough
CT: control target
= control target key end

     0   :  { %s8522_s0 = inlined_call_operand.hbm [shape: f32[294], index: 0, kind: input, shape index: {}]   ;;  %s8523_s1 = inlined_call_operand.vmem [shape: f32[3], index: 1, kind: input, shape index: {}]   ;;  %s8524_s2 = inlined_call_operand.hbm [shape: f32[2,4,16,16], index: 2, kind: input, shape index: {}]   ;;  %s8525_s3 = inlined_call_operand.vmem [shape: f32[2,4,16], index: 3, kind: output, shape index: {0}]   ;;  %s8526_s4 = inlined_call_operand.vmem [shape: f32[2,4,16], index: 4, kind: output, shape index: {1}]   ;;  %s8527_s5 = inlined_call_operand.vmem [shape: f32[2,16,16], index: 5, kind: output, shape index: {2}]  }
   0x1   :  { %8561 = sst [smem:[#allocation30_spill]] %s8522_s0 }
   0x2   :  { %8562 = sst [smem:[#allocation31_spill]] %s8523_s1 }
   0x3   :  { %8563 = sst [smem:[#allocation32_spill]] %s8524_s2 }
   0x4   :  { %8564 = sst [smem:[#allocation33_spill]] %s8525_s3 }
   0x5   :  { %8565 = sst [smem:[#allocation34_spill]] %s8526_s4 }
   0x6   :  { %8566 = sst [smem:[#allocation35_spill]] %s8527_s5 }
   0x7   :  { %11 = vsyncpa [#allocation7], 0 }
   0x8   :  { %12 = vsyncpa [#allocation8], 0 }
   0x9   :  { %13 = vsyncpa [#allocation6], 0 }
   0xa   :  { %15 = vsyncpa [#allocation6 + $0x1], 0  ;;  %s5159_s18 = smov 0   ;;  %s5161_s19 = smov 0  }
   0xb   :  { %s5163_s20 = smov 0   ;;  %s5165_s21 = smov 0  }
   0xc LB: > { %8567 = sst [smem:[#allocation14_spill]] %s5106_s19  ;;  %s5178_s22 = sadd.s32 4294967295, %s5114_s21   ;;  %s5114_s21 = sphi %s5165_s21, %s8647_s21   ;;  %s5110_s20 = sphi %s5163_s20, %s8650_s20   ;;  %s5106_s19 = sphi %s5161_s19, %s8649_s19   ;;  %s5102_s18 = sphi %s5159_s18, %s8648_s18  }
   0xd   : > { %8568 = sst [smem:[#allocation15_spill]] %s5110_s20  ;;  %s5181_s23 = sadd.s32 1, %s5114_s21  }
   0xe   : > { %8569 = sst [smem:[#allocation16_spill]] %s5178_s22  ;;  %s67_s24 = ssub.s32 %s5114_s21, %s5181_s23 }
   0xf   : > { %8570 = sst [smem:[#allocation17_spill]] %s5181_s23  ;;  %s70_s25 = sadd.s32 1, %s5110_s20 }
  0x10   : > { %p68_p0 = scmp.eq.s32.totalorder %s67_s24, 0  ;;  %p77_p1 = scmp.ne.s32.totalorder %s5110_s20, %s5106_s19 }
  0x11   : > { %p78_p2 = scmp.eq.s32.totalorder %s5114_s21, 0  ;;  %p83_p3 = scmp.ne.s32.totalorder %s5106_s19, %s5102_s18 }
  0x12   : > { %s5191_s26 = scalar_select %p68_p0, %s5110_s20, %s70_s25  }
  0x13   : > { %p79_p4 = por %p78_p2, %p77_p1  ;;  %p8528_p5 = scmp.eq.s32.totalorder %s5178_s22, 0 }
  0x14   : > { %8571 = sst [smem:[#allocation18_spill]] %s5191_s26  ;;  %p4595_p6 = scmp.ge.s32.totalorder %s5114_s21, 1 }
  0x15   : > { %p172_p7 = scmp.lt.s32.totalorder %s5114_s21, 3  ;;  %p5198_p8 = por %p8528_p5, %p83_p3 }
  0x16   : > { %p4936_p10 = scmp.lt.s32.totalorder %s5114_s21, 2  ;;  %s8574_s1 = sld [smem:[#allocation31_spill]] }
  0x17   : > { %s8572_s27 = scalar_select %p5198_p8, 1, 0 }
  0x18   : > { %p5202_p9 = pnand %p4595_p6, %p172_p7  ;;  %p5212_p12 = pnand %p4936_p10, %p79_p4 }
  0x19   : > { %s205_s9 = sand.u32 1, %s5110_s20   ;;  %s5116_s10 = smov [#allocation5]  }
  0x1a   : > { %s8573_s28 = scalar_select %p5202_p9, 1, 0 }
  0x1b   : > { %p4923_p11 = pneg %p5202_p9  ;;  %s8577_s0 = sld [smem:[#allocation30_spill]] }
  0x1c   : > { %s194_s6 = sshll.u32 %s8574_s1, 4  ;;  %s195_s6 = int_to_ptr.vmem [resolvable:$true] %s194_s6 }
  0x1d   : > { %p5218_p13 = pnand %p4923_p11, %p8528_p5  ;;  %s5029_s13 = scalar_lea.vmem %s195_s6, 16 }
  0x1e   : > { %p5030_p0 = scmp.ne.s32.totalorder %s195_s6, %s5029_s13  ;;  %p5037_p4 = scmp.lt.s32.totalorder %s195_s6, %s195_s6 }
  0x1f   : > { %p5031_p1 = pneg %p5218_p13  ;;  %p5038_p6 = scmp.lt.s32.totalorder %s5029_s13, %s5029_s13 }
  0x21   : > { %4926 = dma.hbm_to_smem (!%p5218_p13), %s8577_s0, 48, %s5116_s10, [#allocation7]  }
  0x22   : > { %p5032_p2 = pnand %p5031_p1, %p5030_p0  ;;  %p5039_p7 = por %p5038_p6, %p5037_p4 }
  0x24   : > { %p5033_p3 = pneg %p5032_p2 }
  0x26   : > { %p5040_p10 = pnand %p5039_p7, %p5033_p3 }
  0x28   : > { %5043 = shalt.err (!%p5040_p10)
}
  0x29   : > { %s5117_s14 = smov [#allocation9]   ;;  %s4599_s15 = sshll.u32 %s205_s9, 6 }
  0x2a   : > { %4929 = dma.vmem_to_smem (!%p5218_p13), %s195_s6, 16, %s5117_s14, [#allocation8]  }
  0x2b   : > { %s4911_s16 = sshll.u32 %s5114_s21, 10  ;;  %s8578_s2 = sld [smem:[#allocation32_spill]] }
  0x2c   : > { %s209_s25 = scalar_lea.vmem [#allocation10], %s4599_s15  ;;  %s5240_s30 = scalar_lea.sflag [#allocation6], %s205_s9 }
  0x2d   : > { %s216_s29 = sshll.u32 %s209_s25, 4  ;;  %p5046_p13 = pneg %p5212_p12  ;;  %s5238_s29 = int_to_ptr.vmem [resolvable:$true] %s216_s29 }
  0x31   : > { %s5236_s24 = scalar_lea.hbm %s8578_s2, %s4911_s16  ;;  %s5049_s10 = scalar_lea.hbm %s8578_s2, 2048 }
  0x32   : > { %s5044_s8 = scalar_lea.hbm %s5236_s24, 1024  ;;  %p5050_p2 = scmp.lt.s32.totalorder %s5236_s24, %s8578_s2 }
  0x33   : > { %p5045_p11 = scmp.ne.s32.totalorder %s5236_s24, %s5044_s8  ;;  %p5051_p3 = scmp.lt.s32.totalorder %s5049_s10, %s5044_s8 }
  0x35   : > { %p5047_p0 = pnand %p5046_p13, %p5045_p11  ;;  %p5052_p4 = por %p5051_p3, %p5050_p2 }
  0x37   : > { %p5048_p1 = pneg %p5047_p0 }
  0x39   : > { %p5053_p6 = pnand %p5052_p4, %p5048_p1 }
  0x3b   : > { %5056 = shalt.err (!%p5053_p6)
}
  0x3c   : > { %s5057_s9 = scalar_lea.vmem %s5238_s29, 1024  ;;  %s5118_s13 = smov [#allocation10]  }
  0x3d   : > { %p5058_p7 = scmp.ne.s32.totalorder %s5238_s29, %s5057_s9  ;;  %s5062_s14 = sshll.u32 %s5118_s13, 4  ;;  %s5063_s14 = int_to_ptr.vmem [resolvable:$false] %s5062_s14 }
  0x3e   : > { %s5064_s15 = scalar_lea.vmem %s5063_s14, 2048  ;;  %p5065_p0 = scmp.lt.s32.totalorder %s5238_s29, %s5063_s14 }
  0x3f   : > { %p5060_p10 = pnand %p5058_p7, %p5046_p13  ;;  %p5066_p5 = scmp.lt.s32.totalorder %s5064_s15, %s5057_s9 }
  0x41   : > { %p5061_p11 = pneg %p5060_p10  ;;  %p5067_p8 = por %p5066_p5, %p5065_p0 }
  0x43   : > { %p5068_p9 = pnand %p5067_p8, %p5061_p11 }
  0x45   : > { %5071 = shalt.err (!%p5068_p9)
}
  0x46   : > { %s5119_s16 = smov 128   ;;  %s5120_s17 = smov 8  }
  0x47   : > { %4933 = dma.hbm_to_vmem [thread:$0]  (!%p5212_p12), %s5236_s24, 1024, %s5238_s29, %s5240_s30, %s5119_s16, %s5119_s16, %s5120_s17  }
  0x48   : > { %p8579_p13 = scmp.ne.s32.totalorder %s8573_s28, 0 }
  0x4a   : > { %228 = sbr.rel (%p8579_p13) target bundleno = 1070 (0x42e), region = 32 }
  0x4f   : > { %p8580_p1 = scmp.eq.s32.totalorder %s5178_s22, 0 }
  0x51   : > { %5089 = dma.done.wait (%p8580_p1), [#allocation7], 48   ;;  %p8581_p2 = pmov %p8580_p1 }
  0x52   : > { %p8582_p5 = pmov %p8580_p1 }
  0x53   : > { %5091 = vsyncadd (%p8581_p2), [#allocation7], 4294967248 }
  0x54   : > { %5093 = dma.done.wait (%p8582_p5), [#allocation8], 16   ;;  %p8583_p8 = pmov %p8580_p1 }
  0x55   : > { %s238_s18 = sand.u32 1, %s5106_s19   ;;  %p8584_p9 = scmp.ne.s32.totalorder %s8572_s27, 0 }
  0x56   : > { %5095 = vsyncadd (%p8583_p8), [#allocation8], 4294967280  ;;  %s4605_s7 = sshll.u32 %s238_s18, 6  ;;  %s239_s24 = scalar_lea.sflag [#allocation6], %s238_s18 }
  0x57   : > { %s242_s25 = scalar_lea.vmem [#allocation10], %s4605_s7 }
  0x58   : > { %5097 = dma.done.wait (%p8584_p9), %s239_s24, 1024  }
  0x59   : > { %5099 = vsyncadd (%p8584_p9), %s239_s24, 4294966272 }
  0x5a   : > { %247 = sfence }
  0x5b   : > { %v291_v0 = vld [vmem:[%s242_s25] sm:$0xff]  ;;  %v292_v1 = vld [vmem:[%s242_s25 + $0x8] sm:$0xff]  ;;  %v293_v2 = vld [vmem:[%s242_s25 + $0x10] sm:$0xff]  ;;  %vm299_vm0 = vcmask 130048   ;;  %vm382_vm1 = vcmask 1041409   ;;  %vm384_vm2 = vcmask 1042434  }
  0x5c   : > { %v294_v3 = vld [vmem:[%s242_s25 + $0x18] sm:$0xff]  ;;  %v295_v4 = vld [vmem:[%s242_s25 + $0x20] sm:$0xff]  ;;  %v296_v5 = vld [vmem:[%s242_s25 + $0x28] sm:$0xff]  ;;  %v5277_v6 = vsel %vm299_vm0, %v291_v0, -inf  ;;  %v5280_v7 = vsel %vm299_vm0, %v292_v1, -inf  ;;  %v5283_v8 = vsel %vm299_vm0, %v293_v2, -inf }
  0x5d   : > { %v297_v9 = vld [vmem:[%s242_s25 + $0x30] sm:$0xff]  ;;  %v298_v10 = vld [vmem:[%s242_s25 + $0x38] sm:$0xff]  ;;  %v302_v11 = vmax.f32 %v5277_v6, %v5280_v7  ;;  %v5288_v12 = vsel %vm299_vm0, %v294_v3, -inf  ;;  %v5291_v13 = vsel %vm299_vm0, %v295_v4, -inf  ;;  %v5294_v14 = vsel %vm299_vm0, %v296_v5, -inf  ;;  %405 = vmax.xlane.f32.xlu1 %v5277_v6  ;;  %s5121_s27 = smov 3  }
  0x5e   : > { %v311_v15 = vmax.f32 %v5283_v8, %v5288_v12  ;;  %v320_v16 = vmax.f32 %v5291_v13, %v5294_v14  ;;  %v5302_v17 = vsel %vm299_vm0, %v297_v9, -inf  ;;  %v5305_v18 = vsel %vm299_vm0, %v298_v10, -inf  ;;  %s4623_s28 = sld [smem:[#allocation5 + $0x1]]  ;;  %s8587_s19 = smov 127  }
  0x5f   : > { %v303_v19 = vrot.slane %v302_v11, 4  ;;  %v329_v20 = vmax.f32 %v5302_v17, %v5305_v18  ;;  %v5310_v21 = vsel %vm299_vm0, %v291_v0, 0.0  ;;  %v5313_v24 = vsel %vm299_vm0, %v292_v1, 0.0  ;;  %s5384_s29 = sld [smem:[#allocation5 + $0x2]]  ;;  %s8589_s5 = smov 126  }
  0x60   : > { %v312_v22 = vrot.slane %v311_v15, 4  ;;  %v321_v23 = vrot.slane %v320_v16, 4  ;;  %v5316_v25 = vsel %vm299_vm0, %v293_v2, 0.0  ;;  %v338_v28 = vadd.f32 %v5313_v24, %v5310_v21  ;;  %s5386_s30 = sld [smem:[#allocation5 + $0x3]]  ;;  %s8590_s3 = smov 125  }
  0x61   : > { %v304_v26 = vmax.f32 %v302_v11, %v303_v19  ;;  %v330_v27 = vrot.slane %v329_v20, 4  ;;  %v5321_v29 = vsel %vm299_vm0, %v294_v3, 0.0  ;;  %407 = vmax.xlane.f32.xlu1 %v5280_v7  ;;  %v5327_v33 = vsel %vm299_vm0, %v295_v4, 0.0  ;;  %s5388_s8 = sld [smem:[#allocation5 + $0x8]] }
  0x62   : > { %v313_v30 = vmax.f32 %v311_v15, %v312_v22  ;;  %v322_v31 = vmax.f32 %v320_v16, %v321_v23  ;;  %v347_v32 = vadd.f32 %v5321_v29, %v5316_v25  ;;  %v339_v36 = vrot.slane %v338_v28, 4  ;;  %s5390_s21 = sld [smem:[#allocation5 + $0x32]] }
  0x63   : > { %v305_v34 = vrot.slane %v304_v26, 2  ;;  %v331_v35 = vmax.f32 %v329_v20, %v330_v27  ;;  %v5330_v37 = vsel %vm299_vm0, %v296_v5, 0.0  ;;  %v5335_v45 = vsel %vm299_vm0, %v297_v9, 0.0  ;;  %s5392_s6 = sld [smem:[#allocation5 + $0x33]] }
  0x64   : > { %v314_v38 = vrot.slane %v313_v30, 2  ;;  %v323_v39 = vrot.slane %v322_v31, 2  ;;  %v348_v40 = vrot.slane %v347_v32, 4  ;;  %v356_v41 = vadd.f32 %v5330_v37, %v5327_v33  ;;  %s5394_s10 = sld [smem:[#allocation5 + $0x34]] }
  0x65   : > { %v306_v42 = vmax.f32 %v304_v26, %v305_v34  ;;  %v332_v43 = vrot.slane %v331_v35, 2  ;;  %v340_v44 = vadd.f32 %v339_v36, %v338_v28  ;;  %411 = vmax.xlane.f32.xlu1 %v5288_v12  ;;  %v5339_v53 = vsel %vm299_vm0, %v298_v10, 0.0  ;;  %s5396_s11 = sld [smem:[#allocation5 + $0xf]] }
  0x66   : > { %v315_v46 = vmax.f32 %v313_v30, %v314_v38  ;;  %v324_v47 = vmax.f32 %v322_v31, %v323_v39  ;;  %v349_v48 = vadd.f32 %v348_v40, %v347_v32  ;;  %v357_v49 = vrot.slane %v356_v41, 4  ;;  %s5398_s12 = sld [smem:[#allocation5 + $0x39]] }
  0x67   : > { %v307_v50 = vrot.slane %v306_v42, 1  ;;  %v333_v51 = vmax.f32 %v331_v35, %v332_v43  ;;  %v341_v52 = vrot.slane %v340_v44, 2  ;;  %v365_v61 = vadd.f32 %v5339_v53, %v5335_v45  ;;  %s5400_s9 = sld [smem:[#allocation5 + $0x16]] }
  0x68   : > { %v316_v54 = vrot.slane %v315_v46, 1  ;;  %v325_v55 = vrot.slane %v324_v47, 1  ;;  %v350_v56 = vrot.slane %v349_v48, 2  ;;  %v358_v57 = vadd.f32 %v357_v49, %v356_v41  ;;  %s5403_s13 = sld [smem:[#allocation5 + $0x40]] }
  0x69   : > { %v308_v58 = vmax.f32 %v306_v42, %v307_v50  ;;  %v334_v59 = vrot.slane %v333_v51, 1  ;;  %v342_v60 = vadd.f32 %v341_v52, %v340_v44  ;;  %413 = vmax.xlane.f32.xlu1 %v5291_v13  ;;  %vm386_vm3 = vcmask 1043459   ;;  %s5405_s14 = sld [smem:[#allocation5 + $0x1d]] }
  0x6a   : > { %v317_v62 = vmax.f32 %v315_v46, %v316_v54  ;;  %v326_v63 = vmax.f32 %v324_v47, %v325_v55  ;;  %v351_v0 = vadd.f32 %v350_v56, %v349_v48  ;;  %v359_v1 = vrot.slane %v358_v57, 2  ;;  %s5407_s15 = sld [smem:[#allocation5 + $0x47]] }
  0x6b   : > { %v335_v2 = vmax.f32 %v333_v51, %v334_v59  ;;  %v343_v3 = vrot.slane %v342_v60, 1  ;;  %v366_v4 = vrot.slane %v365_v61, 4  ;;  %v548_v26 = vmax.f32 %v5280_v7, %v5294_v14  ;;  %s5409_s16 = sld [smem:[#allocation5 + $0x9]] }
  0x6c   : > { %v383_v5 = vsel %vm382_vm1, %v317_v62, %v308_v58  ;;  %v352_v9 = vrot.slane %v351_v0, 1  ;;  %v360_v10 = vadd.f32 %v359_v1, %v358_v57  ;;  %v549_v27 = vmax.f32 %v5288_v12, %v5305_v18  ;;  %s5413_s17 = sld [smem:[#allocation5 + $0x4e]] }
  0x6d   : > { %v385_v11 = vsel %vm384_vm2, %v326_v63, %v383_v5  ;;  %v344_v15 = vadd.f32 %v343_v3, %v342_v60  ;;  %v367_v16 = vadd.f32 %v366_v4, %v365_v61  ;;  %415 = vmax.xlane.f32.xlu1 %v5294_v14  ;;  %vm372_vm4 = vcmask 179200   ;;  %s5415_s18 = sld [smem:[#allocation5 + $0x10]] }
  0x6e   : > { %v387_v19 = vsel %vm386_vm3, %v335_v2, %v385_v11  ;;  %v353_v20 = vadd.f32 %v352_v9, %v351_v0  ;;  %v361_v22 = vrot.slane %v360_v10, 1  ;;  %v550_v32 = vmax.f32 %v548_v26, %v549_v27  ;;  %s5417_s7 = sld [smem:[#allocation5 + $0x3a]] }
  0x6f   : > { %388 = vrot.lane.b32.xlu0 %v387_v19, %s5121_s27  ;;  %v368_v23 = vrot.slane %v367_v16, 2  ;;  %v5122_v34 = vmov 0.0   ;;  %vm374_vm5 = vcmask 173056   ;;  %v546_v36 = vmax.f32 %v5283_v8, %v5302_v17  ;;  %s5421_s24 = sld [smem:[#allocation5 + $0x17]] }
  0x70   : > { %v362_v28 = vadd.f32 %v361_v22, %v360_v10  ;;  %v397_v31 = vsel %vm382_vm1, %v353_v20, %v344_v15  ;;  %373 = vst.msk [vmem:[#allocation2] sm:$0xff] %vm372_vm4, %v5122_v34  ;;  %376 = vst.msk [vmem:[#allocation2 + $0x10] sm:$0xff] %vm372_vm4, %v5122_v34  ;;  %v551_v38 = vadd.f32 %v5316_v25, %v5310_v21  ;;  %vm559_vm6 = vcmask 177152   ;;  %s5426_s25 = sld [smem:[#allocation5 + $0x41]] }
  0x71   : > { %v369_v30 = vadd.f32 %v368_v23, %v367_v16  ;;  %417 = vmax.xlane.f32.xlu1 %v5302_v17  ;;  %437 = vst.msk [vmem:[#allocation3] sm:$0xff] %vm372_vm4, %v5122_v34  ;;  %439 = vst.msk [vmem:[#allocation3 + $0x10] sm:$0xff] %vm372_vm4, %v5122_v34  ;;  %v554_v41 = vadd.f32 %v5321_v29, %v5313_v24  ;;  %vm391_vm7 = vcmask 150552   ;;  %s5433_s0 = sld [smem:[#allocation5 + $0x48]]  ;;  %v719_v46 = vstv %s5388_s8 }
  0x72   : > { %557 = vst.msk [vmem:[#allocation4] sm:$0xff] %vm372_vm4, %v5122_v34  ;;  %558 = vst.msk [vmem:[#allocation4 + $0x8] sm:$0xff] %vm372_vm4, %v5122_v34  ;;  %v398_v12 = vsel %vm384_vm2, %v362_v28, %v397_v31  ;;  %v552_v40 = vadd.f32 %v551_v38, %v5327_v33  ;;  %s5435_s1 = sld [smem:[#allocation5 + $0xa]]  ;;  %v711_v47 = vstv %s5390_s21  ;;  %s8539_s21 = smov 125   ;;  %v851_v54 = vstv %s5392_s6 }
  0x73   : > { %561 = vst.msk [vmem:[#allocation4 + $0x18] sm:$0xff] %vm372_vm4, %v5122_v34  ;;  %562 = vst.msk [vmem:[#allocation4 + $0x20] sm:$0xff] %vm372_vm4, %v5122_v34  ;;  %v370_v7 = vrot.slane %v369_v30, 1  ;;  %s5440_s2 = sld [smem:[#allocation5 + $0x4f]]  ;;  %v449_v55 = vlaneseq  ;;  %v755_v60 = vstv %s5400_s9  ;;  %v991_v61 = vstv %s5394_s10 }
  0x74   : > { %375 = vst.msk [vmem:[#allocation2 + $0x8] sm:$0x3] %vm374_vm5, %v5122_v34  ;;  %377 = vst.msk [vmem:[#allocation2 + $0x18] sm:$0x3] %vm374_vm5, %v5122_v34  ;;  %v553_v42 = vadd.f32 %v552_v40, %v5335_v45  ;;  %s5444_s26 = sld [smem:[#allocation5 + $0x11]]  ;;  %v728_v62 = vstv %s5398_s12  ;;  %v773_v5 = vstv %s5405_s14  ;;  %v746_v9 = vstv %s5403_s13 }
  0x75   : > { %v371_v14 = vadd.f32 %v370_v7, %v369_v30  ;;  %419 = vmax.xlane.f32.xlu1 %v5305_v18  ;;  %438 = vst.msk [vmem:[#allocation3 + $0x8] sm:$0x3] %vm374_vm5, %v5122_v34  ;;  %440 = vst.msk [vmem:[#allocation3 + $0x18] sm:$0x3] %vm374_vm5, %v5122_v34  ;;  %v545_v18 = vmax.f32 %v5277_v6, %v5291_v13  ;;  %v555_v6 = vadd.f32 %v554_v41, %v5330_v37  ;;  %s5450_s20 = sld [smem:[#allocation5 + $0x18]]  ;;  %vm461_vm8 = vcmask 154712  }
  0x76   : > { %560 = vst.msk [vmem:[#allocation4 + $0x10] sm:$0x3f] %vm559_vm6, %v5122_v34  ;;  %563 = vst.msk [vmem:[#allocation4 + $0x28] sm:$0x3f] %vm559_vm6, %v5122_v34  ;;  %s5462_s8 = sld [smem:[#allocation5 + $0x1f]]  ;;  %v450_v63 = vand.u32 127, %v449_v55  ;;  %v764_v15 = vstv %s5407_s15  ;;  %v859_v20 = vstv %s5409_s16  ;;  %v782_v22 = vstv %s5413_s17 }
  0x77   : > { %v399_v35 = vsel %vm386_vm3, %v371_v14, %v398_v12  ;;  %v547_v39 = vmax.f32 %v545_v18, %v546_v36  ;;  %v556_v13 = vadd.f32 %v555_v6, %v5339_v53  ;;  %s5469_s23 = sld [smem:[#allocation5 + $0x24]]  ;;  %v453_v11 = vshrl.u32 %v449_v55, 7 }
  0x78   : > { %400 = vrot.lane.b32.xlu0 %v399_v35, %s5121_s27  ;;  %s5483_s6 = sld [smem:[#allocation5 + $0x55]]  ;;  %v451_v10 = vadd.s32 4294967293, %v450_v63  ;;  %v877_v28 = vstv %s5415_s18  ;;  %v868_v30 = vstv %s5417_s7  ;;  %v456_v31 = vadd.s32 4294967285, %v450_v63 }
  0x79   : > { %421 = vadd.xlane.f32.xlu1 %v5310_v21  ;;  %v703_v21 = vstv %s4623_s28  ;;  %s8531_s28 = smov 127   ;;  %s5486_s4 = sld [smem:[#allocation5 + $0x25]]  ;;  %v886_v34 = vstv %s5426_s25  ;;  %v904_v14 = vstv %s5433_s0  ;;  %v999_v41 = vstv %s5435_s1 }
  0x7a   : > { %s5491_s9 = sld [smem:[#allocation5 + $0x5c]]  ;;  %v5524_v12 = vsub.s32 %v451_v10, %v453_v11  ;;  %vm662_vm9 = vcmask 1042432   ;;  %vm572_vm10 = vcmask 154648   ;;  %vm685_vm11 = vcmask 1041408  }
  0x7b   : > { %s5496_s10 = sld [smem:[#allocation9]]  ;;  %v5528_v35 = vld [vmem:[#allocation2 + $0x8] sm:$0x3]  ;;  %vm2543_vm12 = vcmask 1046528   ;;  %vm2578_vm13 = vcmask 1045504   ;;  %vm2613_vm14 = vcmask 1044480  }
  0x7c   : > { %s5500_s12 = sld [smem:[#allocation5]]  ;;  %vm1550_vm15 = vcmask 125952  }
  0x7d   : > { %423 = vadd.xlane.f32.xlu1 %v5313_v24  ;;  %s5504_s22 = sld [smem:[#allocation5 + $0x31]]  ;;  %v791_v18 = vstv %s5469_s23 }
  0x7e   : > { %s5511_s13 = sld [smem:[#allocation5 + $0x7]]  ;;  %v804_v63 = vstv %s5483_s6 }
  0x7f   : > { %s5516_s14 = sld [smem:[#allocation5 + $0x38]] }
  0x80   : > { %s5522_s15 = sld [smem:[#allocation5 + $0xe]] }
  0x81   : > { %425 = vadd.xlane.f32.xlu1 %v5316_v25  ;;  %s5532_s16 = sld [smem:[#allocation5 + $0x23]] }
  0x82   : > { %s5539_s17 = sld [smem:[#allocation5 + $0x3f]]  ;;  %v593_v55 = vstv %s5500_s12 }
  0x83   : > { %s5544_s18 = sld [smem:[#allocation5 + $0x15]] }
  0x84   : > { %s5590_s12 = sld [smem:[#allocation5 + $0x2a]] }
  0x85   : > { %429 = vadd.xlane.f32.xlu1 %v5327_v33  ;;  %s5734_s23 = sld [smem:[#allocation5 + $0x56]] }
  0x86   : > { %s5761_s7 = sld [smem:[#allocation5 + $0x5d]] }
  0x87   : > { %s5810_s25 = sld [smem:[#allocation5 + $0x57]] }
  0x88   : > { %s5867_s6 = sld [smem:[#allocation5 + $0x20]] }
  0x89   : > { %433 = vadd.xlane.f32.xlu1 %v5335_v45  ;;  %v983_v45 = vstv %s5386_s30  ;;  %s5458_s30 = sld [smem:[#allocation5 + $0x42]] }
  0x8a   : > { %s5918_s0 = sld [smem:[#allocation5 + $0x36]] }
  0x8b   : > { %s5922_s1 = sld [smem:[#allocation5 + $0x1a]] }
  0x8f   : > { %8585 = sst [smem:[#allocation19_spill]] %s5458_s30 }
  0x97   : > { %409 = vmax.xlane.f32.xlu0 %v5283_v8 }
  0x9a   : > { %566 = vrot.lane.b32.xlu1 %v547_v39, %s5121_s27 }
  0x9b   : > { %427 = vadd.xlane.f32.xlu0 %v5321_v29 }
  0x9e   : > { %577 = vrot.lane.b32.xlu1 %v553_v42, %s5121_s27  ;;  %v922_v42 = vstv %s5440_s2  ;;  %s5705_s2 = sld [smem:[#allocation5 + $0x2c]] }
  0x9f   : > { %431 = vadd.xlane.f32.xlu0 %v5330_v37  ;;  %v843_v37 = vstv %s5384_s29  ;;  %s8534_s29 = smov 126  }
  0xa2   : > { %579 = vrot.lane.b32.xlu1 %v556_v13, %s5121_s27 }
  0xa3   : > { %435 = vadd.xlane.f32.xlu0 %v5339_v53  ;;  %v737_v53 = vstv %s5396_s11  ;;  %s5474_s11 = sld [smem:[#allocation5 + $0x50]] }
  0xb9   : > { %568 = vrot.lane.b32.xlu0 %v550_v32, %s5121_s27  ;;  %s5430_s27 = sld [smem:[#allocation5 + $0x1e]]  ;;  %v895_v32 = vstv %s5421_s24 }
  0xba   : > { %s5559_s24 = sld [smem:[#allocation5 + $0x54]] }
  0xbf   : > { %v913_v7 = vstv %s5430_s27  ;;  %s5828_s27 = sld [smem:[#allocation5 + $0x5e]] }
  0xe1   : > { %v389_v8 = vpop.permute.xlu0 %388 }
  0xe2   : > { %392 = vst.msk [vmem:[#allocation2 + $0x3] sm:$0xf] %vm391_vm7, %v389_v8  ;;  %v1017_v8 = vstv %s5444_s26  ;;  %s5742_s26 = sld [smem:[#allocation5 + $0x26]] }
  0xe6   : > { %v5411_v17 = vpop.xlane.xlu1 %405 }
  0xe9   : > { %v5419_v24 = vld [vmem:[#allocation2] sm:$0xff] }
  0xea   : > { %v401_v25 = vpop.permute.xlu0 %400  ;;  %v704_v29 = vmul.f32 %v703_v21, %v5419_v24  ;;  %v5424_v33 = vpop.xlane.xlu1 %407  ;;  %v844_v43 = vmul.f32 %v843_v37, %v5419_v24  ;;  %v984_v49 = vmul.f32 %v983_v45, %v5419_v24  ;;  %v720_v50 = vmul.f32 %v719_v46, %v5419_v24 }
  0xeb   : > { %404 = vst.msk [vmem:[#allocation2 + $0x13] sm:$0xf] %vm391_vm7, %v401_v25  ;;  %v738_v57 = vmul.f32 %v737_v53, %v5419_v24  ;;  %v756_v1 = vmul.f32 %v755_v60, %v5419_v24  ;;  %v774_v19 = vmul.f32 %v773_v5, %v5419_v24  ;;  %v860_v39 = vmul.f32 %v859_v20, %v5419_v24 }
  0xec   : > { %706 = vrot.lane.b32.xlu0 %v704_v29, %s8531_s28  ;;  %s5448_s28 = sld [smem:[#allocation5 + $0x3b]]  ;;  %v722_v56 = vrot.slane %v720_v50, 1  ;;  %v1035_v25 = vstv %s5450_s20  ;;  %v1026_v29 = vstv %s5458_s30  ;;  %v5552_v37 = vmul.f32 %v791_v18, %v5528_v35 }
  0xed   : > { %v740_v0 = vrot.slane %v738_v57, 2  ;;  %v758_v16 = vrot.slane %v756_v1, 3  ;;  %v776_v38 = vrot.slane %v774_v19, 4  ;;  %v5561_v45 = vsub.s32 %v456_v31, %v453_v11  ;;  %s5567_s30 = sld [smem:[#allocation5 + $0x46]] }
  0xee   : > { %v5438_v44 = vpop.xlane.xlu1 %411  ;;  %v1053_v46 = vstv %s5462_s8  ;;  %v862_v50 = vrot.slane %v860_v39, 1  ;;  %v601_v60 = vstv %s5511_s13  ;;  %v896_v1 = vmul.f32 %v895_v32, %v5419_v24  ;;  %s5853_s8 = sld [smem:[#allocation5 + $0x35]] }
  0xef   : > { %v657_v5 = vstv %s5532_s16  ;;  %v594_v11 = vmul.f32 %v593_v55, %v5419_v24  ;;  %v622_v32 = vstv %s5539_s17  ;;  %s4670_s13 = sld [smem:[#allocation5 + $0x43]] }
  0xf0   : > { %846 = vrot.lane.b32.xlu0 %v844_v43, %s8534_s29  ;;  %s5466_s29 = sld [smem:[#allocation5 + $0x49]]  ;;  %v898_v39 = vrot.slane %v896_v1, 3 }
  0xf1   : > { %s4674_s16 = sld [smem:[#allocation5 + $0x51]] }
  0xf2   : > { %v5452_v48 = vld [vmem:[#allocation2 + $0x10] sm:$0xff]  ;;  %v5456_v51 = vpop.xlane.xlu1 %413  ;;  %v1008_v21 = vstv %s5448_s28  ;;  %s5832_s28 = sld [smem:[#allocation5 + $0x4]] }
  0xf3   : > { %v712_v52 = vmul.f32 %v711_v47, %v5452_v48  ;;  %v852_v59 = vmul.f32 %v851_v54, %v5452_v48  ;;  %v992_v3 = vmul.f32 %v991_v61, %v5452_v48  ;;  %v729_v4 = vmul.f32 %v728_v62, %v5452_v48  ;;  %s5890_s17 = sld [smem:[#allocation5 + $0x58]] }
  0xf4   : > { %986 = vrot.lane.b32.xlu0 %v984_v49, %s8539_s21  ;;  %s5478_s21 = sld [smem:[#allocation5 + $0x2b]]  ;;  %v747_v27 = vmul.f32 %v746_v9, %v5452_v48  ;;  %v765_v13 = vmul.f32 %v764_v15, %v5452_v48  ;;  %v931_v49 = vstv %s5486_s4  ;;  %v1062_v54 = vstv %s5474_s11 }
  0xf5   : > { %714 = vrot.lane.b32.xlu1 %v712_v52, %s8587_s19  ;;  %v731_v26 = vrot.slane %v729_v4, 1  ;;  %v878_v52 = vmul.f32 %v877_v28, %v5419_v24  ;;  %v783_v57 = vmul.f32 %v782_v22, %v5452_v48  ;;  %v797_v61 = vrot.slane %v5552_v37, 5  ;;  %s5773_s4 = sld [smem:[#allocation5 + $0x2d]] }
  0xf6   : > { %8586 = sst [smem:[#allocation20_spill]] %s5466_s29  ;;  %v5472_v58 = vpop.xlane.xlu1 %415  ;;  %v749_v6 = vrot.slane %v747_v27, 2  ;;  %v1044_v47 = vstv %s5466_s29  ;;  %v608_v4 = vstv %s5516_s14  ;;  %v869_v20 = vmul.f32 %v868_v30, %v5452_v48  ;;  %v5610_v27 = vld [vmem:[#allocation2 + $0x18] sm:$0x3] }
  0xf7   : > { %s5579_s29 = sld [smem:[#allocation5 + $0x4d]]  ;;  %v880_v9 = vrot.slane %v878_v52, 2  ;;  %v785_v19 = vrot.slane %v783_v57, 4  ;;  %v830_v22 = vstv %s5491_s9  ;;  %v609_v31 = vmul.f32 %v608_v4, %v5452_v48 }
  0xf8   : > { %723 = vrot.lane.b32.xlu0 %v722_v56, %s8587_s19  ;;  %v767_v56 = vrot.slane %v765_v13, 3  ;;  %v636_v13 = vstv %s5567_s30  ;;  %v5621_v30 = vmul.f32 %v657_v5, %v5528_v35  ;;  %s5846_s30 = sld [smem:[#allocation5 + $0x12]] }
  0xf9   : > { %854 = vrot.lane.b32.xlu1 %v852_v59, %s8589_s5  ;;  %v597_v59 = vstv %s5504_s22  ;;  %s5597_s22 = sld [smem:[#allocation5 + $0x5b]]  ;;  %v611_v4 = vrot.slane %v609_v31, 1 }
  0xfa   : > { %8588 = sst [smem:[#allocation21_spill]] %s5478_s21  ;;  %v5489_v2 = vpop.xlane.xlu1 %417  ;;  %v817_v36 = vstv %s5478_s21  ;;  %v598_v15 = vmul.f32 %v597_v59, %v5452_v48  ;;  %v871_v59 = vrot.slane %v869_v20, 1 }
  0xfb   : > { %v5557_v43 = vmul.f32 %v817_v36, %v5528_v35  ;;  %s5574_s21 = sld [smem:[#allocation5 + $0x1c]] }
  0xfc   : > { %741 = vrot.lane.b32.xlu0 %v740_v0, %s8587_s19  ;;  %v5588_v0 = vmul.f32 %v931_v49, %v5528_v35  ;;  %s4668_s11 = sld [smem:[#allocation5 + $0x3c]] }
  0xfd   : > { %994 = vrot.lane.b32.xlu1 %v992_v3, %s8590_s3  ;;  %v823_v62 = vrot.slane %v5557_v43, 6  ;;  %v587_v3 = vstv %s5496_s10  ;;  %v831_v43 = vmul.f32 %v830_v22, %v5452_v48  ;;  %s5870_s9 = sld [smem:[#allocation5 + $0x27]]  ;;  %s5126_s10 = smov 124  }
  0xfe   : > { %v5509_v23 = vpop.xlane.xlu1 %419  ;;  %v595_v28 = vadd.f32 %v594_v11, %v587_v3  ;;  %v680_v11 = vstv %s5590_s12  ;;  %s5877_s14 = sld [smem:[#allocation5 + $0x2e]] }
  0xff   : > { %s4681_s12 = sld [smem:[#allocation5 + $0xc]] }
 0x100   : > { %759 = vrot.lane.b32.xlu0 %v758_v16, %s8587_s19  ;;  %v602_v16 = vmul.f32 %v601_v60, %v5419_v24  ;;  %v599_v55 = vadd.f32 %v598_v15, %v595_v28  ;;  %v887_v60 = vmul.f32 %v886_v34, %v5452_v48  ;;  %v1000_v15 = vmul.f32 %v999_v41, %v5419_v24  ;;  %s5930_s20 = sld [smem:[#allocation5 + $0x21]] }
 0x101   : > { %732 = vrot.lane.b32.xlu1 %v731_v26, %s8587_s19  ;;  %v615_v26 = vstv %s5522_s15  ;;  %v643_v1 = vstv %s5574_s21  ;;  %v664_v34 = vrot.slane %v5621_v30, 5  ;;  %v5656_v41 = vmul.f32 %v680_v11, %v5528_v35  ;;  %s5858_s21 = sld [smem:[#allocation5 + $0x19]] }
 0x102   : > { %v5535_v40 = vpop.xlane.xlu1 %421  ;;  %v616_v57 = vmul.f32 %v615_v26, %v5419_v24  ;;  %s4672_s15 = sld [smem:[#allocation5 + $0x4a]] }
 0x104   : > { %777 = vrot.lane.b32.xlu0 %v776_v38, %s8587_s19  ;;  %v669_v38 = vstv %s5559_s24  ;;  %s5902_s24 = sld [smem:[#allocation5 + $0x5]] }
 0x105   : > { %750 = vrot.lane.b32.xlu1 %v749_v6, %s8587_s19  ;;  %v629_v6 = vstv %s5544_s18  ;;  %v5636_v3 = vmul.f32 %v669_v38, %v5610_v27  ;;  %s5899_s18 = sld [smem:[#allocation5 + $0x5f]] }
 0x106   : > { %v5570_v53 = vpop.xlane.xlu1 %423  ;;  %v630_v31 = vmul.f32 %v629_v6, %v5419_v24  ;;  %v455_v6 = vrot.slane %v5411_v17, %v5524_v12 }
 0x108   : > { %863 = vrot.lane.b32.xlu0 %v862_v50, %s8589_s5  ;;  %v914_v50 = vmul.f32 %v913_v7, %v5419_v24 }
 0x109   : > { %768 = vrot.lane.b32.xlu1 %v767_v56, %s8587_s19  ;;  %v604_v56 = vrot.slane %v602_v16, 1  ;;  %v650_v16 = vstv %s5579_s29  ;;  %s5837_s29 = sld [smem:[#allocation5 + $0xb]] }
 0x10a   : > { %v5599_v10 = vpop.xlane.xlu1 %425  ;;  %v916_v20 = vrot.slane %v914_v50, 4 }
 0x10b   : > { %v606_v7 = vadd.f32 %v604_v56, %v599_v55  ;;  %v889_v55 = vrot.slane %v887_v60, 2  ;;  %v675_v56 = vrot.slane %v5636_v3, 5  ;;  %v1018_v60 = vmul.f32 %v1017_v8, %v5419_v24 }
 0x10c   : > { %881 = vrot.lane.b32.xlu0 %v880_v9, %s8589_s5  ;;  %v623_v9 = vmul.f32 %v622_v32, %v5452_v48  ;;  %v905_v32 = vmul.f32 %v904_v14, %v5452_v48  ;;  %v460_v14 = vrot.slane %v5424_v33, %v5561_v45  ;;  %v658_v33 = vmul.f32 %v657_v5, %v5419_v24 }
 0x10d   : > { %786 = vrot.lane.b32.xlu1 %v785_v19, %s8587_s19  ;;  %v692_v19 = vstv %s5597_s22  ;;  %v613_v28 = vadd.f32 %v611_v4, %v606_v7  ;;  %v1002_v4 = vrot.slane %v1000_v15, 1  ;;  %v687_v8 = vrot.slane %v5656_v41, 6  ;;  %s5911_s22 = sld [smem:[#allocation5 + $0x13]] }
 0x10e   : > { %v5626_v52 = vpop.xlane.xlu1 %429  ;;  %v5669_v7 = vmul.f32 %v692_v19, %v5610_v27  ;;  %v907_v17 = vrot.slane %v905_v32, 3  ;;  %v1036_v15 = vmul.f32 %v1035_v25, %v5419_v24  ;;  %v470_v32 = vrot.slane %v5438_v44, %v5561_v45 }
 0x10f   : > { %v670_v5 = vmul.f32 %v669_v38, %v5452_v48  ;;  %v1020_v25 = vrot.slane %v1018_v60, 2  ;;  %v663_v44 = vrot.slane %v658_v33, 5  ;;  %v515_v3 = vrot.slane %v5599_v10, %v5524_v12 }
 0x110   : > { %899 = vrot.lane.b32.xlu0 %v898_v39, %s8589_s5  ;;  %v618_v39 = vrot.slane %v616_v57, 2  ;;  %v637_v57 = vmul.f32 %v636_v13, %v5452_v48  ;;  %v644_v13 = vmul.f32 %v643_v1, %v5419_v24  ;;  %v1038_v38 = vrot.slane %v1036_v15, 3 }
 0x111   : > { %872 = vrot.lane.b32.xlu1 %v871_v59, %s8589_s5  ;;  %v625_v59 = vrot.slane %v623_v9, 2  ;;  %v524_v37 = vrot.slane %v5626_v52, %v5524_v12  ;;  %v937_v52 = vrot.slane %v5588_v0, 5 }
 0x112   : > { %v5648_v26 = vpop.xlane.xlu1 %433  ;;  %v620_v50 = vadd.f32 %v618_v39, %v613_v28  ;;  %v632_v28 = vrot.slane %v630_v31, 3  ;;  %v923_v39 = vmul.f32 %v922_v42, %v5452_v48  ;;  %v639_v31 = vrot.slane %v637_v57, 3 }
 0x113   : > { %v462_v42 = vsel %vm461_vm8, %v460_v14, %v455_v6  ;;  %v1009_v6 = vmul.f32 %v1008_v21, %v5452_v48  ;;  %v681_v14 = vmul.f32 %v680_v11, %v5419_v24  ;;  %v475_v21 = vrot.slane %v5456_v51, %v5524_v12 }
 0x114   : > { %917 = vrot.lane.b32.xlu0 %v916_v20, %s8589_s5  ;;  %v627_v9 = vadd.f32 %v625_v59, %v620_v50  ;;  %v698_v50 = vrot.slane %v5669_v7, 6  ;;  %v1054_v59 = vmul.f32 %v1053_v46, %v5419_v24  ;;  %v792_v46 = vmul.f32 %v791_v18, %v5419_v24 }
 0x115   : > { %890 = vrot.lane.b32.xlu1 %v889_v55, %s8589_s5  ;;  %v651_v55 = vmul.f32 %v650_v16, %v5452_v48  ;;  %v646_v16 = vrot.slane %v644_v13, 4  ;;  %v674_v11 = vrot.slane %v670_v5, 5  ;;  %v693_v13 = vmul.f32 %v692_v19, %v5452_v48 }
 0x116   : > { %v567_v20 = vpop.permute.xlu1 %566  ;;  %v634_v1 = vadd.f32 %v632_v28, %v627_v9  ;;  %v479_v28 = vrot.slane %v5472_v58, %v5561_v45  ;;  %v488_v18 = vrot.slane %v5509_v23, %v5561_v45  ;;  %v1011_v15 = vrot.slane %v1009_v6, 1 }
 0x117   : > { %573 = vst.msk [vmem:[#allocation4 + $0x3] sm:$0xff] %vm572_vm10, %v567_v20  ;;  %v925_v20 = vrot.slane %v923_v39, 4  ;;  %v653_v9 = vrot.slane %v651_v55, 4  ;;  %v1027_v39 = vmul.f32 %v1026_v29, %v5452_v48  ;;  %v818_v58 = vmul.f32 %v817_v36, %v5419_v24 }
 0x118   : > { %1003 = vrot.lane.b32.xlu0 %v1002_v4, %s8590_s3  ;;  %v641_v4 = vadd.f32 %v639_v31, %v634_v1  ;;  %v665_v19 = vsel %vm662_vm9, %v663_v44, %v664_v34  ;;  %v686_v1 = vrot.slane %v681_v14, 6  ;;  %v1056_v23 = vrot.slane %v1054_v59, 4 }
 0x119   : > { %908 = vrot.lane.b32.xlu1 %v907_v17, %s8589_s5  ;;  %v484_v17 = vrot.slane %v5489_v2, %v5524_v12  ;;  %v1045_v29 = vmul.f32 %v1044_v47, %v5452_v48  ;;  %v796_v31 = vrot.slane %v792_v46, 5  ;;  %v480_v5 = vsel %vm461_vm8, %v479_v28, %v475_v21 }
 0x11a   : > { %v578_v57 = vpop.permute.xlu1 %577  ;;  %v648_v60 = vadd.f32 %v646_v16, %v641_v4  ;;  %v676_v30 = vsel %vm662_vm9, %v674_v11, %v675_v56  ;;  %v697_v34 = vrot.slane %v693_v13, 6  ;;  %v506_v47 = vrot.slane %v5535_v40, %v5524_v12 }
 0x11b   : > { %584 = vst.msk [vmem:[#allocation4 + $0x1b] sm:$0xff] %vm572_vm10, %v578_v57  ;;  %v1029_v59 = vrot.slane %v1027_v39, 2  ;;  %v510_v4 = vrot.slane %v5570_v53, %v5561_v45  ;;  %v688_v56 = vsel %vm685_vm11, %v686_v1, %v687_v8  ;;  %v932_v6 = vmul.f32 %v931_v49, %v5419_v24 }
 0x11c   : > { %1021 = vrot.lane.b32.xlu0 %v1020_v25, %s8590_s3  ;;  %v655_v51 = vadd.f32 %v653_v9, %v648_v60  ;;  %v489_v25 = vsel %vm461_vm8, %v488_v18, %v484_v17  ;;  %v957_v44 = vstv %s5705_s2  ;;  %v822_v10 = vrot.slane %v818_v58, 6  ;;  %s4682_s2 = sld [smem:[#allocation5 + $0x3d]] }
 0x11d   : > { %926 = vrot.lane.b32.xlu1 %v925_v20, %s8589_s5  ;;  %v699_v41 = vsel %vm685_vm11, %v697_v34, %v698_v50  ;;  %v798_v8 = vsel %vm662_vm9, %v796_v31, %v797_v61  ;;  %v511_v46 = vsel %vm461_vm8, %v510_v4, %v506_v47  ;;  %v1047_v50 = vrot.slane %v1045_v29, 3 }
 0x11e   : > { %v580_v33 = vpop.permute.xlu1 %579  ;;  %v667_v55 = vadd.f32 %v665_v19, %v655_v51  ;;  %v806_v60 = vmul.f32 %v804_v63, %v5610_v27  ;;  %v832_v9 = vmul.f32 %v830_v22, %v5610_v27  ;;  %v959_v28 = vmul.f32 %v957_v44, %v5528_v35 }
 0x11f   : > { %585 = vst.msk [vmem:[#allocation4 + $0x23] sm:$0xff] %vm572_vm10, %v580_v33  ;;  %v944_v11 = vstv %s5734_s23  ;;  %v824_v17 = vsel %vm685_vm11, %v822_v10, %v823_v62  ;;  %v1071_v18 = vstv %s5742_s26  ;;  %v533_v33 = vrot.slane %v5648_v26, %v5524_v12  ;;  %s5933_s23 = sld [smem:[#allocation5 + $0x28]]  ;;  %s5127_s26 = smov 123  }
 0x120   : > { %v410_v2 = vpop.xlane.xlu0 %409  ;;  %1039 = vrot.lane.b32.xlu0 %v1038_v38, %s8590_s3  ;;  %v678_v57 = vadd.f32 %v676_v30, %v667_v55  ;;  %v936_v0 = vrot.slane %v932_v6, 5  ;;  %v810_v19 = vrot.slane %v806_v60, 5  ;;  %v946_v26 = vmul.f32 %v944_v11, %v5610_v27 }
 0x121   : > { %v466_v36 = vrot.slane %v410_v2, %v5524_v12  ;;  %1012 = vrot.lane.b32.xlu1 %v1011_v15, %s8590_s3  ;;  %v836_v12 = vrot.slane %v832_v9, 6  ;;  %v963_v2 = vrot.slane %v959_v28, 6  ;;  %v970_v29 = vstv %s5761_s7  ;;  %s5937_s7 = sld [smem:[#allocation5 + $0x44]] }
 0x122   : > { %v690_v53 = vadd.f32 %v688_v56, %v678_v57  ;;  %v1097_v31 = vstv %s5773_s4  ;;  %v938_v22 = vsel %vm662_vm9, %v936_v0, %v937_v52  ;;  %v835_v34 = vrot.slane %v831_v43, 6  ;;  %s5944_s4 = sld [smem:[#allocation5 + $0x2f]] }
 0x123   : > { %v471_v16 = vsel %vm461_vm8, %v470_v32, %v466_v36  ;;  %v1072_v36 = vmul.f32 %v1071_v18, %v5419_v24  ;;  %v972_v4 = vmul.f32 %v970_v29, %v5610_v27  ;;  %v1098_v56 = vmul.f32 %v1097_v31, %v5419_v24 }
 0x124   : > { %v490_v20 = vsel %vm382_vm1, %v471_v16, %v462_v42  ;;  %v428_v40 = vpop.xlane.xlu0 %427  ;;  %1057 = vrot.lane.b32.xlu0 %v1056_v23, %s8590_s3  ;;  %v1063_v42 = vmul.f32 %v1062_v54, %v5452_v48  ;;  %v5775_v38 = vadd.f32 %v699_v41, %v690_v53  ;;  %v805_v54 = vmul.f32 %v804_v63, %v5452_v48 }
 0x125   : > { %v491_v32 = vsel %vm384_vm2, %v480_v5, %v490_v20  ;;  %v519_v14 = vrot.slane %v428_v40, %v5561_v45  ;;  %1030 = vrot.lane.b32.xlu1 %v1029_v59, %s8590_s3  ;;  %v958_v63 = vmul.f32 %v957_v44, %v5419_v24  ;;  %v1073_v23 = vmul.f32 %v1071_v18, %v5528_v35 }
 0x126   : > { %v492_v49 = vsel %vm386_vm3, %v489_v25, %v491_v32  ;;  %v1065_v51 = vrot.slane %v1063_v42, 4  ;;  %v809_v58 = vrot.slane %v805_v54, 5  ;;  %v945_v25 = vmul.f32 %v944_v11, %v5452_v48 }
 0x127   : > { %494 = vst.msk [vmem:[#allocation3 + $0x3] sm:$0xf] %vm391_vm7, %v492_v49  ;;  %v520_v7 = vsel %vm461_vm8, %v519_v14, %v515_v3  ;;  %v962_v5 = vrot.slane %v958_v63, 6  ;;  %v950_v59 = vrot.slane %v946_v26, 5  ;;  %v1077_v57 = vrot.slane %v1073_v23, 5 }
 0x128   : > { %v432_v61 = vpop.xlane.xlu0 %431  ;;  %799 = vrot.lane.b32.xlu0 %v798_v8, %s8587_s19  ;;  %v539_v13 = vsel %vm382_vm1, %v520_v7, %v511_v46  ;;  %v1076_v3 = vrot.slane %v1072_v36, 5  ;;  %v1099_v20 = vmul.f32 %v1097_v31, %v5528_v35  ;;  %v837_v40 = vsel %vm685_vm11, %v835_v34, %v836_v12 }
 0x129   : > { %v528_v21 = vrot.slane %v432_v61, %v5561_v45  ;;  %1048 = vrot.lane.b32.xlu1 %v1047_v50, %s8590_s3  ;;  %v964_v16 = vsel %vm685_vm11, %v962_v5, %v963_v2  ;;  %v949_v6 = vrot.slane %v945_v25, 5  ;;  %v971_v44 = vmul.f32 %v970_v29, %v5452_v48 }
 0x12a   : > { %v1084_v53 = vstv %s5810_s25  ;;  %v1078_v32 = vsel %vm662_vm9, %v1076_v3, %v1077_v57  ;;  %v1102_v14 = vrot.slane %v1098_v56, 6  ;;  %v1103_v10 = vrot.slane %v1099_v20, 6  ;;  %s5949_s25 = sld [smem:[#allocation5 + $0x4b]] }
 0x12b   : > { %v529_v39 = vsel %vm461_vm8, %v528_v21, %v524_v37  ;;  %v1086_v41 = vmul.f32 %v1084_v53, %v5610_v27  ;;  %v951_v49 = vsel %vm662_vm9, %v949_v6, %v950_v59  ;;  %v975_v8 = vrot.slane %v971_v44, 6 }
 0x12c   : > { %v436_v15 = vpop.xlane.xlu0 %435  ;;  %825 = vrot.lane.b32.xlu0 %v824_v17, %s8587_s19  ;;  %v540_v62 = vsel %vm384_vm2, %v529_v39, %v539_v13  ;;  %v976_v42 = vrot.slane %v972_v4, 6  ;;  %v1085_v46 = vmul.f32 %v1084_v53, %v5452_v48  ;;  %v1110_v7 = vstv %s5828_s27  ;;  %s5961_s27 = sld [smem:[#allocation5 + $0x52]] }
 0x12d   : > { %v537_v1 = vrot.slane %v436_v15, %v5561_v45  ;;  %1066 = vrot.lane.b32.xlu1 %v1065_v51, %s8590_s3  ;;  %v811_v45 = vsel %vm662_vm9, %v809_v58, %v810_v19  ;;  %v1104_v37 = vsel %vm685_vm11, %v1102_v14, %v1103_v10  ;;  %v1090_v50 = vrot.slane %v1086_v41, 5 }
 0x12e   : > { %v1123_v61 = vstv %s5832_s28  ;;  %v1139_v54 = vstv %s5837_s29  ;;  %v977_v60 = vsel %vm685_vm11, %v975_v8, %v976_v42  ;;  %v1089_v9 = vrot.slane %v1085_v46, 5  ;;  %s5964_s28 = sld [smem:[#allocation5 + $0x59]] }
 0x12f   : > { %v538_v55 = vsel %vm461_vm8, %v537_v1, %v533_v33  ;;  %v1111_v21 = vmul.f32 %v1110_v7, %v5452_v48  ;;  %v1112_v52 = vmul.f32 %v1110_v7, %v5610_v27  ;;  %v1124_v28 = vmul.f32 %v1123_v61, %v5419_v24  ;;  %s5978_s29 = sld [smem:[#allocation5 + $0x60]] }
 0x130   : > { %v541_v30 = vsel %vm386_vm3, %v538_v55, %v540_v62  ;;  %939 = vrot.lane.b32.xlu0 %v938_v22, %s8589_s5  ;;  %v569_v47 = vpop.permute.xlu0 %568  ;;  %v1140_v11 = vmul.f32 %v1139_v54, %v5419_v24  ;;  %v1157_v13 = vstv %s5846_s30  ;;  %v1091_v17 = vsel %vm662_vm9, %v1089_v9, %v1090_v50  ;;  %s5983_s30 = sld [smem:[#allocation5 + $0x6]] }
 0x131   : > { %544 = vst.msk [vmem:[#allocation3 + $0x13] sm:$0xf] %vm391_vm7, %v541_v30  ;;  %812 = vrot.lane.b32.xlu1 %v811_v45, %s8587_s19  ;;  %v1115_v63 = vrot.slane %v1111_v21, 6  ;;  %v1116_v18 = vrot.slane %v1112_v52, 6  ;;  %v1158_v33 = vmul.f32 %v1157_v13, %v5419_v24  ;;  %v1175_v51 = vstv %s5858_s21  ;;  %s6003_s21 = sld [smem:[#allocation5 + $0x14]] }
 0x132   : > { %574 = vst.msk [vmem:[#allocation4 + $0xb] sm:$0xff] %vm572_vm10, %v569_v47  ;;  %v1142_v39 = vrot.slane %v1140_v11, 1  ;;  %v1131_v15 = vstv %s5853_s8  ;;  %v1148_v58 = vstv %s4668_s11  ;;  %v1176_v43 = vmul.f32 %v1175_v51, %v5419_v24  ;;  %s5991_s8 = sld [smem:[#allocation5 + $0xd]] }
 0x133   : > { %v1117_v0 = vsel %vm685_vm11, %v1115_v63, %v1116_v18  ;;  %v1160_v19 = vrot.slane %v1158_v33, 2  ;;  %v1132_v62 = vmul.f32 %v1131_v15, %v5452_v48  ;;  %v1149_v1 = vmul.f32 %v1148_v58, %v5452_v48  ;;  %s6012_s11 = sld [smem:[#allocation5 + $0x37]] }
 0x134   : > { %965 = vrot.lane.b32.xlu0 %v964_v16, %s8589_s5  ;;  %v1193_v12 = vstv %s5867_s6  ;;  %v1211_v26 = vstv %s5870_s9  ;;  %v1166_v2 = vstv %s4670_s13  ;;  %v1178_v23 = vrot.slane %v1176_v43, 3  ;;  %s6019_s6 = sld [smem:[#allocation5 + $0x1b]] }
 0x135   : > { %838 = vrot.lane.b32.xlu1 %v837_v40, %s8587_s19  ;;  %v1194_v29 = vmul.f32 %v1193_v12, %v5419_v24  ;;  %v1213_v31 = vmul.f32 %v1211_v26, %v5528_v35  ;;  %v1151_v55 = vrot.slane %v1149_v1, 1  ;;  %v1167_v22 = vmul.f32 %v1166_v2, %v5452_v48  ;;  %s6026_s9 = sld [smem:[#allocation5 + $0x3e]] }
 0x136   : > { %v1212_v5 = vmul.f32 %v1211_v26, %v5419_v24  ;;  %v1237_v36 = vstv %s5877_s14  ;;  %v1184_v30 = vstv %s4672_s15  ;;  %v1202_v16 = vstv %s4674_s16  ;;  %s6033_s13 = sld [smem:[#allocation5 + $0x22]]  ;;  %s5128_s15 = smov 122  }
 0x137   : > { %v1196_v45 = vrot.slane %v1194_v29, 4  ;;  %v1217_v34 = vrot.slane %v1213_v31, 5  ;;  %v1239_v25 = vmul.f32 %v1237_v36, %v5528_v35  ;;  %v1169_v47 = vrot.slane %v1167_v22, 2  ;;  %s6038_s14 = sld [smem:[#allocation5 + $0x29]] }
 0x138   : > { %1079 = vrot.lane.b32.xlu0 %v1078_v32, %s8590_s3  ;;  %v1185_v59 = vmul.f32 %v1184_v30, %v5452_v48  ;;  %v1216_v57 = vrot.slane %v1212_v5, 5  ;;  %v1238_v4 = vmul.f32 %v1237_v36, %v5419_v24  ;;  %v1224_v3 = vstv %s5890_s17  ;;  %s6042_s16 = sld [smem:[#allocation5 + $0x45]] }
 0x139   : > { %952 = vrot.lane.b32.xlu1 %v951_v49, %s8589_s5  ;;  %v1243_v56 = vrot.slane %v1239_v25, 6  ;;  %v1203_v6 = vmul.f32 %v1202_v16, %v5452_v48  ;;  %v1225_v53 = vmul.f32 %v1224_v3, %v5452_v48  ;;  %v1226_v32 = vmul.f32 %v1224_v3, %v5610_v27  ;;  %s6051_s17 = sld [smem:[#allocation5 + $0x30]] }
 0x13a   : > { %v1187_v20 = vrot.slane %v1185_v59, 3  ;;  %v1218_v40 = vsel %vm662_vm9, %v1216_v57, %v1217_v34  ;;  %v1242_v44 = vrot.slane %v1238_v4, 6  ;;  %v1250_v14 = vstv %s5899_s18  ;;  %v5988_v59 = vld [vmem:[#allocation2] sm:$0xff]  ;;  %s6057_s18 = sld [smem:[#allocation5 + $0x4c]] }
 0x13b   : > { %v1205_v10 = vrot.slane %v1203_v6, 4  ;;  %v1263_v49 = vstv %s5902_s24  ;;  %v1279_v8 = vstv %s4681_s12  ;;  %v1229_v42 = vrot.slane %v1225_v53, 5  ;;  %s6071_s24 = sld [smem:[#allocation5 + $0x53]] }
 0x13c   : > { %1105 = vrot.lane.b32.xlu0 %v1104_v37, %s8590_s3  ;;  %v1244_v41 = vsel %vm685_vm11, %v1242_v44, %v1243_v56  ;;  %v1230_v46 = vrot.slane %v1226_v32, 5  ;;  %v1251_v7 = vmul.f32 %v1250_v14, %v5452_v48  ;;  %v1252_v37 = vmul.f32 %v1250_v14, %v5610_v27  ;;  %s6074_s12 = sld [smem:[#allocation5 + $0x5a]] }
 0x13d   : > { %978 = vrot.lane.b32.xlu1 %v977_v60, %s8589_s5  ;;  %v1264_v50 = vmul.f32 %v1263_v49, %v5419_v24  ;;  %v1280_v61 = vmul.f32 %v1279_v8, %v5419_v24  ;;  %v1297_v54 = vstv %s5911_s22  ;;  %v1315_v13 = vstv %s5922_s1  ;;  %s6082_s22 = sld [smem:[#allocation5 + $0x61]] }
 0x13e   : > { %v1231_v60 = vsel %vm662_vm9, %v1229_v42, %v1230_v46  ;;  %v1255_v9 = vrot.slane %v1251_v7, 6  ;;  %v1256_v21 = vrot.slane %v1252_v37, 6  ;;  %v1298_v11 = vmul.f32 %v1297_v54, %v5419_v24  ;;  %s6102_s1 = sld [smem:[#allocation5 + $0x6a]] }
 0x13f   : > { %v1271_v63 = vstv %s5918_s0  ;;  %v1288_v18 = vstv %s4682_s2  ;;  %v1316_v51 = vmul.f32 %v1315_v13, %v5419_v24  ;;  %v1333_v58 = vstv %s5930_s20  ;;  %s6096_s0 = sld [smem:[#allocation5 + $0x63]] }
 0x140   : > { %1126 = vrot.lane.b32.xlu0 %v1124_v28, %s5126_s10  ;;  %v1282_v28 = vrot.slane %v1280_v61, 1  ;;  %v1300_v33 = vrot.slane %v1298_v11, 2  ;;  %v1289_v15 = vmul.f32 %v1288_v18, %v5452_v48  ;;  %v1306_v43 = vstv %s5937_s7  ;;  %s6116_s2 = sld [smem:[#allocation5 + $0x71]] }
 0x141   : > { %1092 = vrot.lane.b32.xlu1 %v1091_v17, %s8590_s3  ;;  %v1257_v17 = vsel %vm685_vm11, %v1255_v9, %v1256_v21  ;;  %v1318_v1 = vrot.slane %v1316_v51, 3  ;;  %v1334_v12 = vmul.f32 %v1333_v58, %v5419_v24  ;;  %v1307_v29 = vmul.f32 %v1306_v43, %v5452_v48  ;;  %s6126_s20 = sld [smem:[#allocation5 + $0x78]] }
 0x142   : > { %v1324_v22 = vstv %s5949_s25  ;;  %v1342_v4 = vstv %s5961_s27  ;;  %v1364_v16 = vstv %s5964_s28  ;;  %v1403_v46 = vstv %s5983_s30  ;;  %s6138_s7 = sld [smem:[#allocation5 + $0x9b]] }
 0x143   : > { %v1336_v36 = vrot.slane %v1334_v12, 4  ;;  %v1325_v25 = vmul.f32 %v1324_v22, %v5452_v48  ;;  %v1343_v44 = vmul.f32 %v1342_v4, %v5452_v48  ;;  %v1365_v32 = vmul.f32 %v1364_v16, %v5452_v48  ;;  %s6152_s25 = sld [smem:[#allocation5 + $0x86]] }
 0x144   : > { %1143 = vrot.lane.b32.xlu0 %v1142_v39, %s5126_s10  ;;  %v1366_v14 = vmul.f32 %v1364_v16, %v5610_v27  ;;  %v1419_v7 = vstv %s5991_s8  ;;  %v1404_v9 = vmul.f32 %v5988_v59, %v1403_v46  ;;  %v1437_v11 = vstv %s6003_s21  ;;  %s6157_s27 = sld [smem:[#allocation5 + $0xa2]] }
 0x145   : > { %1118 = vrot.lane.b32.xlu1 %v1117_v0, %s8590_s3  ;;  %v1272_v0 = vmul.f32 %v1271_v63, %v5452_v48  ;;  %v1345_v8 = vrot.slane %v1343_v44, 4  ;;  %v1369_v48 = vrot.slane %v1365_v32, 5  ;;  %v1420_v21 = vmul.f32 %v5988_v59, %v1419_v7  ;;  %v5001_v32 = vld [vmem:[#allocation2 + $0x8] sm:$0x3]  ;;  %s6166_s28 = sld [smem:[#allocation5 + $0x8d]] }
 0x146   : > { %v1370_v37 = vrot.slane %v1366_v14, 5  ;;  %v1438_v51 = vmul.f32 %v5988_v59, %v1437_v11  ;;  %v1428_v43 = vstv %s6026_s9  ;;  %v1491_v22 = vstv %s6038_s14  ;;  %s6176_s30 = sld [smem:[#allocation5 + $0xb7]] }
 0x147   : > { %v1482_v7 = vstv %s6071_s24  ;;  %s6192_s8 = sld [smem:[#allocation5 + $0xb0]]  ;;  %vm2648_vm1 = vcmask 1043456  }
 0x148   : > { %1161 = vrot.lane.b32.xlu0 %v1160_v19, %s5126_s10  ;;  %v1351_v19 = vstv %s5933_s23  ;;  %v1371_v13 = vsel %vm662_vm9, %v1369_v48, %v1370_v37  ;;  %v1440_v12 = vrot.slane %v1438_v51, 2  ;;  %v1504_v48 = vstv %s6074_s12  ;;  %s6133_s23 = sld [smem:[#allocation5 + $0x94]] }
 0x149   : > { %1134 = vrot.lane.b32.xlu1 %v1132_v62, %s5126_s10  ;;  %v1353_v26 = vmul.f32 %v1351_v19, %v5528_v35  ;;  %v1352_v31 = vmul.f32 %v1351_v19, %v5419_v24  ;;  %v1309_v24 = vrot.slane %v1307_v29, 2  ;;  %v1411_v19 = vstv %s6012_s11  ;;  %s6207_s21 = sld [smem:[#allocation5 + $0xbe]] }
 0x14a   : > { %s6212_s11 = sld [smem:[#allocation5 + $0x64]] }
 0x14b   : > { %v1357_v30 = vrot.slane %v1353_v26, 5  ;;  %s6228_s9 = sld [smem:[#allocation5 + $0x72]] }
 0x14c   : > { %1179 = vrot.lane.b32.xlu0 %v1178_v23, %s5126_s10  ;;  %v1291_v23 = vrot.slane %v1289_v15, 1  ;;  %v1455_v15 = vstv %s6019_s6  ;;  %s6216_s6 = sld [smem:[#allocation5 + $0x6b]] }
 0x14d   : > { %1152 = vrot.lane.b32.xlu1 %v1151_v55, %s5126_s10  ;;  %v1377_v55 = vstv %s5944_s4  ;;  %v1456_v26 = vmul.f32 %v5988_v59, %v1455_v15  ;;  %s6147_s4 = sld [smem:[#allocation5 + $0x7f]] }
 0x14e   : > { %v1378_v57 = vmul.f32 %v5988_v59, %v1377_v55  ;;  %s6243_s14 = sld [smem:[#allocation5 + $0x95]] }
 0x14f   : > { %s6268_s24 = sld [smem:[#allocation5 + $0xa3]] }
 0x150   : > { %1197 = vrot.lane.b32.xlu0 %v1196_v45, %s5126_s10  ;;  %v1379_v45 = vmul.f32 %v1377_v55, %v5528_v35  ;;  %v1382_v53 = vrot.slane %v1378_v57, 6  ;;  %v1473_v55 = vstv %s6033_s13  ;;  %s6238_s13 = sld [smem:[#allocation5 + $0x79]] }
 0x151   : > { %1170 = vrot.lane.b32.xlu1 %v1169_v47, %s5126_s10  ;;  %v1356_v47 = vrot.slane %v1352_v31, 5  ;;  %s6275_s12 = sld [smem:[#allocation5 + $0x8e]] }
 0x152   : > { %v1383_v56 = vrot.slane %v1379_v45, 6 }
 0x153   : > { %v1358_v6 = vsel %vm662_vm9, %v1356_v47, %v1357_v30  ;;  %v1493_v47 = vmul.f32 %v1491_v22, %v5528_v35 }
 0x154   : > { %1219 = vrot.lane.b32.xlu0 %v1218_v40, %s5126_s10  ;;  %v1327_v40 = vrot.slane %v1325_v25, 3  ;;  %v1384_v42 = vsel %vm685_vm11, %v1382_v53, %v1383_v56  ;;  %v1474_v25 = vmul.f32 %v5988_v59, %v1473_v55  ;;  %v1492_v56 = vmul.f32 %v5988_v59, %v1491_v22 }
 0x155   : > { %1188 = vrot.lane.b32.xlu1 %v1187_v20, %s5126_s10  ;;  %v1497_v53 = vrot.slane %v1493_v47, 5 }
 0x156   : > { %v1476_v44 = vrot.slane %v1474_v25, 4 }
 0x158   : > { %1245 = vrot.lane.b32.xlu0 %v1244_v41, %s5126_s10 }
 0x159   : > { %1206 = vrot.lane.b32.xlu1 %v1205_v10, %s5126_s10  ;;  %v1390_v10 = vstv %s5978_s29  ;;  %s6173_s29 = sld [smem:[#allocation5 + $0xa9]] }
 0x15a   : > { %v1392_v54 = vmul.f32 %v1390_v10, %v5610_v27 }
 0x15c   : > { %1266 = vrot.lane.b32.xlu0 %v1264_v50, %s5127_s26  ;;  %v6022_v50 = vld [vmem:[#allocation2 + $0x10] sm:$0xff]  ;;  %v1396_v63 = vrot.slane %v1392_v54, 6  ;;  %v1530_v54 = vstv %s6082_s22  ;;  %s6280_s22 = sld [smem:[#allocation5 + $0xaa]] }
 0x15d   : > { %1232 = vrot.lane.b32.xlu1 %v1231_v60, %s5126_s10  ;;  %v1391_v61 = vmul.f32 %v6022_v50, %v1390_v10  ;;  %v1412_v29 = vmul.f32 %v6022_v50, %v1411_v19  ;;  %v1429_v31 = vmul.f32 %v6022_v50, %v1428_v43  ;;  %v1483_v11 = vmul.f32 %v6022_v50, %v1482_v7 }
 0x15e   : > { %v5940_v52 = vpop.permute.xlu0 %706  ;;  %v1532_v51 = vmul.f32 %v1530_v54, %v5610_v27  ;;  %v1683_v43 = vstv %s6102_s1  ;;  %v1755_v7 = vstv %s6152_s25  ;;  %s6290_s1 = sld [smem:[#allocation5 + $0xb8]] }
 0x15f   : > { %v709_v30 = vadd.f32 %v5940_v52, %v5775_v38  ;;  %v1431_v4 = vrot.slane %v1429_v31, 1  ;;  %v1464_v38 = vstv %s6057_s18  ;;  %v6140_v31 = vld [vmem:[#allocation3] sm:$0xff]  ;;  %s6263_s18 = sld [smem:[#allocation5 + $0x87]] }
 0x160   : > { %1283 = vrot.lane.b32.xlu0 %v1282_v28, %s5127_s26  ;;  %v1536_v47 = vrot.slane %v1532_v51, 6  ;;  %s6356_s25 = sld [smem:[#allocation9 + $0x1]] }
 0x161   : > { %1258 = vrot.lane.b32.xlu1 %v1257_v17, %s5126_s10  ;;  %v1395_v17 = vrot.slane %v1391_v61, 6 }
 0x162   : > { %v5952_v39 = vpop.permute.xlu0 %846 }
 0x163   : > { %v1397_v58 = vsel %vm685_vm11, %v1395_v17, %v1396_v63  ;;  %v1505_v17 = vmul.f32 %v6022_v50, %v1504_v48  ;;  %v1506_v63 = vmul.f32 %v1504_v48, %v5610_v27  ;;  %v1531_v27 = vmul.f32 %v6022_v50, %v1530_v54 }
 0x164   : > { %1301 = vrot.lane.b32.xlu0 %v1300_v33, %s5127_s26  ;;  %v1422_v33 = vrot.slane %v1420_v21, 1 }
 0x165   : > { %1274 = vrot.lane.b32.xlu1 %v1272_v0, %s5127_s26  ;;  %v1535_v25 = vrot.slane %v1531_v27, 6 }
 0x166   : > { %v5966_v62 = vpop.permute.xlu0 %986 }
 0x167   : > { %v5970_v2 = vpop.permute.xlu1 %714 }
 0x168   : > { %1319 = vrot.lane.b32.xlu0 %v1318_v1, %s5127_s26 }
 0x169   : > { %1292 = vrot.lane.b32.xlu1 %v1291_v23, %s5127_s26 }
 0x16a   : > { %v5980_v5 = vpop.permute.xlu0 %723 }
 0x16b   : > { %v5985_v34 = vpop.permute.xlu1 %854 }
 0x16c   : > { %1337 = vrot.lane.b32.xlu0 %v1336_v36, %s5127_s26  ;;  %v1446_v36 = vstv %s6042_s16  ;;  %s6250_s16 = sld [smem:[#allocation5 + $0x9c]] }
 0x16d   : > { %1310 = vrot.lane.b32.xlu1 %v1309_v24, %s5127_s26  ;;  %v1458_v24 = vrot.slane %v1456_v26, 3  ;;  %v1447_v16 = vmul.f32 %v6022_v50, %v1446_v36  ;;  %v1509_v26 = vrot.slane %v1505_v17, 5  ;;  %v1684_v36 = vmul.f32 %v1683_v43, %v6140_v31 }
 0x16e   : > { %v5997_v3 = vpop.permute.xlu0 %741  ;;  %v1756_v17 = vmul.f32 %v1755_v7, %v6140_v31 }
 0x16f   : > { %v5999_v20 = vpop.permute.xlu1 %994 }
 0x170   : > { %1359 = vrot.lane.b32.xlu0 %v1358_v6, %s5127_s26  ;;  %v717_v6 = vadd.f32 %v5970_v2, %v709_v30  ;;  %v1449_v2 = vrot.slane %v1447_v16, 2  ;;  %v1701_v30 = vstv %s6116_s2  ;;  %v1686_v16 = vrot.slane %v1684_v36, 1  ;;  %s6322_s2 = sld [smem:[#allocation5 + $0xbf]] }
 0x171   : > { %1328 = vrot.lane.b32.xlu1 %v1327_v40, %s5127_s26  ;;  %v1517_v40 = vstv %s6051_s17  ;;  %v1760_v36 = vrot.slane %v1756_v17, 5  ;;  %s6258_s17 = sld [smem:[#allocation5 + $0x80]] }
 0x172   : > { %v6010_v41 = vpop.permute.xlu0 %759  ;;  %v726_v35 = vadd.f32 %v5980_v5, %v717_v6  ;;  %v1519_v14 = vmul.f32 %v5001_v32, %v1517_v40  ;;  %v1518_v46 = vmul.f32 %v5988_v59, %v1517_v40 }
 0x173   : > { %v6014_v49 = vpop.permute.xlu1 %732 }
 0x174   : > { %1385 = vrot.lane.b32.xlu0 %v1384_v42, %s5127_s26  ;;  %v1496_v42 = vrot.slane %v1492_v56, 5  ;;  %v735_v5 = vadd.f32 %v6014_v49, %v726_v35  ;;  %v1523_v61 = vrot.slane %v1519_v14, 6  ;;  %v1522_v49 = vrot.slane %v1518_v46, 6 }
 0x175   : > { %1346 = vrot.lane.b32.xlu1 %v1345_v8, %s5127_s26  ;;  %v1465_v8 = vmul.f32 %v6022_v50, %v1464_v38  ;;  %v1702_v56 = vmul.f32 %v1701_v30, %v6140_v31  ;;  %v1537_v38 = vsel %vm685_vm11, %v1535_v25, %v1536_v47  ;;  %v1675_v35 = vstv %s6133_s23  ;;  %v6221_v25 = vld [vmem:[#allocation3 + $0x18] sm:$0x3]  ;;  %s6334_s23 = sld [smem:[#allocation5 + $0x6c]] }
 0x176   : > { %v6029_v60 = vpop.permute.xlu0 %777  ;;  %v1498_v59 = vsel %vm662_vm9, %v1496_v42, %v1497_v53  ;;  %v1524_v19 = vsel %vm685_vm11, %v1522_v49, %v1523_v61  ;;  %v6178_v53 = vld [vmem:[#allocation3 + $0x10] sm:$0xff]  ;;  %v1737_v46 = vstv %s6147_s4  ;;  %v1710_v61 = vstv %s6157_s27  ;;  %s6352_s4 = sld [smem:[#allocation5 + $0x62]] }
 0x177   : > { %v6035_v28 = vpop.permute.xlu1 %750  ;;  %v1467_v21 = vrot.slane %v1465_v8, 3  ;;  %v1704_v14 = vrot.slane %v1702_v56, 2  ;;  %v1676_v8 = vmul.f32 %v1675_v35, %v6178_v53  ;;  %s6361_s27 = sld [smem:[#allocation5 + $0x7a]] }
 0x178   : > { %1406 = vrot.lane.b32.xlu0 %v1404_v9, %s5128_s15 }
 0x179   : > { %1372 = vrot.lane.b32.xlu1 %v1371_v13, %s5127_s26  ;;  %v744_v13 = vadd.f32 %v5997_v3, %v735_v5  ;;  %v1667_v3 = vstv %s6096_s0  ;;  %v6186_v5 = vld [vmem:[#allocation3 + $0x8] sm:$0x3]  ;;  %s6287_s0 = sld [smem:[#allocation5 + $0xb1]] }
 0x17a   : > { %v6045_v18 = vpop.permute.xlu0 %863  ;;  %v1668_v22 = vmul.f32 %v1667_v3, %v6140_v31 }
 0x17b   : > { %v6048_v0 = vpop.permute.xlu1 %768 }
 0x17c   : > { %1423 = vrot.lane.b32.xlu0 %v1422_v33, %s5128_s15 }
 0x17d   : > { %1398 = vrot.lane.b32.xlu1 %v1397_v58, %s5127_s26  ;;  %v1485_v58 = vrot.slane %v1483_v11, 4  ;;  %v1757_v11 = vmul.f32 %v1755_v7, %v6186_v5  ;;  %v1807_v7 = vstv %s6212_s11  ;;  %s6394_s11 = sld [smem:[#allocation5 + $0x93]] }
 0x17e   : > { %v6060_v1 = vpop.permute.xlu0 %881 }
 0x17f   : > { %v6063_v23 = vpop.permute.xlu1 %786 }
 0x180   : > { %1441 = vrot.lane.b32.xlu0 %v1440_v12, %s5128_s15  ;;  %v753_v12 = vadd.f32 %v6035_v28, %v744_v13 }
 0x181   : > { %1414 = vrot.lane.b32.xlu1 %v1412_v29, %s5128_s15  ;;  %v1510_v29 = vrot.slane %v1506_v63, 5  ;;  %v1781_v63 = vstv %s6166_s28  ;;  %s6367_s28 = sld [smem:[#allocation5 + $0x96]] }
 0x182   : > { %v6078_v45 = vpop.permute.xlu0 %899  ;;  %v762_v50 = vadd.f32 %v6010_v41, %v753_v12  ;;  %v1719_v41 = vstv %s6126_s20  ;;  %v1782_v30 = vmul.f32 %v1781_v63, %v6140_v31  ;;  %s6328_s20 = sld [smem:[#allocation5 + $0x65]] }
 0x183   : > { %v6084_v57 = vpop.permute.xlu1 %872 }
 0x184   : > { %1459 = vrot.lane.b32.xlu0 %v1458_v24, %s5128_s15  ;;  %v1511_v24 = vsel %vm662_vm9, %v1509_v26, %v1510_v29  ;;  %v771_v6 = vadd.f32 %v6048_v0, %v762_v50  ;;  %v1720_v0 = vmul.f32 %v1719_v41, %v6140_v31  ;;  %v1761_v26 = vrot.slane %v1757_v11, 5 }
 0x185   : > { %1432 = vrot.lane.b32.xlu1 %v1431_v4, %s5128_s15  ;;  %v1783_v29 = vmul.f32 %v1781_v63, %v6186_v5 }
 0x186   : > { %v6094_v52 = vpop.permute.xlu0 %917  ;;  %v780_v48 = vadd.f32 %v6029_v60, %v771_v6  ;;  %v1711_v60 = vmul.f32 %v1710_v61, %v6178_v53 }
 0x187   : > { %v6098_v10 = vpop.permute.xlu1 %890  ;;  %v1787_v41 = vrot.slane %v1783_v29, 6 }
 0x188   : > { %1477 = vrot.lane.b32.xlu0 %v1476_v44, %s5128_s15  ;;  %v1692_v44 = vstv %s6138_s7  ;;  %v789_v51 = vadd.f32 %v6063_v23, %v780_v48  ;;  %v1713_v23 = vrot.slane %v1711_v60, 2  ;;  %s6347_s7 = sld [smem:[#allocation5 + $0x73]] }
 0x189   : > { %1450 = vrot.lane.b32.xlu1 %v1449_v2, %s5128_s15  ;;  %v1693_v42 = vmul.f32 %v1692_v44, %v6178_v53  ;;  %v1762_v44 = vsel %vm662_vm9, %v1760_v36, %v1761_v26  ;;  %v1859_v36 = vstv %s6238_s13  ;;  %s6408_s13 = sld [smem:[#allocation5 + $0x8f]] }
 0x18a   : > { %v6109_v37 = vpop.permute.xlu0 %1003 }
 0x18b   : > { %v6112_v9 = vpop.permute.xlu1 %908  ;;  %v1695_v13 = vrot.slane %v1693_v42, 1 }
 0x18c   : > { %1499 = vrot.lane.b32.xlu0 %v1498_v59, %s5128_s15  ;;  %v1738_v59 = vmul.f32 %v1737_v46, %v6140_v31 }
 0x18d   : > { %1468 = vrot.lane.b32.xlu1 %v1467_v21, %s5128_s15  ;;  %v1722_v21 = vrot.slane %v1720_v0, 3 }
 0x18e   : > { %v6123_v33 = vpop.permute.xlu0 %1021  ;;  %v1740_v12 = vrot.slane %v1738_v59, 4  ;;  %v1823_v59 = vstv %s6216_s6  ;;  %s6397_s6 = sld [smem:[#allocation5 + $0x69]] }
 0x18f   : > { %v6128_v15 = vpop.permute.xlu1 %926 }
 0x190   : > { %1525 = vrot.lane.b32.xlu0 %v1524_v19, %s5128_s15  ;;  %v1768_v19 = vstv %s6176_s30  ;;  %s6377_s30 = sld [smem:[#allocation5 + $0x81]] }
 0x191   : > { %1486 = vrot.lane.b32.xlu1 %v1485_v58, %s5128_s15  ;;  %v1728_v58 = vstv %s6173_s29  ;;  %v1770_v56 = vmul.f32 %v1768_v19, %v6221_v25  ;;  %v1769_v0 = vmul.f32 %v1768_v19, %v6178_v53  ;;  %v1841_v19 = vstv %s6228_s9  ;;  %s6374_s29 = sld [smem:[#allocation5 + $0x9d]] }
 0x192   : > { %v6143_v55 = vpop.permute.xlu0 %1039  ;;  %s6403_s9 = sld [smem:[#allocation5 + $0xab]] }
 0x193   : > { %v6149_v28 = vpop.permute.xlu1 %1012 }
 0x194   : > { %1670 = vrot.lane.b32.xlu0 %v1668_v22, %s8587_s19  ;;  %v1729_v22 = vmul.f32 %v1728_v58, %v6178_v53  ;;  %v1824_v58 = vmul.f32 %v1823_v59, %v6140_v31  ;;  %v1868_v59 = vstv %s6280_s22  ;;  %s6470_s22 = sld [smem:[#allocation5 + $0x66]] }
 0x195   : > { %1512 = vrot.lane.b32.xlu1 %v1511_v24, %s5128_s15  ;;  %v1746_v24 = vstv %s6192_s8  ;;  %s6384_s8 = sld [smem:[#allocation5 + $0xa4]] }
 0x196   : > { %v6160_v4 = vpop.permute.xlu0 %1057  ;;  %v1747_v35 = vmul.f32 %v1746_v24, %v6178_v53  ;;  %v1815_v24 = vstv %s6243_s14  ;;  %s6415_s14 = sld [smem:[#allocation5 + $0xb2]] }
 0x197   : > { %v6163_v40 = vpop.permute.xlu1 %1030 }
 0x198   : > { %1687 = vrot.lane.b32.xlu0 %v1686_v16, %s8587_s19  ;;  %v1749_v61 = vrot.slane %v1747_v35, 4 }
 0x199   : > { %1538 = vrot.lane.b32.xlu1 %v1537_v38, %s5128_s15  ;;  %v1731_v38 = vrot.slane %v1729_v22, 3  ;;  %v1842_v22 = vmul.f32 %v1841_v19, %v6140_v31 }
 0x19a   : > { %v800_v32 = vpop.permute.xlu0 %799 }
 0x19b   : > { %v6181_v2 = vpop.permute.xlu1 %1048  ;;  %v802_v3 = vadd.f32 %v800_v32, %v789_v51  ;;  %v1786_v32 = vrot.slane %v1782_v30, 6  ;;  %v1808_v51 = vmul.f32 %v1807_v7, %v6140_v31 }
 0x19c   : > { %1705 = vrot.lane.b32.xlu0 %v1704_v14, %s8587_s19 }
 0x19d   : > { %1678 = vrot.lane.b32.xlu1 %v1676_v8, %s8587_s19  ;;  %v1794_v8 = vstv %s6207_s21  ;;  %s6389_s21 = sld [smem:[#allocation5 + $0x88]] }
 0x19e   : > { %v826_v54 = vpop.permute.xlu0 %825  ;;  %v1796_v60 = vmul.f32 %v1794_v8, %v6221_v25 }
 0x19f   : > { %v6197_v49 = vpop.permute.xlu1 %1066 }
 0x1a0   : > { %1723 = vrot.lane.b32.xlu0 %v1722_v21, %s8587_s19  ;;  %v1788_v21 = vsel %vm685_vm11, %v1786_v32, %v1787_v41  ;;  %v1800_v26 = vrot.slane %v1796_v60, 6  ;;  %v1844_v41 = vrot.slane %v1842_v22, 2  ;;  %v1895_v32 = vstv %s6263_s18  ;;  %s6452_s18 = sld [smem:[#allocation5 + $0x70]] }
 0x1a1   : > { %1696 = vrot.lane.b32.xlu1 %v1695_v13, %s8587_s19  ;;  %v1773_v13 = vrot.slane %v1769_v0, 5  ;;  %v1908_v60 = vstv %s6290_s1  ;;  %s6483_s1 = sld [smem:[#allocation5 + $0x74]] }
 0x1a2   : > { %v6209_v43 = vpop.permute.xlu0 %939 }
 0x1a3   : > { %v813_v27 = vpop.permute.xlu1 %812 }
 0x1a4   : > { %v815_v50 = vadd.f32 %v813_v27, %v802_v3  ;;  %1741 = vrot.lane.b32.xlu0 %v1740_v12, %s8587_s19 }
 0x1a5   : > { %1714 = vrot.lane.b32.xlu1 %v1713_v23, %s8587_s19  ;;  %v1826_v23 = vrot.slane %v1824_v58, 1  ;;  %v1869_v58 = vmul.f32 %v1868_v59, %v6178_v53 }
 0x1a6   : > { %v828_v47 = vadd.f32 %v826_v54, %v815_v50  ;;  %v6223_v16 = vpop.permute.xlu0 %965  ;;  %v1774_v54 = vrot.slane %v1770_v56, 5 }
 0x1a7   : > { %v839_v6 = vpop.permute.xlu1 %838 }
 0x1a8   : > { %v841_v14 = vadd.f32 %v839_v6, %v828_v47  ;;  %1763 = vrot.lane.b32.xlu0 %v1762_v44, %s8587_s19  ;;  %v1775_v12 = vsel %vm662_vm9, %v1773_v13, %v1774_v54  ;;  %v1877_v44 = vstv %s6258_s17  ;;  %s6426_s17 = sld [smem:[#allocation5 + $0xb9]] }
 0x1a9   : > { %1732 = vrot.lane.b32.xlu1 %v1731_v38, %s8587_s19  ;;  %v1816_v38 = vmul.f32 %v1815_v24, %v6178_v53  ;;  %v1878_v7 = vmul.f32 %v1877_v44, %v6140_v31  ;;  %v1871_v24 = vrot.slane %v1869_v58, 3 }
 0x1aa   : > { %v849_v42 = vadd.f32 %v5952_v39, %v841_v14  ;;  %v6235_v46 = vpop.permute.xlu0 %1079  ;;  %v1795_v39 = vmul.f32 %v1794_v8, %v6178_v53 }
 0x1ab   : > { %v6240_v48 = vpop.permute.xlu1 %952  ;;  %v1880_v19 = vrot.slane %v1878_v7, 4 }
 0x1ac   : > { %v857_v11 = vadd.f32 %v5985_v34, %v849_v42  ;;  %1789 = vrot.lane.b32.xlu0 %v1788_v21, %s8587_s19 }
 0x1ad   : > { %1750 = vrot.lane.b32.xlu1 %v1749_v61, %s8587_s19  ;;  %v1896_v61 = vmul.f32 %v1895_v32, %v6140_v31 }
 0x1ae   : > { %v866_v17 = vadd.f32 %v6045_v18, %v857_v11  ;;  %v6254_v63 = vpop.permute.xlu0 %1105  ;;  %v1799_v18 = vrot.slane %v1795_v39, 6  ;;  %v1897_v11 = vmul.f32 %v1895_v32, %v6186_v5  ;;  %v1886_v39 = vstv %s6287_s0  ;;  %s6476_s0 = sld [smem:[#allocation5 + $0x6d]] }
 0x1af   : > { %v6260_v34 = vpop.permute.xlu1 %978 }
 0x1b0   : > { %v875_v3 = vadd.f32 %v6084_v57, %v866_v17  ;;  %1810 = vrot.lane.b32.xlu0 %v1808_v51, %s8589_s5  ;;  %v1801_v50 = vsel %vm685_vm11, %v1799_v18, %v1800_v26  ;;  %v1901_v18 = vrot.slane %v1897_v11, 5 }
 0x1b1   : > { %1776 = vrot.lane.b32.xlu1 %v1775_v12, %s8587_s19 }
 0x1b2   : > { %v884_v29 = vadd.f32 %v6060_v1, %v875_v3  ;;  %v6272_v27 = vpop.permute.xlu0 %1126  ;;  %v1832_v1 = vstv %s6250_s16  ;;  %v1900_v3 = vrot.slane %v1896_v61, 5  ;;  %s6419_s16 = sld [smem:[#allocation5 + $0x9a]] }
 0x1b3   : > { %v6277_v57 = vpop.permute.xlu1 %1092  ;;  %v1833_v35 = vmul.f32 %v1832_v1, %v6178_v53 }
 0x1b4   : > { %v893_v30 = vadd.f32 %v6098_v10, %v884_v29  ;;  %1827 = vrot.lane.b32.xlu0 %v1826_v23, %s8589_s5  ;;  %v1860_v10 = vmul.f32 %v1859_v36, %v6140_v31  ;;  %v1887_v36 = vmul.f32 %v1886_v39, %v6178_v53  ;;  %v1902_v1 = vsel %vm662_vm9, %v1900_v3, %v1901_v18 }
 0x1b5   : > { %1802 = vrot.lane.b32.xlu1 %v1801_v50, %s8587_s19 }
 0x1b6   : > { %v902_v47 = vadd.f32 %v6078_v45, %v893_v30  ;;  %v6293_v56 = vpop.permute.xlu0 %1143  ;;  %v1850_v45 = vstv %s6268_s24  ;;  %v1862_v42 = vrot.slane %v1860_v10, 3  ;;  %v1910_v30 = vmul.f32 %v1908_v60, %v6221_v25  ;;  %s6456_s24 = sld [smem:[#allocation5 + $0xc0]] }
 0x1b7   : > { %v6296_v6 = vpop.permute.xlu1 %1118  ;;  %v1851_v21 = vmul.f32 %v1850_v45, %v6178_v53  ;;  %v1934_v10 = vstv %s6322_s2  ;;  %v1947_v45 = vstv %s6328_s20  ;;  %s6490_s2 = sld [smem:[#allocation5 + $0x7b]] }
 0x1b8   : > { %v911_v14 = vadd.f32 %v6112_v9, %v902_v47  ;;  %1845 = vrot.lane.b32.xlu0 %v1844_v41, %s8589_s5  ;;  %v1835_v9 = vrot.slane %v1833_v35, 1  ;;  %v1889_v35 = vrot.slane %v1887_v36, 4  ;;  %v1914_v32 = vrot.slane %v1910_v30, 5  ;;  %s6496_s20 = sld [smem:[#allocation5 + $0x77]] }
 0x1b9   : > { %1818 = vrot.lane.b32.xlu1 %v1816_v38, %s8589_s5  ;;  %v1853_v12 = vrot.slane %v1851_v21, 2  ;;  %v1936_v61 = vmul.f32 %v1934_v10, %v6221_v25  ;;  %v1948_v59 = vmul.f32 %v1947_v45, %v6140_v31  ;;  %v1990_v30 = vstv %s6384_s8  ;;  %s6550_s8 = sld [smem:[#allocation5 + $0xaf]] }
 0x1ba   : > { %v920_v0 = vadd.f32 %v6094_v52, %v911_v14  ;;  %v6307_v8 = vpop.permute.xlu0 %1161  ;;  %v1921_v52 = vstv %s6275_s12  ;;  %s6463_s12 = sld [smem:[#allocation5 + $0xa1]] }
 0x1bb   : > { %v6311_v54 = vpop.permute.xlu1 %1134  ;;  %v1922_v26 = vmul.f32 %v1921_v52, %v6140_v31  ;;  %v1923_v29 = vmul.f32 %v1921_v52, %v6186_v5 }
 0x1bc   : > { %v929_v13 = vadd.f32 %v6128_v15, %v920_v0  ;;  %1863 = vrot.lane.b32.xlu0 %v1862_v42, %s8589_s5  ;;  %v1963_v0 = vstv %s6334_s23  ;;  %s6501_s23 = sld [smem:[#allocation5 + $0x9e]] }
 0x1bd   : > { %1836 = vrot.lane.b32.xlu1 %v1835_v9, %s8589_s5  ;;  %v1926_v47 = vrot.slane %v1922_v26, 6 }
 0x1be   : > { %v942_v17 = vadd.f32 %v6209_v43, %v929_v13  ;;  %v6325_v51 = vpop.permute.xlu0 %1179  ;;  %v1981_v13 = vstv %s6347_s7  ;;  %s6505_s7 = sld [smem:[#allocation5 + $0xa8]] }
 0x1bf   : > { %v6330_v15 = vpop.permute.xlu1 %1152 }
 0x1c0   : > { %v955_v43 = vadd.f32 %v6240_v48, %v942_v17  ;;  %1881 = vrot.lane.b32.xlu0 %v1880_v19, %s8589_s5  ;;  %v1927_v48 = vrot.slane %v1923_v29, 6  ;;  %v1982_v19 = vmul.f32 %v1981_v13, %v6140_v31  ;;  %v1955_v29 = vstv %s6367_s28  ;;  %s6534_s28 = sld [smem:[#allocation5 + $0xac]] }
 0x1c1   : > { %1854 = vrot.lane.b32.xlu1 %v1853_v12, %s8589_s5  ;;  %v1999_v12 = vstv %s6361_s27  ;;  %s6527_s27 = sld [smem:[#allocation5 + $0x82]] }
 0x1c2   : > { %v968_v23 = vadd.f32 %v6223_v16, %v955_v43  ;;  %v6340_v22 = vpop.permute.xlu0 %1197  ;;  %v1909_v16 = vmul.f32 %v1908_v60, %v6178_v53  ;;  %v1928_v14 = vsel %vm685_vm11, %v1926_v47, %v1927_v48  ;;  %v1559_v43 = vstv %s6352_s4  ;;  %s6511_s4 = sld [smem:[#allocation5 + $0x97]] }
 0x1c3   : > { %v6344_v50 = vpop.permute.xlu1 %1170  ;;  %v1956_v47 = vmul.f32 %v1955_v29, %v6178_v53 }
 0x1c4   : > { %v981_v41 = vadd.f32 %v6260_v34, %v968_v23  ;;  %1903 = vrot.lane.b32.xlu0 %v1902_v1, %s8589_s5  ;;  %v1913_v7 = vrot.slane %v1909_v16, 5  ;;  %v2035_v16 = vstv %s6389_s21  ;;  %s6556_s21 = sld [smem:[#allocation5 + $0x90]] }
 0x1c5   : > { %1872 = vrot.lane.b32.xlu1 %v1871_v24, %s8589_s5  ;;  %v2000_v24 = vmul.f32 %v1999_v12, %v6140_v31  ;;  %v2026_v12 = vstv %s6415_s14  ;;  %s6598_s14 = sld [smem:[#allocation5 + $0xc1]] }
 0x1c6   : > { %v989_v38 = vadd.f32 %v5966_v62, %v981_v41  ;;  %v6359_v44 = vpop.permute.xlu0 %1219  ;;  %v1935_v62 = vmul.f32 %v1934_v10, %v6178_v53  ;;  %v1915_v39 = vsel %vm662_vm9, %v1913_v7, %v1914_v32  ;;  %v2017_v41 = vstv %s6377_s30  ;;  %s6544_s30 = sld [smem:[#allocation5 + $0x89]] }
 0x1c7   : > { %v6363_v34 = vpop.permute.xlu1 %1188  ;;  %v1560_v10 = vmul.f32 %v1559_v43, %v6140_v31  ;;  %v1563_v32 = vstv %s6394_s11  ;;  %v2008_v7 = vstv %s6403_s9  ;;  %s6563_s11 = sld [smem:[#allocation5 + $0xb3]] }
 0x1c8   : > { %v997_v42 = vadd.f32 %v5999_v20, %v989_v38  ;;  %1929 = vrot.lane.b32.xlu0 %v1928_v14, %s8589_s5  ;;  %v1964_v20 = vmul.f32 %v1963_v0, %v6140_v31  ;;  %v1939_v60 = vrot.slane %v1935_v62, 6  ;;  %v1991_v38 = vmul.f32 %v1990_v30, %v6178_v53  ;;  %s6574_s9 = sld [smem:[#allocation5 + $0xba]] }
 0x1c9   : > { %1890 = vrot.lane.b32.xlu1 %v1889_v35, %s8589_s5  ;;  %v1553_v35 = vstv %s6356_s25  ;;  %v1567_v14 = vstv %s6397_s6  ;;  %s6519_s25 = sld [smem:[#allocation5 + $0xa5]] }
 0x1ca   : > { %v1006_v9 = vadd.f32 %v6109_v37, %v997_v42  ;;  %v6380_v21 = vpop.permute.xlu0 %1245  ;;  %v1940_v37 = vrot.slane %v1936_v61, 6  ;;  %v2002_v42 = vrot.slane %v2000_v24, 3  ;;  %v1561_v13 = vadd.f32 %v1560_v10, %v1553_v35  ;;  %s6569_s6 = sld [smem:[#allocation5 + $0x85]] }
 0x1cb   : > { %v6386_v11 = vpop.permute.xlu1 %1206 }
 0x1cc   : > { %v1015_v52 = vadd.f32 %v6149_v28, %v1006_v9  ;;  %1950 = vrot.lane.b32.xlu0 %v1948_v59, %s8590_s3  ;;  %v1966_v28 = vrot.slane %v1964_v20, 1  ;;  %v1941_v26 = vsel %vm685_vm11, %v1939_v60, %v1940_v37  ;;  %v2036_v9 = vmul.f32 %v2035_v16, %v6140_v31 }
 0x1cd   : > { %1916 = vrot.lane.b32.xlu1 %v1915_v39, %s8589_s5  ;;  %v2037_v59 = vmul.f32 %v2035_v16, %v6186_v5  ;;  %v2061_v20 = vstv %s6408_s13  ;;  %v1568_v39 = vmul.f32 %v1567_v14, %v6140_v31  ;;  %v1993_v60 = vrot.slane %v1991_v38, 2  ;;  %s6580_s13 = sld [smem:[#allocation5 + $0xb6]] }
 0x1ce   : > { %v1024_v17 = vadd.f32 %v6123_v33, %v1015_v52  ;;  %v6400_v58 = vpop.permute.xlu0 %1266  ;;  %v1972_v33 = vstv %s6374_s29  ;;  %v1564_v52 = vmul.f32 %v1563_v32, %v6178_v53  ;;  %v2009_v37 = vmul.f32 %v2008_v7, %v6178_v53  ;;  %s6540_s29 = sld [smem:[#allocation5 + $0x7e]] }
 0x1cf   : > { %v6405_v3 = vpop.permute.xlu1 %1232  ;;  %v1973_v48 = vmul.f32 %v1972_v33, %v6178_v53  ;;  %v2040_v29 = vrot.slane %v2036_v9, 5  ;;  %v2041_v33 = vrot.slane %v2037_v59, 5  ;;  %v2062_v43 = vmul.f32 %v2061_v20, %v6140_v31 }
 0x1d0   : > { %v1033_v18 = vadd.f32 %v6163_v40, %v1024_v17  ;;  %1967 = vrot.lane.b32.xlu0 %v1966_v28, %s8590_s3  ;;  %v1984_v40 = vrot.slane %v1982_v19, 2  ;;  %v1574_v17 = vstv %s6419_s16  ;;  %v1570_v30 = vrot.slane %v1568_v39, 1  ;;  %s6610_s16 = sld [smem:[#allocation5 + $0x8c]] }
 0x1d1   : > { %1942 = vrot.lane.b32.xlu1 %v1941_v26, %s8589_s5  ;;  %v1975_v61 = vrot.slane %v1973_v48, 1  ;;  %v1575_v24 = vmul.f32 %v1574_v17, %v6178_v53  ;;  %v2042_v38 = vsel %vm662_vm9, %v2040_v29, %v2041_v33  ;;  %v2066_v35 = vrot.slane %v2062_v43, 6 }
 0x1d2   : > { %v1042_v23 = vadd.f32 %v6143_v55, %v1033_v18  ;;  %v6422_v36 = vpop.permute.xlu0 %1283  ;;  %v2048_v18 = vstv %s6426_s17  ;;  %v1581_v14 = vstv %s6452_s18  ;;  %v2121_v33 = vstv %s6483_s1  ;;  %s6616_s17 = sld [smem:[#allocation5 + $0x67]] }
 0x1d3   : > { %v6428_v1 = vpop.permute.xlu1 %1258  ;;  %v2050_v16 = vmul.f32 %v2048_v18, %v6221_v25  ;;  %v1577_v7 = vrot.slane %v1575_v24, 1  ;;  %s6623_s18 = sld [smem:[#allocation5 + $0xbd]] }
 0x1d4   : > { %v1051_v55 = vadd.f32 %v6181_v2, %v1042_v23  ;;  %1985 = vrot.lane.b32.xlu0 %v1984_v40, %s8590_s3  ;;  %v2018_v2 = vmul.f32 %v2017_v41, %v6140_v31  ;;  %v2063_v23 = vmul.f32 %v2061_v20, %v6186_v5  ;;  %v2011_v41 = vrot.slane %v2009_v37, 3  ;;  %s6672_s1 = sld [smem:[#allocation5 + $0x9f]] }
 0x1d5   : > { %1958 = vrot.lane.b32.xlu1 %v1956_v47, %s8590_s3  ;;  %v2027_v47 = vmul.f32 %v2026_v12, %v6178_v53  ;;  %v2103_v37 = vstv %s6476_s0  ;;  %s6668_s0 = sld [smem:[#allocation5 + $0x7c]] }
 0x1d6   : > { %v1060_v45 = vadd.f32 %v6160_v4, %v1051_v55  ;;  %v6443_v0 = vpop.permute.xlu0 %1301  ;;  %v2020_v19 = vrot.slane %v2018_v2, 4  ;;  %v2067_v32 = vrot.slane %v2063_v23, 6 }
 0x1d7   : > { %v6447_v62 = vpop.permute.xlu1 %1274  ;;  %v2029_v2 = vrot.slane %v2027_v47, 4 }
 0x1d8   : > { %v1069_v4 = vadd.f32 %v6197_v49, %v1060_v45  ;;  %2003 = vrot.lane.b32.xlu0 %v2002_v42, %s8590_s3  ;;  %v2074_v45 = vstv %s6456_s24  ;;  %v2068_v39 = vsel %vm685_vm11, %v2066_v35, %v2067_v32  ;;  %v2139_v32 = vstv %s6490_s2  ;;  %s6629_s24 = sld [smem:[#allocation5 + $0x6e]] }
 0x1d9   : > { %1976 = vrot.lane.b32.xlu1 %v1975_v61, %s8590_s3  ;;  %v1588_v61 = vstv %s6463_s12  ;;  %v2076_v17 = vmul.f32 %v2074_v45, %v6221_v25  ;;  %s6646_s12 = sld [smem:[#allocation5 + $0x75]] }
 0x1da   : > { %v1082_v28 = vadd.f32 %v6235_v46, %v1069_v4  ;;  %v6466_v49 = vpop.permute.xlu0 %1319  ;;  %v1565_v46 = vadd.f32 %v1564_v52, %v1561_v13  ;;  %v1582_v4 = vmul.f32 %v1581_v14, %v6140_v31  ;;  %v2054_v52 = vrot.slane %v2050_v16, 5  ;;  %s6683_s2 = sld [smem:[#allocation5 + $0xa6]] }
 0x1db   : > { %v6472_v26 = vpop.permute.xlu1 %1292  ;;  %v2080_v24 = vrot.slane %v2076_v17, 6  ;;  %v1602_v16 = vstv %s6505_s7  ;;  %v2148_v17 = vstv %s6534_s28  ;;  %s6696_s7 = sld [smem:[#allocation5 + $0xad]] }
 0x1dc   : > { %v1095_v40 = vadd.f32 %v6277_v57, %v1082_v28  ;;  %2021 = vrot.lane.b32.xlu0 %v2020_v19, %s8590_s3  ;;  %v2049_v57 = vmul.f32 %v2048_v18, %v6178_v53  ;;  %v1572_v42 = vadd.f32 %v1570_v30, %v1565_v46  ;;  %v1589_v19 = vmul.f32 %v1588_v61, %v6178_v53  ;;  %s6747_s28 = sld [smem:[#allocation5 + $0xc2]] }
 0x1dd   : > { %1994 = vrot.lane.b32.xlu1 %v1993_v60, %s8590_s3  ;;  %v2075_v60 = vmul.f32 %v2074_v45, %v6178_v53  ;;  %v1584_v43 = vrot.slane %v1582_v4, 2  ;;  %v1595_v30 = vstv %s6496_s20  ;;  %v2095_v45 = vstv %s6511_s4  ;;  %s6688_s20 = sld [smem:[#allocation5 + $0x83]] }
 0x1de   : > { %v1108_v48 = vadd.f32 %v6254_v63, %v1095_v40  ;;  %v6486_v55 = vpop.permute.xlu0 %1337  ;;  %v2053_v20 = vrot.slane %v2049_v57, 5  ;;  %v1579_v28 = vadd.f32 %v1577_v7, %v1572_v42  ;;  %v2122_v57 = vmul.f32 %v2121_v33, %v6140_v31  ;;  %s6711_s4 = sld [smem:[#allocation5 + $0x91]] }
 0x1df   : > { %v6492_v10 = vpop.permute.xlu1 %1310  ;;  %v2079_v46 = vrot.slane %v2075_v60, 6  ;;  %v1596_v14 = vmul.f32 %v1595_v30, %v6140_v31  ;;  %v2130_v42 = vstv %s6519_s25  ;;  %v1603_v61 = vmul.f32 %v1602_v16, %v6178_v53  ;;  %s6715_s25 = sld [smem:[#allocation5 + $0xb4]] }
 0x1e0   : > { %v1121_v63 = vadd.f32 %v6296_v6, %v1108_v48  ;;  %2043 = vrot.lane.b32.xlu0 %v2042_v38, %s8590_s3  ;;  %v2087_v6 = vstv %s6470_s22  ;;  %v2055_v40 = vsel %vm662_vm9, %v2053_v20, %v2054_v52  ;;  %v1586_v47 = vadd.f32 %v1584_v43, %v1579_v28  ;;  %s6660_s22 = sld [smem:[#allocation5 + $0x98]] }
 0x1e1   : > { %2012 = vrot.lane.b32.xlu1 %v2011_v41, %s8590_s3  ;;  %v2088_v12 = vmul.f32 %v2087_v6, %v6140_v31  ;;  %v1591_v48 = vrot.slane %v1589_v19, 2  ;;  %v2112_v41 = vstv %s6501_s23  ;;  %v2140_v20 = vmul.f32 %v2139_v32, %v6140_v31  ;;  %s6693_s23 = sld [smem:[#allocation5 + $0x8a]] }
 0x1e2   : > { %v1129_v9 = vadd.f32 %v6272_v27, %v1121_v63  ;;  %v6508_v59 = vpop.permute.xlu0 %1359  ;;  %v2124_v4 = vrot.slane %v2122_v57, 2  ;;  %v2157_v52 = vstv %s6527_s27  ;;  %v1609_v28 = vstv %s6540_s29  ;;  %s6720_s27 = sld [smem:[#allocation5 + $0xbb]] }
 0x1e3   : > { %v6514_v13 = vpop.permute.xlu1 %1328  ;;  %v2158_v33 = vmul.f32 %v2157_v52, %v6140_v31  ;;  %v1616_v43 = vstv %s6550_s8  ;;  %v2142_v30 = vrot.slane %v2140_v20, 3  ;;  %s6751_s29 = sld [smem:[#allocation5 + $0x68]] }
 0x1e4   : > { %v1137_v27 = vadd.f32 %v6311_v54, %v1129_v9  ;;  %2069 = vrot.lane.b32.xlu0 %v2068_v39, %s8590_s3  ;;  %v2104_v54 = vmul.f32 %v2103_v37, %v6140_v31  ;;  %v2113_v9 = vmul.f32 %v2112_v41, %v6178_v53  ;;  %v1598_v39 = vrot.slane %v1596_v14, 3  ;;  %s6767_s8 = sld [smem:[#allocation5 + $0x76]] }
 0x1e5   : > { %2030 = vrot.lane.b32.xlu1 %v2029_v2, %s8590_s3  ;;  %v2081_v2 = vsel %vm685_vm11, %v2079_v46, %v2080_v24  ;;  %v2096_v37 = vmul.f32 %v2095_v45, %v6178_v53  ;;  %v2160_v32 = vrot.slane %v2158_v33, 4  ;;  %v2166_v14 = vstv %s6563_s11  ;;  %s6779_s11 = sld [smem:[#allocation5 + $0x7d]] }
 0x1e6   : > { %v1146_v18 = vadd.f32 %v6293_v56, %v1137_v27  ;;  %v6530_v29 = vpop.permute.xlu0 %1385  ;;  %v2106_v35 = vrot.slane %v2104_v54, 1  ;;  %v2131_v27 = vmul.f32 %v2130_v42, %v6178_v53  ;;  %v2115_v54 = vrot.slane %v2113_v9, 1 }
 0x1e7   : > { %v6536_v23 = vpop.permute.xlu1 %1346  ;;  %v2188_v45 = vstv %s6574_s9  ;;  %v2214_v33 = vstv %s6598_s14  ;;  %s6788_s9 = sld [smem:[#allocation5 + $0xa7]] }
 0x1e8   : > { %v1155_v56 = vadd.f32 %v6330_v15, %v1146_v18  ;;  %2090 = vrot.lane.b32.xlu0 %v2088_v12, %s5126_s10  ;;  %v1605_v18 = vrot.slane %v1603_v61, 3  ;;  %v1634_v61 = vstv %s6580_s13  ;;  %s6795_s13 = sld [smem:[#allocation5 + $0x84]] }
 0x1e9   : > { %2056 = vrot.lane.b32.xlu1 %v2055_v40, %s8590_s3  ;;  %s6799_s14 = sld [smem:[#allocation5 + $0x8b]] }
 0x1ea   : > { %v1164_v38 = vadd.f32 %v6307_v8, %v1155_v56  ;;  %v6553_v15 = vpop.permute.xlu0 %1406  ;;  %v1593_v8 = vadd.f32 %v1591_v48, %v1586_v47  ;;  %v2201_v56 = vstv %s6556_s21  ;;  %v2133_v47 = vrot.slane %v2131_v27, 2  ;;  %s6774_s21 = sld [smem:[#allocation5 + $0x99]] }
 0x1eb   : > { %v6559_v63 = vpop.permute.xlu1 %1372  ;;  %v2149_v48 = vmul.f32 %v2148_v17, %v6178_v53  ;;  %v2202_v42 = vmul.f32 %v2201_v56, %v6140_v31 }
 0x1ec   : > { %v1173_v7 = vadd.f32 %v6344_v50, %v1164_v38  ;;  %2107 = vrot.lane.b32.xlu0 %v2106_v35, %s5126_s10  ;;  %v1600_v12 = vadd.f32 %v1598_v39, %v1593_v8  ;;  %v1617_v38 = vmul.f32 %v1616_v43, %v6178_v53  ;;  %v1623_v35 = vstv %s6569_s6  ;;  %s6785_s6 = sld [smem:[#allocation5 + $0xa0]] }
 0x1ed   : > { %2082 = vrot.lane.b32.xlu1 %v2081_v2, %s8590_s3  ;;  %v2203_v2 = vmul.f32 %v2201_v56, %v6186_v5  ;;  %v1625_v52 = vmul.f32 %v1623_v35, %v6186_v5  ;;  %v2167_v39 = vmul.f32 %v2166_v14, %v6178_v53  ;;  %v2151_v17 = vrot.slane %v2149_v48, 3 }
 0x1ee   : > { %v1182_v50 = vadd.f32 %v6325_v51, %v1173_v7  ;;  %v6577_v6 = vpop.permute.xlu0 %1423  ;;  %v2175_v51 = vstv %s6544_s30  ;;  %v1607_v16 = vadd.f32 %v1605_v18, %v1600_v12  ;;  %v1619_v27 = vrot.slane %v1617_v38, 4  ;;  %s6755_s30 = sld [smem:[#allocation5 + $0x6f]] }
 0x1ef   : > { %v6582_v60 = vpop.permute.xlu1 %1398  ;;  %v2176_v41 = vmul.f32 %v2175_v51, %v6140_v31  ;;  %v2177_v57 = vmul.f32 %v2175_v51, %v6186_v5  ;;  %v1636_v51 = vmul.f32 %v1634_v61, %v6221_v25  ;;  %v2227_v14 = vstv %s6616_s17  ;;  %s6812_s17 = sld [smem:[#allocation5 + $0x92]] }
 0x1f0   : > { %v1191_v19 = vadd.f32 %v6363_v34, %v1182_v50  ;;  %2125 = vrot.lane.b32.xlu0 %v2124_v4, %s5126_s10  ;;  %v1610_v34 = vmul.f32 %v1609_v28, %v6140_v31  ;;  %v1624_v4 = vmul.f32 %v1623_v35, %v6140_v31  ;;  %v2189_v28 = vmul.f32 %v2188_v45, %v6178_v53 }
 0x1f1   : > { %2098 = vrot.lane.b32.xlu1 %v2096_v37, %s5126_s10  ;;  %v2180_v20 = vrot.slane %v2176_v41, 5  ;;  %v2181_v50 = vrot.slane %v2177_v57, 5  ;;  %v1645_v41 = vstv %s6610_s16  ;;  %v2215_v57 = vmul.f32 %v2214_v33, %v6178_v53  ;;  %s6802_s16 = sld [smem:[#allocation5 + $0xae]] }
 0x1f2   : > { %v1200_v40 = vadd.f32 %v6340_v22, %v1191_v19  ;;  %v6595_v46 = vpop.permute.xlu0 %1441  ;;  %v1612_v8 = vrot.slane %v1610_v34, 4  ;;  %v1635_v19 = vmul.f32 %v1634_v61, %v6178_v53  ;;  %v1628_v56 = vrot.slane %v1624_v4, 5 }
 0x1f3   : > { %v6601_v24 = vpop.permute.xlu1 %1414  ;;  %v1629_v34 = vrot.slane %v1625_v52, 5  ;;  %v1640_v38 = vrot.slane %v1636_v51, 5  ;;  %v2243_v61 = vstv %s6629_s24  ;;  %s6820_s24 = sld [smem:[#allocation5 + $0xbc]] }
 0x1f4   : > { %v1209_v22 = vadd.f32 %v6386_v11, %v1200_v40  ;;  %2143 = vrot.lane.b32.xlu0 %v2142_v30, %s5126_s10  ;;  %v1614_v37 = vadd.f32 %v1612_v8, %v1607_v16  ;;  %v2182_v40 = vsel %vm662_vm9, %v2180_v20, %v2181_v50  ;;  %v2190_v30 = vmul.f32 %v2188_v45, %v6221_v25 }
 0x1f5   : > { %2116 = vrot.lane.b32.xlu1 %v2115_v54, %s5126_s10  ;;  %v2207_v54 = vrot.slane %v2203_v2, 6  ;;  %v1639_v16 = vrot.slane %v1635_v19, 5  ;;  %v1656_v45 = vstv %s6623_s18  ;;  %v1646_v2 = vmul.f32 %v1645_v41, %v6140_v31  ;;  %s6816_s18 = sld [smem:[#allocation5 + $0xb5]] }
 0x1f6   : > { %v1222_v11 = vadd.f32 %v6359_v44, %v1209_v22  ;;  %v6619_v7 = vpop.permute.xlu0 %1459  ;;  %v1621_v48 = vadd.f32 %v1619_v27, %v1614_v37  ;;  %v2216_v22 = vmul.f32 %v2214_v33, %v6221_v25  ;;  %v1647_v8 = vmul.f32 %v1645_v41, %v6186_v5 }
 0x1f7   : > { %v6625_v9 = vpop.permute.xlu1 %1432  ;;  %v2193_v20 = vrot.slane %v2189_v28, 5  ;;  %v2194_v50 = vrot.slane %v2190_v30, 5  ;;  %v1641_v52 = vsel %vm662_vm9, %v1639_v16, %v1640_v38  ;;  %v1658_v5 = vmul.f32 %v1656_v45, %v6221_v25  ;;  %v6699_v30 = vld [vmem:[#allocation3] sm:$0xff] }
 0x1f8   : > { %v1235_v44 = vadd.f32 %v6405_v3, %v1222_v11  ;;  %2161 = vrot.lane.b32.xlu0 %v2160_v32, %s5126_s10  ;;  %v2206_v3 = vrot.slane %v2202_v42, 6  ;;  %v1630_v11 = vsel %vm662_vm9, %v1628_v56, %v1629_v34  ;;  %v2228_v27 = vmul.f32 %v2227_v14, %v6140_v31 }
 0x1f9   : > { %2134 = vrot.lane.b32.xlu1 %v2133_v47, %s5126_s10  ;;  %v1632_v4 = vadd.f32 %v1630_v11, %v1621_v48  ;;  %v2220_v19 = vrot.slane %v2216_v22, 6  ;;  %v1650_v51 = vrot.slane %v1646_v2, 6  ;;  %v2195_v25 = vsel %vm662_vm9, %v2193_v20, %v2194_v50  ;;  %v6724_v11 = vld [vmem:[#allocation3 + $0x10] sm:$0xff] }
 0x1fa   : > { %v1248_v12 = vadd.f32 %v6380_v21, %v1235_v44  ;;  %v6639_v18 = vpop.permute.xlu0 %1477  ;;  %v2169_v21 = vrot.slane %v2167_v39, 4  ;;  %v1657_v44 = vmul.f32 %v1656_v45, %v6178_v53  ;;  %v2279_v48 = vstv %s6668_s0  ;;  %s6851_s0 = sld [smem:[#allocation5 + $0xcc]] }
 0x1fb   : > { %v6642_v43 = vpop.permute.xlu1 %1450  ;;  %v2235_v22 = vstv %s6660_s22  ;;  %v2280_v14 = vmul.f32 %v6699_v30, %v2279_v48  ;;  %v2315_v20 = vstv %s6693_s23  ;;  %s6847_s22 = sld [smem:[#allocation5 + $0xc5]] }
 0x1fc   : > { %v1261_v47 = vadd.f32 %v6428_v1, %v1248_v12  ;;  %2183 = vrot.lane.b32.xlu0 %v2182_v40, %s5126_s10  ;;  %v2208_v1 = vsel %vm685_vm11, %v2206_v3, %v2207_v54  ;;  %v1651_v12 = vrot.slane %v1647_v8, 6  ;;  %v2261_v3 = vstv %s6646_s12  ;;  %s6838_s12 = sld [smem:[#allocation5 + $0xc3]] }
 0x1fd   : > { %2152 = vrot.lane.b32.xlu1 %v2151_v17, %s5126_s10  ;;  %v2244_v17 = vmul.f32 %v2243_v61, %v6140_v31  ;;  %v1661_v31 = vrot.slane %v1657_v44, 6  ;;  %v1662_v54 = vrot.slane %v1658_v5, 6  ;;  %v2262_v56 = vmul.f32 %v6699_v30, %v2261_v3  ;;  %s6892_s23 = sld [smem:[#allocation5 + $0x104]] }
 0x1fe   : > { %v1269_v35 = vadd.f32 %v6400_v58, %v1261_v47  ;;  %v6655_v32 = vpop.permute.xlu0 %1499  ;;  %v2236_v2 = vmul.f32 %v6724_v11, %v2235_v22  ;;  %v2297_v61 = vstv %s6688_s20  ;;  %s6873_s20 = sld [smem:[#allocation5 + $0xd3]] }
 0x1ff   : > { %v6662_v42 = vpop.permute.xlu1 %1468  ;;  %v1663_v16 = vsel %vm685_vm11, %v1661_v31, %v1662_v54 }
 0x200   : > { %v1277_v58 = vadd.f32 %v6447_v62, %v1269_v35  ;;  %2209 = vrot.lane.b32.xlu0 %v2208_v1, %s5126_s10  ;;  %v2219_v62 = vrot.slane %v2215_v57, 6  ;;  %v2270_v1 = vstv %s6683_s2  ;;  %s6861_s2 = sld [smem:[#allocation5 + $0xfd]] }
 0x201   : > { %2170 = vrot.lane.b32.xlu1 %v2169_v21, %s5126_s10  ;;  %v1652_v21 = vsel %vm685_vm11, %v1650_v51, %v1651_v12  ;;  %v2271_v50 = vmul.f32 %v6724_v11, %v2270_v1 }
 0x202   : > { %v1286_v39 = vadd.f32 %v6422_v36, %v1277_v58  ;;  %v6679_v37 = vpop.permute.xlu0 %1525  ;;  %v1643_v36 = vadd.f32 %v1641_v52, %v1632_v4  ;;  %v2221_v47 = vsel %vm685_vm11, %v2219_v62, %v2220_v19  ;;  %v2288_v4 = vstv %s6696_s7  ;;  %v6738_v19 = vld [vmem:[#allocation3 + $0x8] sm:$0x3]  ;;  %s6906_s7 = sld [smem:[#allocation5 + $0xda]] }
 0x203   : > { %v6685_v28 = vpop.permute.xlu1 %1486  ;;  %v2298_v62 = vmul.f32 %v6699_v30, %v2297_v61  ;;  %v2317_v51 = vmul.f32 %v6738_v19, %v2315_v20 }
 0x204   : > { %v1295_v53 = vadd.f32 %v6472_v26, %v1286_v39  ;;  %2230 = vrot.lane.b32.xlu0 %v2228_v27, %s5127_s26  ;;  %v2246_v26 = vrot.slane %v2244_v17, 1  ;;  %v1654_v57 = vadd.f32 %v1652_v21, %v1643_v36  ;;  %v2282_v39 = vrot.slane %v2280_v14, 3  ;;  %v6764_v14 = vld [vmem:[#allocation3 + $0x18] sm:$0x3] }
 0x205   : > { %2196 = vrot.lane.b32.xlu1 %v2195_v25, %s5126_s10  ;;  %v2316_v17 = vmul.f32 %v6699_v30, %v2315_v20  ;;  %v2289_v25 = vmul.f32 %v6724_v11, %v2288_v4  ;;  %v2306_v36 = vstv %s6715_s25  ;;  %s8594_s25 = sld [smem:[#allocation16_spill]] }
 0x206   : > { %v1304_v33 = vadd.f32 %v6443_v0, %v1295_v53  ;;  %v1671_v40 = vpop.permute.xlu0 %1670  ;;  %v2252_v0 = vstv %s6672_s1  ;;  %v2273_v53 = vrot.slane %v2271_v50, 2  ;;  %s6857_s1 = sld [smem:[#allocation5 + $0xf6]] }
 0x207   : > { %v6702_v34 = vpop.permute.xlu1 %1512  ;;  %v2253_v8 = vmul.f32 %v6724_v11, %v2252_v0 }
 0x208   : > { %v1313_v41 = vadd.f32 %v6492_v10, %v1304_v33  ;;  %2247 = vrot.lane.b32.xlu0 %v2246_v26, %s5127_s26  ;;  %v2264_v10 = vrot.slane %v2262_v56, 2  ;;  %v2328_v26 = vstv %s6720_s27  ;;  %v2320_v56 = vrot.slane %v2316_v17, 5  ;;  %s6940_s27 = sld [smem:[#allocation5 + $0xe1]] }
 0x209   : > { %2222 = vrot.lane.b32.xlu1 %v2221_v47, %s5126_s10  ;;  %v2321_v47 = vrot.slane %v2317_v51, 5 }
 0x20a   : > { %v1322_v38 = vadd.f32 %v6466_v49, %v1313_v41  ;;  %v1688_v35 = vpop.permute.xlu0 %1687  ;;  %v1665_v49 = vadd.f32 %v1663_v16, %v1654_v57 }
 0x20b   : > { %v6722_v45 = vpop.permute.xlu1 %1538  ;;  %v2322_v1 = vsel %vm662_vm9, %v2320_v56, %v2321_v47  ;;  %p278_p12 = scmp.lt.s32.totalorder %s8594_s25, 1 }
 0x20c   : > { %v1331_v58 = vadd.f32 %v6514_v13, %v1322_v38  ;;  %2265 = vrot.lane.b32.xlu0 %v2264_v10, %s5127_s26  ;;  %v1673_v44 = vadd.f32 %v1671_v40, %v1665_v49  ;;  %v2255_v13 = vrot.slane %v2253_v8, 1  ;;  %v2300_v40 = vrot.slane %v2298_v62, 4 }
 0x20d   : > { %2238 = vrot.lane.b32.xlu1 %v2236_v2, %s5127_s26  ;;  %v2307_v38 = vmul.f32 %v6724_v11, %v2306_v36  ;;  %v2367_v62 = vstv %s6751_s29  ;;  %v2401_v36 = vstv %s6767_s8  ;;  %s6964_s29 = sld [smem:[#allocation5 + $0xe8]]  ;;  %s8652_s25 = smov (!%p278_p12, %s8594_s25), 1 }
 0x20e   : > { %v1340_v52 = vadd.f32 %v6486_v55, %v1331_v58  ;;  %v1706_v5 = vpop.permute.xlu0 %1705  ;;  %v2341_v55 = vstv %s6711_s4  ;;  %v2354_v58 = vstv %s6747_s28  ;;  %s6925_s4 = sld [smem:[#allocation5 + $0x10b]]  ;;  %s4606_s8 = sshll.u32 %s8652_s25, 2 }
 0x20f   : > { %v1679_v27 = vpop.permute.xlu1 %1678  ;;  %v2342_v21 = vmul.f32 %v6699_v30, %v2341_v55  ;;  %v2343_v48 = vmul.f32 %v6738_v19, %v2341_v55  ;;  %v2309_v50 = vrot.slane %v2307_v38, 4  ;;  %v2356_v17 = vmul.f32 %v6764_v14, %v2354_v58  ;;  %s6947_s28 = sld [smem:[#allocation5 + $0x112]] }
 0x210   : > { %v1349_v12 = vadd.f32 %v6536_v23, %v1340_v52  ;;  %v1681_v3 = vadd.f32 %v1679_v27, %v1673_v44  ;;  %2283 = vrot.lane.b32.xlu0 %v2282_v39, %s5127_s26  ;;  %v2368_v55 = vmul.f32 %v6699_v30, %v2367_v62 }
 0x211   : > { %2256 = vrot.lane.b32.xlu1 %v2255_v13, %s5127_s26  ;;  %v2346_v2 = vrot.slane %v2342_v21, 6  ;;  %v2347_v8 = vrot.slane %v2343_v48, 6  ;;  %v2375_v21 = vstv %s6774_s21  ;;  %v2419_v48 = vstv %s6779_s11  ;;  %s7207_s21 = sld [smem:[#allocation5 + $0xf5]] }
 0x212   : > { %v1362_v31 = vadd.f32 %v6508_v59, %v1349_v12  ;;  %v1690_v54 = vadd.f32 %v1688_v35, %v1681_v3  ;;  %v1724_v33 = vpop.permute.xlu0 %1723  ;;  %v2291_v59 = vrot.slane %v2289_v25, 3  ;;  %v2329_v35 = vmul.f32 %v6724_v11, %v2328_v26  ;;  %s7211_s11 = sld [smem:[#allocation5 + $0xce]] }
 0x213   : > { %v1697_v23 = vpop.permute.xlu1 %1696  ;;  %v2348_v39 = vsel %vm685_vm11, %v2346_v2, %v2347_v8  ;;  %v2437_v2 = vstv %s6795_s13  ;;  %s7013_s13 = sld [smem:[#allocation5 + $0xef]] }
 0x214   : > { %v1375_v41 = vadd.f32 %v6559_v63, %v1362_v31  ;;  %v1699_v57 = vadd.f32 %v1697_v23, %v1690_v54  ;;  %2301 = vrot.lane.b32.xlu0 %v2300_v40, %s5127_s26  ;;  %v2330_v63 = vmul.f32 %v6764_v14, %v2328_v26  ;;  %v2333_v52 = vrot.slane %v2329_v35, 5 }
 0x215   : > { %2274 = vrot.lane.b32.xlu1 %v2273_v53, %s5127_s26  ;;  %v2360_v40 = vrot.slane %v2356_v17, 6  ;;  %v2420_v35 = vmul.f32 %v6699_v30, %v2419_v48 }
 0x216   : > { %v1388_v22 = vadd.f32 %v6530_v29, %v1375_v41  ;;  %v1708_v0 = vadd.f32 %v1706_v5, %v1699_v57  ;;  %v1742_v16 = vpop.permute.xlu0 %1741  ;;  %v2334_v5 = vrot.slane %v2330_v63, 5 }
 0x217   : > { %v1715_v10 = vpop.permute.xlu1 %1714 }
 0x218   : > { %v1401_v29 = vadd.f32 %v6582_v60, %v1388_v22  ;;  %v1717_v61 = vadd.f32 %v1715_v10, %v1708_v0  ;;  %2323 = vrot.lane.b32.xlu0 %v2322_v1, %s5127_s26  ;;  %v2383_v60 = vstv %s6755_s30  ;;  %v2335_v25 = vsel %vm662_vm9, %v2333_v52, %v2334_v5  ;;  %s6989_s30 = sld [smem:[#allocation5 + $0x119]] }
 0x219   : > { %2292 = vrot.lane.b32.xlu1 %v2291_v59, %s5127_s26  ;;  %v2392_v22 = vstv %s6785_s6  ;;  %v2376_v1 = vmul.f32 %v6724_v11, %v2375_v21  ;;  %v2438_v52 = vmul.f32 %v6699_v30, %v2437_v2  ;;  %v2494_v21 = vstv %s6838_s12  ;;  %s8595_s6 = sld [smem:[#allocation33_spill]] }
 0x21a   : > { %v1409_v49 = vadd.f32 %v6553_v15, %v1401_v29  ;;  %v1726_v20 = vadd.f32 %v1724_v33, %v1717_v61  ;;  %v1764_v4 = vpop.permute.xlu0 %1763  ;;  %v2355_v15 = vmul.f32 %v6724_v11, %v2354_v58  ;;  %v2393_v63 = vmul.f32 %v6724_v11, %v2392_v22  ;;  %s4841_s12 = sld [smem:[#allocation5 + $0xd4]] }
 0x21b   : > { %v1733_v44 = vpop.permute.xlu1 %1732  ;;  %v2428_v58 = vstv %s6802_s16  ;;  %s7051_s16 = sld [smem:[#allocation5 + $0xc6]] }
 0x21c   : > { %v1417_v27 = vadd.f32 %v6601_v24, %v1409_v49  ;;  %v1735_v13 = vadd.f32 %v1733_v44, %v1726_v20  ;;  %2349 = vrot.lane.b32.xlu0 %v2348_v39, %s5127_s26  ;;  %v2384_v24 = vmul.f32 %v6699_v30, %v2383_v60  ;;  %v2359_v33 = vrot.slane %v2355_v15, 6 }
 0x21d   : > { %2310 = vrot.lane.b32.xlu1 %v2309_v50, %s5127_s26  ;;  %v2446_v15 = vstv %s6816_s18  ;;  %s7056_s18 = sld [smem:[#allocation5 + $0xf7]] }
 0x21e   : > { %v1426_v51 = vadd.f32 %v6577_v6, %v1417_v27  ;;  %v1744_v12 = vadd.f32 %v1742_v16, %v1735_v13  ;;  %v1790_v3 = vpop.permute.xlu0 %1789  ;;  %v2386_v56 = vrot.slane %v2384_v24, 1  ;;  %v2361_v59 = vsel %vm685_vm11, %v2359_v33, %v2360_v40 }
 0x21f   : > { %v1751_v53 = vpop.permute.xlu1 %1750  ;;  %v2481_v27 = vstv %s6812_s17  ;;  %v2429_v13 = vmul.f32 %v6724_v11, %v2428_v58  ;;  %s4839_s17 = sld [smem:[#allocation5 + $0xcd]] }
 0x220   : > { %v1435_v31 = vadd.f32 %v6625_v9, %v1426_v51  ;;  %v1753_v54 = vadd.f32 %v1751_v53, %v1744_v12  ;;  %2370 = vrot.lane.b32.xlu0 %v2368_v55, %s5128_s15  ;;  %v2402_v9 = vmul.f32 %v6699_v30, %v2401_v36  ;;  %v2468_v55 = vstv %s6820_s24  ;;  %s4840_s24 = sld [smem:[#allocation5 + $0xfe]] }
 0x221   : > { %2336 = vrot.lane.b32.xlu1 %v2335_v25, %s5127_s26  ;;  %v2482_v25 = vmul.f32 %v6699_v30, %v2481_v27  ;;  %v2483_v36 = vmul.f32 %v6738_v19, %v2481_v27 }
 0x222   : > { %v1444_v6 = vadd.f32 %v6595_v46, %v1435_v31  ;;  %v1766_v26 = vadd.f32 %v1764_v4, %v1753_v54  ;;  %v1811_v23 = vpop.permute.xlu0 %1810  ;;  %v2410_v46 = vstv %s6788_s9  ;;  %v2404_v38 = vrot.slane %v2402_v9, 2  ;;  %s281_s9 = scalar_lea.vmem %s8595_s6, %s4606_s8  ;;  %s7215_s6 = sld [smem:[#allocation5 + $0xfc]] }
 0x223   : > { %v1777_v47 = vpop.permute.xlu1 %1776  ;;  %v2411_v61 = vmul.f32 %v6724_v11, %v2410_v46  ;;  %v2422_v4 = vrot.slane %v2420_v35, 3  ;;  %v2487_v9 = vrot.slane %v2483_v36, 6  ;;  %v2496_v35 = vmul.f32 %v6764_v14, %v2494_v21 }
 0x224   : > { %v1453_v41 = vadd.f32 %v6642_v43, %v1444_v6  ;;  %v1779_v57 = vadd.f32 %v1777_v47, %v1766_v26  ;;  %2387 = vrot.lane.b32.xlu0 %v2386_v56, %s5128_s15  ;;  %v2486_v56 = vrot.slane %v2482_v25, 6 }
 0x225   : > { %2362 = vrot.lane.b32.xlu1 %v2361_v59, %s5127_s26 }
 0x226   : > { %v1462_v0 = vadd.f32 %v6619_v7, %v1453_v41  ;;  %v1792_v16 = vadd.f32 %v1790_v3, %v1779_v57  ;;  %v1828_v43 = vpop.permute.xlu0 %1827  ;;  %v2455_v7 = vstv %s6799_s14  ;;  %v2440_v3 = vrot.slane %v2438_v52, 4  ;;  %v6894_v52 = vld [vmem:[#allocation4 + $0x18] sm:$0xff]  ;;  %s4836_s14 = sld [smem:[#allocation5 + $0x120]] }
 0x227   : > { %v1803_v10 = vpop.permute.xlu1 %1802  ;;  %v2456_v5 = vmul.f32 %v6699_v30, %v2455_v7  ;;  %v2457_v39 = vmul.f32 %v6738_v19, %v2455_v7  ;;  %v2431_v30 = vrot.slane %v2429_v13, 3  ;;  %v2469_v19 = vmul.f32 %v6724_v11, %v2468_v55 }
 0x228   : > { %v1471_v8 = vadd.f32 %v6662_v42, %v1462_v0  ;;  %v1805_v29 = vadd.f32 %v1803_v10, %v1792_v16  ;;  %2405 = vrot.lane.b32.xlu0 %v2404_v38, %s5128_s15  ;;  %v2395_v42 = vrot.slane %v2393_v63, 1  ;;  %v2488_v16 = vsel %vm685_vm11, %v2486_v56, %v2487_v9  ;;  %v6881_v63 = vld [vmem:[#allocation4 + $0x8] sm:$0xff] }
 0x229   : > { %2378 = vrot.lane.b32.xlu1 %v2376_v1, %s5128_s15  ;;  %v2461_v53 = vrot.slane %v2457_v39, 5  ;;  %v2473_v22 = vrot.slane %v2469_v19, 5  ;;  %v2772_v10 = vstv %s6851_s0  ;;  %v6878_v1 = vld [vmem:[#allocation4] sm:$0xff]  ;;  %v2758_v7 = vstv %s6857_s1  ;;  %s4843_s0 = sld [smem:[#allocation5 + $0xdb]] }
 0x22a   : > { %v1480_v49 = vadd.f32 %v6639_v18, %v1471_v8  ;;  %v1813_v20 = vadd.f32 %v1811_v23, %v1805_v29  ;;  %v1846_v50 = vpop.permute.xlu0 %1845  ;;  %v2413_v18 = vrot.slane %v2411_v61, 2  ;;  %v2470_v23 = vmul.f32 %v6764_v14, %v2468_v55  ;;  %s7103_s1 = sld [smem:[#allocation5 + $0xe2]] }
 0x22b   : > { %v1819_v44 = vpop.permute.xlu1 %1818  ;;  %v2773_v61 = vmul.f32 %v2772_v10, %v6878_v1  ;;  %v6887_v58 = vmul.f32 %v2772_v10, %v6881_v63  ;;  %v2759_v39 = vmul.f32 %v2758_v7, %v6894_v52 }
 0x22c   : > { %v1489_v62 = vadd.f32 %v6685_v28, %v1480_v49  ;;  %v1821_v60 = vadd.f32 %v1819_v44, %v1813_v20  ;;  %2423 = vrot.lane.b32.xlu0 %v2422_v4, %s5128_s15  ;;  %v2460_v28 = vrot.slane %v2456_v5, 5  ;;  %v2474_v0 = vrot.slane %v2470_v23, 5  ;;  %v6896_v44 = vld [vmem:[#allocation4 + $0x20] sm:$0xff] }
 0x22d   : > { %2396 = vrot.lane.b32.xlu1 %v2395_v42, %s5128_s15  ;;  %v2793_v49 = vstv %s6861_s2  ;;  %v2500_v4 = vrot.slane %v2496_v35, 6  ;;  %v2780_v13 = vrot.slane %v6887_v58, 1  ;;  %v2760_v19 = vmul.f32 %v2758_v7, %v6896_v44  ;;  %s7118_s2 = sld [smem:[#allocation5 + $0x113]] }
 0x22e   : > { %v1502_v17 = vadd.f32 %v6655_v32, %v1489_v62  ;;  %v1830_v51 = vadd.f32 %v1828_v43, %v1821_v60  ;;  %v1864_v12 = vpop.permute.xlu0 %1863  ;;  %v2447_v32 = vmul.f32 %v6724_v11, %v2446_v15  ;;  %v2462_v26 = vsel %vm662_vm9, %v2460_v28, %v2461_v53  ;;  %v6913_v53 = vld [vmem:[#allocation4 + $0x10] sm:$0x3f] }
 0x22f   : > { %v1837_v24 = vpop.permute.xlu1 %1836  ;;  %v2744_v43 = vstv %s6847_s22  ;;  %v2475_v20 = vsel %vm662_vm9, %v2473_v22, %v2474_v0  ;;  %v2794_v62 = vmul.f32 %v2793_v49, %v6894_v52  ;;  %v6902_v60 = vmul.f32 %v2793_v49, %v6896_v44  ;;  %s4842_s22 = sld [smem:[#allocation5 + $0x105]] }
 0x230   : > { %v1515_v31 = vadd.f32 %v6702_v34, %v1502_v17  ;;  %v1839_v54 = vadd.f32 %v1837_v24, %v1830_v51  ;;  %2441 = vrot.lane.b32.xlu0 %v2440_v3, %s5128_s15  ;;  %v2449_v57 = vrot.slane %v2447_v32, 4  ;;  %v2814_v15 = vstv %s6873_s20  ;;  %v6920_v32 = vld [vmem:[#allocation4 + $0x28] sm:$0x3f]  ;;  %s7128_s20 = sld [smem:[#allocation5 + $0xe9]] }
 0x231   : > { %2414 = vrot.lane.b32.xlu1 %v2413_v18, %s5128_s15  ;;  %v2779_v18 = vrot.slane %v2773_v61, 1  ;;  %v2800_v55 = vrot.slane %v2794_v62, 1  ;;  %v2801_v24 = vrot.slane %v6902_v60, 1  ;;  %v2815_v28 = vmul.f32 %v2814_v15, %v6878_v1 }
 0x232   : > { %v1528_v33 = vadd.f32 %v6679_v37, %v1515_v31  ;;  %v1848_v40 = vadd.f32 %v1846_v50, %v1839_v54  ;;  %v1882_v6 = vpop.permute.xlu0 %1881  ;;  %v2746_v36 = vmul.f32 %v2744_v43, %v6881_v63  ;;  %v6918_v54 = vmul.f32 %v2814_v15, %v6881_v63 }
 0x233   : > { %v1855_v34 = vpop.permute.xlu1 %1854  ;;  %v2781_v31 = vsel %vm2543_vm12, %v2779_v18, %v2780_v13  ;;  %v2802_v9 = vsel %vm2543_vm12, %v2800_v55, %v2801_v24  ;;  %v2817_v7 = vmul.f32 %v2814_v15, %v6913_v53  ;;  %v2877_v61 = vstv %s6925_s4  ;;  %s4850_s4 = sld [smem:[#allocation5 + $0x121]] }
 0x234   : > { %v6864_v47 = vadd.f32 %v6722_v45, %v1528_v33  ;;  %v1857_v37 = vadd.f32 %v1855_v34, %v1848_v40  ;;  %2463 = vrot.lane.b32.xlu0 %v2462_v26, %s5128_s15  ;;  %v2495_v45 = vmul.f32 %v6724_v11, %v2494_v21  ;;  %v2745_v11 = vmul.f32 %v2744_v43, %v6878_v1 }
 0x235   : > { %2432 = vrot.lane.b32.xlu1 %v2431_v30, %s5128_s15  ;;  %v2775_v40 = vmul.f32 %v2772_v10, %v6913_v53  ;;  %v2835_v30 = vstv %s6892_s23  ;;  %v2796_v34 = vmul.f32 %v2793_v49, %v6920_v32  ;;  %v2824_v18 = vrot.slane %v2817_v7, 2  ;;  %s7141_s23 = sld [smem:[#allocation5 + $0x11a]] }
 0x236   : > { %v4707_v48 = vmul.f32 -1.442695, %v6864_v47  ;;  %v1866_v41 = vadd.f32 %v1864_v12, %v1857_v37  ;;  %v1904_v59 = vpop.permute.xlu0 %1903  ;;  %v2499_v50 = vrot.slane %v2495_v45, 6  ;;  %v2821_v37 = vrot.slane %v2815_v28, 2 }
 0x237   : > { %v1873_v46 = vpop.permute.xlu1 %1872  ;;  %v2803_v35 = vrot.slane %v2796_v34, 1  ;;  %v2838_v58 = vmul.f32 %v2835_v30, %v6920_v32  ;;  %v6982_v60 = vstv %s6947_s28  ;;  %s7193_s28 = sld [smem:[#allocation9 + $0x2]] }
 0x238   : > { %4983 = vpow2.f32 %v4707_v48  ;;  %v1875_v38 = vadd.f32 %v1873_v46, %v1866_v41  ;;  %2489 = vrot.lane.b32.xlu0 %v2488_v16, %s5128_s15  ;;  %v2501_v51 = vsel %vm685_vm11, %v2499_v50, %v2500_v4  ;;  %v2822_v48 = vrot.slane %v6918_v54, 2 }
 0x239   : > { %2450 = vrot.lane.b32.xlu1 %v2449_v57, %s5128_s15  ;;  %v2836_v41 = vmul.f32 %v2835_v30, %v6894_v52  ;;  %v6936_v57 = vmul.f32 %v2835_v30, %v6896_v44  ;;  %v2782_v46 = vrot.slane %v2775_v40, 1  ;;  %v2845_v15 = vrot.slane %v2838_v58, 2 }
 0x23a   : > { %v1884_v2 = vadd.f32 %v1882_v6, %v1875_v38  ;;  %v1930_v8 = vpop.permute.xlu0 %1929  ;;  %v2823_v10 = vsel %vm2578_vm13, %v2821_v37, %v2822_v48  ;;  %v2825_v54 = vsel %vm2578_vm13, %v2822_v48, %v2824_v18 }
 0x23b   : > { %v1891_v29 = vpop.permute.xlu1 %1890 }
 0x23c   : > { %v1893_v14 = vadd.f32 %v1891_v29, %v1884_v2  ;;  %2749 = vrot.lane.b32.xlu0 %v2745_v11, %s8587_s19  ;;  %v2842_v2 = vrot.slane %v2836_v41, 2  ;;  %v2783_v29 = vsel %vm2543_vm12, %v2780_v13, %v2782_v46  ;;  %v2898_v13 = vstv %s6940_s27  ;;  %s7188_s27 = sld [smem:[#allocation5 + $0xc7]] }
 0x23d   : > { %2476 = vrot.lane.b32.xlu1 %v2475_v20, %s5128_s15  ;;  %v2880_v41 = vmul.f32 %v2877_v61, %v6920_v32  ;;  %v2901_v46 = vmul.f32 %v2898_v13, %v6913_v53 }
 0x23e   : > { %v1906_v42 = vadd.f32 %v1904_v59, %v1893_v14  ;;  %v1951_v5 = vpop.permute.xlu0 %1950  ;;  %v2856_v59 = vstv %s6906_s7  ;;  %s7157_s7 = sld [smem:[#allocation5 + $0xf0]] }
 0x23f   : > { %v1917_v27 = vpop.permute.xlu1 %1916  ;;  %v2857_v45 = vmul.f32 %v2856_v59, %v6878_v1  ;;  %v6945_v43 = vmul.f32 %v2856_v59, %v6881_v63 }
 0x240   : > { %v1919_v17 = vadd.f32 %v1917_v27, %v1906_v42  ;;  %2763 = vrot.lane.b32.xlu0 %v2759_v39, %s8587_s19  ;;  %v6962_v39 = vmul.f32 %v2877_v61, %v6896_v44  ;;  %v2804_v27 = vsel %vm2543_vm12, %v2801_v24, %v2803_v35 }
 0x241   : > { %2502 = vrot.lane.b32.xlu1 %v2501_v51, %s5128_s15  ;;  %v2863_v20 = vrot.slane %v2857_v45, 3  ;;  %v2864_v50 = vrot.slane %v6945_v43, 3 }
 0x242   : > { %v1932_v12 = vadd.f32 %v1930_v8, %v1919_v17  ;;  %v1968_v3 = vpop.permute.xlu0 %1967  ;;  %v2843_v8 = vrot.slane %v6936_v57, 2  ;;  %v2859_v17 = vmul.f32 %v2856_v59, %v6913_v53  ;;  %v2885_v28 = vrot.slane %v6962_v39, 3 }
 0x243   : > { %v1943_v25 = vpop.permute.xlu1 %1942  ;;  %v2940_v57 = vstv %s6964_s29  ;;  %v2922_v39 = vmul.f32 %v6982_v60, %v6920_v32  ;;  %s7196_s29 = sld [smem:[#allocation5 + $0xc4]] }
 0x244   : > { %v1945_v33 = vadd.f32 %v1943_v25, %v1932_v12  ;;  %2784 = vrot.lane.b32.xlu0 %v2781_v31, %s8587_s19  ;;  %v2844_v42 = vsel %vm2578_vm13, %v2842_v2, %v2843_v8  ;;  %v2899_v25 = vmul.f32 %v2898_v13, %v6878_v1  ;;  %v2846_v40 = vsel %vm2578_vm13, %v2843_v8, %v2845_v15 }
 0x245   : > { %v4984_v6 = vpop.eup %4983  ;;  %2751 = vrot.lane.b32.xlu1 %v2746_v36, %s8587_s19  ;;  %v6987_v36 = vmul.f32 %v2898_v13, %v6881_v63  ;;  %v2866_v30 = vrot.slane %v2859_v17, 3  ;;  %v2941_v35 = vmul.f32 %v2940_v57, %v6878_v1  ;;  %v2961_v2 = vstv %s6989_s30  ;;  %s7200_s30 = sld [smem:[#allocation5 + $0xcb]] }
 0x246   : > { %v1545_v26 = vadd.f32 1.0, %v4984_v6  ;;  %v1953_v23 = vadd.f32 %v1951_v5, %v1945_v33  ;;  %v1986_v56 = vpop.permute.xlu0 %1985  ;;  %v2878_v5 = vmul.f32 %v2877_v61, %v6894_v52  ;;  %v2905_v37 = vrot.slane %v2899_v25, 4 }
 0x247   : > { %v1959_v21 = vpop.permute.xlu1 %1958  ;;  %v2962_v58 = vmul.f32 %v2961_v2, %v6894_v52  ;;  %v2947_v43 = vrot.slane %v2941_v35, 5  ;;  %v3003_v25 = vstv %s4836_s14  ;;  %s7225_s14 = sld [smem:[#allocation5 + $0xd2]] }
 0x248   : > { %4985 = vrcp.f32 %v1545_v26  ;;  %v1961_v22 = vadd.f32 %v1959_v21, %v1953_v23  ;;  %2805 = vrot.lane.b32.xlu0 %v2802_v9, %s8587_s19  ;;  %v2884_v24 = vrot.slane %v2878_v5, 3  ;;  %v2920_v26 = vmul.f32 %v6982_v60, %v6894_v52 }
 0x249   : > { %2765 = vrot.lane.b32.xlu1 %v2760_v19, %s8587_s19  ;;  %v7001_v23 = vmul.f32 %v6982_v60, %v6896_v44  ;;  %v2968_v13 = vrot.slane %v2962_v58, 5  ;;  %v2943_v60 = vmul.f32 %v2940_v57, %v6913_v53 }
 0x24a   : > { %v1970_v0 = vadd.f32 %v1968_v3, %v1961_v22  ;;  %v2004_v16 = vpop.permute.xlu0 %2003  ;;  %v2865_v3 = vsel %vm2613_vm14, %v2863_v20, %v2864_v50  ;;  %v2886_v9 = vsel %vm2613_vm14, %v2884_v24, %v2885_v28  ;;  %v2908_v20 = vrot.slane %v2901_v46, 4 }
 0x24b   : > { %v1977_v38 = vpop.permute.xlu1 %1976 }
 0x24c   : > { %v1979_v11 = vadd.f32 %v1977_v38, %v1970_v0  ;;  %2826 = vrot.lane.b32.xlu0 %v2823_v10, %s8587_s19  ;;  %v2926_v0 = vrot.slane %v2920_v26, 4  ;;  %v7022_v10 = vmul.f32 %v2940_v57, %v6881_v63 }
 0x24d   : > { %2786 = vrot.lane.b32.xlu1 %v2783_v29, %s8587_s19  ;;  %v2887_v29 = vrot.slane %v2880_v41, 3 }
 0x24e   : > { %v1988_v49 = vadd.f32 %v1986_v56, %v1979_v11  ;;  %v2022_v14 = vpop.permute.xlu0 %2021  ;;  %v2867_v11 = vsel %vm2613_vm14, %v2864_v50, %v2866_v30  ;;  %v2948_v50 = vrot.slane %v7022_v10, 5  ;;  %v3024_v10 = vstv %s7051_s16  ;;  %s7239_s16 = sld [smem:[#allocation5 + $0xd5]] }
 0x24f   : > { %v1995_v4 = vpop.permute.xlu1 %1994  ;;  %v2888_v5 = vsel %vm2613_vm14, %v2885_v28, %v2887_v29  ;;  %v2929_v28 = vrot.slane %v2922_v39, 4  ;;  %v3052_v29 = vstv %s4839_s17  ;;  %v3025_v58 = vmul.f32 %v3024_v10, %v6878_v1  ;;  %s7260_s17 = sld [smem:[#allocation5 + $0x103]] }
 0x250   : > { %v1997_v62 = vadd.f32 %v1995_v4, %v1988_v49  ;;  %2847 = vrot.lane.b32.xlu0 %v2844_v42, %s8587_s19  ;;  %v2963_v49 = vmul.f32 %v2961_v2, %v6896_v44 }
 0x251   : > { %2807 = vrot.lane.b32.xlu1 %v2804_v27, %s8587_s19 }
 0x252   : > { %v2006_v51 = vadd.f32 %v2004_v16, %v1997_v62  ;;  %v2044_v12 = vpop.permute.xlu0 %2043  ;;  %v2927_v16 = vrot.slane %v7001_v23, 4  ;;  %v2982_v62 = vstv %s7013_s13  ;;  %v2969_v15 = vrot.slane %v2963_v49, 5  ;;  %s7221_s13 = sld [smem:[#allocation5 + $0xff]] }
 0x253   : > { %v2013_v55 = vpop.permute.xlu1 %2012  ;;  %v2985_v46 = vmul.f32 %v2982_v62, %v6913_v53 }
 0x254   : > { %v2015_v31 = vadd.f32 %v2013_v55, %v2006_v51  ;;  %2868 = vrot.lane.b32.xlu0 %v2865_v3, %s8587_s19  ;;  %v2928_v4 = vsel %vm2648_vm1, %v2926_v0, %v2927_v16  ;;  %v2983_v3 = vmul.f32 %v2982_v62, %v6878_v1  ;;  %v2984_v55 = vmul.f32 %v2982_v62, %v6881_v63 }
 0x255   : > { %v4986_v33 = vpop.eup %4985  ;;  %2828 = vrot.lane.b32.xlu1 %v2825_v54, %s8587_s19  ;;  %v2970_v54 = vsel %vm662_vm9, %v2968_v13, %v2969_v15  ;;  %v2930_v23 = vsel %vm2648_vm1, %v2927_v16, %v2929_v28 }
 0x256   : > { %v1548_v6 = vmul.f32 %v4986_v33, %v6864_v47  ;;  %v2024_v19 = vadd.f32 %v2022_v14, %v2015_v31  ;;  %v2070_v34 = vpop.permute.xlu0 %2069  ;;  %v2906_v47 = vrot.slane %v6987_v36, 4  ;;  %v2964_v33 = vmul.f32 %v2961_v2, %v6920_v32 }
 0x257   : > { %v2031_v56 = vpop.permute.xlu1 %2030  ;;  %v2989_v30 = vrot.slane %v2983_v3, 6 }
 0x258   : > { %v1549_v21 = vmul.f32 0.33333334, %v1548_v6  ;;  %v2033_v48 = vadd.f32 %v2031_v56, %v2024_v19  ;;  %2889 = vrot.lane.b32.xlu0 %v2886_v9, %s8587_s19  ;;  %v2907_v38 = vsel %vm2648_vm1, %v2905_v37, %v2906_v47  ;;  %v2909_v51 = vsel %vm2648_vm1, %v2906_v47, %v2908_v20 }
 0x259   : > { %2849 = vrot.lane.b32.xlu1 %v2846_v40, %s8587_s19  ;;  %v2990_v6 = vrot.slane %v2984_v55, 6  ;;  %v3004_v19 = vmul.f32 %v3003_v25, %v6894_v52  ;;  %v2950_v56 = vrot.slane %v2943_v60, 5  ;;  %v3053_v20 = vmul.f32 %v3052_v29, %v6878_v1 }
 0x25a   : > { %1551 = vst.msk [vmem:[%s281_s9] sm:$0xf] %vm1550_vm15, %v1549_v21  ;;  %v2046_v59 = vadd.f32 %v2044_v12, %v2033_v48  ;;  %v2091_v22 = vpop.permute.xlu0 %2090  ;;  %v2949_v12 = vsel %vm662_vm9, %v2947_v43, %v2948_v50  ;;  %v2971_v21 = vrot.slane %v2964_v33, 5  ;;  %v3073_v43 = vstv %s4840_s24  ;;  %s7217_s9 = sld [smem:[#allocation5 + $0xf8]] }
 0x25b   : > { %v2057_v45 = vpop.permute.xlu1 %2056  ;;  %v2991_v48 = vsel %vm685_vm11, %v2989_v30, %v2990_v6  ;;  %v3010_v41 = vrot.slane %v3004_v19, 6  ;;  %v7081_v13 = vmul.f32 %v3073_v43, %v6896_v44  ;;  %v3115_v19 = vstv %s4842_s22  ;;  %s7309_s24 = sld [smem:[#allocation5 + $0xdc]] }
 0x25c   : > { %v2059_v8 = vadd.f32 %v2057_v45, %v2046_v59  ;;  %2910 = vrot.lane.b32.xlu0 %v2907_v38, %s8587_s19  ;;  %v2972_v38 = vsel %vm662_vm9, %v2969_v15, %v2971_v21  ;;  %v3116_v21 = vmul.f32 %v3115_v19, %v6894_v52  ;;  %s7329_s22 = sld [smem:[#allocation5 + $0x10a]] }
 0x25d   : > { %2870 = vrot.lane.b32.xlu1 %v2867_v11, %s8587_s19  ;;  %v3006_v11 = vmul.f32 %v3003_v25, %v6920_v32 }
 0x25e   : > { %v2072_v7 = vadd.f32 %v2070_v34, %v2059_v8  ;;  %v2108_v61 = vpop.permute.xlu0 %2107  ;;  %v3005_v34 = vmul.f32 %v3003_v25, %v6896_v44  ;;  %v2992_v8 = vrot.slane %v2985_v46, 6  ;;  %v3081_v25 = vrot.slane %v7081_v13, 1 }
 0x25f   : > { %v2083_v14 = vpop.permute.xlu1 %2082 }
 0x260   : > { %v2085_v42 = vadd.f32 %v2083_v14, %v2072_v7  ;;  %2931 = vrot.lane.b32.xlu0 %v2928_v4, %s8587_s19  ;;  %v3011_v57 = vrot.slane %v3005_v34, 6  ;;  %v3038_v14 = vstv %s7056_s18  ;;  %v7073_v4 = vmul.f32 %v3052_v29, %v6881_v63  ;;  %s7286_s18 = sld [smem:[#allocation5 + $0x106]] }
 0x261   : > { %2891 = vrot.lane.b32.xlu1 %v2888_v5, %s8587_s19  ;;  %v3013_v5 = vrot.slane %v3006_v11, 6 }
 0x262   : > { %v2093_v27 = vadd.f32 %v2091_v22, %v2085_v42  ;;  %v2126_v18 = vpop.permute.xlu0 %2125  ;;  %v2951_v22 = vsel %vm662_vm9, %v2948_v50, %v2950_v56  ;;  %v3012_v35 = vsel %vm685_vm11, %v3010_v41, %v3011_v57  ;;  %v2993_v42 = vsel %vm685_vm11, %v2990_v6, %v2992_v8 }
 0x263   : > { %v2099_v17 = vpop.permute.xlu1 %2098  ;;  %v3014_v55 = vsel %vm685_vm11, %v3011_v57, %v3013_v5  ;;  %v3055_v6 = vmul.f32 %v3052_v29, %v6913_v53  ;;  %v3136_v41 = vstv %s4843_s0  ;;  %s7391_s0 = sld [smem:[#allocation5 + $0xe3]] }
 0x264   : > { %v2101_v24 = vadd.f32 %v2099_v17, %v2093_v27  ;;  %2952 = vrot.lane.b32.xlu0 %v2949_v12, %s8587_s19  ;;  %v3039_v27 = vmul.f32 %v3038_v14, %v6894_v52  ;;  %v3059_v17 = vrot.slane %v3053_v20, 1  ;;  %v3094_v12 = vstv %s4841_s12  ;;  %s7314_s12 = sld [smem:[#allocation5 + $0xd9]] }
 0x265   : > { %2912 = vrot.lane.b32.xlu1 %v2909_v51, %s8587_s19  ;;  %v3060_v51 = vrot.slane %v7073_v4, 1 }
 0x266   : > { %v2110_v36 = vadd.f32 %v2108_v61, %v2101_v24  ;;  %v2144_v31 = vpop.permute.xlu0 %2143 }
 0x267   : > { %v2117_v40 = vpop.permute.xlu1 %2116  ;;  %v3061_v33 = vsel %vm2543_vm12, %v3059_v17, %v3060_v51 }
 0x268   : > { %v2119_v26 = vadd.f32 %v2117_v40, %v2110_v36  ;;  %2973 = vrot.lane.b32.xlu0 %v2970_v54, %s8587_s19  ;;  %v3095_v36 = vmul.f32 %v3094_v12, %v6878_v1  ;;  %v3026_v54 = vmul.f32 %v3024_v10, %v6881_v63  ;;  %v3096_v40 = vmul.f32 %v3094_v12, %v6881_v63 }
 0x269   : > { %2933 = vrot.lane.b32.xlu1 %v2930_v23, %s8587_s19 }
 0x26a   : > { %v2128_v9 = vadd.f32 %v2126_v18, %v2119_v26  ;;  %v2162_v37 = vpop.permute.xlu0 %2161  ;;  %v3074_v18 = vmul.f32 %v3073_v43, %v6894_v52  ;;  %v3040_v26 = vmul.f32 %v3038_v14, %v6896_v44 }
 0x26b   : > { %v2135_v47 = vpop.permute.xlu1 %2134 }
 0x26c   : > { %v2137_v59 = vadd.f32 %v2135_v47, %v2128_v9  ;;  %2994 = vrot.lane.b32.xlu0 %v2991_v48, %s8587_s19  ;;  %v3080_v60 = vrot.slane %v3074_v18, 1  ;;  %v3101_v9 = vrot.slane %v3095_v36, 2  ;;  %v3102_v47 = vrot.slane %v3096_v40, 2 }
 0x26d   : > { %2954 = vrot.lane.b32.xlu1 %v2951_v22, %s8587_s19  ;;  %v7101_v48 = vmul.f32 %v3115_v19, %v6896_v44  ;;  %v3076_v22 = vmul.f32 %v3073_v43, %v6920_v32  ;;  %v3118_v18 = vmul.f32 %v3115_v19, %v6920_v32  ;;  %v3139_v36 = vmul.f32 %v3136_v41, %v6913_v53 }
 0x26e   : > { %v2146_v0 = vadd.f32 %v2144_v31, %v2137_v59  ;;  %v2184_v16 = vpop.permute.xlu0 %2183  ;;  %v3082_v56 = vsel %vm2543_vm12, %v3080_v60, %v3081_v25  ;;  %v3062_v59 = vrot.slane %v3055_v6, 1  ;;  %v3103_v10 = vsel %vm2578_vm13, %v3101_v9, %v3102_v47 }
 0x26f   : > { %v2153_v45 = vpop.permute.xlu1 %2152  ;;  %v3123_v8 = vrot.slane %v7101_v48, 2 }
 0x270   : > { %v2155_v2 = vadd.f32 %v2153_v45, %v2146_v0  ;;  %3015 = vrot.lane.b32.xlu0 %v3012_v35, %s8587_s19  ;;  %v3137_v45 = vmul.f32 %v3136_v41, %v6878_v1  ;;  %v3063_v29 = vsel %vm2543_vm12, %v3060_v51, %v3062_v59 }
 0x271   : > { %2975 = vrot.lane.b32.xlu1 %v2972_v38, %s8587_s19  ;;  %v7111_v38 = vmul.f32 %v3136_v41, %v6881_v63 }
 0x272   : > { %v2164_v7 = vadd.f32 %v2162_v37, %v2155_v2  ;;  %v2210_v61 = vpop.permute.xlu0 %2209  ;;  %v3122_v2 = vrot.slane %v3116_v21, 2  ;;  %v3143_v20 = vrot.slane %v3137_v45, 3  ;;  %v3241_v45 = vstv %s7141_s23  ;;  %s7486_s23 = sld [smem:[#allocation5 + $0xe7]] }
 0x273   : > { %v2171_v49 = vpop.permute.xlu1 %2170  ;;  %v3144_v4 = vrot.slane %v7111_v38, 3 }
 0x274   : > { %v2173_v50 = vadd.f32 %v2171_v49, %v2164_v7  ;;  %3029 = vrot.lane.b32.xlu0 %v3025_v58, %s8589_s5  ;;  %v3083_v7 = vrot.slane %v3076_v22, 1 }
 0x275   : > { %2996 = vrot.lane.b32.xlu1 %v2993_v42, %s8587_s19 }
 0x276   : > { %v2186_v39 = vadd.f32 %v2184_v16, %v2173_v50  ;;  %v2231_v62 = vpop.permute.xlu0 %2230  ;;  %v3097_v16 = vmul.f32 %v3094_v12, %v6913_v53  ;;  %v3124_v50 = vsel %vm2578_vm13, %v3122_v2, %v3123_v8 }
 0x277   : > { %v2197_v15 = vpop.permute.xlu1 %2196 }
 0x278   : > { %v2199_v3 = vadd.f32 %v2197_v15, %v2186_v39  ;;  %3043 = vrot.lane.b32.xlu0 %v3039_v27, %s8589_s5  ;;  %v3104_v14 = vrot.slane %v3097_v16, 2  ;;  %v3178_v39 = vstv %s7103_s1  ;;  %v3084_v27 = vsel %vm2543_vm12, %v3081_v25, %v3083_v7  ;;  %s7425_s1 = sld [smem:[#allocation5 + $0x114]] }
 0x279   : > { %3017 = vrot.lane.b32.xlu1 %v3014_v55, %s8587_s19  ;;  %s7094_s19 = sld [smem:[#allocation5 + $0x10c]]  ;;  %v3179_v17 = vmul.f32 %v3178_v39, %v6878_v1  ;;  %v7136_v51 = vmul.f32 %v3178_v39, %v6881_v63  ;;  %v3145_v55 = vsel %vm2613_vm14, %v3143_v20, %v3144_v4  ;;  %v3125_v25 = vrot.slane %v3118_v18, 2 }
 0x27a   : > { %v2212_v24 = vadd.f32 %v2210_v61, %v2199_v3  ;;  %v2248_v28 = vpop.permute.xlu0 %2247  ;;  %v3105_v3 = vsel %vm2578_vm13, %v3102_v47, %v3104_v14  ;;  %v3146_v47 = vrot.slane %v3139_v36, 3  ;;  %v3242_v7 = vmul.f32 %v3241_v45, %v6894_v52 }
 0x27b   : > { %v2223_v31 = vpop.permute.xlu1 %2222  ;;  %v3186_v6 = vrot.slane %v7136_v51, 4  ;;  %v7176_v14 = vmul.f32 %v3241_v45, %v6896_v44 }
 0x27c   : > { %v2225_v30 = vadd.f32 %v2223_v31, %v2212_v24  ;;  %3064 = vrot.lane.b32.xlu0 %v3061_v33, %s8589_s5  ;;  %v3199_v31 = vstv %s7118_s2  ;;  %s7445_s2 = sld [smem:[#allocation5 + $0x111]] }
 0x27d   : > { %3031 = vrot.lane.b32.xlu1 %v3026_v54, %s8589_s5  ;;  %v3249_v18 = vrot.slane %v7176_v14, 5  ;;  %v7258_v14 = vstv %s7215_s6  ;;  %s8294_s6 = sld [smem:[#allocation5 + $0xf3]] }
 0x27e   : > { %v2233_v34 = vadd.f32 %v2231_v62, %v2225_v30  ;;  %v2266_v23 = vpop.permute.xlu0 %2265  ;;  %v3185_v30 = vrot.slane %v3179_v17, 4  ;;  %v3283_v17 = vstv %s4850_s4  ;;  %s7543_s4 = sld [smem:[#allocation5 + $0xf1]] }
 0x27f   : > { %v2239_v37 = vpop.permute.xlu1 %2238  ;;  %v3157_v61 = vstv %s7094_s19  ;;  %s7402_s19 = sld [smem:[#allocation5 + $0xe0]] }
 0x280   : > { %v2241_v57 = vadd.f32 %v2239_v37, %v2233_v34  ;;  %3085 = vrot.lane.b32.xlu0 %v3082_v56, %s8589_s5  ;;  %v3158_v42 = vmul.f32 %v3157_v61, %v6894_v52  ;;  %v7125_v5 = vmul.f32 %v3157_v61, %v6896_v44  ;;  %v3160_v40 = vmul.f32 %v3157_v61, %v6920_v32 }
 0x281   : > { %3045 = vrot.lane.b32.xlu1 %v3040_v26, %s8589_s5  ;;  %v3200_v26 = vmul.f32 %v3199_v31, %v6894_v52  ;;  %v3220_v56 = vstv %s7128_s20  ;;  %v3126_v37 = vsel %vm2578_vm13, %v3123_v8, %v3125_v25  ;;  %v3284_v25 = vmul.f32 %v3283_v17, %v6894_v52  ;;  %s7479_s20 = sld [smem:[#allocation5 + $0xea]] }
 0x282   : > { %v2250_v46 = vadd.f32 %v2248_v28, %v2241_v57  ;;  %v2284_v0 = vpop.permute.xlu0 %2283  ;;  %v3164_v24 = vrot.slane %v3158_v42, 3  ;;  %v3165_v28 = vrot.slane %v7125_v5, 3  ;;  %v3167_v41 = vrot.slane %v3160_v40, 3 }
 0x283   : > { %v2257_v35 = vpop.permute.xlu1 %2256  ;;  %v3221_v57 = vmul.f32 %v3220_v56, %v6878_v1  ;;  %v7162_v59 = vmul.f32 %v3220_v56, %v6881_v63  ;;  %v7205_v40 = vmul.f32 %v3283_v17, %v6896_v44 }
 0x284   : > { %v2259_v11 = vadd.f32 %v2257_v35, %v2250_v46  ;;  %3106 = vrot.lane.b32.xlu0 %v3103_v10, %s8589_s5  ;;  %v3166_v34 = vsel %vm2613_vm14, %v3164_v24, %v3165_v28  ;;  %v3187_v46 = vsel %vm2648_vm1, %v3185_v30, %v3186_v6  ;;  %v3147_v35 = vsel %vm2613_vm14, %v3144_v4, %v3146_v47 }
 0x285   : > { %3066 = vrot.lane.b32.xlu1 %v3063_v29, %s8589_s5  ;;  %v3181_v10 = vmul.f32 %v3178_v39, %v6913_v53  ;;  %v3228_v29 = vrot.slane %v7162_v59, 5  ;;  %v3290_v47 = vrot.slane %v3284_v25, 6  ;;  %v2524_v59 = vstv %s7196_s29  ;;  %s7660_s29 = sld [smem:[#allocation5 + $0xee]] }
 0x286   : > { %v2268_v58 = vadd.f32 %v2266_v23, %v2259_v11  ;;  %v2302_v49 = vpop.permute.xlu0 %2301  ;;  %v7152_v23 = vmul.f32 %v3199_v31, %v6896_v44  ;;  %v3227_v11 = vrot.slane %v3221_v57, 5 }
 0x287   : > { %v2275_v43 = vpop.permute.xlu1 %2274  ;;  %v3188_v4 = vrot.slane %v3181_v10, 4  ;;  %v3304_v10 = vstv %s7188_s27  ;;  %s7593_s27 = sld [smem:[#allocation5 + $0x122]] }
 0x288   : > { %v2277_v62 = vadd.f32 %v2275_v43, %v2268_v58  ;;  %3127 = vrot.lane.b32.xlu0 %v3124_v50, %s8589_s5  ;;  %v3207_v16 = vrot.slane %v7152_v23, 4  ;;  %v3168_v58 = vsel %vm2613_vm14, %v3165_v28, %v3167_v41  ;;  %v3202_v43 = vmul.f32 %v3199_v31, %v6920_v32 }
 0x289   : > { %3087 = vrot.lane.b32.xlu1 %v3084_v27, %s8589_s5  ;;  %v3262_v50 = vstv %s7157_s7  ;;  %v3229_v39 = vsel %vm662_vm9, %v3227_v11, %v3228_v29  ;;  %v8552_v11 = vstv %s7193_s28  ;;  %s7517_s7 = sld [smem:[#allocation5 + $0x11b]] }
 0x28a   : > { %v2286_v13 = vadd.f32 %v2284_v0, %v2277_v62  ;;  %v2324_v15 = vpop.permute.xlu0 %2323  ;;  %v3206_v0 = vrot.slane %v3200_v26, 4  ;;  %v3248_v62 = vrot.slane %v3242_v7, 5  ;;  %v7247_v7 = vstv %s7211_s11  ;;  %s8274_s11 = sld [smem:[#allocation5 + $0x11d]] }
 0x28b   : > { %v2293_v12 = vpop.permute.xlu1 %2292 }
 0x28c   : > { %v2295_v60 = vadd.f32 %v2293_v12, %v2286_v13  ;;  %3148 = vrot.lane.b32.xlu0 %v3145_v55, %s8589_s5  ;;  %v3263_v13 = vmul.f32 %v3262_v50, %v6878_v1  ;;  %v3189_v12 = vsel %vm2648_vm1, %v3186_v6, %v3188_v4  ;;  %v3223_v55 = vmul.f32 %v3220_v56, %v6913_v53 }
 0x28d   : > { %3108 = vrot.lane.b32.xlu1 %v3105_v3, %s8589_s5  ;;  %v3209_v3 = vrot.slane %v3202_v43, 4  ;;  %v3250_v31 = vsel %vm662_vm9, %v3248_v62, %v3249_v18  ;;  %v3333_v62 = vmul.f32 %v7247_v7, %v6878_v1 }
 0x28e   : > { %v2304_v54 = vadd.f32 %v2302_v49, %v2295_v60  ;;  %v2350_v33 = vpop.permute.xlu0 %2349  ;;  %v3208_v49 = vsel %vm2648_vm1, %v3206_v0, %v3207_v16  ;;  %v3244_v60 = vmul.f32 %v3241_v45, %v6920_v32  ;;  %v3286_v0 = vmul.f32 %v3283_v17, %v6920_v32 }
 0x28f   : > { %v2311_v19 = vpop.permute.xlu1 %2310  ;;  %v3210_v6 = vsel %vm2648_vm1, %v3207_v16, %v3209_v3  ;;  %v7231_v16 = vstv %s7200_s30  ;;  %v2555_v17 = vmul.f32 %v7258_v14, %v6894_v52  ;;  %s7677_s30 = sld [smem:[#allocation5 + $0x11f]] }
 0x290   : > { %v2313_v9 = vadd.f32 %v2311_v19, %v2304_v54  ;;  %3169 = vrot.lane.b32.xlu0 %v3166_v34, %s8589_s5  ;;  %v3269_v54 = vrot.slane %v3263_v13, 6  ;;  %v3230_v19 = vrot.slane %v3223_v55, 5  ;;  %v3265_v34 = vmul.f32 %v3262_v50, %v6913_v53 }
 0x291   : > { %3129 = vrot.lane.b32.xlu1 %v3126_v37, %s8589_s5  ;;  %v3293_v43 = vrot.slane %v3286_v0, 6  ;;  %v7292_v55 = vmul.f32 %v7258_v14, %v6896_v44  ;;  %v7336_v0 = vld [vmem:[#allocation4 + $0x8] sm:$0xff] }
 0x292   : > { %v2326_v21 = vadd.f32 %v2324_v15, %v2313_v9  ;;  %v2371_v48 = vpop.permute.xlu0 %2370  ;;  %v7186_v15 = vmul.f32 %v3262_v50, %v6881_v63  ;;  %v3251_v9 = vrot.slane %v3244_v60, 5  ;;  %v3231_v41 = vsel %vm662_vm9, %v3228_v29, %v3230_v19 }
 0x293   : > { %v2337_v22 = vpop.permute.xlu1 %2336  ;;  %v3272_v57 = vrot.slane %v3265_v34, 6  ;;  %v2525_v29 = vmul.f32 %v2524_v59, %v6878_v1  ;;  %v3305_v50 = vmul.f32 %v3304_v10, %v6878_v1 }
 0x294   : > { %v2339_v38 = vadd.f32 %v2337_v22, %v2326_v21  ;;  %3190 = vrot.lane.b32.xlu0 %v3187_v46, %s8589_s5  ;;  %v3291_v21 = vrot.slane %v7205_v40, 6 }
 0x295   : > { %3150 = vrot.lane.b32.xlu1 %v3147_v35, %s8589_s5 }
 0x296   : > { %v2352_v2 = vadd.f32 %v2350_v33, %v2339_v38  ;;  %v2388_v8 = vpop.permute.xlu0 %2387  ;;  %v3270_v33 = vrot.slane %v7186_v15, 6  ;;  %v3252_v38 = vsel %vm662_vm9, %v3249_v18, %v3251_v9  ;;  %v3292_v35 = vsel %vm685_vm11, %v3290_v47, %v3291_v21 }
 0x297   : > { %v2363_v61 = vpop.permute.xlu1 %2362  ;;  %v7276_v18 = vstv %s7221_s13  ;;  %v2527_v15 = vadd.f32 %v2525_v29, %v8552_v11  ;;  %v3294_v34 = vsel %vm685_vm11, %v3291_v21, %v3293_v43  ;;  %v8548_v9 = vrot.slane %v7292_v55, 1 }
 0x298   : > { %v2365_v20 = vadd.f32 %v2363_v61, %v2352_v2  ;;  %3211 = vrot.lane.b32.xlu0 %v3208_v49, %s8589_s5  ;;  %v3271_v37 = vsel %vm685_vm11, %v3269_v54, %v3270_v33  ;;  %v8553_v2 = vstv %s7207_s21  ;;  %v3273_v61 = vsel %vm685_vm11, %v3270_v33, %v3272_v57 }
 0x299   : > { %3171 = vrot.lane.b32.xlu1 %v3168_v58, %s8589_s5  ;;  %v2537_v58 = vmul.f32 %v7231_v16, %v6878_v1  ;;  %v7255_v49 = vmul.f32 %v7231_v16, %v6881_v63  ;;  %v3354_v25 = vmul.f32 %v7276_v18, %v6894_v52  ;;  %v3339_v33 = vrot.slane %v3333_v62, 1 }
 0x29a   : > { %v2373_v42 = vadd.f32 %v2371_v48, %v2365_v20  ;;  %v2406_v5 = vpop.permute.xlu0 %2405  ;;  %v3395_v29 = vstv %s7286_s18  ;;  %s7812_s18 = sld [smem:[#allocation5 + $0x107]] }
 0x29b   : > { %v2379_v27 = vpop.permute.xlu1 %2378  ;;  %v8550_v3 = vrot.slane %v7255_v49, 1 }
 0x29c   : > { %v2381_v51 = vadd.f32 %v2379_v27, %v2373_v42  ;;  %3232 = vrot.lane.b32.xlu0 %v3229_v39, %s8589_s5  ;;  %v2531_v42 = vmul.f32 %v8553_v2, %v6894_v52  ;;  %v3318_v39 = vstv %s7217_s9  ;;  %v7273_v27 = vmul.f32 %v7247_v7, %v6881_v63  ;;  %s8608_s9 = sld [smem:[#allocation34_spill]] }
 0x29d   : > { %3192 = vrot.lane.b32.xlu1 %v3189_v12, %s8589_s5  ;;  %v2544_v12 = vrot.slane %v2537_v58, 1  ;;  %v3319_v60 = vmul.f32 %v3318_v39, %v6894_v52  ;;  %v7559_v2 = vstv %s7486_s23  ;;  %s8091_s23 = sld [smem:[#allocation5 + $0xfa]] }
 0x29e   : > { %v2390_v24 = vadd.f32 %v2388_v8, %v2381_v51  ;;  %v2424_v28 = vpop.permute.xlu0 %2423  ;;  %v7284_v51 = vstv %s7225_s14  ;;  %s7707_s14 = sld [smem:[#allocation5 + $0xcf]] }
 0x29f   : > { %v2397_v36 = vpop.permute.xlu1 %2396  ;;  %v2572_v54 = vmul.f32 %v7284_v51, %v6878_v1  ;;  %v7324_v40 = vmul.f32 %v7284_v51, %v6881_v63  ;;  %v3306_v63 = vmul.f32 %v7336_v0, %v3304_v10 }
 0x2a0   : > { %v2399_v30 = vadd.f32 %v2397_v36, %v2390_v24  ;;  %3253 = vrot.lane.b32.xlu0 %v3250_v31, %s8589_s5  ;;  %v7301_v36 = vmul.f32 %v7276_v18, %v6896_v44 }
 0x2a1   : > { %3213 = vrot.lane.b32.xlu1 %v3210_v6, %s8589_s5  ;;  %v7307_v6 = vstv %s7239_s16  ;;  %s7738_s16 = sld [smem:[#allocation5 + $0x100]] }
 0x2a2   : > { %v2408_v26 = vadd.f32 %v2406_v5, %v2399_v30  ;;  %v2442_v23 = vpop.permute.xlu0 %2441  ;;  %v3340_v30 = vrot.slane %v7273_v27, 1  ;;  %v3375_v57 = vmul.f32 %v7307_v6, %v6878_v1  ;;  %s285_s13 = scalar_lea.vmem %s8608_s9, %s4606_s8  ;;  %s7730_s8 = sld [smem:[#allocation5 + $0xf9]] }
 0x2a3   : > { %v2415_v56 = vpop.permute.xlu1 %2414  ;;  %s8305_s9 = sld [smem:[#allocation5 + $0x124]] }
 0x2a4   : > { %v2417_v48 = vadd.f32 %v2415_v56, %v2408_v26  ;;  %3274 = vrot.lane.b32.xlu0 %v3271_v37, %s8589_s5  ;;  %v2533_v26 = vadd.f32 %v2531_v42, %v2527_v15  ;;  %v2546_v56 = vsel %vm2543_vm12, %v2544_v12, %v8550_v3  ;;  %v7327_v37 = vstv %s7260_s17  ;;  %s7785_s17 = sld [smem:[#allocation5 + $0xd6]] }
 0x2a5   : > { %3234 = vrot.lane.b32.xlu1 %v3231_v41, %s8589_s5  ;;  %v3361_v41 = vrot.slane %v7301_v36, 1  ;;  %v2590_v58 = vmul.f32 %v7327_v37, %v6894_v52 }
 0x2a6   : > { %v2426_v22 = vadd.f32 %v2424_v28, %v2417_v48  ;;  %v2464_v46 = vpop.permute.xlu0 %2463  ;;  %v3360_v48 = vrot.slane %v3354_v25, 1  ;;  %v2551_v1 = vadd.f32 %v2546_v56, %v2533_v26  ;;  %v7400_v25 = vstv %s7329_s22  ;;  %s7932_s22 = sld [smem:[#allocation5 + $0x115]] }
 0x2a7   : > { %v2433_v45 = vpop.permute.xlu1 %2432 }
 0x2a8   : > { %v2435_v8 = vadd.f32 %v2433_v45, %v2426_v22  ;;  %3295 = vrot.lane.b32.xlu0 %v3292_v35, %s8589_s5  ;;  %v3341_v45 = vsel %vm2543_vm12, %v3339_v33, %v3340_v30  ;;  %v3362_v43 = vsel %vm2543_vm12, %v3360_v48, %v3361_v41 }
 0x2a9   : > { %3255 = vrot.lane.b32.xlu1 %v3252_v38, %s8589_s5  ;;  %v7346_v38 = vmul.f32 %v7336_v0, %v7307_v6 }
 0x2aa   : > { %v2444_v20 = vadd.f32 %v2442_v23, %v2435_v8  ;;  %v2490_v4 = vpop.permute.xlu0 %2489  ;;  %v2561_v23 = vrot.slane %v2555_v17, 1  ;;  %v3335_v8 = vmul.f32 %v7247_v7, %v6913_v53  ;;  %v3320_v53 = vmul.f32 %v3318_v39, %v6896_v44 }
 0x2ab   : > { %v2451_v5 = vpop.permute.xlu1 %2450  ;;  %v3382_v42 = vrot.slane %v7346_v38, 2  ;;  %v7386_v39 = vstv %s7309_s24  ;;  %v3356_v17 = vmul.f32 %v7276_v18, %v6920_v32  ;;  %v7408_v18 = vld [vmem:[#allocation4] sm:$0xff]  ;;  %v2526_v38 = vmul.f32 %v7336_v0, %v2524_v59  ;;  %s7847_s24 = sld [smem:[#allocation5 + $0xdd]] }
 0x2ac   : > { %v2453_v13 = vadd.f32 %v2451_v5, %v2444_v20  ;;  %3309 = vrot.lane.b32.xlu0 %v3305_v50, %s8590_s3  ;;  %v2563_v10 = vsel %vm2543_vm12, %v2561_v23, %v8548_v9  ;;  %v7364_v20 = vmul.f32 %v7327_v37, %v6896_v44  ;;  %v3381_v50 = vrot.slane %v3375_v57, 2  ;;  %v7377_v5 = vld [vmem:[#allocation4 + $0x18] sm:$0xff] }
 0x2ad   : > { %3276 = vrot.lane.b32.xlu1 %v3273_v61, %s8589_s5  ;;  %v8547_v61 = vrot.slane %v7324_v40, 2  ;;  %v3396_v62 = vmul.f32 %v7377_v5, %v3395_v29  ;;  %v3342_v15 = vrot.slane %v3335_v8, 1  ;;  %v2568_v12 = vadd.f32 %v2563_v10, %v2551_v1 }
 0x2ae   : > { %v2466_v24 = vadd.f32 %v2464_v46, %v2453_v13  ;;  %v7294_v28 = vpop.permute.xlu0 %2749  ;;  %v2579_v46 = vrot.slane %v2572_v54, 2  ;;  %v7380_v13 = vld [vmem:[#allocation4 + $0x20] sm:$0xff]  ;;  %v8546_v54 = vrot.slane %v7364_v20, 2  ;;  %v3417_v33 = vmul.f32 %v7408_v18, %v7386_v39 }
 0x2af   : > { %v2477_v31 = vpop.permute.xlu1 %2476  ;;  %v7383_v44 = vmul.f32 %v7380_v13, %v3395_v29  ;;  %v3383_v26 = vsel %vm2578_vm13, %v3381_v50, %v3382_v42  ;;  %v3402_v23 = vrot.slane %v3396_v62, 2  ;;  %v3343_v48 = vsel %vm2543_vm12, %v3340_v30, %v3342_v15 }
 0x2b0   : > { %v2479_v19 = vadd.f32 %v2477_v31, %v2466_v24  ;;  %3323 = vrot.lane.b32.xlu0 %v3319_v60, %s8590_s3  ;;  %v2581_v24 = vsel %vm2578_vm13, %v2579_v46, %v8547_v61  ;;  %v7397_v60 = vstv %s7314_s12  ;;  %v2596_v31 = vrot.slane %v2590_v58, 2  ;;  %s7908_s12 = sld [smem:[#allocation5 + $0xe4]] }
 0x2b1   : > { %3297 = vrot.lane.b32.xlu1 %v3294_v34, %s8589_s5  ;;  %s7348_s5 = sld [smem:[#allocation5 + $0x10d]]  ;;  %v3403_v56 = vrot.slane %v7383_v44, 2  ;;  %v3363_v57 = vrot.slane %v3356_v17, 1  ;;  %v7439_v1 = vmul.f32 %v7336_v0, %v7397_v60  ;;  %v7443_v27 = vmul.f32 %v7377_v5, %v7400_v25 }
 0x2b2   : > { %v2492_v47 = vadd.f32 %v2490_v4, %v2479_v19  ;;  %v7331_v21 = vpop.permute.xlu0 %2763  ;;  %v7414_v19 = vmul.f32 %v7336_v0, %v7386_v39  ;;  %v3423_v10 = vrot.slane %v3417_v33, 3  ;;  %v7470_v62 = vmul.f32 %v7380_v13, %v7400_v25 }
 0x2b3   : > { %v2503_v22 = vpop.permute.xlu1 %2502  ;;  %v3404_v50 = vsel %vm2578_vm13, %v3402_v23, %v3403_v56  ;;  %v3364_v15 = vsel %vm2543_vm12, %v3361_v41, %v3363_v57  ;;  %v2631_v33 = vrot.slane %v7443_v27, 3  ;;  %v7527_v9 = vstv %s7445_s2  ;;  %s8079_s2 = sld [smem:[#allocation5 + $0xc9]] }
 0x2b4   : > { %v7350_v35 = vadd.f32 %v2503_v22, %v2492_v47  ;;  %3344 = vrot.lane.b32.xlu0 %v3341_v45, %s8590_s3  ;;  %v7431_v22 = vld [vmem:[#allocation4 + $0x10] sm:$0x3f]  ;;  %v2607_v45 = vmul.f32 %v7408_v18, %v7397_v60  ;;  %v8551_v58 = vrot.slane %v7414_v19, 3  ;;  %v8597_v44 = vstv %s7207_s21  ;;  %s7688_s21 = sld [smem:[#allocation5 + $0xc8]] }
 0x2b5   : > { %3311 = vrot.lane.b32.xlu1 %v3306_v63, %s8590_s3  ;;  %v3377_v46 = vmul.f32 %v7431_v22, %v7307_v6  ;;  %v2586_v63 = vadd.f32 %v2581_v24, %v2568_v12  ;;  %v7450_v6 = vld [vmem:[#allocation4 + $0x28] sm:$0x3f]  ;;  %v7477_v12 = vstv %s7391_s0  ;;  %s7980_s0 = sld [smem:[#allocation5 + $0x11c]] }
 0x2b6   : > { %v4807_v4 = vmul.f32 -1.442695, %v7350_v35  ;;  %v7369_v7 = vpop.permute.xlu0 %2784  ;;  %v3398_v8 = vmul.f32 %v7450_v6, %v3395_v29  ;;  %v2614_v24 = vrot.slane %v2607_v45, 3  ;;  %v3459_v27 = vmul.f32 %v7408_v18, %v7477_v12 }
 0x2b7   : > { %v7374_v52 = vpop.permute.xlu1 %2751  ;;  %v7423_v47 = vstv %s7348_s5  ;;  %v3384_v17 = vrot.slane %v3377_v46, 2  ;;  %s7961_s5 = sld [smem:[#allocation5 + $0xeb]] }
 0x2b8   : > { %4987 = vpow2.f32 %v4807_v4  ;;  %3365 = vrot.lane.b32.xlu0 %v3362_v43, %s8590_s3  ;;  %v3438_v4 = vmul.f32 %v7377_v5, %v7423_v47  ;;  %v7466_v29 = vmul.f32 %v7380_v13, %v7423_v47  ;;  %v3405_v23 = vrot.slane %v3398_v8, 2 }
 0x2b9   : > { %3325 = vrot.lane.b32.xlu1 %v3320_v53, %s8590_s3  ;;  %v2598_v53 = vsel %vm2578_vm13, %v2596_v31, %v8546_v54  ;;  %v8549_v31 = vrot.slane %v7439_v1, 3  ;;  %v3500_v8 = vstv %s7479_s20  ;;  %s8084_s20 = sld [smem:[#allocation5 + $0xd0]] }
 0x2ba   : > { %v7406_v32 = vpop.permute.xlu0 %2805  ;;  %v2603_v36 = vadd.f32 %v2598_v53, %v2586_v63  ;;  %v3444_v57 = vrot.slane %v3438_v4, 3  ;;  %v8555_v45 = vrot.slane %v7466_v29, 3  ;;  %v7501_v63 = vmul.f32 %v7336_v0, %v7477_v12 }
 0x2bb   : > { %v7416_v34 = vpop.permute.xlu1 %2765  ;;  %v7504_v53 = vstv %s7425_s1  ;;  %v3385_v4 = vsel %vm2578_vm13, %v3382_v42, %v3384_v17  ;;  %v2616_v54 = vsel %vm2613_vm14, %v2614_v24, %v8549_v31  ;;  %s8024_s1 = sld [smem:[#allocation5 + $0x123]] }
 0x2bc   : > { %3386 = vrot.lane.b32.xlu0 %v3383_v26, %s8590_s3  ;;  %v7484_v26 = vstv %s7402_s19  ;;  %v3480_v24 = vmul.f32 %v7377_v5, %v7504_v53  ;;  %v8554_v31 = vrot.slane %v7501_v63, 4  ;;  %v2621_v11 = vadd.f32 %v2616_v54, %v2603_v36  ;;  %s7999_s19 = sld [smem:[#allocation5 + $0xf2]] }
 0x2bd   : > { %3346 = vrot.lane.b32.xlu1 %v3343_v48, %s8590_s3  ;;  %v3425_v48 = vsel %vm2613_vm14, %v3423_v10, %v8551_v58  ;;  %v7509_v10 = vmul.f32 %v7408_v18, %v7484_v26  ;;  %v7524_v61 = vmul.f32 %v7336_v0, %v7484_v26  ;;  %v3440_v58 = vmul.f32 %v7450_v6, %v7423_v47 }
 0x2be   : > { %v7448_v30 = vpop.permute.xlu0 %2826  ;;  %v8599_v54 = vrot.slane %v7470_v62, 3 }
 0x2bf   : > { %v7459_v43 = vpop.permute.xlu1 %2786 }
 0x2c0   : > { %3407 = vrot.lane.b32.xlu0 %v3404_v50, %s8590_s3  ;;  %v3419_v50 = vmul.f32 %v7431_v22, %v7386_v39  ;;  %v2539_v39 = vmul.f32 %v7431_v22, %v7231_v16  ;;  %v3406_v16 = vsel %vm2578_vm13, %v3403_v56, %v3405_v23  ;;  %v2532_v56 = vmul.f32 %v7380_v13, %v8597_v44 }
 0x2c1   : > { %3367 = vrot.lane.b32.xlu1 %v3364_v15, %s8590_s3  ;;  %v8598_v23 = vstv %s7193_s28  ;;  %v2633_v36 = vsel %vm2613_vm14, %v2631_v33, %v8599_v54  ;;  %v3447_v44 = vrot.slane %v3440_v58, 3  ;;  %v3461_v33 = vmul.f32 %v7431_v22, %v7477_v12  ;;  %s7638_s28 = sld [smem:[#allocation5 + $0x118]] }
 0x2c2   : > { %v7489_v41 = vpop.permute.xlu0 %2847  ;;  %v3426_v3 = vrot.slane %v3419_v50, 3  ;;  %v8601_v58 = vrot.slane %v7255_v49, 1 }
 0x2c3   : > { %v7494_v46 = vpop.permute.xlu1 %2807 }
 0x2c4   : > { %3428 = vrot.lane.b32.xlu0 %v3425_v48, %s8590_s3  ;;  %v7541_v48 = vmul.f32 %v7380_v13, %v7504_v53 }
 0x2c5   : > { %v4988_v15 = vpop.eup %4987  ;;  %3388 = vrot.lane.b32.xlu1 %v3385_v4, %s8590_s3  ;;  %v3446_v4 = vsel %vm2613_vm14, %v3444_v57, %v8555_v45  ;;  %v2547_v57 = vrot.slane %v2539_v39, 1  ;;  %v3501_v39 = vmul.f32 %v7408_v18, %v3500_v8 }
 0x2c6   : > { %v2509_v42 = vadd.f32 1.0, %v4988_v15  ;;  %v7535_v17 = vpop.permute.xlu0 %2868  ;;  %v3465_v15 = vrot.slane %v3459_v27, 4  ;;  %v2557_v27 = vmul.f32 %v7450_v6, %v7258_v14  ;;  %v8556_v47 = vrot.slane %v7541_v48, 4 }
 0x2c7   : > { %v7545_v59 = vpop.permute.xlu1 %2828  ;;  %v8600_v14 = vrot.slane %v7414_v19, 3  ;;  %v2574_v19 = vmul.f32 %v7431_v22, %v7284_v51  ;;  %v3507_v45 = vrot.slane %v3501_v39, 5  ;;  %v3482_v39 = vmul.f32 %v7450_v6, %v7504_v53 }
 0x2c8   : > { %8596 = vst [vmem:[#allocation22_spill] sm:$0xff] %v7545_v59  ;;  %4989 = vrcp.f32 %v2509_v42  ;;  %3449 = vrot.lane.b32.xlu0 %v3446_v4, %s8590_s3  ;;  %v2528_v59 = vadd.f32 %v2526_v38, %v8598_v23  ;;  %v3486_v42 = vrot.slane %v3480_v24, 4  ;;  %v3467_v38 = vsel %vm2648_vm1, %v3465_v15, %v8554_v31 }
 0x2c9   : > { %3409 = vrot.lane.b32.xlu1 %v3406_v16, %s8590_s3  ;;  %v7582_v16 = vmul.f32 %v7336_v0, %v3500_v8  ;;  %v3427_v24 = vsel %vm2613_vm14, %v8600_v14, %v3426_v3  ;;  %v7591_v23 = vstv %s7517_s7  ;;  %v2649_v15 = vrot.slane %v7509_v10, 4  ;;  %s8098_s7 = sld [smem:[#allocation5 + $0x101]] }
 0x2ca   : > { %v7569_v50 = vpop.permute.xlu0 %2889  ;;  %v2534_v31 = vadd.f32 %v2532_v56, %v2528_v59  ;;  %v2564_v3 = vrot.slane %v2557_v27, 1  ;;  %v3488_v14 = vsel %vm2648_vm1, %v3486_v42, %v8556_v47  ;;  %v7609_v10 = vstv %s7543_s4  ;;  %s8115_s4 = sld [smem:[#allocation5 + $0xd7]] }
 0x2cb   : > { %v7575_v4 = vpop.permute.xlu1 %2849  ;;  %v8557_v51 = vrot.slane %v7582_v16, 5  ;;  %v3522_v59 = vmul.f32 %v7377_v5, %v7591_v23  ;;  %v7618_v49 = vmul.f32 %v7380_v13, %v7591_v23  ;;  %v7622_v56 = vmul.f32 %v7377_v5, %v7527_v9 }
 0x2cc   : > { %3470 = vrot.lane.b32.xlu0 %v3467_v38, %s8590_s3  ;;  %v2548_v38 = vsel %vm2543_vm12, %v8601_v58, %v2547_v57  ;;  %v8602_v57 = vrot.slane %v7466_v29, 3  ;;  %v3468_v42 = vrot.slane %v3461_v33, 4  ;;  %v7632_v58 = vmul.f32 %v7380_v13, %v7527_v9 }
 0x2cd   : > { %3430 = vrot.lane.b32.xlu1 %v3427_v24, %s8590_s3  ;;  %v2638_v24 = vadd.f32 %v2633_v36, %v2621_v11  ;;  %v7636_v47 = vmul.f32 %v7408_v18, %v7559_v2  ;;  %v2552_v29 = vadd.f32 %v2548_v38, %v2534_v31  ;;  %v2582_v53 = vrot.slane %v2574_v19, 2 }
 0x2ce   : > { %v7603_v12 = vpop.permute.xlu0 %2910  ;;  %v3448_v27 = vsel %vm2613_vm14, %v8602_v57, %v3447_v44  ;;  %v8603_v44 = vrot.slane %v7292_v55, 1  ;;  %v2592_v11 = vmul.f32 %v7450_v6, %v7327_v37  ;;  %v3509_v31 = vsel %vm662_vm9, %v3507_v45, %v8557_v51 }
 0x2cf   : > { %v7611_v54 = vpop.permute.xlu1 %2870  ;;  %v3528_v38 = vrot.slane %v3522_v59, 5  ;;  %v7658_v19 = vmul.f32 %v7336_v0, %v7609_v10  ;;  %v8605_v37 = vrot.slane %v7501_v63, 4  ;;  %v7668_v45 = vstv %s7593_s27  ;;  %s8138_s27 = sld [smem:[#allocation5 + $0x108]] }
 0x2d0   : > { %3491 = vrot.lane.b32.xlu0 %v3488_v14, %s8590_s3  ;;  %v2565_v33 = vsel %vm2543_vm12, %v8603_v44, %v2564_v3  ;;  %v3543_v14 = vmul.f32 %v7408_v18, %v7609_v10  ;;  %v3503_v44 = vmul.f32 %v7431_v22, %v3500_v8  ;;  %v8606_v51 = vrot.slane %v7524_v61, 4 }
 0x2d1   : > { %3451 = vrot.lane.b32.xlu1 %v3448_v27, %s8590_s3  ;;  %v3469_v3 = vsel %vm2648_vm1, %v8605_v37, %v3468_v42  ;;  %v3489_v27 = vrot.slane %v3482_v39, 4  ;;  %v2609_v63 = vmul.f32 %v7431_v22, %v7397_v60  ;;  %v2569_v42 = vadd.f32 %v2565_v33, %v2552_v29 }
 0x2d2   : > { %v7646_v36 = vpop.permute.xlu0 %2931  ;;  %v2651_v55 = vsel %vm2648_vm1, %v2649_v15, %v8606_v51  ;;  %v2599_v39 = vrot.slane %v2592_v11, 2  ;;  %v3549_v51 = vrot.slane %v3543_v14, 6  ;;  %v3564_v33 = vmul.f32 %v7377_v5, %v7668_v45 }
 0x2d3   : > { %v7650_v57 = vpop.permute.xlu1 %2891  ;;  %v8611_v14 = vrot.slane %v7541_v48, 4  ;;  %v2683_v48 = vrot.slane %v7636_v47, 5 }
 0x2d4   : > { %8604 = vst [vmem:[#allocation23_spill] sm:$0xff] %v7650_v57  ;;  %3512 = vrot.lane.b32.xlu0 %v3509_v31, %s8590_s3  ;;  %v7675_v57 = vmul.f32 %v7336_v0, %v7559_v2  ;;  %v8607_v31 = vrot.slane %v7324_v40, 2  ;;  %v7718_v40 = vstv %s7638_s28  ;;  %s8153_s28 = sld [smem:[#allocation5 + $0xde]] }
 0x2d5   : > { %v4990_v59 = vpop.eup %4989  ;;  %3472 = vrot.lane.b32.xlu1 %v3469_v3, %s8590_s3  ;;  %v3490_v3 = vsel %vm2648_vm1, %v8611_v14, %v3489_v27  ;;  %v8612_v27 = vrot.slane %v7364_v20, 2 }
 0x2d6   : > { %v2512_v8 = vmul.f32 %v4990_v59, %v7350_v35  ;;  %v2583_v37 = vsel %vm2578_vm13, %v8607_v31, %v2582_v53  ;;  %v7686_v15 = vpop.permute.xlu0 %2952  ;;  %v8610_v35 = vrot.slane %v7618_v49, 5  ;;  %v7705_v53 = vmul.f32 %v7380_v13, %v7668_v45 }
 0x2d7   : > { %v7695_v60 = vpop.permute.xlu1 %2912  ;;  %v3510_v59 = vrot.slane %v3503_v44, 5  ;;  %v2666_v31 = vrot.slane %v7622_v56, 4  ;;  %v2600_v44 = vsel %vm2578_vm13, %v8612_v27, %v2599_v39 }
 0x2d8   : > { %8609 = vst [vmem:[#allocation24_spill] sm:$0xff] %v7695_v60  ;;  %v3530_v29 = vsel %vm662_vm9, %v3528_v38, %v8610_v35  ;;  %v2513_v11 = vmul.f32 0.33333334, %v2512_v8  ;;  %v3524_v38 = vmul.f32 %v7450_v6, %v7591_v23  ;;  %v8559_v35 = vrot.slane %v7632_v58, 4 }
 0x2d9   : > { %3533 = vrot.lane.b32.xlu0 %v3530_v29, %s8590_s3  ;;  %v2587_v60 = vadd.f32 %v2583_v37, %v2569_v42  ;;  %3493 = vrot.lane.b32.xlu1 %v3490_v3, %s8590_s3  ;;  %v2617_v8 = vrot.slane %v2609_v63, 3  ;;  %v2627_v23 = vmul.f32 %v7450_v6, %v7400_v25  ;;  %v2656_v29 = vadd.f32 %v2651_v55, %v2638_v24 }
 0x2da   : > { %2514 = vst.msk [vmem:[%s285_s13] sm:$0xf] %vm1550_vm15, %v2513_v11  ;;  %v7728_v56 = vpop.permute.xlu0 %2973  ;;  %v8613_v37 = vrot.slane %v7658_v19, 6  ;;  %v3570_v11 = vrot.slane %v3564_v33, 6  ;;  %v8560_v20 = vrot.slane %v7705_v53, 6  ;;  %v8558_v25 = vrot.slane %v7675_v57, 5 }
 0x2db   : > { %v7732_v42 = vpop.permute.xlu1 %2933  ;;  %v8614_v63 = vrot.slane %v7582_v16, 5  ;;  %v3531_v24 = vrot.slane %v3524_v38, 5  ;;  %v3545_v55 = vmul.f32 %v7431_v22, %v7609_v10  ;;  %v2694_v33 = vmul.f32 %v7377_v5, %v7718_v40  ;;  %s8337_s13 = sld [smem:[#allocation5 + $0xca]] }
 0x2dc   : > { %v3551_v47 = vsel %vm685_vm11, %v3549_v51, %v8613_v37  ;;  %v2668_v51 = vsel %vm2648_vm1, %v2666_v31, %v8559_v35  ;;  %v2644_v16 = vmul.f32 %v7431_v22, %v7484_v26  ;;  %v2604_v14 = vadd.f32 %v2600_v44, %v2587_v60 }
 0x2dd   : > { %v3511_v39 = vsel %vm662_vm9, %v8614_v63, %v3510_v59  ;;  %3554 = vrot.lane.b32.xlu0 %v3551_v47, %s8590_s3  ;;  %v7757_v3 = vmul.f32 %v7380_v13, %v7718_v40  ;;  %v7760_v59 = vstv %s7660_s29  ;;  %v2634_v10 = vrot.slane %v2627_v23, 3  ;;  %s8210_s29 = sld [smem:[#allocation5 + $0xe5]] }
 0x2de   : > { %3514 = vrot.lane.b32.xlu1 %v3511_v39, %s8590_s3  ;;  %v8615_v38 = vrot.slane %v7439_v1, 3  ;;  %v7765_v27 = vpop.permute.xlu0 %2994  ;;  %v7768_v37 = vstv %s7677_s30  ;;  %v3572_v26 = vsel %vm685_vm11, %v3570_v11, %v8560_v20  ;;  %v3584_v60 = vstv %s7688_s21  ;;  %s8240_s30 = sld [smem:[#allocation5 + $0x116]] }
 0x2df   : > { %v7770_v47 = vpop.permute.xlu1 %2954  ;;  %v7777_v44 = vstv %s7707_s14  ;;  %v2673_v63 = vadd.f32 %v2668_v51, %v2656_v29  ;;  %v8617_v23 = vrot.slane %v7618_v49, 5  ;;  %v3552_v39 = vrot.slane %v3545_v55, 6  ;;  %s8247_s21 = sld [smem:[#allocation5 + $0xec]] }
 0x2e0   : > { %v2618_v31 = vsel %vm2613_vm14, %v8615_v38, %v2617_v8  ;;  %8616 = vst [vmem:[#allocation25_spill] sm:$0xff] %v7770_v47  ;;  %v3566_v8 = vmul.f32 %v7450_v6, %v7668_v45  ;;  %v2685_v11 = vsel %vm662_vm9, %v2683_v48, %v8558_v25  ;;  %v2652_v38 = vrot.slane %v2644_v16, 4  ;;  %s4895_s14 = sld [smem:[#allocation5 + $0xd1]] }
 0x2e1   : > { %v3532_v1 = vsel %vm662_vm9, %v8617_v23, %v3531_v24  ;;  %3575 = vrot.lane.b32.xlu0 %v3572_v26, %s8590_s3  ;;  %v2662_v49 = vmul.f32 %v7450_v6, %v7527_v9  ;;  %v2622_v29 = vadd.f32 %v2618_v31, %v2604_v14  ;;  %v8618_v24 = vrot.slane %v7470_v62, 3 }
 0x2e2   : > { %3535 = vrot.lane.b32.xlu1 %v3532_v1, %s8590_s3  ;;  %v7796_v51 = vpop.permute.xlu0 %3015  ;;  %v3585_v45 = vmul.f32 %v7408_v18, %v3584_v60  ;;  %v3613_v26 = vmul.f32 %v7408_v18, %v7777_v44  ;;  %v7803_v48 = vmul.f32 %v7336_v0, %v7777_v44  ;;  %v2700_v16 = vrot.slane %v2694_v33, 5 }
 0x2e3   : > { %v2635_v55 = vsel %vm2613_vm14, %v8618_v24, %v2634_v10  ;;  %v7806_v14 = vpop.permute.xlu1 %2975  ;;  %v3598_v31 = vstv %s7730_s8  ;;  %v7810_v62 = vstv %s7738_s16  ;;  %v2711_v10 = vmul.f32 %v7408_v18, %v7760_v59  ;;  %s8346_s8 = sld [smem:[#allocation5 + $0xfb]] }
 0x2e4   : > { %8619 = vst [vmem:[#allocation26_spill] sm:$0xff] %v7806_v14  ;;  %v7818_v23 = vmul.f32 %v7336_v0, %v7760_v59  ;;  %v8620_v1 = vrot.slane %v7658_v19, 6  ;;  %v3573_v24 = vrot.slane %v3566_v8, 6  ;;  %v2669_v25 = vrot.slane %v2662_v49, 4  ;;  %s4896_s16 = sld [smem:[#allocation5 + $0x102]] }
 0x2e5   : > { %3589 = vrot.lane.b32.xlu0 %v3585_v45, %s5126_s10  ;;  %v2679_v35 = vmul.f32 %v7431_v22, %v7559_v2  ;;  %v2639_v20 = vadd.f32 %v2635_v55, %v2622_v29  ;;  %v8621_v9 = vrot.slane %v7524_v61, 4  ;;  %v3599_v19 = vmul.f32 %v7377_v5, %v3598_v31 }
 0x2e6   : > { %v3553_v33 = vsel %vm685_vm11, %v8620_v1, %v3552_v39  ;;  %v7830_v47 = vpop.permute.xlu0 %3029  ;;  %v3619_v39 = vrot.slane %v3613_v26, 1  ;;  %v3634_v49 = vmul.f32 %v7377_v5, %v7810_v62  ;;  %v2690_v45 = vadd.f32 %v2685_v11, %v2673_v63 }
 0x2e7   : > { %v2653_v14 = vsel %vm2648_vm1, %v8621_v9, %v2652_v38  ;;  %3556 = vrot.lane.b32.xlu1 %v3553_v33, %s8590_s3  ;;  %v8622_v2 = vrot.slane %v7757_v3, 5  ;;  %v2728_v38 = vmul.f32 %v7377_v5, %v7768_v37  ;;  %v7841_v29 = vpop.permute.xlu1 %2996  ;;  %v7845_v55 = vmul.f32 %v7380_v13, %v7810_v62 }
 0x2e8   : > { %8623 = vst [vmem:[#allocation27_spill] sm:$0xff] %v7841_v29  ;;  %v2717_v26 = vrot.slane %v2711_v10, 6  ;;  %v7851_v9 = vmul.f32 %v7380_v13, %v7768_v37  ;;  %v8624_v63 = vrot.slane %v7705_v53, 6  ;;  %v2686_v33 = vrot.slane %v2679_v35, 5 }
 0x2e9   : > { %v2702_v61 = vsel %vm662_vm9, %v2700_v16, %v8622_v2  ;;  %3603 = vrot.lane.b32.xlu0 %v3599_v19, %s5126_s10  ;;  %v3654_v16 = vstv %s7785_s17  ;;  %v2696_v2 = vmul.f32 %v7450_v6, %v7718_v40  ;;  %v2657_v8 = vadd.f32 %v2653_v14, %v2639_v20  ;;  %s4897_s17 = sld [smem:[#allocation5 + $0xd8]] }
 0x2ea   : > { %v3574_v11 = vsel %vm685_vm11, %v8624_v63, %v3573_v24  ;;  %v8625_v10 = vrot.slane %v7632_v58, 4  ;;  %v3586_v53 = vmul.f32 %v7336_v0, %v3584_v60  ;;  %v7866_v24 = vpop.permute.xlu0 %3043  ;;  %v8626_v19 = vrot.slane %v7803_v48, 1 }
 0x2eb   : > { %3577 = vrot.lane.b32.xlu1 %v3574_v11, %s8590_s3  ;;  %v3640_v1 = vrot.slane %v3634_v49, 1  ;;  %v7871_v35 = vpop.permute.xlu1 %3017  ;;  %v3655_v20 = vmul.f32 %v7408_v18, %v3654_v16  ;;  %v7876_v14 = vmul.f32 %v7336_v0, %v3654_v16  ;;  %v3675_v58 = vstv %s7812_s18  ;;  %s7883_s3 = sld [smem:[#allocation5 + $0x10e]] }
 0x2ec   : > { %v2670_v29 = vsel %vm2648_vm1, %v8625_v10, %v2669_v25  ;;  %v3621_v63 = vsel %vm2543_vm12, %v3619_v39, %v8626_v19  ;;  %8627 = vst [vmem:[#allocation28_spill] sm:$0xff] %v7871_v35  ;;  %v2707_v25 = vadd.f32 %v2702_v61, %v2690_v45  ;;  %v2734_v11 = vrot.slane %v2728_v38, 6  ;;  %s4898_s18 = sld [smem:[#allocation5 + $0x109]] }
 0x2ed   : > { %3624 = vrot.lane.b32.xlu0 %v3621_v63, %s5126_s10  ;;  %v3615_v39 = vmul.f32 %v7431_v22, %v7777_v44  ;;  %v8628_v49 = vrot.slane %v7818_v23, 6  ;;  %v2703_v19 = vrot.slane %v2696_v2, 5  ;;  %v2713_v40 = vmul.f32 %v7431_v22, %v7760_v59 }
 0x2ee   : > { %v2674_v45 = vadd.f32 %v2670_v29, %v2657_v8  ;;  %v8629_v61 = vrot.slane %v7675_v57, 5  ;;  %v3600_v44 = vmul.f32 %v7380_v13, %v3598_v31  ;;  %v7895_v63 = vpop.permute.xlu0 %3064  ;;  %v3676_v60 = vmul.f32 %v7377_v5, %v3675_v58 }
 0x2ef   : > { %v2719_v10 = vsel %vm685_vm11, %v2717_v26, %v8628_v49  ;;  %3591 = vrot.lane.b32.xlu1 %v3586_v53, %s5126_s10  ;;  %v7899_v35 = vmul.f32 %v7380_v13, %v3675_v58  ;;  %v7901_v26 = vpop.permute.xlu1 %3031  ;;  %v8631_v59 = vrot.slane %v7845_v55, 1  ;;  %v3661_v29 = vrot.slane %v3655_v20, 2 }
 0x2f0   : > { %v2687_v38 = vsel %vm662_vm9, %v8629_v61, %v2686_v33  ;;  %8630 = vst [vmem:[#allocation29_spill] sm:$0xff] %v7901_v26  ;;  %v3662_v57 = vrot.slane %v7876_v14, 2  ;;  %v3696_v2 = vstv %s7847_s24  ;;  %v2724_v31 = vadd.f32 %v2719_v10, %v2707_v25  ;;  %s8375_s24 = sld [smem:[#allocation5 + $0xdf]] }
 0x2f1   : > { %v3642_v8 = vsel %vm2543_vm12, %v3640_v1, %v8631_v59  ;;  %v8632_v33 = vrot.slane %v7851_v9, 6  ;;  %v3622_v49 = vrot.slane %v3615_v39, 1  ;;  %v3636_v61 = vmul.f32 %v7450_v6, %v7810_v62 }
 0x2f2   : > { %3645 = vrot.lane.b32.xlu0 %v3642_v8, %s5126_s10  ;;  %v8633_v26 = vrot.slane %v7757_v3, 5  ;;  %v2720_v20 = vrot.slane %v2713_v40, 6  ;;  %v2730_v14 = vmul.f32 %v7450_v6, %v7768_v37  ;;  %v2691_v25 = vadd.f32 %v2687_v38, %v2674_v45  ;;  %v7922_v10 = vpop.permute.xlu0 %3085 }
 0x2f3   : > { %v2736_v53 = vsel %vm685_vm11, %v2734_v11, %v8632_v33  ;;  %3605 = vrot.lane.b32.xlu1 %v3600_v44, %s5126_s10  ;;  %v3682_v11 = vrot.slane %v3676_v60, 2  ;;  %v3683_v39 = vrot.slane %v7899_v35, 2  ;;  %v3697_v59 = vmul.f32 %v7408_v18, %v3696_v2  ;;  %v7929_v3 = vpop.permute.xlu1 %3045 }
 0x2f4   : > { %v2704_v1 = vsel %vm662_vm9, %v8633_v26, %v2703_v19  ;;  %v7927_v62 = vmul.f32 %v7336_v0, %v3696_v2  ;;  %v3663_v40 = vsel %vm2578_vm13, %v3661_v29, %v3662_v57  ;;  %v8634_v37 = vrot.slane %v7803_v48, 1 }
 0x2f5   : > { %v3643_v45 = vrot.slane %v3636_v61, 1  ;;  %v3657_v35 = vmul.f32 %v7431_v22, %v3654_v16  ;;  %v3717_v60 = vstv %s7883_s3  ;;  %v2741_v38 = vadd.f32 %v2736_v53, %v2724_v31  ;;  %s4900_s3 = sld [smem:[#allocation5 + $0x110]] }
 0x2f6   : > { %v3623_v19 = vsel %vm2543_vm12, %v8634_v37, %v3622_v49  ;;  %3666 = vrot.lane.b32.xlu0 %v3663_v40, %s5126_s10  ;;  %v2737_v44 = vrot.slane %v2730_v14, 6  ;;  %v2708_v26 = vadd.f32 %v2704_v1, %v2691_v25  ;;  %v8635_v8 = vrot.slane %v7818_v23, 6  ;;  %v7944_v33 = vpop.permute.xlu0 %3106 }
 0x2f7   : > { %3626 = vrot.lane.b32.xlu1 %v3623_v19, %s5126_s10  ;;  %v3684_v48 = vsel %vm2578_vm13, %v3682_v11, %v3683_v39  ;;  %v3678_v49 = vmul.f32 %v7450_v6, %v3675_v58  ;;  %v3703_v61 = vrot.slane %v3697_v59, 3  ;;  %v3704_v16 = vrot.slane %v7927_v62, 3  ;;  %v7950_v31 = vpop.permute.xlu1 %3066 }
 0x2f8   : > { %v2721_v29 = vsel %vm685_vm11, %v8635_v8, %v2720_v20  ;;  %v2755_v40 = vadd.f32 %v7294_v28, %v2741_v38  ;;  %v3718_v53 = vmul.f32 %v7377_v5, %v3717_v60  ;;  %v7954_v23 = vmul.f32 %v7380_v13, %v3717_v60 }
 0x2f9   : > { %v3738_v1 = vstv %s7908_s12  ;;  %v8636_v20 = vrot.slane %v7845_v55, 1  ;;  %v3664_v25 = vrot.slane %v3657_v35, 2  ;;  %v8637_v28 = vrot.slane %v7851_v9, 6  ;;  %s8410_s12 = sld [smem:[#allocation5 + $0x117]] }
 0x2fa   : > { %3687 = vrot.lane.b32.xlu0 %v3684_v48, %s5126_s10  ;;  %v2725_v11 = vadd.f32 %v2721_v29, %v2708_v26  ;;  %v2769_v59 = vadd.f32 %v7331_v21, %v2755_v40  ;;  %v7968_v62 = vpop.permute.xlu0 %3127  ;;  %v3685_v55 = vrot.slane %v3678_v49, 2  ;;  %v3705_v37 = vsel %vm2613_vm14, %v3703_v61, %v3704_v16 }
 0x2fb   : > { %v3644_v14 = vsel %vm2543_vm12, %v8636_v20, %v3643_v45  ;;  %v2738_v58 = vsel %vm685_vm11, %v8637_v28, %v2737_v44  ;;  %v3739_v19 = vmul.f32 %v7408_v18, %v3738_v1  ;;  %v7973_v45 = vmul.f32 %v7336_v0, %v3738_v1  ;;  %v7976_v9 = vpop.permute.xlu1 %3087 }
 0x2fc   : > { %3647 = vrot.lane.b32.xlu1 %v3644_v14, %s5126_s10  ;;  %v2790_v35 = vadd.f32 %v7369_v7, %v2769_v59  ;;  %v3724_v38 = vrot.slane %v3718_v53, 3  ;;  %v3725_v44 = vrot.slane %v7954_v23, 3  ;;  %v3759_v21 = vstv %s7932_s22  ;;  %s8421_s22 = sld [smem:[#allocation5 + $0xed]] }
 0x2fd   : > { %v3665_v26 = vsel %vm2578_vm13, %v3662_v57, %v3664_v25  ;;  %v3699_v8 = vmul.f32 %v7431_v22, %v3696_v2  ;;  %v2742_v29 = vadd.f32 %v2738_v58, %v2725_v11  ;;  %v3745_v49 = vrot.slane %v3739_v19, 4 }
 0x2fe   : > { %3708 = vrot.lane.b32.xlu0 %v3705_v37, %s5126_s10  ;;  %v2811_v48 = vadd.f32 %v7406_v32, %v2790_v35  ;;  %v7987_v7 = vpop.permute.xlu0 %3148  ;;  %v3746_v61 = vrot.slane %v7973_v45, 4  ;;  %v3760_v40 = vmul.f32 %v7377_v5, %v3759_v21  ;;  %v7992_v53 = vmul.f32 %v7380_v13, %v3759_v21 }
 0x2ff   : > { %v7995_v23 = vpop.permute.xlu1 %3108  ;;  %v3686_v2 = vsel %vm2578_vm13, %v3683_v39, %v3685_v55  ;;  %v3726_v32 = vsel %vm2613_vm14, %v3724_v38, %v3725_v44  ;;  %v2756_v20 = vadd.f32 %v7374_v52, %v2742_v29  ;;  %v3706_v14 = vrot.slane %v3699_v8, 3 }
 0x300   : > { %3668 = vrot.lane.b32.xlu1 %v3665_v26, %s5126_s10  ;;  %v2832_v57 = vadd.f32 %v7448_v30, %v2811_v48  ;;  %v3720_v25 = vmul.f32 %v7450_v6, %v3717_v60  ;;  %v3780_v28 = vstv %s7961_s5  ;;  %v3741_v30 = vmul.f32 %v7431_v22, %v3738_v1  ;;  %s8434_s5 = sld [smem:[#allocation5 + $0x11e]] }
 0x301   : > { %v2770_v39 = vadd.f32 %v7416_v34, %v2756_v20  ;;  %v3747_v59 = vsel %vm2648_vm1, %v3745_v49, %v3746_v61  ;;  %v3766_v52 = vrot.slane %v3760_v40, 4  ;;  %v3767_v55 = vrot.slane %v7992_v53, 4 }
 0x302   : > { %3729 = vrot.lane.b32.xlu0 %v3726_v32, %s5126_s10  ;;  %v2853_v58 = vadd.f32 %v7489_v41, %v2832_v57  ;;  %v8009_v11 = vpop.permute.xlu0 %3169  ;;  %v3781_v60 = vmul.f32 %v7408_v18, %v3780_v28  ;;  %v8018_v41 = vmul.f32 %v7336_v0, %v3780_v28  ;;  %v3801_v45 = vstv %s7980_s0  ;;  %v8638_v57 = vld [vmem:[#allocation22_spill] sm:$0xff]  ;;  %s8438_s0 = sld [smem:[#allocation5 + $0xf4]] }
 0x303   : > { %v8014_v19 = vpop.permute.xlu1 %3129  ;;  %v2791_v1 = vadd.f32 %v7459_v43, %v2770_v39  ;;  %v3707_v34 = vsel %vm2613_vm14, %v3704_v16, %v3706_v14  ;;  %v3727_v35 = vrot.slane %v3720_v25, 3  ;;  %v3748_v38 = vrot.slane %v3741_v30, 4 }
 0x304   : > { %3689 = vrot.lane.b32.xlu1 %v3686_v2, %s5126_s10  ;;  %v2874_v37 = vadd.f32 %v7535_v17, %v2853_v58  ;;  %v3768_v29 = vsel %vm2648_vm1, %v3766_v52, %v3767_v55  ;;  %v3802_v43 = vmul.f32 %v7377_v5, %v3801_v45  ;;  %v8034_v16 = vmul.f32 %v7380_v13, %v3801_v45 }
 0x305   : > { %v2812_v26 = vadd.f32 %v7494_v46, %v2791_v1  ;;  %v3787_v40 = vrot.slane %v3781_v60, 5  ;;  %v3822_v53 = vstv %s7999_s19  ;;  %v3728_v46 = vsel %vm2613_vm14, %v3725_v44, %v3727_v35  ;;  %s4906_s19 = sld [smem:[#allocation5 + $0x125]] }
 0x306   : > { %3750 = vrot.lane.b32.xlu0 %v3747_v59, %s5126_s10  ;;  %v2895_v17 = vadd.f32 %v7569_v50, %v2874_v37  ;;  %v8029_v8 = vpop.permute.xlu0 %3190  ;;  %v3788_v50 = vrot.slane %v8018_v41, 5  ;;  %v3762_v32 = vmul.f32 %v7450_v6, %v3759_v21  ;;  %v3808_v25 = vrot.slane %v3802_v43, 5 }
 0x307   : > { %v8037_v49 = vpop.permute.xlu1 %3150  ;;  %v2833_v2 = vadd.f32 %v8638_v57, %v2812_v26  ;;  %v3809_v58 = vrot.slane %v8034_v16, 5  ;;  %v3823_v30 = vmul.f32 %v7408_v18, %v3822_v53  ;;  %v3749_v21 = vsel %vm2648_vm1, %v3746_v61, %v3748_v38  ;;  %v8640_v26 = vld [vmem:[#allocation24_spill] sm:$0xff] }
 0x308   : > { %3710 = vrot.lane.b32.xlu1 %v3707_v34, %s5126_s10  ;;  %v2916_v48 = vadd.f32 %v7603_v12, %v2895_v17  ;;  %v8058_v59 = vmul.f32 %v7336_v0, %v3822_v53  ;;  %v3769_v52 = vrot.slane %v3762_v32, 4  ;;  %v3783_v37 = vmul.f32 %v7431_v22, %v3780_v28 }
 0x309   : > { %v2854_v12 = vadd.f32 %v7575_v4, %v2833_v2  ;;  %v3843_v60 = vstv %s8024_s1  ;;  %v3810_v34 = vsel %vm662_vm9, %v3808_v25, %v3809_v58  ;;  %v3804_v0 = vmul.f32 %v7450_v6, %v3801_v45  ;;  %v8642_v25 = vld [vmem:[#allocation26_spill] sm:$0xff] }
 0x30a   : > { %3771 = vrot.lane.b32.xlu0 %v3768_v29, %s5126_s10  ;;  %v2937_v20 = vadd.f32 %v7646_v36, %v2916_v48  ;;  %v8048_v14 = vpop.permute.xlu0 %3211  ;;  %v3789_v36 = vsel %vm662_vm9, %v3787_v40, %v3788_v50  ;;  %v3829_v35 = vrot.slane %v3823_v30, 6  ;;  %v3830_v28 = vrot.slane %v8058_v59, 6 }
 0x30b   : > { %v8053_v39 = vpop.permute.xlu1 %3171  ;;  %v2875_v4 = vadd.f32 %v7611_v54, %v2854_v12  ;;  %v3844_v38 = vmul.f32 %v7377_v5, %v3843_v60  ;;  %v3770_v43 = vsel %vm2648_vm1, %v3767_v55, %v3769_v52  ;;  %v3790_v16 = vrot.slane %v3783_v37, 5 }
 0x30c   : > { %3731 = vrot.lane.b32.xlu1 %v3728_v46, %s5126_s10  ;;  %v2958_v44 = vadd.f32 %v7686_v15, %v2937_v20  ;;  %v8639_v15 = vld [vmem:[#allocation23_spill] sm:$0xff]  ;;  %v3811_v40 = vrot.slane %v3804_v0, 5  ;;  %v3831_v55 = vsel %vm685_vm11, %v3829_v35, %v3830_v28  ;;  %v3825_v12 = vmul.f32 %v7431_v22, %v3822_v53 }
 0x30d   : > { %v2896_v1 = vadd.f32 %v8639_v15, %v2875_v4  ;;  %v3850_v46 = vrot.slane %v3844_v38, 6  ;;  %v3864_v4 = vstv %s8079_s2  ;;  %v8643_v53 = vld [vmem:[#allocation27_spill] sm:$0xff]  ;;  %v3846_v37 = vmul.f32 %v7450_v6, %v3843_v60  ;;  %v8644_v15 = vld [vmem:[#allocation28_spill] sm:$0xff] }
 0x30e   : > { %3792 = vrot.lane.b32.xlu0 %v3789_v36, %s5126_s10  ;;  %v2979_v41 = vadd.f32 %v7728_v56, %v2958_v44  ;;  %v8067_v61 = vpop.permute.xlu0 %3232  ;;  %v8077_v56 = vmul.f32 %v7380_v13, %v3843_v60  ;;  %v3832_v52 = vrot.slane %v3825_v12, 6  ;;  %v3878_v0 = vstv %s8091_s23  ;;  %v8645_v60 = vld [vmem:[#allocation29_spill] sm:$0xff] }
 0x30f   : > { %v8072_v17 = vpop.permute.xlu1 %3192  ;;  %v2917_v29 = vadd.f32 %v8640_v26, %v2896_v1 }
 0x310   : > { %3752 = vrot.lane.b32.xlu1 %v3749_v21, %s5126_s10  ;;  %v3000_v54 = vadd.f32 %v7765_v27, %v2979_v41  ;;  %v3851_v32 = vrot.slane %v8077_v56, 6  ;;  %v3892_v41 = vstv %s8084_s20  ;;  %v8132_v56 = vld [vmem:[#allocation4 + $0x8] sm:$0xff]  ;;  %s8646_s20 = sld [smem:[#allocation35_spill]] }
 0x311   : > { %v2938_v45 = vadd.f32 %v7732_v42, %v2917_v29  ;;  %v3791_v42 = vsel %vm662_vm9, %v3788_v50, %v3790_v16  ;;  %v3812_v50 = vsel %vm662_vm9, %v3809_v58, %v3811_v40  ;;  %v3893_v38 = vmul.f32 %v7408_v18, %v3892_v41 }
 0x312   : > { %3813 = vrot.lane.b32.xlu0 %v3810_v34, %s5126_s10  ;;  %v3021_v27 = vadd.f32 %v7796_v51, %v3000_v54  ;;  %v8089_v48 = vpop.permute.xlu0 %3253  ;;  %v8641_v51 = vld [vmem:[#allocation25_spill] sm:$0xff]  ;;  %v3852_v59 = vsel %vm685_vm11, %v3850_v46, %v3851_v32  ;;  %v3865_v34 = vmul.f32 %v7408_v18, %v3864_v4  ;;  %v8135_v6 = vmul.f32 %v8132_v56, %v3892_v41 }
 0x313   : > { %v8094_v2 = vpop.permute.xlu1 %3213  ;;  %v2959_v20 = vadd.f32 %v8641_v51, %v2938_v45  ;;  %v3833_v29 = vsel %vm685_vm11, %v3830_v28, %v3832_v52  ;;  %v3879_v45 = vmul.f32 %v7377_v5, %v3878_v0  ;;  %v3934_v51 = vstv %s8115_s4 }
 0x314   : > { %3773 = vrot.lane.b32.xlu1 %v3770_v43, %s5126_s10  ;;  %v3035_v57 = vadd.f32 %v7830_v47, %v3021_v27  ;;  %v3853_v43 = vrot.slane %v3846_v37, 6  ;;  %v3900_v46 = vrot.slane %v8135_v6, 1  ;;  %v8201_v52 = vstv %s8153_s28  ;;  %v8222_v6 = vld [vmem:[#allocation4] sm:$0xff] }
 0x315   : > { %v2980_v30 = vadd.f32 %v8642_v25, %v2959_v20  ;;  %v3935_v25 = vmul.f32 %v7408_v18, %v3934_v51 }
 0x316   : > { %3834 = vrot.lane.b32.xlu0 %v3831_v55, %s5126_s10  ;;  %v3049_v47 = vadd.f32 %v7866_v24, %v3035_v57  ;;  %v8107_v44 = vpop.permute.xlu0 %3274  ;;  %v3854_v20 = vsel %vm685_vm11, %v3851_v32, %v3853_v43 }
 0x317   : > { %v8110_v36 = vpop.permute.xlu1 %3234  ;;  %v3001_v24 = vadd.f32 %v8643_v53, %v2980_v30 }
 0x318   : > { %3794 = vrot.lane.b32.xlu1 %v3791_v42, %s5126_s10  ;;  %v3070_v21 = vadd.f32 %v7895_v63, %v3049_v47 }
 0x319   : > { %v3022_v58 = vadd.f32 %v8644_v15, %v3001_v24  ;;  %v8192_v24 = vld [vmem:[#allocation4 + $0x18] sm:$0xff] }
 0x31a   : > { %3855 = vrot.lane.b32.xlu0 %v3852_v59, %s5126_s10  ;;  %v3091_v63 = vadd.f32 %v7922_v10, %v3070_v21  ;;  %v8124_v1 = vpop.permute.xlu0 %3295  ;;  %v3913_v10 = vstv %s8098_s7  ;;  %v8179_v21 = vstv %s8138_s27 }
 0x31b   : > { %v8129_v54 = vpop.permute.xlu1 %3255  ;;  %v3036_v26 = vadd.f32 %v8645_v60, %v3022_v58  ;;  %v3914_v40 = vmul.f32 %v7377_v5, %v3913_v10  ;;  %v8151_v57 = vmul.f32 %v7380_v13, %v3913_v10  ;;  %v3866_v13 = vmul.f32 %v8132_v56, %v3864_v4 }
 0x31c   : > { %3815 = vrot.lane.b32.xlu1 %v3812_v50, %s5126_s10  ;;  %v3112_v35 = vadd.f32 %v7944_v33, %v3091_v63  ;;  %v3895_v50 = vmul.f32 %v7431_v22, %v3892_v41  ;;  %v3941_v41 = vrot.slane %v3935_v25, 2 }
 0x31d   : > { %v3050_v16 = vadd.f32 %v7929_v3, %v3036_v26  ;;  %v3920_v12 = vrot.slane %v3914_v40, 1  ;;  %v3921_v47 = vrot.slane %v8151_v57, 1 }
 0x31e   : > { %3869 = vrot.lane.b32.xlu0 %v3865_v34, %s5127_s26  ;;  %v3133_v33 = vadd.f32 %v7968_v62, %v3112_v35  ;;  %v8146_v27 = vpop.permute.xlu0 %3309  ;;  %v3899_v62 = vrot.slane %v3893_v38, 1  ;;  %v3902_v58 = vrot.slane %v3895_v50, 1  ;;  %v8214_v34 = vld [vmem:[#allocation4 + $0x28] sm:$0x3f]  ;;  %v8219_v35 = vld [vmem:[#allocation4 + $0x10] sm:$0x3f] }
 0x31f   : > { %v8156_v55 = vpop.permute.xlu1 %3276  ;;  %v3071_v3 = vadd.f32 %v7950_v31, %v3050_v16  ;;  %v3937_v38 = vmul.f32 %v8219_v35, %v3934_v51 }
 0x320   : > { %3836 = vrot.lane.b32.xlu1 %v3833_v29, %s5126_s10  ;;  %v3154_v28 = vadd.f32 %v7987_v7, %v3133_v33  ;;  %v3901_v30 = vsel %vm2543_vm12, %v3899_v62, %v3900_v46  ;;  %v3903_v40 = vsel %vm2543_vm12, %v3900_v46, %v3902_v58 }
 0x321   : > { %v3092_v7 = vadd.f32 %v7976_v9, %v3071_v3 }
 0x322   : > { %3883 = vrot.lane.b32.xlu0 %v3879_v45, %s5127_s26  ;;  %v3175_v5 = vadd.f32 %v8009_v11, %v3154_v28  ;;  %v8167_v42 = vpop.permute.xlu0 %3323  ;;  %v8176_v11 = vmul.f32 %v8132_v56, %v3934_v51 }
 0x323   : > { %v8172_v32 = vpop.permute.xlu1 %3297  ;;  %v3113_v9 = vadd.f32 %v7995_v23, %v3092_v7  ;;  %v3956_v23 = vmul.f32 %v8192_v24, %v8179_v21 }
 0x324   : > { %3857 = vrot.lane.b32.xlu1 %v3854_v20, %s5126_s10  ;;  %v3196_v31 = vadd.f32 %v8029_v8, %v3175_v5  ;;  %s8184_s10 = sld [smem:[#allocation5 + $0x10f]]  ;;  %v8188_v8 = vld [vmem:[#allocation4 + $0x20] sm:$0xff]  ;;  %v3942_v63 = vrot.slane %v8176_v11, 2 }
 0x325   : > { %v3880_v59 = vmul.f32 %v8188_v8, %v3878_v0  ;;  %v3134_v4 = vadd.f32 %v8014_v19, %v3113_v9  ;;  %v8198_v22 = vmul.f32 %v8188_v8, %v8179_v21  ;;  %v3922_v19 = vsel %vm2543_vm12, %v3920_v12, %v3921_v47 }
 0x326   : > { %3904 = vrot.lane.b32.xlu0 %v3901_v30, %s5127_s26  ;;  %v3217_v18 = vadd.f32 %v8048_v14, %v3196_v31  ;;  %v3345_v53 = vpop.permute.xlu0 %3344  ;;  %v3962_v29 = vrot.slane %v3956_v23, 2  ;;  %v3943_v16 = vsel %vm2578_vm13, %v3941_v41, %v3942_v63  ;;  %v4018_v12 = vstv %s8210_s29 }
 0x327   : > { %v8204_v37 = vpop.permute.xlu1 %3311  ;;  %v3155_v15 = vadd.f32 %v8037_v49, %v3134_v4  ;;  %v3977_v49 = vmul.f32 %v8222_v6, %v8201_v52  ;;  %v3958_v31 = vmul.f32 %v8214_v34, %v8179_v21  ;;  %v8268_v57 = vmul.f32 %v8132_v56, %v4018_v12 }
 0x328   : > { %3871 = vrot.lane.b32.xlu1 %v3866_v13, %s5127_s26  ;;  %v3238_v14 = vadd.f32 %v8067_v61, %v3217_v18  ;;  %v3916_v61 = vmul.f32 %v8214_v34, %v3913_v10  ;;  %v3963_v10 = vrot.slane %v8198_v22, 2  ;;  %v3979_v4 = vmul.f32 %v8219_v35, %v8201_v52 }
 0x329   : > { %v3176_v60 = vadd.f32 %v8053_v39, %v3155_v15  ;;  %v4060_v15 = vstv %s8247_s21 }
 0x32a   : > { %3925 = vrot.lane.b32.xlu0 %v3922_v19, %s5127_s26  ;;  %v3259_v0 = vadd.f32 %v8089_v48, %v3238_v14  ;;  %v3366_v26 = vpop.permute.xlu0 %3365  ;;  %v8230_v48 = vmul.f32 %v8132_v56, %v8201_v52  ;;  %v3923_v28 = vrot.slane %v3916_v61, 1  ;;  %v3997_v39 = vstv %s8184_s10 }
 0x32b   : > { %v8233_v33 = vpop.permute.xlu1 %3325  ;;  %v3197_v45 = vadd.f32 %v8072_v17, %v3176_v60  ;;  %v3964_v20 = vsel %vm2578_vm13, %v3962_v29, %v3963_v10  ;;  %v3983_v17 = vrot.slane %v3977_v49, 3  ;;  %v3998_v7 = vmul.f32 %v8192_v24, %v3997_v39 }
 0x32c   : > { %3885 = vrot.lane.b32.xlu1 %v3880_v59, %s5127_s26  ;;  %v3280_v43 = vadd.f32 %v8107_v44, %v3259_v0  ;;  %v3944_v44 = vrot.slane %v3937_v38, 2  ;;  %v3984_v46 = vrot.slane %v8230_v48, 3  ;;  %v3965_v59 = vrot.slane %v3958_v31, 2 }
 0x32d   : > { %v3218_v51 = vadd.f32 %v8094_v2, %v3197_v45  ;;  %v3924_v2 = vsel %vm2543_vm12, %v3921_v47, %v3923_v28  ;;  %v4000_v22 = vmul.f32 %v8214_v34, %v3997_v39 }
 0x32e   : > { %3946 = vrot.lane.b32.xlu0 %v3943_v16, %s5127_s26  ;;  %v3301_v62 = vadd.f32 %v8124_v1, %v3280_v43  ;;  %v3387_v3 = vpop.permute.xlu0 %3386  ;;  %v8252_v1 = vmul.f32 %v8188_v8, %v3997_v39  ;;  %v3945_v11 = vsel %vm2578_vm13, %v3942_v63, %v3944_v44  ;;  %v3985_v21 = vsel %vm2613_vm14, %v3983_v17, %v3984_v46 }
 0x32f   : > { %v3347_v13 = vpop.permute.xlu1 %3346  ;;  %v3239_v25 = vadd.f32 %v8110_v36, %v3218_v51  ;;  %v4019_v36 = vmul.f32 %v8222_v6, %v4018_v12  ;;  %v4026_v63 = vrot.slane %v8268_v57, 4  ;;  %v3966_v49 = vsel %vm2578_vm13, %v3963_v10, %v3965_v59 }
 0x330   : > { %3906 = vrot.lane.b32.xlu1 %v3903_v40, %s5127_s26  ;;  %v3315_v5 = vadd.f32 %v8146_v27, %v3301_v62  ;;  %v4005_v18 = vrot.slane %v8252_v1, 3  ;;  %v4007_v16 = vrot.slane %v4000_v22, 3  ;;  %v4081_v62 = vstv %s8274_s11 }
 0x331   : > { %v3260_v30 = vadd.f32 %v8129_v54, %v3239_v25  ;;  %v4025_v41 = vrot.slane %v4019_v36, 4  ;;  %v4021_v51 = vmul.f32 %v8219_v35, %v4018_v12  ;;  %v4082_v1 = vmul.f32 %v8192_v24, %v4081_v62 }
 0x332   : > { %3967 = vrot.lane.b32.xlu0 %v3964_v20, %s5127_s26  ;;  %v3329_v27 = vadd.f32 %v8167_v42, %v3315_v5  ;;  %v3408_v9 = vpop.permute.xlu0 %3407  ;;  %v4004_v42 = vrot.slane %v3998_v7, 3 }
 0x333   : > { %v3368_v50 = vpop.permute.xlu1 %3367  ;;  %v3281_v54 = vadd.f32 %v8156_v55, %v3260_v30  ;;  %v4027_v45 = vsel %vm2648_vm1, %v4025_v41, %v4026_v63  ;;  %v4028_v31 = vrot.slane %v4021_v51, 4  ;;  %v4102_v30 = vstv %s8294_s6 }
 0x334   : > { %3927 = vrot.lane.b32.xlu1 %v3924_v2, %s5127_s26  ;;  %v3350_v47 = vadd.f32 %v3345_v53, %v3329_v27  ;;  %v4039_v53 = vstv %s8240_s30  ;;  %v4006_v61 = vsel %vm2613_vm14, %v4004_v42, %v4005_v18  ;;  %v4088_v57 = vrot.slane %v4082_v1, 5 }
 0x335   : > { %v3302_v14 = vadd.f32 %v8172_v32, %v3281_v54  ;;  %v4040_v0 = vmul.f32 %v8192_v24, %v4039_v53  ;;  %v8289_v52 = vmul.f32 %v8188_v8, %v4039_v53  ;;  %v3986_v32 = vrot.slane %v3979_v4, 3 }
 0x336   : > { %3988 = vrot.lane.b32.xlu0 %v3985_v21, %s5127_s26  ;;  %v3371_v23 = vadd.f32 %v3366_v26, %v3350_v47  ;;  %v3429_v19 = vpop.permute.xlu0 %3428  ;;  %v4061_v26 = vmul.f32 %v8222_v6, %v4060_v15  ;;  %v4042_v27 = vmul.f32 %v8214_v34, %v4039_v53  ;;  %v4103_v42 = vmul.f32 %v8222_v6, %v4102_v30 }
 0x337   : > { %v3389_v58 = vpop.permute.xlu1 %3388  ;;  %v3316_v38 = vadd.f32 %v8204_v37, %v3302_v14  ;;  %v8301_v37 = vmul.f32 %v8132_v56, %v4060_v15  ;;  %v4046_v28 = vrot.slane %v4040_v0, 4  ;;  %v4047_v39 = vrot.slane %v8289_v52, 4 }
 0x338   : > { %3948 = vrot.lane.b32.xlu1 %v3945_v11, %s5127_s26  ;;  %v3392_v55 = vadd.f32 %v3387_v3, %v3371_v23  ;;  %v4067_v20 = vrot.slane %v4061_v26, 5  ;;  %v4123_v54 = vstv %s8305_s9  ;;  %v4029_v4 = vsel %vm2648_vm1, %v4026_v63, %v4028_v31 }
 0x339   : > { %v3330_v29 = vadd.f32 %v8233_v33, %v3316_v38  ;;  %v3987_v33 = vsel %vm2613_vm14, %v3984_v46, %v3986_v32  ;;  %v4068_v7 = vrot.slane %v8301_v37, 5  ;;  %v4008_v46 = vsel %vm2613_vm14, %v4005_v18, %v4007_v16 }
 0x33a   : > { %4009 = vrot.lane.b32.xlu0 %v4006_v61, %s5127_s26  ;;  %v3413_v60 = vadd.f32 %v3408_v9, %v3392_v55  ;;  %v3450_v43 = vpop.permute.xlu0 %3449  ;;  %v4048_v12 = vsel %vm2648_vm1, %v4046_v28, %v4047_v39  ;;  %v8328_v18 = vmul.f32 %v8132_v56, %v4102_v30  ;;  %v4049_v53 = vrot.slane %v4042_v27, 4 }
 0x33b   : > { %v3410_v10 = vpop.permute.xlu1 %3409  ;;  %v3351_v44 = vadd.f32 %v3347_v13, %v3330_v29  ;;  %v8316_v13 = vmul.f32 %v8188_v8, %v4081_v62  ;;  %v4069_v36 = vsel %vm662_vm9, %v4067_v20, %v4068_v7  ;;  %v4063_v23 = vmul.f32 %v8219_v35, %v4060_v15 }
 0x33c   : > { %3969 = vrot.lane.b32.xlu1 %v3966_v49, %s5127_s26  ;;  %v3434_v40 = vadd.f32 %v3429_v19, %v3413_v60  ;;  %v4124_v41 = vmul.f32 %v8192_v24, %v4123_v54  ;;  %v4109_v61 = vrot.slane %v4103_v42, 6  ;;  %v4110_v63 = vrot.slane %v8328_v18, 6 }
 0x33d   : > { %v3372_v17 = vadd.f32 %v3368_v50, %v3351_v44  ;;  %v4089_v47 = vrot.slane %v8316_v13, 5  ;;  %v4125_v0 = vmul.f32 %v8188_v8, %v4123_v54  ;;  %v4050_v15 = vsel %vm2648_vm1, %v4047_v39, %v4049_v53 }
 0x33e   : > { %4030 = vrot.lane.b32.xlu0 %v4027_v45, %s5127_s26  ;;  %v3455_v3 = vadd.f32 %v3450_v43, %v3434_v40  ;;  %v3471_v5 = vpop.permute.xlu0 %3470  ;;  %v4070_v38 = vrot.slane %v4063_v23, 5  ;;  %v4084_v49 = vmul.f32 %v8214_v34, %v4081_v62  ;;  %v4111_v29 = vsel %vm685_vm11, %v4109_v61, %v4110_v63 }
 0x33f   : > { %v3431_v48 = vpop.permute.xlu1 %3430  ;;  %v3393_v2 = vadd.f32 %v3389_v58, %v3372_v17  ;;  %v4090_v19 = vsel %vm662_vm9, %v4088_v57, %v4089_v47  ;;  %v4130_v43 = vrot.slane %v4124_v41, 6  ;;  %v4131_v16 = vrot.slane %v4125_v0, 6 }
 0x340   : > { %3990 = vrot.lane.b32.xlu1 %v3987_v33, %s5127_s26  ;;  %v3476_v25 = vadd.f32 %v3471_v5, %v3455_v3  ;;  %v4071_v37 = vsel %vm662_vm9, %v4068_v7, %v4070_v38  ;;  %v4105_v40 = vmul.f32 %v8219_v35, %v4102_v30  ;;  %v4144_v33 = vstv %s8337_s13 }
 0x341   : > { %v3414_v11 = vadd.f32 %v3410_v10, %v3393_v2  ;;  %v4091_v10 = vrot.slane %v4084_v49, 5  ;;  %v4132_v44 = vsel %vm685_vm11, %v4130_v43, %v4131_v16  ;;  %v4172_v51 = vstv %s4895_s14 }
 0x342   : > { %4051 = vrot.lane.b32.xlu0 %v4048_v12, %s5127_s26  ;;  %v3492_v9 = vpop.permute.xlu0 %3491  ;;  %v4112_v17 = vrot.slane %v4105_v40, 6  ;;  %v4126_v5 = vmul.f32 %v8214_v34, %v4123_v54  ;;  %v4145_v1 = vmul.f32 %v8222_v6, %v4144_v33  ;;  %v4173_v13 = vmul.f32 %v8222_v6, %v4172_v51 }
 0x343   : > { %v3452_v50 = vpop.permute.xlu1 %3451  ;;  %v3497_v21 = vadd.f32 %v3492_v9, %v3476_v25  ;;  %v3435_v59 = vadd.f32 %v3431_v48, %v3414_v11  ;;  %v4092_v20 = vsel %vm662_vm9, %v4089_v47, %v4091_v10  ;;  %v4158_v25 = vstv %s8346_s8 }
 0x344   : > { %4011 = vrot.lane.b32.xlu1 %v4008_v46, %s5127_s26  ;;  %v8362_v12 = vmul.f32 %v8132_v56, %v4172_v51  ;;  %v4113_v31 = vsel %vm685_vm11, %v4110_v63, %v4112_v17  ;;  %v4133_v27 = vrot.slane %v4126_v5, 6  ;;  %v4193_v30 = vstv %s4896_s16 }
 0x345   : > { %v3456_v22 = vadd.f32 %v3452_v50, %v3435_v59  ;;  %v4159_v9 = vmul.f32 %v8192_v24, %v4158_v25  ;;  %v4214_v57 = vstv %s4897_s17  ;;  %v4194_v42 = vmul.f32 %v8192_v24, %v4193_v30 }
 0x346   : > { %4072 = vrot.lane.b32.xlu0 %v4069_v36, %s5127_s26  ;;  %v3513_v14 = vpop.permute.xlu0 %3512  ;;  %v4179_v36 = vrot.slane %v4173_v13, 1  ;;  %v8371_v18 = vmul.f32 %v8188_v8, %v4193_v30  ;;  %v4134_v59 = vsel %vm685_vm11, %v4131_v16, %v4133_v27  ;;  %v4215_v23 = vmul.f32 %v8222_v6, %v4214_v57 }
 0x347   : > { %v3473_v55 = vpop.permute.xlu1 %3472  ;;  %v3518_v58 = vadd.f32 %v3513_v14, %v3497_v21  ;;  %v4180_v21 = vrot.slane %v8362_v12, 1  ;;  %v4235_v14 = vstv %s4898_s18  ;;  %v4175_v0 = vmul.f32 %v8219_v35, %v4172_v51 }
 0x348   : > { %4032 = vrot.lane.b32.xlu1 %v4029_v4, %s5127_s26  ;;  %v3477_v52 = vadd.f32 %v3473_v55, %v3456_v22  ;;  %v4146_v4 = vmul.f32 %v8132_v56, %v4144_v33  ;;  %v8381_v22 = vmul.f32 %v8132_v56, %v4214_v57  ;;  %v4201_v61 = vrot.slane %v8371_v18, 1 }
 0x349   : > { %v4181_v55 = vsel %vm2543_vm12, %v4179_v36, %v4180_v21  ;;  %v4236_v49 = vmul.f32 %v8192_v24, %v4235_v14  ;;  %v4256_v10 = vstv %s8375_s24 }
 0x34a   : > { %4093 = vrot.lane.b32.xlu0 %v4090_v19, %s5127_s26  ;;  %v4222_v38 = vrot.slane %v8381_v22, 2  ;;  %v4257_v51 = vmul.f32 %v8222_v6, %v4256_v10 }
 0x34b   : > { %v3534_v32 = vpop.permute.xlu0 %3533  ;;  %v3494_v60 = vpop.permute.xlu1 %3493 }
 0x34c   : > { %4053 = vrot.lane.b32.xlu1 %v4050_v15, %s5127_s26  ;;  %v3539_v26 = vadd.f32 %v3534_v32, %v3518_v58  ;;  %v3498_v45 = vadd.f32 %v3494_v60, %v3477_v52  ;;  %v4200_v58 = vrot.slane %v4194_v42, 1  ;;  %v4221_v15 = vrot.slane %v4215_v23, 2 }
 0x34d   : > { %v8391_v32 = vmul.f32 %v8188_v8, %v4235_v14  ;;  %v4263_v27 = vrot.slane %v4257_v51, 3  ;;  %v4361_v51 = vstv %s8434_s5 }
 0x34e   : > { %4114 = vrot.lane.b32.xlu0 %v4111_v29, %s5127_s26  ;;  %v4202_v43 = vsel %vm2543_vm12, %v4200_v58, %v4201_v61 }
 0x34f   : > { %v3555_v28 = vpop.permute.xlu0 %3554 }
 0x350   : > { %4074 = vrot.lane.b32.xlu1 %v4071_v37, %s5127_s26  ;;  %v3515_v39 = vpop.permute.xlu1 %3514  ;;  %v3560_v62 = vadd.f32 %v3555_v28, %v3539_v26  ;;  %v4160_v26 = vmul.f32 %v8188_v8, %v4158_v25  ;;  %v4196_v37 = vmul.f32 %v8214_v34, %v4193_v30  ;;  %v4223_v28 = vsel %vm2578_vm13, %v4221_v15, %v4222_v38 }
 0x351   : > { %v3519_v3 = vadd.f32 %v3515_v39, %v3498_v45  ;;  %v4182_v45 = vrot.slane %v4175_v0, 1  ;;  %v4242_v39 = vrot.slane %v4236_v49, 2 }
 0x352   : > { %4135 = vrot.lane.b32.xlu0 %v4132_v44, %s5127_s26 }
 0x353   : > { %v3576_v7 = vpop.permute.xlu0 %3575  ;;  %v4183_v5 = vsel %vm2543_vm12, %v4180_v21, %v4182_v45 }
 0x354   : > { %4095 = vrot.lane.b32.xlu1 %v4092_v20, %s5127_s26  ;;  %v3536_v48 = vpop.permute.xlu1 %3535  ;;  %v3581_v46 = vadd.f32 %v3576_v7, %v3560_v62  ;;  %v4243_v62 = vrot.slane %v8391_v32, 2  ;;  %v4277_v20 = vstv %s4900_s3  ;;  %v4203_v7 = vrot.slane %v4196_v37, 1 }
 0x355   : > { %v3540_v2 = vadd.f32 %v3536_v48, %v3519_v3  ;;  %v8405_v3 = vmul.f32 %v8132_v56, %v4256_v10  ;;  %v4278_v25 = vmul.f32 %v8192_v24, %v4277_v20  ;;  %v8417_v12 = vmul.f32 %v8188_v8, %v4277_v20 }
 0x356   : > { %4149 = vrot.lane.b32.xlu0 %v4145_v1, %s5128_s15  ;;  %v4217_v1 = vmul.f32 %v8219_v35, %v4214_v57  ;;  %v4244_v48 = vsel %vm2578_vm13, %v4242_v39, %v4243_v62  ;;  %v4204_v36 = vsel %vm2543_vm12, %v4201_v61, %v4203_v7  ;;  %v4382_v7 = vstv %s8438_s0 }
 0x357   : > { %v3590_v11 = vpop.permute.xlu0 %3589  ;;  %v4264_v30 = vrot.slane %v8405_v3, 3  ;;  %v4285_v21 = vrot.slane %v8417_v12, 3 }
 0x358   : > { %4116 = vrot.lane.b32.xlu1 %v4113_v31, %s5127_s26  ;;  %v3595_v50 = vadd.f32 %v3590_v11, %v3581_v46  ;;  %v4238_v46 = vmul.f32 %v8214_v34, %v4235_v14  ;;  %v4224_v57 = vrot.slane %v4217_v1, 2  ;;  %v4259_v14 = vmul.f32 %v8219_v35, %v4256_v10 }
 0x359   : > { %v3557_v47 = vpop.permute.xlu1 %3556 }
 0x35a   : > { %v3561_v54 = vadd.f32 %v3557_v47, %v3540_v2  ;;  %4163 = vrot.lane.b32.xlu0 %v4159_v9, %s5128_s15  ;;  %v4225_v22 = vsel %vm2578_vm13, %v4222_v38, %v4224_v57  ;;  %v4340_v38 = vstv %s8421_s22 }
 0x35b   : > { %v3604_v53 = vpop.permute.xlu0 %3603  ;;  %v8452_v45 = vmul.f32 %v8132_v56, %v4340_v38 }
 0x35c   : > { %4137 = vrot.lane.b32.xlu1 %v4134_v59, %s5127_s26  ;;  %v3609_v41 = vadd.f32 %v3604_v53, %v3595_v50  ;;  %s8395_s26 = sld [smem:[#allocation5 + $0xe6]]  ;;  %v4284_v50 = vrot.slane %v4278_v25, 3  ;;  %v4265_v53 = vsel %vm2613_vm14, %v4263_v27, %v4264_v30  ;;  %v4363_v25 = vmul.f32 %v8188_v8, %v4361_v51 }
 0x35d   : > { %v3578_v19 = vpop.permute.xlu1 %3577 }
 0x35e   : > { %v3582_v63 = vadd.f32 %v3578_v19, %v3561_v54  ;;  %4184 = vrot.lane.b32.xlu0 %v4181_v55, %s5128_s15  ;;  %v4319_v19 = vstv %s8410_s12  ;;  %v4286_v55 = vsel %vm2613_vm14, %v4284_v50, %v4285_v21  ;;  %v4369_v50 = vrot.slane %v4363_v25, 5 }
 0x35f   : > { %v3625_v52 = vpop.permute.xlu0 %3624  ;;  %v8442_v15 = vmul.f32 %v8188_v8, %v4319_v19 }
 0x360   : > { %4151 = vrot.lane.b32.xlu1 %v4146_v4, %s5128_s15  ;;  %v3630_v29 = vadd.f32 %v3625_v52, %v3609_v41  ;;  %v4245_v4 = vrot.slane %v4238_v46, 2  ;;  %v4320_v52 = vmul.f32 %v8192_v24, %v4319_v19  ;;  %v4362_v46 = vmul.f32 %v8192_v24, %v4361_v51 }
 0x361   : > { %v3592_v60 = vpop.permute.xlu1 %3591  ;;  %v4327_v39 = vrot.slane %v8442_v15, 4 }
 0x362   : > { %v3596_v16 = vadd.f32 %v3592_v60, %v3582_v63  ;;  %4205 = vrot.lane.b32.xlu0 %v4202_v43, %s5128_s15  ;;  %v4298_v11 = vstv %s8395_s26  ;;  %v4246_v32 = vsel %vm2578_vm13, %v4243_v62, %v4245_v4  ;;  %v4266_v60 = vrot.slane %v4259_v14, 3 }
 0x363   : > { %v4299_v42 = vmul.f32 %v8222_v6, %v4298_v11  ;;  %v4300_v18 = vmul.f32 %v8132_v56, %v4298_v11  ;;  %v4301_v43 = vmul.f32 %v8219_v35, %v4298_v11 }
 0x364   : > { %4165 = vrot.lane.b32.xlu1 %v4160_v26, %s5128_s15  ;;  %v3646_v40 = vpop.permute.xlu0 %3645  ;;  %v4280_v26 = vmul.f32 %v8214_v34, %v4277_v20 }
 0x365   : > { %v3606_v44 = vpop.permute.xlu1 %3605  ;;  %v3651_v33 = vadd.f32 %v3646_v40, %v3630_v29  ;;  %v4305_v58 = vrot.slane %v4299_v42, 4  ;;  %v4306_v61 = vrot.slane %v4300_v18, 4  ;;  %v4308_v20 = vrot.slane %v4301_v43, 4 }
 0x366   : > { %v3610_v17 = vadd.f32 %v3606_v44, %v3596_v16  ;;  %4226 = vrot.lane.b32.xlu0 %v4223_v28, %s5128_s15  ;;  %v4341_v16 = vmul.f32 %v8222_v6, %v4340_v38  ;;  %v4326_v28 = vrot.slane %v4320_v52, 4  ;;  %v4267_v44 = vsel %vm2613_vm14, %v4264_v30, %v4266_v60 }
 0x367   : > { %v4307_v40 = vsel %vm2648_vm1, %v4305_v58, %v4306_v61  ;;  %v4309_v27 = vsel %vm2648_vm1, %v4306_v61, %v4308_v20  ;;  %v4364_v58 = vmul.f32 %v8214_v34, %v4361_v51 }
 0x368   : > { %4186 = vrot.lane.b32.xlu1 %v4183_v5, %s5128_s15  ;;  %v3667_v13 = vpop.permute.xlu0 %3666  ;;  %v4348_v5 = vrot.slane %v8452_v45, 5 }
 0x369   : > { %v3627_v2 = vpop.permute.xlu1 %3626  ;;  %v3672_v31 = vadd.f32 %v3667_v13, %v3651_v33  ;;  %v4287_v33 = vrot.slane %v4280_v26, 3 }
 0x36a   : > { %v3631_v9 = vadd.f32 %v3627_v2, %v3610_v17  ;;  %4247 = vrot.lane.b32.xlu0 %v4244_v48, %s5128_s15  ;;  %v4347_v17 = vrot.slane %v4341_v16, 5  ;;  %v4328_v48 = vsel %vm2648_vm1, %v4326_v28, %v4327_v39 }
 0x36b   : > { %v4288_v2 = vsel %vm2613_vm14, %v4285_v21, %v4287_v33  ;;  %v4384_v21 = vmul.f32 %v8132_v56, %v4382_v7 }
 0x36c   : > { %4207 = vrot.lane.b32.xlu1 %v4204_v36, %s5128_s15  ;;  %v3688_v47 = vpop.permute.xlu0 %3687  ;;  %v4349_v11 = vsel %vm662_vm9, %v4347_v17, %v4348_v5 }
 0x36d   : > { %v3693_v59 = vadd.f32 %v3688_v47, %v3672_v31  ;;  %v4322_v31 = vmul.f32 %v8214_v34, %v4319_v19  ;;  %v4368_v47 = vrot.slane %v4362_v46, 5 }
 0x36e   : > { %v3648_v54 = vpop.permute.xlu1 %3647  ;;  %4268 = vrot.lane.b32.xlu0 %v4265_v53, %s5128_s15 }
 0x36f   : > { %v3652_v23 = vadd.f32 %v3648_v54, %v3631_v9  ;;  %v4383_v9 = vmul.f32 %v8222_v6, %v4382_v7  ;;  %v4329_v18 = vrot.slane %v4322_v31, 4  ;;  %v4343_v54 = vmul.f32 %v8219_v35, %v4340_v38 }
 0x370   : > { %4228 = vrot.lane.b32.xlu1 %v4225_v22, %s5128_s15  ;;  %v3709_v41 = vpop.permute.xlu0 %3708  ;;  %v4390_v22 = vrot.slane %v4384_v21, 6 }
 0x371   : > { %v3714_v0 = vadd.f32 %v3709_v41, %v3693_v59  ;;  %v4403_v59 = vstv %s4906_s19  ;;  %v4389_v53 = vrot.slane %v4383_v9, 6  ;;  %v4330_v41 = vsel %vm2648_vm1, %v4327_v39, %v4329_v18 }
 0x372   : > { %v3669_v63 = vpop.permute.xlu1 %3668  ;;  %4289 = vrot.lane.b32.xlu0 %v4286_v55, %s5128_s15  ;;  %v4404_v14 = vmul.f32 %v8192_v24, %v4403_v59  ;;  %v4405_v56 = vmul.f32 %v8188_v8, %v4403_v59  ;;  %v4350_v55 = vrot.slane %v4343_v54, 5  ;;  %v4371_v8 = vrot.slane %v4364_v58, 5 }
 0x373   : > { %v3673_v49 = vadd.f32 %v3669_v63, %v3652_v23  ;;  %v4370_v23 = vsel %vm662_vm9, %v4368_v47, %v4369_v50  ;;  %v4406_v16 = vmul.f32 %v8214_v34, %v4403_v59 }
 0x374   : > { %4249 = vrot.lane.b32.xlu1 %v4246_v32, %s5128_s15  ;;  %v3730_v29 = vpop.permute.xlu0 %3729  ;;  %v4410_v52 = vrot.slane %v4404_v14, 6  ;;  %v4411_v15 = vrot.slane %v4405_v56, 6  ;;  %v4351_v24 = vsel %vm662_vm9, %v4348_v5, %v4350_v55 }
 0x375   : > { %v3735_v10 = vadd.f32 %v3730_v29, %v3714_v0  ;;  %v4391_v0 = vsel %vm685_vm11, %v4389_v53, %v4390_v22  ;;  %v4372_v29 = vsel %vm662_vm9, %v4369_v50, %v4371_v8 }
 0x376   : > { %v3690_v37 = vpop.permute.xlu1 %3689  ;;  %4310 = vrot.lane.b32.xlu0 %v4307_v40, %s5128_s15  ;;  %v4412_v26 = vsel %vm685_vm11, %v4410_v52, %v4411_v15 }
 0x377   : > { %v3694_v62 = vadd.f32 %v3690_v37, %v3673_v49  ;;  %v4385_v49 = vmul.f32 %v8219_v35, %v4382_v7  ;;  %v4413_v35 = vrot.slane %v4406_v16, 6 }
 0x378   : > { %4270 = vrot.lane.b32.xlu1 %v4267_v44, %s5128_s15  ;;  %v3751_v3 = vpop.permute.xlu0 %3750 }
 0x379   : > { %v3756_v13 = vadd.f32 %v3751_v3, %v3735_v10  ;;  %v4392_v43 = vrot.slane %v4385_v49, 6  ;;  %v4414_v39 = vsel %vm685_vm11, %v4411_v15, %v4413_v35 }
 0x37a   : > { %v3711_v1 = vpop.permute.xlu1 %3710  ;;  %4331 = vrot.lane.b32.xlu0 %v4328_v48, %s5128_s15 }
 0x37b   : > { %v3715_v12 = vadd.f32 %v3711_v1, %v3694_v62  ;;  %v4393_v10 = vsel %vm685_vm11, %v4390_v22, %v4392_v43 }
 0x37c   : > { %4291 = vrot.lane.b32.xlu1 %v4288_v2, %s5128_s15  ;;  %v3772_v30 = vpop.permute.xlu0 %3771 }
 0x37d   : > { %v8472_v57 = vadd.f32 %v3772_v30, %v3756_v13 }
 0x37e   : > { %v3732_v36 = vpop.permute.xlu1 %3731  ;;  %4352 = vrot.lane.b32.xlu0 %v4349_v11, %s5128_s15 }
 0x37f   : > { %v3736_v42 = vadd.f32 %v3732_v36, %v3715_v12 }
 0x380   : > { %4312 = vrot.lane.b32.xlu1 %v4309_v27, %s5128_s15  ;;  %v8478_v4 = vpop.permute.xlu0 %3792 }
 0x381   : > { %v3798_v36 = vadd.f32 %v8478_v4, %v8472_v57 }
 0x382   : > { %v3753_v6 = vpop.permute.xlu1 %3752  ;;  %4373 = vrot.lane.b32.xlu0 %v4370_v23, %s5128_s15 }
 0x383   : > { %v3757_v19 = vadd.f32 %v3753_v6, %v3736_v42 }
 0x384   : > { %4333 = vrot.lane.b32.xlu1 %v4330_v41, %s5128_s15  ;;  %v3814_v61 = vpop.permute.xlu0 %3813 }
 0x385   : > { %v3819_v50 = vadd.f32 %v3814_v61, %v3798_v36 }
 0x386   : > { %v3774_v63 = vpop.permute.xlu1 %3773  ;;  %4394 = vrot.lane.b32.xlu0 %v4391_v0, %s5128_s15 }
 0x387   : > { %v3778_v38 = vadd.f32 %v3774_v63, %v3757_v19 }
 0x388   : > { %4354 = vrot.lane.b32.xlu1 %v4351_v24, %s5128_s15  ;;  %v3835_v32 = vpop.permute.xlu0 %3834 }
 0x389   : > { %v3840_v42 = vadd.f32 %v3835_v32, %v3819_v50 }
 0x38a   : > { %v3795_v60 = vpop.permute.xlu1 %3794  ;;  %4415 = vrot.lane.b32.xlu0 %v4412_v26, %s5128_s15 }
 0x38b   : > { %v3799_v6 = vadd.f32 %v3795_v60, %v3778_v38 }
 0x38c   : > { %4375 = vrot.lane.b32.xlu1 %v4372_v29, %s5128_s15  ;;  %v3856_v45 = vpop.permute.xlu0 %3855 }
 0x38d   : > { %v3861_v54 = vadd.f32 %v3856_v45, %v3840_v42 }
 0x38e   : > { %v3816_v37 = vpop.permute.xlu1 %3815 }
 0x38f   : > { %v3820_v56 = vadd.f32 %v3816_v37, %v3799_v6 }
 0x390   : > { %4396 = vrot.lane.b32.xlu1 %v4393_v10, %s5128_s15  ;;  %v3870_v40 = vpop.permute.xlu0 %3869 }
 0x391   : > { %v3875_v53 = vadd.f32 %v3870_v40, %v3861_v54 }
 0x392   : > { %v3837_v28 = vpop.permute.xlu1 %3836 }
 0x393   : > { %v3841_v41 = vadd.f32 %v3837_v28, %v3820_v56 }
 0x394   : > { %4417 = vrot.lane.b32.xlu1 %v4414_v39, %s5128_s15  ;;  %v3884_v62 = vpop.permute.xlu0 %3883  ;;  %s4912_s15 = sshll.u32 %s8652_s25, 4 }
 0x395   : > { %v3889_v22 = vadd.f32 %v3884_v62, %v3875_v53  ;;  %s290_s23 = scalar_lea.vmem %s8646_s20, %s4912_s15 }
 0x396   : > { %v3858_v44 = vpop.permute.xlu1 %3857 }
 0x397   : > { %v3862_v0 = vadd.f32 %v3858_v44, %v3841_v41 }
 0x398   : > { %v3905_v33 = vpop.permute.xlu0 %3904 }
 0x399   : > { %v3910_v19 = vadd.f32 %v3905_v33, %v3889_v22 }
 0x39a   : > { %v3872_v51 = vpop.permute.xlu1 %3871 }
 0x39b   : > { %v3876_v4 = vadd.f32 %v3872_v51, %v3862_v0 }
 0x39c   : > { %v3926_v34 = vpop.permute.xlu0 %3925 }
 0x39d   : > { %v3931_v58 = vadd.f32 %v3926_v34, %v3910_v19 }
 0x39e   : > { %v3886_v3 = vpop.permute.xlu1 %3885 }
 0x39f   : > { %v3890_v24 = vadd.f32 %v3886_v3, %v3876_v4 }
 0x3a0   : > { %v3947_v20 = vpop.permute.xlu0 %3946 }
 0x3a1   : > { %v3952_v57 = vadd.f32 %v3947_v20, %v3931_v58 }
 0x3a2   : > { %v3907_v17 = vpop.permute.xlu1 %3906 }
 0x3a3   : > { %v3911_v49 = vadd.f32 %v3907_v17, %v3890_v24 }
 0x3a4   : > { %v3968_v5 = vpop.permute.xlu0 %3967 }
 0x3a5   : > { %v3973_v52 = vadd.f32 %v3968_v5, %v3952_v57 }
 0x3a6   : > { %v3928_v7 = vpop.permute.xlu1 %3927 }
 0x3a7   : > { %v3932_v26 = vadd.f32 %v3928_v7, %v3911_v49 }
 0x3a8   : > { %v3989_v1 = vpop.permute.xlu0 %3988 }
 0x3a9   : > { %v3994_v8 = vadd.f32 %v3989_v1, %v3973_v52 }
 0x3aa   : > { %v3949_v13 = vpop.permute.xlu1 %3948 }
 0x3ab   : > { %v3953_v43 = vadd.f32 %v3949_v13, %v3932_v26 }
 0x3ac   : > { %v4010_v48 = vpop.permute.xlu0 %4009 }
 0x3ad   : > { %v4015_v38 = vadd.f32 %v4010_v48, %v3994_v8 }
 0x3ae   : > { %v3970_v46 = vpop.permute.xlu1 %3969 }
 0x3af   : > { %v3974_v10 = vadd.f32 %v3970_v46, %v3953_v43 }
 0x3b0   : > { %v4031_v25 = vpop.permute.xlu0 %4030 }
 0x3b1   : > { %v4036_v29 = vadd.f32 %v4031_v25, %v4015_v38 }
 0x3b2   : > { %v3991_v12 = vpop.permute.xlu1 %3990 }
 0x3b3   : > { %v3995_v40 = vadd.f32 %v3991_v12, %v3974_v10 }
 0x3b4   : > { %v4052_v2 = vpop.permute.xlu0 %4051 }
 0x3b5   : > { %v4057_v45 = vadd.f32 %v4052_v2, %v4036_v29 }
 0x3b6   : > { %v4012_v31 = vpop.permute.xlu1 %4011 }
 0x3b7   : > { %v4016_v44 = vadd.f32 %v4012_v31, %v3995_v40 }
 0x3b8   : > { %v4073_v27 = vpop.permute.xlu0 %4072 }
 0x3b9   : > { %v4078_v35 = vadd.f32 %v4073_v27, %v4057_v45 }
 0x3ba   : > { %v4033_v30 = vpop.permute.xlu1 %4032 }
 0x3bb   : > { %v4037_v51 = vadd.f32 %v4033_v30, %v4016_v44 }
 0x3bc   : > { %v4094_v11 = vpop.permute.xlu0 %4093 }
 0x3bd   : > { %v4099_v39 = vadd.f32 %v4094_v11, %v4078_v35 }
 0x3be   : > { %v4054_v9 = vpop.permute.xlu1 %4053 }
 0x3bf   : > { %v4058_v17 = vadd.f32 %v4054_v9, %v4037_v51 }
 0x3c0   : > { %v4115_v47 = vpop.permute.xlu0 %4114 }
 0x3c1   : > { %v4120_v33 = vadd.f32 %v4115_v47, %v4099_v39 }
 0x3c2   : > { %v4075_v21 = vpop.permute.xlu1 %4074 }
 0x3c3   : > { %v4079_v7 = vadd.f32 %v4075_v21, %v4058_v17 }
 0x3c4   : > { %v4136_v18 = vpop.permute.xlu0 %4135 }
 0x3c5   : > { %v4141_v3 = vadd.f32 %v4136_v18, %v4120_v33 }
 0x3c6   : > { %v4096_v59 = vpop.permute.xlu1 %4095 }
 0x3c7   : > { %v4100_v25 = vadd.f32 %v4096_v59, %v4079_v7 }
 0x3c8   : > { %v4150_v23 = vpop.permute.xlu0 %4149 }
 0x3c9   : > { %v4155_v5 = vadd.f32 %v4150_v23, %v4141_v3 }
 0x3ca   : > { %v4117_v14 = vpop.permute.xlu1 %4116 }
 0x3cb   : > { %v4121_v46 = vadd.f32 %v4117_v14, %v4100_v25 }
 0x3cc   : > { %v4164_v55 = vpop.permute.xlu0 %4163 }
 0x3cd   : > { %v4169_v13 = vadd.f32 %v4164_v55, %v4155_v5 }
 0x3ce   : > { %v4138_v63 = vpop.permute.xlu1 %4137 }
 0x3cf   : > { %v4142_v11 = vadd.f32 %v4138_v63, %v4121_v46 }
 0x3d0   : > { %v4185_v61 = vpop.permute.xlu0 %4184 }
 0x3d1   : > { %v4190_v2 = vadd.f32 %v4185_v61, %v4169_v13 }
 0x3d2   : > { %v4152_v15 = vpop.permute.xlu1 %4151 }
 0x3d3   : > { %v4156_v31 = vadd.f32 %v4152_v15, %v4142_v11 }
 0x3d4   : > { %v4206_v32 = vpop.permute.xlu0 %4205 }
 0x3d5   : > { %v4211_v12 = vadd.f32 %v4206_v32, %v4190_v2 }
 0x3d6   : > { %v4166_v60 = vpop.permute.xlu1 %4165 }
 0x3d7   : > { %v4170_v18 = vadd.f32 %v4166_v60, %v4156_v31 }
 0x3d8   : > { %v4227_v16 = vpop.permute.xlu0 %4226 }
 0x3d9   : > { %v4232_v50 = vadd.f32 %v4227_v16, %v4211_v12 }
 0x3da   : > { %v4187_v37 = vpop.permute.xlu1 %4186 }
 0x3db   : > { %v4191_v9 = vadd.f32 %v4187_v37, %v4170_v18 }
 0x3dc   : > { %v4248_v28 = vpop.permute.xlu0 %4247 }
 0x3dd   : > { %v4253_v30 = vadd.f32 %v4248_v28, %v4232_v50 }
 0x3de   : > { %v4208_v62 = vpop.permute.xlu1 %4207 }
 0x3df   : > { %v4212_v23 = vadd.f32 %v4208_v62, %v4191_v9 }
 0x3e0   : > { %v4269_v34 = vpop.permute.xlu0 %4268 }
 0x3e1   : > { %v4274_v54 = vadd.f32 %v4269_v34, %v4253_v30 }
 0x3e2   : > { %v4229_v20 = vpop.permute.xlu1 %4228 }
 0x3e3   : > { %v4233_v59 = vadd.f32 %v4229_v20, %v4212_v23 }
 0x3e4   : > { %v4290_v1 = vpop.permute.xlu0 %4289 }
 0x3e5   : > { %v4295_v21 = vadd.f32 %v4290_v1, %v4274_v54 }
 0x3e6   : > { %v4250_v48 = vpop.permute.xlu1 %4249 }
 0x3e7   : > { %v4254_v41 = vadd.f32 %v4250_v48, %v4233_v59 }
 0x3e8   : > { %v4311_v27 = vpop.permute.xlu0 %4310 }
 0x3e9   : > { %v4316_v22 = vadd.f32 %v4311_v27, %v4295_v21 }
 0x3ea   : > { %v4271_v36 = vpop.permute.xlu1 %4270 }
 0x3eb   : > { %v4275_v58 = vadd.f32 %v4271_v36, %v4254_v41 }
 0x3ec   : > { %v4332_v47 = vpop.permute.xlu0 %4331 }
 0x3ed   : > { %v4337_v14 = vadd.f32 %v4332_v47, %v4316_v22 }
 0x3ee   : > { %v4292_v42 = vpop.permute.xlu1 %4291 }
 0x3ef   : > { %v4296_v4 = vadd.f32 %v4292_v42, %v4275_v58 }
 0x3f0   : > { %v4353_v53 = vpop.permute.xlu0 %4352 }
 0x3f1   : > { %v4358_v55 = vadd.f32 %v4353_v53, %v4337_v14 }
 0x3f2   : > { %v4313_v6 = vpop.permute.xlu1 %4312 }
 0x3f3   : > { %v4317_v52 = vadd.f32 %v4313_v6, %v4296_v4 }
 0x3f4   : > { %v4374_v56 = vpop.permute.xlu0 %4373 }
 0x3f5   : > { %v4379_v57 = vadd.f32 %v4374_v56, %v4358_v55 }
 0x3f6   : > { %v4334_v19 = vpop.permute.xlu1 %4333 }
 0x3f7   : > { %v4338_v49 = vadd.f32 %v4334_v19, %v4317_v52 }
 0x3f8   : > { %v4395_v63 = vpop.permute.xlu0 %4394 }
 0x3f9   : > { %v4400_v61 = vadd.f32 %v4395_v63, %v4379_v57 }
 0x3fa   : > { %v4355_v0 = vpop.permute.xlu1 %4354 }
 0x3fb   : > { %v4359_v38 = vadd.f32 %v4355_v0, %v4338_v49 }
 0x3fc   : > { %v4416_v15 = vpop.permute.xlu0 %4415 }
 0x3fd   : > { %v4421_v8 = vadd.f32 %v4416_v15, %v4400_v61 }
 0x3fe   : > { %v4376_v24 = vpop.permute.xlu1 %4375 }
 0x3ff   : > { %v4907_v32 = vmul.f32 -1.442695, %v4421_v8  ;;  %v4380_v26 = vadd.f32 %v4376_v24, %v4359_v38 }
 0x401   : > { %4991 = vpow2.f32 %v4907_v32 }
 0x402   : > { %v4397_v60 = vpop.permute.xlu1 %4396 }
 0x403   : > { %v4401_v29 = vadd.f32 %v4397_v60, %v4380_v26 }
 0x406   : > { %v4418_v43 = vpop.permute.xlu1 %4417 }
 0x407   : > { %v4422_v16 = vadd.f32 %v4418_v43, %v4401_v29 }
 0x409   : > { %v4908_v45 = vmul.f32 -1.442695, %v4422_v16 }
 0x40b   : > { %4993 = vpow2.f32 %v4908_v45 }
 0x40e   : > { %v4992_v37 = vpop.eup %4991 }
 0x40f   : > { %v4429_v10 = vadd.f32 1.0, %v4992_v37 }
 0x411   : > { %4995 = vrcp.f32 %v4429_v10 }
 0x418   : > { %v4994_v35 = vpop.eup %4993 }
 0x419   : > { %v4430_v40 = vadd.f32 1.0, %v4994_v35 }
 0x41b   : > { %4997 = vrcp.f32 %v4430_v40 }
 0x41e   : > { %v4996_v28 = vpop.eup %4995 }
 0x41f   : > { %v4435_v39 = vmul.f32 %v4996_v28, %v4421_v8 }
 0x421   : > { %v4437_v62 = vmul.f32 0.33333334, %v4435_v39 }
 0x423   : > { %4439 = vst.msk [vmem:[%s290_s23] sm:$0xff] %vm299_vm0, %v4437_v62 }
 0x428   : > { %v4998_v44 = vpop.eup %4997 }
 0x429   : > { %v4436_v33 = vmul.f32 %v4998_v44, %v4422_v16 }
 0x42b   : > { %v4438_v51 = vmul.f32 0.33333334, %v4436_v33 }
 0x42d   : > { %4440 = vst.msk [vmem:[%s290_s23 + $0x8] sm:$0xff] %vm299_vm0, %v4438_v51 }
 0x42e PF: > { %s8647_s21 = sld [smem:[#allocation17_spill]] }
 0x42f   : > { %s8648_s18 = sld [smem:[#allocation14_spill]] }
 0x430   : > { %s8649_s19 = sld [smem:[#allocation15_spill]] }
 0x431   : > { %s8650_s20 = sld [smem:[#allocation18_spill]] }
 0x434   : > { %p18_p3 = scmp.ge.s32.totalorder %s8647_s21, 4  }
 0x436   :  { %20 = sbr.rel (!%p18_p3) target bundleno = 12 (0xc), region = 109 }
 0x43b   :  { %4490 = vsyncpa [#allocation6], 1 }
 0x43c   :  { %4492 = vsyncpa [#allocation6 + $0x1], 1 }
 0x43d   :  { %4493 = vsyncpa [#allocation7], 1 }
 0x43e   :  { %4495 = vsyncpa [#allocation7 + $0x1], 1 }
 0x43f   :  { %4496 = vsyncpa [#allocation8], 1 }
 0x440   :  { %4498 = vsyncpa [#allocation8 + $0x1], 1 }

</bundles_post_ra>
